<compile_context>
chip_gen: v6e
topology: v6e:2x2x1
jax: 0.10.0
libtpu: 0.0.40
codegen_flags: <defaults>
</compile_context>

<pallas_src>
import functools

import jax
import jax.numpy as jnp
from jax.experimental import pallas as pl
from jax.experimental.pallas import tpu as pltpu

EMBED_DIM = 64
HIDDEN_DIM = 128
LN_EPS = 1e-5


def _round_up(x, m):
    return (x + m - 1) // m * m


def _token_seq_kernel(
    learned_ref, feats_ref,
    wse1_ref, bse1_ref, wse2_ref, bse2_ref,
    wca_ref, wcb_ref, bc_ref,
    lng_ref, lnb_ref,
    wih0_ref, whh0_ref, b0_ref,
    wih1_ref, whh1_ref, b1_ref,
    wout_ref, bout_ref, mask_ref,
    out_ref,
    gx_sc, y0_sc, y1_sc, h_sc, c_sc,
    *, seq_len, batch_tile,
):
    S = seq_len
    Bt = batch_tile
    H = HIDDEN_DIM

    learned = learned_ref[0]            # (S*Bt, 64)  pre-gathered embedding rows
    feats = feats_ref[0]                # (S*Bt, 4)

    # --- TokenEmbedding.structure_encoder: Linear(4,32) -> ReLU -> Linear(32,64) ---
    s1 = jnp.maximum(
        jnp.dot(feats, wse1_ref[...], preferred_element_type=jnp.float32) + bse1_ref[...], 0.0)
    structural = jnp.dot(s1, wse2_ref[...], preferred_element_type=jnp.float32) + bse2_ref[...]

    # --- combiner Linear(128,64) on concat([learned, structural]) as split matmul ---
    pre = (jnp.dot(learned, wca_ref[...], preferred_element_type=jnp.float32)
           + jnp.dot(structural, wcb_ref[...], preferred_element_type=jnp.float32)
           + bc_ref[...])
    # LayerNorm(64)
    mu = jnp.mean(pre, axis=-1, keepdims=True)
    var = jnp.mean((pre - mu) ** 2, axis=-1, keepdims=True)
    emb = lng_ref[...] * (pre - mu) * jax.lax.rsqrt(var + LN_EPS) + lnb_ref[...]   # (S*Bt, 64)

    # --- 2-layer LSTM (batch_first, eval mode: dropout is identity) ---
    def lstm_layer(x, wih_ref, whh_ref, bias_ref, y_ref):
        # hoisted input-to-hidden projection: one well-shaped MXU matmul for all timesteps
        gx_sc[...] = (jnp.dot(x, wih_ref[...], preferred_element_type=jnp.float32)
                      + bias_ref[...])                       # (S*Bt, 4H)
        h_sc[...] = jnp.zeros_like(h_sc)                     # (Bt, H)
        c_sc[...] = jnp.zeros_like(c_sc)

        def body(t, carry):
            row = pl.multiple_of(t * Bt, Bt)
            gates = (gx_sc[pl.ds(row, Bt), :]
                     + jnp.dot(h_sc[...], whh_ref[...],
                               preferred_element_type=jnp.float32))      # (Bt, 4H)
            i = jax.nn.sigmoid(gates[:, 0:H])
            f = jax.nn.sigmoid(gates[:, H:2 * H])
            g = jnp.tanh(gates[:, 2 * H:3 * H])
            o = jax.nn.sigmoid(gates[:, 3 * H:4 * H])
            c = f * c_sc[...] + i * g
            h = o * jnp.tanh(c)
            c_sc[...] = c
            h_sc[...] = h
            y_ref[pl.ds(row, Bt), :] = h                     # full (Bt,128) tile store
            return carry

        jax.lax.fori_loop(0, S, body, 0, unroll=True)

    lstm_layer(emb, wih0_ref, whh0_ref, b0_ref, y0_sc)
    lstm_layer(y0_sc[...], wih1_ref, whh1_ref, b1_ref, y1_sc)

    # --- output projection + phi_mask (lane-dense, V padded to multiple of 128) ---
    logits = (jnp.dot(y1_sc[...], wout_ref[...], preferred_element_type=jnp.float32)
              + bout_ref[...])
    out_ref[0] = logits * mask_ref[...]


def token_sequence_model(token_ids, token_features, params):
    B, S = token_ids.shape
    V = params["emb"].shape[0]
    E = EMBED_DIM
    H = HIDDEN_DIM

    Bt = min(128, _round_up(B, 8))          # batch tile per grid step (>= 8 sublanes)
    Bp = _round_up(B, Bt)
    nb = Bp // Bt
    Vp = _round_up(V, 128)                  # lane-dense output vocab
    SB = S * Bt

    # Embedding lookup as an XLA gather in the wrapper (exact; replaces the one-hot matmul).
    learned = jnp.take(params["emb"], token_ids, axis=0).astype(jnp.float32)   # (B, S, E)
    feats = token_features.astype(jnp.float32)                                 # (B, S, 4)

    def prep(x):
        # (B, S, F) -> pad batch -> (nb, S*Bt, F), time-major within each tile
        F = x.shape[-1]
        x = jnp.pad(x, ((0, Bp - B), (0, 0), (0, 0)))
        x = x.reshape(nb, Bt, S, F)
        x = jnp.transpose(x, (0, 2, 1, 3))
        return x.reshape(nb, SB, F)

    learned_t = prep(learned)
    feats_t = prep(feats)

    # Pad the vocab dimension of the output head so stores are unmasked full lanes.
    w_out = jnp.pad(params["w_out"], ((0, 0), (0, Vp - V)))
    b_out = jnp.pad(params["b_out"], ((0, 0), (0, Vp - V)))
    phi_mask = jnp.pad(params["phi_mask"], ((0, 0), (0, Vp - V)), constant_values=1.0)

    weights = [params["w_se1"], params["b_se1"], params["w_se2"], params["b_se2"],
               params["wc_a"], params["wc_b"], params["b_comb"],
               params["ln_g"], params["ln_b"],
               params["w_ih0"], params["w_hh0"], params["b0"],
               params["w_ih1"], params["w_hh1"], params["b1"],
               w_out, b_out, phi_mask]

    def full_spec(a):
        nd = a.ndim
        return pl.BlockSpec(a.shape, lambda b, _nd=nd: (0,) * _nd)

    in_specs = ([pl.BlockSpec((1, SB, E), lambda b: (b, 0, 0)),
                 pl.BlockSpec((1, SB, 4), lambda b: (b, 0, 0))]
                + [full_spec(w) for w in weights])

    scratch_shapes = [
        pltpu.VMEM((SB, 4 * H), jnp.float32),   # precomputed x @ W_ih + b (reused per layer)
        pltpu.VMEM((SB, H), jnp.float32),       # layer-0 hidden states, all timesteps
        pltpu.VMEM((SB, H), jnp.float32),       # layer-1 hidden states, all timesteps
        pltpu.VMEM((Bt, H), jnp.float32),       # h state
        pltpu.VMEM((Bt, H), jnp.float32),       # c state
    ]

    # Explicit VMEM budget: double-buffered I/O blocks + resident weights + scratch, 2x headroom.
    io_bytes = 2 * 4 * (SB * E + SB * 4 + SB * Vp)
    w_bytes = 2 * sum(int(w.size) * w.dtype.itemsize for w in weights)
    sc_bytes = 4 * (SB * 4 * H + 2 * SB * H + 2 * Bt * H)
    vmem_limit = int(min(max(2 * (io_bytes + w_bytes + sc_bytes), 16 * 2**20), 64 * 2**20))

    grid_spec = pltpu.PrefetchScalarGridSpec(
        num_scalar_prefetch=0,
        grid=(nb,),
        in_specs=in_specs,
        out_specs=pl.BlockSpec((1, SB, Vp), lambda b: (b, 0, 0)),
        scratch_shapes=scratch_shapes,
    )

    out = pl.pallas_call(
        functools.partial(_token_seq_kernel, seq_len=S, batch_tile=Bt),
        out_shape=jax.ShapeDtypeStruct((nb, SB, Vp), jnp.float32),
        grid_spec=grid_spec,
        compiler_params=pltpu.CompilerParams(
            dimension_semantics=("parallel",),
            vmem_limit_bytes=vmem_limit,
        ),
    )(learned_t, feats_t, *weights)

    # (nb, S*Bt, Vp) -> (B, S, V)
    out = out.reshape(nb, S, Bt, Vp)
    out = jnp.transpose(out, (0, 2, 1, 3)).reshape(Bp, S, Vp)
    return out[:B, :, :V]


def init_params(key, vocab_size):
    V, E, H = vocab_size, EMBED_DIM, HIDDEN_DIM
    ks = jax.random.split(key, 20)

    def w(k, shape, fan_in):
        return jax.random.normal(k, shape, jnp.float32) / jnp.sqrt(jnp.float32(fan_in))

    return {
        "emb":     w(ks[0], (V, E), E),
        "w_se1":   w(ks[1], (4, 32), 4),
        "b_se1":   0.01 * jax.random.normal(ks[2], (1, 32), jnp.float32),
        "w_se2":   w(ks[3], (32, E), 32),
        "b_se2":   0.01 * jax.random.normal(ks[4], (1, E), jnp.float32),
        "wc_a":    w(ks[5], (E, E), 2 * E),     # combiner weight, columns for `learned`
        "wc_b":    w(ks[6], (E, E), 2 * E),     # combiner weight, columns for `structural`
        "b_comb":  0.01 * jax.random.normal(ks[7], (1, E), jnp.float32),
        "ln_g":    jnp.ones((1, E), jnp.float32),
        "ln_b":    jnp.zeros((1, E), jnp.float32),
        "w_ih0":   w(ks[8], (E, 4 * H), E),
        "w_hh0":   w(ks[9], (H, 4 * H), H),
        "b0":      0.01 * jax.random.normal(ks[10], (1, 4 * H), jnp.float32),
        "w_ih1":   w(ks[11], (H, 4 * H), H),
        "w_hh1":   w(ks[12], (H, 4 * H), H),
        "b1":      0.01 * jax.random.normal(ks[13], (1, 4 * H), jnp.float32),
        "w_out":   w(ks[14], (H, V), H),
        "b_out":   0.01 * jax.random.normal(ks[15], (1, V), jnp.float32),
        "phi_mask": jnp.ones((1, V), jnp.float32),   # requires_grad=False buffer of ones
    }


def reference(token_ids, feats, p):
    """Pure-JAX reference for correctness checking."""
    learned = p["emb"][token_ids]                                        # (B,S,64)
    s1 = jax.nn.relu(feats @ p["w_se1"] + p["b_se1"])
    structural = s1 @ p["w_se2"] + p["b_se2"]
    pre = learned @ p["wc_a"] + structural @ p["wc_b"] + p["b_comb"]
    mu = pre.mean(-1, keepdims=True)
    var = ((pre - mu) ** 2).mean(-1, keepdims=True)
    emb = p["ln_g"] * (pre - mu) / jnp.sqrt(var + LN_EPS) + p["ln_b"]

    def run_layer(x, wih, whh, b):
        B = x.shape[0]
        H = whh.shape[0]

        def step(carry, x_t):
            h, c = carry
            gates = x_t @ wih + h @ whh + b
            i, f, g, o = jnp.split(gates, 4, axis=-1)
            i, f, g, o = jax.nn.sigmoid(i), jax.nn.sigmoid(f), jnp.tanh(g), jax.nn.sigmoid(o)
            c = f * c + i * g
            h = o * jnp.tanh(c)
            return (h, c), h

        init = (jnp.zeros((B, H), jnp.float32), jnp.zeros((B, H), jnp.float32))
        _, ys = jax.lax.scan(step, init, jnp.swapaxes(x, 0, 1))
        return jnp.swapaxes(ys, 0, 1)

    h1 = run_layer(emb, p["w_ih0"], p["w_hh0"], p["b0"])
    h2 = run_layer(h1, p["w_ih1"], p["w_hh1"], p["b1"])
    logits = h2 @ p["w_out"] + p["b_out"]
    return logits * p["phi_mask"]


if __name__ == "__main__":
    B, S, V = 2, 8, 16
    key = jax.random.PRNGKey(0)
    k_ids, k_feat, k_param = jax.random.split(key, 3)

    token_ids = jax.random.randint(k_ids, (B, S), 0, V, dtype=jnp.int32)
    token_features = jax.random.normal(k_feat, (B, S, 4), jnp.float32)
    params = init_params(k_param, V)

    logits = token_sequence_model(token_ids, token_features, params)
    logits = jax.block_until_ready(logits)

    ref = reference(token_ids, token_features, params)
    assert logits.shape == (B, S, V)
    assert bool(jnp.all(jnp.isfinite(logits)))
    assert bool(jnp.allclose(logits, ref, atol=1e-2, rtol=1e-2))

    print("KERNEL_OK")
</pallas_src>

<mosaic_0001>
module attributes {stable_mosaic.version = 11 : i64} {
  func.func @_token_seq_kernel(%arg0: i32, %arg1: memref<1x64x64xf32, #tpu.memory_space<vmem>>, %arg2: memref<1x64x4xf32, #tpu.memory_space<vmem>>, %arg3: memref<4x32xf32, #tpu.memory_space<vmem>>, %arg4: memref<1x32xf32, #tpu.memory_space<vmem>>, %arg5: memref<32x64xf32, #tpu.memory_space<vmem>>, %arg6: memref<1x64xf32, #tpu.memory_space<vmem>>, %arg7: memref<64x64xf32, #tpu.memory_space<vmem>>, %arg8: memref<64x64xf32, #tpu.memory_space<vmem>>, %arg9: memref<1x64xf32, #tpu.memory_space<vmem>>, %arg10: memref<1x64xf32, #tpu.memory_space<vmem>>, %arg11: memref<1x64xf32, #tpu.memory_space<vmem>>, %arg12: memref<64x512xf32, #tpu.memory_space<vmem>>, %arg13: memref<128x512xf32, #tpu.memory_space<vmem>>, %arg14: memref<1x512xf32, #tpu.memory_space<vmem>>, %arg15: memref<128x512xf32, #tpu.memory_space<vmem>>, %arg16: memref<128x512xf32, #tpu.memory_space<vmem>>, %arg17: memref<1x512xf32, #tpu.memory_space<vmem>>, %arg18: memref<128x128xf32, #tpu.memory_space<vmem>>, %arg19: memref<1x128xf32, #tpu.memory_space<vmem>>, %arg20: memref<1x128xf32, #tpu.memory_space<vmem>>, %arg21: memref<1x64x128xf32, #tpu.memory_space<vmem>>, %arg22: memref<64x512xf32, #tpu.memory_space<vmem>>, %arg23: memref<64x128xf32, #tpu.memory_space<vmem>>, %arg24: memref<64x128xf32, #tpu.memory_space<vmem>>, %arg25: memref<8x128xf32, #tpu.memory_space<vmem>>, %arg26: memref<8x128xf32, #tpu.memory_space<vmem>>) attributes {dimension_semantics = [#tpu.dimension_semantics<parallel>], iteration_bounds = array<i64: 1>, scalar_prefetch = 0 : i64, scratch_operands = 5 : i64, tpu.core_type = #tpu.core_type<tc>, window_params = [{transform_indices = @transform_0, window_bounds = array<i64: 1, 64, 64>}, {transform_indices = @transform_1, window_bounds = array<i64: 1, 64, 4>}, {pipeline_mode = #tpu.pipeline_mode<synchronous>, transform_indices = @transform_2, window_bounds = array<i64: 4, 32>}, {pipeline_mode = #tpu.pipeline_mode<synchronous>, transform_indices = @transform_3, window_bounds = array<i64: 1, 32>}, {pipeline_mode = #tpu.pipeline_mode<synchronous>, transform_indices = @transform_4, window_bounds = array<i64: 32, 64>}, {pipeline_mode = #tpu.pipeline_mode<synchronous>, transform_indices = @transform_5, window_bounds = array<i64: 1, 64>}, {pipeline_mode = #tpu.pipeline_mode<synchronous>, transform_indices = @transform_6, window_bounds = array<i64: 64, 64>}, {pipeline_mode = #tpu.pipeline_mode<synchronous>, transform_indices = @transform_7, window_bounds = array<i64: 64, 64>}, {pipeline_mode = #tpu.pipeline_mode<synchronous>, transform_indices = @transform_8, window_bounds = array<i64: 1, 64>}, {pipeline_mode = #tpu.pipeline_mode<synchronous>, transform_indices = @transform_9, window_bounds = array<i64: 1, 64>}, {pipeline_mode = #tpu.pipeline_mode<synchronous>, transform_indices = @transform_10, window_bounds = array<i64: 1, 64>}, {pipeline_mode = #tpu.pipeline_mode<synchronous>, transform_indices = @transform_11, window_bounds = array<i64: 64, 512>}, {pipeline_mode = #tpu.pipeline_mode<synchronous>, transform_indices = @transform_12, window_bounds = array<i64: 128, 512>}, {pipeline_mode = #tpu.pipeline_mode<synchronous>, transform_indices = @transform_13, window_bounds = array<i64: 1, 512>}, {pipeline_mode = #tpu.pipeline_mode<synchronous>, transform_indices = @transform_14, window_bounds = array<i64: 128, 512>}, {pipeline_mode = #tpu.pipeline_mode<synchronous>, transform_indices = @transform_15, window_bounds = array<i64: 128, 512>}, {pipeline_mode = #tpu.pipeline_mode<synchronous>, transform_indices = @transform_16, window_bounds = array<i64: 1, 512>}, {pipeline_mode = #tpu.pipeline_mode<synchronous>, transform_indices = @transform_17, window_bounds = array<i64: 128, 128>}, {pipeline_mode = #tpu.pipeline_mode<synchronous>, transform_indices = @transform_18, window_bounds = array<i64: 1, 128>}, {pipeline_mode = #tpu.pipeline_mode<synchronous>, transform_indices = @transform_19, window_bounds = array<i64: 1, 128>}, {transform_indices = @transform_20, window_bounds = array<i64: 1, 64, 128>}]} {
    %c0 = arith.constant 0 : index
    %c0_0 = arith.constant 0 : index
    %c0_1 = arith.constant 0 : index
    %0 = vector.load %arg1[%c0, %c0_0, %c0_1] : memref<1x64x64xf32, #tpu.memory_space<vmem>>, vector<1x64x64xf32>
    %1 = vector.shape_cast %0 : vector<1x64x64xf32> to vector<64x64xf32>
    %c0_2 = arith.constant 0 : index
    %c0_3 = arith.constant 0 : index
    %c0_4 = arith.constant 0 : index
    %2 = vector.load %arg2[%c0_2, %c0_3, %c0_4] : memref<1x64x4xf32, #tpu.memory_space<vmem>>, vector<1x64x4xf32>
    %3 = vector.shape_cast %2 : vector<1x64x4xf32> to vector<64x4xf32>
    %c0_5 = arith.constant 0 : index
    %c0_6 = arith.constant 0 : index
    %4 = vector.load %arg3[%c0_5, %c0_6] : memref<4x32xf32, #tpu.memory_space<vmem>>, vector<4x32xf32>
    %cst = arith.constant dense<0.000000e+00> : vector<64x32xf32>
    %5 = tpu.matmul %3, %4, %cst {dimension_numbers = #tpu.dot_dimension_numbers<[1], [0], [0], [1], [0, 0, 1, 1], [], []>} : vector<64x4xf32>, vector<4x32xf32>, vector<64x32xf32> -> vector<64x32xf32>
    %c0_7 = arith.constant 0 : index
    %c0_8 = arith.constant 0 : index
    %6 = vector.load %arg4[%c0_7, %c0_8] : memref<1x32xf32, #tpu.memory_space<vmem>>, vector<1x32xf32>
    %7 = vector.broadcast %6 : vector<1x32xf32> to vector<64x32xf32>
    %8 = arith.addf %5, %7 : vector<64x32xf32>
    %cst_9 = arith.constant 0.000000e+00 : f32
    %9 = vector.broadcast %cst_9 : f32 to vector<64x32xf32>
    %10 = arith.maximumf %8, %9 : vector<64x32xf32>
    %c0_10 = arith.constant 0 : index
    %c0_11 = arith.constant 0 : index
    %11 = vector.load %arg5[%c0_10, %c0_11] : memref<32x64xf32, #tpu.memory_space<vmem>>, vector<32x64xf32>
    %cst_12 = arith.constant dense<0.000000e+00> : vector<64x64xf32>
    %12 = tpu.matmul %10, %11, %cst_12 {dimension_numbers = #tpu.dot_dimension_numbers<[1], [0], [0], [1], [0, 0, 1, 1], [], []>} : vector<64x32xf32>, vector<32x64xf32>, vector<64x64xf32> -> vector<64x64xf32>
    %c0_13 = arith.constant 0 : index
    %c0_14 = arith.constant 0 : index
    %13 = vector.load %arg6[%c0_13, %c0_14] : memref<1x64xf32, #tpu.memory_space<vmem>>, vector<1x64xf32>
    %14 = vector.broadcast %13 : vector<1x64xf32> to vector<64x64xf32>
    %15 = arith.addf %12, %14 : vector<64x64xf32>
    %c0_15 = arith.constant 0 : index
    %c0_16 = arith.constant 0 : index
    %16 = vector.load %arg7[%c0_15, %c0_16] : memref<64x64xf32, #tpu.memory_space<vmem>>, vector<64x64xf32>
    %cst_17 = arith.constant dense<0.000000e+00> : vector<64x64xf32>
    %17 = tpu.matmul %1, %16, %cst_17 {dimension_numbers = #tpu.dot_dimension_numbers<[1], [0], [0], [1], [0, 0, 1, 1], [], []>} : vector<64x64xf32>, vector<64x64xf32>, vector<64x64xf32> -> vector<64x64xf32>
    %c0_18 = arith.constant 0 : index
    %c0_19 = arith.constant 0 : index
    %18 = vector.load %arg8[%c0_18, %c0_19] : memref<64x64xf32, #tpu.memory_space<vmem>>, vector<64x64xf32>
    %cst_20 = arith.constant dense<0.000000e+00> : vector<64x64xf32>
    %19 = tpu.matmul %15, %18, %cst_20 {dimension_numbers = #tpu.dot_dimension_numbers<[1], [0], [0], [1], [0, 0, 1, 1], [], []>} : vector<64x64xf32>, vector<64x64xf32>, vector<64x64xf32> -> vector<64x64xf32>
    %20 = arith.addf %17, %19 : vector<64x64xf32>
    %c0_21 = arith.constant 0 : index
    %c0_22 = arith.constant 0 : index
    %21 = vector.load %arg9[%c0_21, %c0_22] : memref<1x64xf32, #tpu.memory_space<vmem>>, vector<1x64xf32>
    %22 = vector.broadcast %21 : vector<1x64xf32> to vector<64x64xf32>
    %23 = arith.addf %20, %22 : vector<64x64xf32>
    %cst_23 = arith.constant dense<0.000000e+00> : vector<64xf32>
    %24 = vector.multi_reduction <add>, %23, %cst_23 [1] : vector<64x64xf32> to vector<64xf32>
    %25 = vector.shape_cast %24 : vector<64xf32> to vector<64x1xf32>
    %cst_24 = arith.constant 6.400000e+01 : f32
    %26 = vector.broadcast %cst_24 : f32 to vector<64x1xf32>
    %27 = arith.divf %25, %26 : vector<64x1xf32>
    %28 = vector.broadcast %27 : vector<64x1xf32> to vector<64x64xf32>
    %29 = arith.subf %23, %28 : vector<64x64xf32>
    %30 = arith.mulf %29, %29 : vector<64x64xf32>
    %cst_25 = arith.constant dense<0.000000e+00> : vector<64xf32>
    %31 = vector.multi_reduction <add>, %30, %cst_25 [1] : vector<64x64xf32> to vector<64xf32>
    %32 = vector.shape_cast %31 : vector<64xf32> to vector<64x1xf32>
    %cst_26 = arith.constant 6.400000e+01 : f32
    %33 = vector.broadcast %cst_26 : f32 to vector<64x1xf32>
    %34 = arith.divf %32, %33 : vector<64x1xf32>
    %c0_27 = arith.constant 0 : index
    %c0_28 = arith.constant 0 : index
    %35 = vector.load %arg10[%c0_27, %c0_28] : memref<1x64xf32, #tpu.memory_space<vmem>>, vector<1x64xf32>
    %36 = vector.broadcast %27 : vector<64x1xf32> to vector<64x64xf32>
    %37 = arith.subf %23, %36 : vector<64x64xf32>
    %38 = vector.broadcast %35 : vector<1x64xf32> to vector<64x64xf32>
    %39 = arith.mulf %38, %37 : vector<64x64xf32>
    %cst_29 = arith.constant 9.99999974E-6 : f32
    %40 = vector.broadcast %cst_29 : f32 to vector<64x1xf32>
    %41 = arith.addf %34, %40 : vector<64x1xf32>
    %42 = math.rsqrt %41 : vector<64x1xf32>
    %43 = vector.broadcast %42 : vector<64x1xf32> to vector<64x64xf32>
    %44 = arith.mulf %39, %43 : vector<64x64xf32>
    %c0_30 = arith.constant 0 : index
    %c0_31 = arith.constant 0 : index
    %45 = vector.load %arg11[%c0_30, %c0_31] : memref<1x64xf32, #tpu.memory_space<vmem>>, vector<1x64xf32>
    %46 = vector.broadcast %45 : vector<1x64xf32> to vector<64x64xf32>
    %47 = arith.addf %44, %46 : vector<64x64xf32>
    %c0_32 = arith.constant 0 : index
    %c0_33 = arith.constant 0 : index
    %48 = vector.load %arg12[%c0_32, %c0_33] : memref<64x512xf32, #tpu.memory_space<vmem>>, vector<64x512xf32>
    %cst_34 = arith.constant dense<0.000000e+00> : vector<64x512xf32>
    %49 = tpu.matmul %47, %48, %cst_34 {dimension_numbers = #tpu.dot_dimension_numbers<[1], [0], [0], [1], [0, 0, 1, 1], [], []>} : vector<64x64xf32>, vector<64x512xf32>, vector<64x512xf32> -> vector<64x512xf32>
    %c0_35 = arith.constant 0 : index
    %c0_36 = arith.constant 0 : index
    %50 = vector.load %arg14[%c0_35, %c0_36] : memref<1x512xf32, #tpu.memory_space<vmem>>, vector<1x512xf32>
    %51 = vector.broadcast %50 : vector<1x512xf32> to vector<64x512xf32>
    %52 = arith.addf %49, %51 : vector<64x512xf32>
    %c0_37 = arith.constant 0 : index
    %c0_38 = arith.constant 0 : index
    %53 = vector.load %arg22[%c0_37, %c0_38] : memref<64x512xf32, #tpu.memory_space<vmem>>, vector<64x512xf32>
    tpu.vector_store %arg22[%c0_37, %c0_38], %52 {strides = array<i32>} : memref<64x512xf32, #tpu.memory_space<vmem>>, vector<64x512xf32>,
    %cst_39 = arith.constant 0.000000e+00 : f32
    %54 = vector.broadcast %cst_39 : f32 to vector<8x128xf32>
    %c0_40 = arith.constant 0 : index
    %c0_41 = arith.constant 0 : index
    %55 = vector.load %arg25[%c0_40, %c0_41] : memref<8x128xf32, #tpu.memory_space<vmem>>, vector<8x128xf32>
    tpu.vector_store %arg25[%c0_40, %c0_41], %54 {strides = array<i32>} : memref<8x128xf32, #tpu.memory_space<vmem>>, vector<8x128xf32>,
    %cst_42 = arith.constant 0.000000e+00 : f32
    %56 = vector.broadcast %cst_42 : f32 to vector<8x128xf32>
    %c0_43 = arith.constant 0 : index
    %c0_44 = arith.constant 0 : index
    %57 = vector.load %arg26[%c0_43, %c0_44] : memref<8x128xf32, #tpu.memory_space<vmem>>, vector<8x128xf32>
    tpu.vector_store %arg26[%c0_43, %c0_44], %56 {strides = array<i32>} : memref<8x128xf32, #tpu.memory_space<vmem>>, vector<8x128xf32>,
    %c0_i32 = arith.constant 0 : i32
    %c8_i32 = arith.constant 8 : i32
    %58 = arith.muli %c0_i32, %c8_i32 : i32
    %59 = tpu.assume_multiple %58, 8 : i32
    %60 = arith.index_cast %59 : i32 to index
    %c0_45 = arith.constant 0 : index
    %61 = vector.load %arg22[%60, %c0_45] : memref<64x512xf32, #tpu.memory_space<vmem>>, vector<8x512xf32>
    %c0_46 = arith.constant 0 : index
    %c0_47 = arith.constant 0 : index
    %62 = vector.load %arg25[%c0_46, %c0_47] : memref<8x128xf32, #tpu.memory_space<vmem>>, vector<8x128xf32>
    %c0_48 = arith.constant 0 : index
    %c0_49 = arith.constant 0 : index
    %63 = vector.load %arg13[%c0_48, %c0_49] : memref<128x512xf32, #tpu.memory_space<vmem>>, vector<128x512xf32>
    %cst_50 = arith.constant dense<0.000000e+00> : vector<8x512xf32>
    %64 = tpu.matmul %62, %63, %cst_50 {dimension_numbers = #tpu.dot_dimension_numbers<[1], [0], [0], [1], [0, 0, 1, 1], [], []>} : vector<8x128xf32>, vector<128x512xf32>, vector<8x512xf32> -> vector<8x512xf32>
    %65 = arith.addf %61, %64 : vector<8x512xf32>
    %66 = vector.extract_strided_slice %65 {offsets = [0, 0], sizes = [8, 128], strides = [1, 1]} : vector<8x512xf32> to vector<8x128xf32>
    %67 = arith.negf %66 : vector<8x128xf32>
    %68 = math.exp %67 : vector<8x128xf32>
    %cst_51 = arith.constant 1.000000e+00 : f32
    %69 = vector.broadcast %cst_51 : f32 to vector<8x128xf32>
    %70 = arith.addf %69, %68 : vector<8x128xf32>
    %71 = arith.divf %69, %70 : vector<8x128xf32>
    %72 = vector.extract_strided_slice %65 {offsets = [0, 128], sizes = [8, 128], strides = [1, 1]} : vector<8x512xf32> to vector<8x128xf32>
    %73 = arith.negf %72 : vector<8x128xf32>
    %74 = math.exp %73 : vector<8x128xf32>
    %cst_52 = arith.constant 1.000000e+00 : f32
    %75 = vector.broadcast %cst_52 : f32 to vector<8x128xf32>
    %76 = arith.addf %75, %74 : vector<8x128xf32>
    %77 = arith.divf %75, %76 : vector<8x128xf32>
    %78 = vector.extract_strided_slice %65 {offsets = [0, 256], sizes = [8, 128], strides = [1, 1]} : vector<8x512xf32> to vector<8x128xf32>
    %79 = math.tanh %78 : vector<8x128xf32>
    %80 = vector.extract_strided_slice %65 {offsets = [0, 384], sizes = [8, 128], strides = [1, 1]} : vector<8x512xf32> to vector<8x128xf32>
    %81 = arith.negf %80 : vector<8x128xf32>
    %82 = math.exp %81 : vector<8x128xf32>
    %cst_53 = arith.constant 1.000000e+00 : f32
    %83 = vector.broadcast %cst_53 : f32 to vector<8x128xf32>
    %84 = arith.addf %83, %82 : vector<8x128xf32>
    %85 = arith.divf %83, %84 : vector<8x128xf32>
    %c0_54 = arith.constant 0 : index
    %c0_55 = arith.constant 0 : index
    %86 = vector.load %arg26[%c0_54, %c0_55] : memref<8x128xf32, #tpu.memory_space<vmem>>, vector<8x128xf32>
    %87 = arith.mulf %77, %86 : vector<8x128xf32>
    %88 = arith.mulf %71, %79 : vector<8x128xf32>
    %89 = arith.addf %87, %88 : vector<8x128xf32>
    %90 = math.tanh %89 : vector<8x128xf32>
    %91 = arith.mulf %85, %90 : vector<8x128xf32>
    %c0_56 = arith.constant 0 : index
    %c0_57 = arith.constant 0 : index
    %92 = vector.load %arg26[%c0_56, %c0_57] : memref<8x128xf32, #tpu.memory_space<vmem>>, vector<8x128xf32>
    tpu.vector_store %arg26[%c0_56, %c0_57], %89 {strides = array<i32>} : memref<8x128xf32, #tpu.memory_space<vmem>>, vector<8x128xf32>,
    %c0_58 = arith.constant 0 : index
    %c0_59 = arith.constant 0 : index
    %93 = vector.load %arg25[%c0_58, %c0_59] : memref<8x128xf32, #tpu.memory_space<vmem>>, vector<8x128xf32>
    tpu.vector_store %arg25[%c0_58, %c0_59], %91 {strides = array<i32>} : memref<8x128xf32, #tpu.memory_space<vmem>>, vector<8x128xf32>,
    %94 = arith.index_cast %59 : i32 to index
    %c0_60 = arith.constant 0 : index
    %95 = vector.load %arg23[%94, %c0_60] : memref<64x128xf32, #tpu.memory_space<vmem>>, vector<8x128xf32>
    tpu.vector_store %arg23[%94, %c0_60], %91 {strides = array<i32>} : memref<64x128xf32, #tpu.memory_space<vmem>>, vector<8x128xf32>,
    %c1_i32 = arith.constant 1 : i32
    %c8_i32_61 = arith.constant 8 : i32
    %96 = arith.muli %c1_i32, %c8_i32_61 : i32
    %97 = tpu.assume_multiple %96, 8 : i32
    %98 = arith.index_cast %97 : i32 to index
    %c0_62 = arith.constant 0 : index
    %99 = vector.load %arg22[%98, %c0_62] : memref<64x512xf32, #tpu.memory_space<vmem>>, vector<8x512xf32>
    %c0_63 = arith.constant 0 : index
    %c0_64 = arith.constant 0 : index
    %100 = vector.load %arg25[%c0_63, %c0_64] : memref<8x128xf32, #tpu.memory_space<vmem>>, vector<8x128xf32>
    %c0_65 = arith.constant 0 : index
    %c0_66 = arith.constant 0 : index
    %101 = vector.load %arg13[%c0_65, %c0_66] : memref<128x512xf32, #tpu.memory_space<vmem>>, vector<128x512xf32>
    %cst_67 = arith.constant dense<0.000000e+00> : vector<8x512xf32>
    %102 = tpu.matmul %100, %101, %cst_67 {dimension_numbers = #tpu.dot_dimension_numbers<[1], [0], [0], [1], [0, 0, 1, 1], [], []>} : vector<8x128xf32>, vector<128x512xf32>, vector<8x512xf32> -> vector<8x512xf32>
    %103 = arith.addf %99, %102 : vector<8x512xf32>
    %104 = vector.extract_strided_slice %103 {offsets = [0, 0], sizes = [8, 128], strides = [1, 1]} : vector<8x512xf32> to vector<8x128xf32>
    %105 = arith.negf %104 : vector<8x128xf32>
    %106 = math.exp %105 : vector<8x128xf32>
    %cst_68 = arith.constant 1.000000e+00 : f32
    %107 = vector.broadcast %cst_68 : f32 to vector<8x128xf32>
    %108 = arith.addf %107, %106 : vector<8x128xf32>
    %109 = arith.divf %107, %108 : vector<8x128xf32>
    %110 = vector.extract_strided_slice %103 {offsets = [0, 128], sizes = [8, 128], strides = [1, 1]} : vector<8x512xf32> to vector<8x128xf32>
    %111 = arith.negf %110 : vector<8x128xf32>
    %112 = math.exp %111 : vector<8x128xf32>
    %cst_69 = arith.constant 1.000000e+00 : f32
    %113 = vector.broadcast %cst_69 : f32 to vector<8x128xf32>
    %114 = arith.addf %113, %112 : vector<8x128xf32>
    %115 = arith.divf %113, %114 : vector<8x128xf32>
    %116 = vector.extract_strided_slice %103 {offsets = [0, 256], sizes = [8, 128], strides = [1, 1]} : vector<8x512xf32> to vector<8x128xf32>
    %117 = math.tanh %116 : vector<8x128xf32>
    %118 = vector.extract_strided_slice %103 {offsets = [0, 384], sizes = [8, 128], strides = [1, 1]} : vector<8x512xf32> to vector<8x128xf32>
    %119 = arith.negf %118 : vector<8x128xf32>
    %120 = math.exp %119 : vector<8x128xf32>
    %cst_70 = arith.constant 1.000000e+00 : f32
    %121 = vector.broadcast %cst_70 : f32 to vector<8x128xf32>
    %122 = arith.addf %121, %120 : vector<8x128xf32>
    %123 = arith.divf %121, %122 : vector<8x128xf32>
    %c0_71 = arith.constant 0 : index
    %c0_72 = arith.constant 0 : index
    %124 = vector.load %arg26[%c0_71, %c0_72] : memref<8x128xf32, #tpu.memory_space<vmem>>, vector<8x128xf32>
    %125 = arith.mulf %115, %124 : vector<8x128xf32>
    %126 = arith.mulf %109, %117 : vector<8x128xf32>
    %127 = arith.addf %125, %126 : vector<8x128xf32>
    %128 = math.tanh %127 : vector<8x128xf32>
    %129 = arith.mulf %123, %128 : vector<8x128xf32>
    %c0_73 = arith.constant 0 : index
    %c0_74 = arith.constant 0 : index
    %130 = vector.load %arg26[%c0_73, %c0_74] : memref<8x128xf32, #tpu.memory_space<vmem>>, vector<8x128xf32>
    tpu.vector_store %arg26[%c0_73, %c0_74], %127 {strides = array<i32>} : memref<8x128xf32, #tpu.memory_space<vmem>>, vector<8x128xf32>,
    %c0_75 = arith.constant 0 : index
    %c0_76 = arith.constant 0 : index
    %131 = vector.load %arg25[%c0_75, %c0_76] : memref<8x128xf32, #tpu.memory_space<vmem>>, vector<8x128xf32>
    tpu.vector_store %arg25[%c0_75, %c0_76], %129 {strides = array<i32>} : memref<8x128xf32, #tpu.memory_space<vmem>>, vector<8x128xf32>,
    %132 = arith.index_cast %97 : i32 to index
    %c0_77 = arith.constant 0 : index
    %133 = vector.load %arg23[%132, %c0_77] : memref<64x128xf32, #tpu.memory_space<vmem>>, vector<8x128xf32>
    tpu.vector_store %arg23[%132, %c0_77], %129 {strides = array<i32>} : memref<64x128xf32, #tpu.memory_space<vmem>>, vector<8x128xf32>,
    %c2_i32 = arith.constant 2 : i32
    %c8_i32_78 = arith.constant 8 : i32
    %134 = arith.muli %c2_i32, %c8_i32_78 : i32
    %135 = tpu.assume_multiple %134, 8 : i32
    %136 = arith.index_cast %135 : i32 to index
    %c0_79 = arith.constant 0 : index
    %137 = vector.load %arg22[%136, %c0_79] : memref<64x512xf32, #tpu.memory_space<vmem>>, vector<8x512xf32>
    %c0_80 = arith.constant 0 : index
    %c0_81 = arith.constant 0 : index
    %138 = vector.load %arg25[%c0_80, %c0_81] : memref<8x128xf32, #tpu.memory_space<vmem>>, vector<8x128xf32>
    %c0_82 = arith.constant 0 : index
    %c0_83 = arith.constant 0 : index
    %139 = vector.load %arg13[%c0_82, %c0_83] : memref<128x512xf32, #tpu.memory_space<vmem>>, vector<128x512xf32>
    %cst_84 = arith.constant dense<0.000000e+00> : vector<8x512xf32>
    %140 = tpu.matmul %138, %139, %cst_84 {dimension_numbers = #tpu.dot_dimension_numbers<[1], [0], [0], [1], [0, 0, 1, 1], [], []>} : vector<8x128xf32>, vector<128x512xf32>, vector<8x512xf32> -> vector<8x512xf32>
    %141 = arith.addf %137, %140 : vector<8x512xf32>
    %142 = vector.extract_strided_slice %141 {offsets = [0, 0], sizes = [8, 128], strides = [1, 1]} : vector<8x512xf32> to vector<8x128xf32>
    %143 = arith.negf %142 : vector<8x128xf32>
    %144 = math.exp %143 : vector<8x128xf32>
    %cst_85 = arith.constant 1.000000e+00 : f32
    %145 = vector.broadcast %cst_85 : f32 to vector<8x128xf32>
    %146 = arith.addf %145, %144 : vector<8x128xf32>
    %147 = arith.divf %145, %146 : vector<8x128xf32>
    %148 = vector.extract_strided_slice %141 {offsets = [0, 128], sizes = [8, 128], strides = [1, 1]} : vector<8x512xf32> to vector<8x128xf32>
    %149 = arith.negf %148 : vector<8x128xf32>
    %150 = math.exp %149 : vector<8x128xf32>
    %cst_86 = arith.constant 1.000000e+00 : f32
    %151 = vector.broadcast %cst_86 : f32 to vector<8x128xf32>
    %152 = arith.addf %151, %150 : vector<8x128xf32>
    %153 = arith.divf %151, %152 : vector<8x128xf32>
    %154 = vector.extract_strided_slice %141 {offsets = [0, 256], sizes = [8, 128], strides = [1, 1]} : vector<8x512xf32> to vector<8x128xf32>
    %155 = math.tanh %154 : vector<8x128xf32>
    %156 = vector.extract_strided_slice %141 {offsets = [0, 384], sizes = [8, 128], strides = [1, 1]} : vector<8x512xf32> to vector<8x128xf32>
    %157 = arith.negf %156 : vector<8x128xf32>
    %158 = math.exp %157 : vector<8x128xf32>
    %cst_87 = arith.constant 1.000000e+00 : f32
    %159 = vector.broadcast %cst_87 : f32 to vector<8x128xf32>
    %160 = arith.addf %159, %158 : vector<8x128xf32>
    %161 = arith.divf %159, %160 : vector<8x128xf32>
    %c0_88 = arith.constant 0 : index
    %c0_89 = arith.constant 0 : index
    %162 = vector.load %arg26[%c0_88, %c0_89] : memref<8x128xf32, #tpu.memory_space<vmem>>, vector<8x128xf32>
    %163 = arith.mulf %153, %162 : vector<8x128xf32>
    %164 = arith.mulf %147, %155 : vector<8x128xf32>
    %165 = arith.addf %163, %164 : vector<8x128xf32>
    %166 = math.tanh %165 : vector<8x128xf32>
    %167 = arith.mulf %161, %166 : vector<8x128xf32>
    %c0_90 = arith.constant 0 : index
    %c0_91 = arith.constant 0 : index
    %168 = vector.load %arg26[%c0_90, %c0_91] : memref<8x128xf32, #tpu.memory_space<vmem>>, vector<8x128xf32>
    tpu.vector_store %arg26[%c0_90, %c0_91], %165 {strides = array<i32>} : memref<8x128xf32, #tpu.memory_space<vmem>>, vector<8x128xf32>,
    %c0_92 = arith.constant 0 : index
    %c0_93 = arith.constant 0 : index
    %169 = vector.load %arg25[%c0_92, %c0_93] : memref<8x128xf32, #tpu.memory_space<vmem>>, vector<8x128xf32>
    tpu.vector_store %arg25[%c0_92, %c0_93], %167 {strides = array<i32>} : memref<8x128xf32, #tpu.memory_space<vmem>>, vector<8x128xf32>,
    %170 = arith.index_cast %135 : i32 to index
    %c0_94 = arith.constant 0 : index
    %171 = vector.load %arg23[%170, %c0_94] : memref<64x128xf32, #tpu.memory_space<vmem>>, vector<8x128xf32>
    tpu.vector_store %arg23[%170, %c0_94], %167 {strides = array<i32>} : memref<64x128xf32, #tpu.memory_space<vmem>>, vector<8x128xf32>,
    %c3_i32 = arith.constant 3 : i32
    %c8_i32_95 = arith.constant 8 : i32
    %172 = arith.muli %c3_i32, %c8_i32_95 : i32
    %173 = tpu.assume_multiple %172, 8 : i32
    %174 = arith.index_cast %173 : i32 to index
    %c0_96 = arith.constant 0 : index
    %175 = vector.load %arg22[%174, %c0_96] : memref<64x512xf32, #tpu.memory_space<vmem>>, vector<8x512xf32>
    %c0_97 = arith.constant 0 : index
    %c0_98 = arith.constant 0 : index
    %176 = vector.load %arg25[%c0_97, %c0_98] : memref<8x128xf32, #tpu.memory_space<vmem>>, vector<8x128xf32>
    %c0_99 = arith.constant 0 : index
    %c0_100 = arith.constant 0 : index
    %177 = vector.load %arg13[%c0_99, %c0_100] : memref<128x512xf32, #tpu.memory_space<vmem>>, vector<128x512xf32>
    %cst_101 = arith.constant dense<0.000000e+00> : vector<8x512xf32>
    %178 = tpu.matmul %176, %177, %cst_101 {dimension_numbers = #tpu.dot_dimension_numbers<[1], [0], [0], [1], [0, 0, 1, 1], [], []>} : vector<8x128xf32>, vector<128x512xf32>, vector<8x512xf32> -> vector<8x512xf32>
    %179 = arith.addf %175, %178 : vector<8x512xf32>
    %180 = vector.extract_strided_slice %179 {offsets = [0, 0], sizes = [8, 128], strides = [1, 1]} : vector<8x512xf32> to vector<8x128xf32>
    %181 = arith.negf %180 : vector<8x128xf32>
    %182 = math.exp %181 : vector<8x128xf32>
    %cst_102 = arith.constant 1.000000e+00 : f32
    %183 = vector.broadcast %cst_102 : f32 to vector<8x128xf32>
    %184 = arith.addf %183, %182 : vector<8x128xf32>
    %185 = arith.divf %183, %184 : vector<8x128xf32>
    %186 = vector.extract_strided_slice %179 {offsets = [0, 128], sizes = [8, 128], strides = [1, 1]} : vector<8x512xf32> to vector<8x128xf32>
    %187 = arith.negf %186 : vector<8x128xf32>
    %188 = math.exp %187 : vector<8x128xf32>
    %cst_103 = arith.constant 1.000000e+00 : f32
    %189 = vector.broadcast %cst_103 : f32 to vector<8x128xf32>
    %190 = arith.addf %189, %188 : vector<8x128xf32>
    %191 = arith.divf %189, %190 : vector<8x128xf32>
    %192 = vector.extract_strided_slice %179 {offsets = [0, 256], sizes = [8, 128], strides = [1, 1]} : vector<8x512xf32> to vector<8x128xf32>
    %193 = math.tanh %192 : vector<8x128xf32>
    %194 = vector.extract_strided_slice %179 {offsets = [0, 384], sizes = [8, 128], strides = [1, 1]} : vector<8x512xf32> to vector<8x128xf32>
    %195 = arith.negf %194 : vector<8x128xf32>
    %196 = math.exp %195 : vector<8x128xf32>
    %cst_104 = arith.constant 1.000000e+00 : f32
    %197 = vector.broadcast %cst_104 : f32 to vector<8x128xf32>
    %198 = arith.addf %197, %196 : vector<8x128xf32>
    %199 = arith.divf %197, %198 : vector<8x128xf32>
    %c0_105 = arith.constant 0 : index
    %c0_106 = arith.constant 0 : index
    %200 = vector.load %arg26[%c0_105, %c0_106] : memref<8x128xf32, #tpu.memory_space<vmem>>, vector<8x128xf32>
    %201 = arith.mulf %191, %200 : vector<8x128xf32>
    %202 = arith.mulf %185, %193 : vector<8x128xf32>
    %203 = arith.addf %201, %202 : vector<8x128xf32>
    %204 = math.tanh %203 : vector<8x128xf32>
    %205 = arith.mulf %199, %204 : vector<8x128xf32>
    %c0_107 = arith.constant 0 : index
    %c0_108 = arith.constant 0 : index
    %206 = vector.load %arg26[%c0_107, %c0_108] : memref<8x128xf32, #tpu.memory_space<vmem>>, vector<8x128xf32>
    tpu.vector_store %arg26[%c0_107, %c0_108], %203 {strides = array<i32>} : memref<8x128xf32, #tpu.memory_space<vmem>>, vector<8x128xf32>,
    %c0_109 = arith.constant 0 : index
    %c0_110 = arith.constant 0 : index
    %207 = vector.load %arg25[%c0_109, %c0_110] : memref<8x128xf32, #tpu.memory_space<vmem>>, vector<8x128xf32>
    tpu.vector_store %arg25[%c0_109, %c0_110], %205 {strides = array<i32>} : memref<8x128xf32, #tpu.memory_space<vmem>>, vector<8x128xf32>,
    %208 = arith.index_cast %173 : i32 to index
    %c0_111 = arith.constant 0 : index
    %209 = vector.load %arg23[%208, %c0_111] : memref<64x128xf32, #tpu.memory_space<vmem>>, vector<8x128xf32>
    tpu.vector_store %arg23[%208, %c0_111], %205 {strides = array<i32>} : memref<64x128xf32, #tpu.memory_space<vmem>>, vector<8x128xf32>,
    %c4_i32 = arith.constant 4 : i32
    %c8_i32_112 = arith.constant 8 : i32
    %210 = arith.muli %c4_i32, %c8_i32_112 : i32
    %211 = tpu.assume_multiple %210, 8 : i32
    %212 = arith.index_cast %211 : i32 to index
    %c0_113 = arith.constant 0 : index
    %213 = vector.load %arg22[%212, %c0_113] : memref<64x512xf32, #tpu.memory_space<vmem>>, vector<8x512xf32>
    %c0_114 = arith.constant 0 : index
    %c0_115 = arith.constant 0 : index
    %214 = vector.load %arg25[%c0_114, %c0_115] : memref<8x128xf32, #tpu.memory_space<vmem>>, vector<8x128xf32>
    %c0_116 = arith.constant 0 : index
    %c0_117 = arith.constant 0 : index
    %215 = vector.load %arg13[%c0_116, %c0_117] : memref<128x512xf32, #tpu.memory_space<vmem>>, vector<128x512xf32>
    %cst_118 = arith.constant dense<0.000000e+00> : vector<8x512xf32>
    %216 = tpu.matmul %214, %215, %cst_118 {dimension_numbers = #tpu.dot_dimension_numbers<[1], [0], [0], [1], [0, 0, 1, 1], [], []>} : vector<8x128xf32>, vector<128x512xf32>, vector<8x512xf32> -> vector<8x512xf32>
    %217 = arith.addf %213, %216 : vector<8x512xf32>
    %218 = vector.extract_strided_slice %217 {offsets = [0, 0], sizes = [8, 128], strides = [1, 1]} : vector<8x512xf32> to vector<8x128xf32>
    %219 = arith.negf %218 : vector<8x128xf32>
    %220 = math.exp %219 : vector<8x128xf32>
    %cst_119 = arith.constant 1.000000e+00 : f32
    %221 = vector.broadcast %cst_119 : f32 to vector<8x128xf32>
    %222 = arith.addf %221, %220 : vector<8x128xf32>
    %223 = arith.divf %221, %222 : vector<8x128xf32>
    %224 = vector.extract_strided_slice %217 {offsets = [0, 128], sizes = [8, 128], strides = [1, 1]} : vector<8x512xf32> to vector<8x128xf32>
    %225 = arith.negf %224 : vector<8x128xf32>
    %226 = math.exp %225 : vector<8x128xf32>
    %cst_120 = arith.constant 1.000000e+00 : f32
    %227 = vector.broadcast %cst_120 : f32 to vector<8x128xf32>
    %228 = arith.addf %227, %226 : vector<8x128xf32>
    %229 = arith.divf %227, %228 : vector<8x128xf32>
    %230 = vector.extract_strided_slice %217 {offsets = [0, 256], sizes = [8, 128], strides = [1, 1]} : vector<8x512xf32> to vector<8x128xf32>
    %231 = math.tanh %230 : vector<8x128xf32>
    %232 = vector.extract_strided_slice %217 {offsets = [0, 384], sizes = [8, 128], strides = [1, 1]} : vector<8x512xf32> to vector<8x128xf32>
    %233 = arith.negf %232 : vector<8x128xf32>
    %234 = math.exp %233 : vector<8x128xf32>
    %cst_121 = arith.constant 1.000000e+00 : f32
    %235 = vector.broadcast %cst_121 : f32 to vector<8x128xf32>
    %236 = arith.addf %235, %234 : vector<8x128xf32>
    %237 = arith.divf %235, %236 : vector<8x128xf32>
    %c0_122 = arith.constant 0 : index
    %c0_123 = arith.constant 0 : index
    %238 = vector.load %arg26[%c0_122, %c0_123] : memref<8x128xf32, #tpu.memory_space<vmem>>, vector<8x128xf32>
    %239 = arith.mulf %229, %238 : vector<8x128xf32>
    %240 = arith.mulf %223, %231 : vector<8x128xf32>
    %241 = arith.addf %239, %240 : vector<8x128xf32>
    %242 = math.tanh %241 : vector<8x128xf32>
    %243 = arith.mulf %237, %242 : vector<8x128xf32>
    %c0_124 = arith.constant 0 : index
    %c0_125 = arith.constant 0 : index
    %244 = vector.load %arg26[%c0_124, %c0_125] : memref<8x128xf32, #tpu.memory_space<vmem>>, vector<8x128xf32>
    tpu.vector_store %arg26[%c0_124, %c0_125], %241 {strides = array<i32>} : memref<8x128xf32, #tpu.memory_space<vmem>>, vector<8x128xf32>,
    %c0_126 = arith.constant 0 : index
    %c0_127 = arith.constant 0 : index
    %245 = vector.load %arg25[%c0_126, %c0_127] : memref<8x128xf32, #tpu.memory_space<vmem>>, vector<8x128xf32>
    tpu.vector_store %arg25[%c0_126, %c0_127], %243 {strides = array<i32>} : memref<8x128xf32, #tpu.memory_space<vmem>>, vector<8x128xf32>,
    %246 = arith.index_cast %211 : i32 to index
    %c0_128 = arith.constant 0 : index
    %247 = vector.load %arg23[%246, %c0_128] : memref<64x128xf32, #tpu.memory_space<vmem>>, vector<8x128xf32>
    tpu.vector_store %arg23[%246, %c0_128], %243 {strides = array<i32>} : memref<64x128xf32, #tpu.memory_space<vmem>>, vector<8x128xf32>,
    %c5_i32 = arith.constant 5 : i32
    %c8_i32_129 = arith.constant 8 : i32
    %248 = arith.muli %c5_i32, %c8_i32_129 : i32
    %249 = tpu.assume_multiple %248, 8 : i32
    %250 = arith.index_cast %249 : i32 to index
    %c0_130 = arith.constant 0 : index
    %251 = vector.load %arg22[%250, %c0_130] : memref<64x512xf32, #tpu.memory_space<vmem>>, vector<8x512xf32>
    %c0_131 = arith.constant 0 : index
    %c0_132 = arith.constant 0 : index
    %252 = vector.load %arg25[%c0_131, %c0_132] : memref<8x128xf32, #tpu.memory_space<vmem>>, vector<8x128xf32>
    %c0_133 = arith.constant 0 : index
    %c0_134 = arith.constant 0 : index
    %253 = vector.load %arg13[%c0_133, %c0_134] : memref<128x512xf32, #tpu.memory_space<vmem>>, vector<128x512xf32>
    %cst_135 = arith.constant dense<0.000000e+00> : vector<8x512xf32>
    %254 = tpu.matmul %252, %253, %cst_135 {dimension_numbers = #tpu.dot_dimension_numbers<[1], [0], [0], [1], [0, 0, 1, 1], [], []>} : vector<8x128xf32>, vector<128x512xf32>, vector<8x512xf32> -> vector<8x512xf32>
    %255 = arith.addf %251, %254 : vector<8x512xf32>
    %256 = vector.extract_strided_slice %255 {offsets = [0, 0], sizes = [8, 128], strides = [1, 1]} : vector<8x512xf32> to vector<8x128xf32>
    %257 = arith.negf %256 : vector<8x128xf32>
    %258 = math.exp %257 : vector<8x128xf32>
    %cst_136 = arith.constant 1.000000e+00 : f32
    %259 = vector.broadcast %cst_136 : f32 to vector<8x128xf32>
    %260 = arith.addf %259, %258 : vector<8x128xf32>
    %261 = arith.divf %259, %260 : vector<8x128xf32>
    %262 = vector.extract_strided_slice %255 {offsets = [0, 128], sizes = [8, 128], strides = [1, 1]} : vector<8x512xf32> to vector<8x128xf32>
    %263 = arith.negf %262 : vector<8x128xf32>
    %264 = math.exp %263 : vector<8x128xf32>
    %cst_137 = arith.constant 1.000000e+00 : f32
    %265 = vector.broadcast %cst_137 : f32 to vector<8x128xf32>
    %266 = arith.addf %265, %264 : vector<8x128xf32>
    %267 = arith.divf %265, %266 : vector<8x128xf32>
    %268 = vector.extract_strided_slice %255 {offsets = [0, 256], sizes = [8, 128], strides = [1, 1]} : vector<8x512xf32> to vector<8x128xf32>
    %269 = math.tanh %268 : vector<8x128xf32>
    %270 = vector.extract_strided_slice %255 {offsets = [0, 384], sizes = [8, 128], strides = [1, 1]} : vector<8x512xf32> to vector<8x128xf32>
    %271 = arith.negf %270 : vector<8x128xf32>
    %272 = math.exp %271 : vector<8x128xf32>
    %cst_138 = arith.constant 1.000000e+00 : f32
    %273 = vector.broadcast %cst_138 : f32 to vector<8x128xf32>
    %274 = arith.addf %273, %272 : vector<8x128xf32>
    %275 = arith.divf %273, %274 : vector<8x128xf32>
    %c0_139 = arith.constant 0 : index
    %c0_140 = arith.constant 0 : index
    %276 = vector.load %arg26[%c0_139, %c0_140] : memref<8x128xf32, #tpu.memory_space<vmem>>, vector<8x128xf32>
    %277 = arith.mulf %267, %276 : vector<8x128xf32>
    %278 = arith.mulf %261, %269 : vector<8x128xf32>
    %279 = arith.addf %277, %278 : vector<8x128xf32>
    %280 = math.tanh %279 : vector<8x128xf32>
    %281 = arith.mulf %275, %280 : vector<8x128xf32>
    %c0_141 = arith.constant 0 : index
    %c0_142 = arith.constant 0 : index
    %282 = vector.load %arg26[%c0_141, %c0_142] : memref<8x128xf32, #tpu.memory_space<vmem>>, vector<8x128xf32>
    tpu.vector_store %arg26[%c0_141, %c0_142], %279 {strides = array<i32>} : memref<8x128xf32, #tpu.memory_space<vmem>>, vector<8x128xf32>,
    %c0_143 = arith.constant 0 : index
    %c0_144 = arith.constant 0 : index
    %283 = vector.load %arg25[%c0_143, %c0_144] : memref<8x128xf32, #tpu.memory_space<vmem>>, vector<8x128xf32>
    tpu.vector_store %arg25[%c0_143, %c0_144], %281 {strides = array<i32>} : memref<8x128xf32, #tpu.memory_space<vmem>>, vector<8x128xf32>,
    %284 = arith.index_cast %249 : i32 to index
    %c0_145 = arith.constant 0 : index
    %285 = vector.load %arg23[%284, %c0_145] : memref<64x128xf32, #tpu.memory_space<vmem>>, vector<8x128xf32>
    tpu.vector_store %arg23[%284, %c0_145], %281 {strides = array<i32>} : memref<64x128xf32, #tpu.memory_space<vmem>>, vector<8x128xf32>,
    %c6_i32 = arith.constant 6 : i32
    %c8_i32_146 = arith.constant 8 : i32
    %286 = arith.muli %c6_i32, %c8_i32_146 : i32
    %287 = tpu.assume_multiple %286, 8 : i32
    %288 = arith.index_cast %287 : i32 to index
    %c0_147 = arith.constant 0 : index
    %289 = vector.load %arg22[%288, %c0_147] : memref<64x512xf32, #tpu.memory_space<vmem>>, vector<8x512xf32>
    %c0_148 = arith.constant 0 : index
    %c0_149 = arith.constant 0 : index
    %290 = vector.load %arg25[%c0_148, %c0_149] : memref<8x128xf32, #tpu.memory_space<vmem>>, vector<8x128xf32>
    %c0_150 = arith.constant 0 : index
    %c0_151 = arith.constant 0 : index
    %291 = vector.load %arg13[%c0_150, %c0_151] : memref<128x512xf32, #tpu.memory_space<vmem>>, vector<128x512xf32>
    %cst_152 = arith.constant dense<0.000000e+00> : vector<8x512xf32>
    %292 = tpu.matmul %290, %291, %cst_152 {dimension_numbers = #tpu.dot_dimension_numbers<[1], [0], [0], [1], [0, 0, 1, 1], [], []>} : vector<8x128xf32>, vector<128x512xf32>, vector<8x512xf32> -> vector<8x512xf32>
    %293 = arith.addf %289, %292 : vector<8x512xf32>
    %294 = vector.extract_strided_slice %293 {offsets = [0, 0], sizes = [8, 128], strides = [1, 1]} : vector<8x512xf32> to vector<8x128xf32>
    %295 = arith.negf %294 : vector<8x128xf32>
    %296 = math.exp %295 : vector<8x128xf32>
    %cst_153 = arith.constant 1.000000e+00 : f32
    %297 = vector.broadcast %cst_153 : f32 to vector<8x128xf32>
    %298 = arith.addf %297, %296 : vector<8x128xf32>
    %299 = arith.divf %297, %298 : vector<8x128xf32>
    %300 = vector.extract_strided_slice %293 {offsets = [0, 128], sizes = [8, 128], strides = [1, 1]} : vector<8x512xf32> to vector<8x128xf32>
    %301 = arith.negf %300 : vector<8x128xf32>
    %302 = math.exp %301 : vector<8x128xf32>
    %cst_154 = arith.constant 1.000000e+00 : f32
    %303 = vector.broadcast %cst_154 : f32 to vector<8x128xf32>
    %304 = arith.addf %303, %302 : vector<8x128xf32>
    %305 = arith.divf %303, %304 : vector<8x128xf32>
    %306 = vector.extract_strided_slice %293 {offsets = [0, 256], sizes = [8, 128], strides = [1, 1]} : vector<8x512xf32> to vector<8x128xf32>
    %307 = math.tanh %306 : vector<8x128xf32>
    %308 = vector.extract_strided_slice %293 {offsets = [0, 384], sizes = [8, 128], strides = [1, 1]} : vector<8x512xf32> to vector<8x128xf32>
    %309 = arith.negf %308 : vector<8x128xf32>
    %310 = math.exp %309 : vector<8x128xf32>
    %cst_155 = arith.constant 1.000000e+00 : f32
    %311 = vector.broadcast %cst_155 : f32 to vector<8x128xf32>
    %312 = arith.addf %311, %310 : vector<8x128xf32>
    %313 = arith.divf %311, %312 : vector<8x128xf32>
    %c0_156 = arith.constant 0 : index
    %c0_157 = arith.constant 0 : index
    %314 = vector.load %arg26[%c0_156, %c0_157] : memref<8x128xf32, #tpu.memory_space<vmem>>, vector<8x128xf32>
    %315 = arith.mulf %305, %314 : vector<8x128xf32>
    %316 = arith.mulf %299, %307 : vector<8x128xf32>
    %317 = arith.addf %315, %316 : vector<8x128xf32>
    %318 = math.tanh %317 : vector<8x128xf32>
    %319 = arith.mulf %313, %318 : vector<8x128xf32>
    %c0_158 = arith.constant 0 : index
    %c0_159 = arith.constant 0 : index
    %320 = vector.load %arg26[%c0_158, %c0_159] : memref<8x128xf32, #tpu.memory_space<vmem>>, vector<8x128xf32>
    tpu.vector_store %arg26[%c0_158, %c0_159], %317 {strides = array<i32>} : memref<8x128xf32, #tpu.memory_space<vmem>>, vector<8x128xf32>,
    %c0_160 = arith.constant 0 : index
    %c0_161 = arith.constant 0 : index
    %321 = vector.load %arg25[%c0_160, %c0_161] : memref<8x128xf32, #tpu.memory_space<vmem>>, vector<8x128xf32>
    tpu.vector_store %arg25[%c0_160, %c0_161], %319 {strides = array<i32>} : memref<8x128xf32, #tpu.memory_space<vmem>>, vector<8x128xf32>,
    %322 = arith.index_cast %287 : i32 to index
    %c0_162 = arith.constant 0 : index
    %323 = vector.load %arg23[%322, %c0_162] : memref<64x128xf32, #tpu.memory_space<vmem>>, vector<8x128xf32>
    tpu.vector_store %arg23[%322, %c0_162], %319 {strides = array<i32>} : memref<64x128xf32, #tpu.memory_space<vmem>>, vector<8x128xf32>,
    %c7_i32 = arith.constant 7 : i32
    %c8_i32_163 = arith.constant 8 : i32
    %324 = arith.muli %c7_i32, %c8_i32_163 : i32
    %325 = tpu.assume_multiple %324, 8 : i32
    %326 = arith.index_cast %325 : i32 to index
    %c0_164 = arith.constant 0 : index
    %327 = vector.load %arg22[%326, %c0_164] : memref<64x512xf32, #tpu.memory_space<vmem>>, vector<8x512xf32>
    %c0_165 = arith.constant 0 : index
    %c0_166 = arith.constant 0 : index
    %328 = vector.load %arg25[%c0_165, %c0_166] : memref<8x128xf32, #tpu.memory_space<vmem>>, vector<8x128xf32>
    %c0_167 = arith.constant 0 : index
    %c0_168 = arith.constant 0 : index
    %329 = vector.load %arg13[%c0_167, %c0_168] : memref<128x512xf32, #tpu.memory_space<vmem>>, vector<128x512xf32>
    %cst_169 = arith.constant dense<0.000000e+00> : vector<8x512xf32>
    %330 = tpu.matmul %328, %329, %cst_169 {dimension_numbers = #tpu.dot_dimension_numbers<[1], [0], [0], [1], [0, 0, 1, 1], [], []>} : vector<8x128xf32>, vector<128x512xf32>, vector<8x512xf32> -> vector<8x512xf32>
    %331 = arith.addf %327, %330 : vector<8x512xf32>
    %332 = vector.extract_strided_slice %331 {offsets = [0, 0], sizes = [8, 128], strides = [1, 1]} : vector<8x512xf32> to vector<8x128xf32>
    %333 = arith.negf %332 : vector<8x128xf32>
    %334 = math.exp %333 : vector<8x128xf32>
    %cst_170 = arith.constant 1.000000e+00 : f32
    %335 = vector.broadcast %cst_170 : f32 to vector<8x128xf32>
    %336 = arith.addf %335, %334 : vector<8x128xf32>
    %337 = arith.divf %335, %336 : vector<8x128xf32>
    %338 = vector.extract_strided_slice %331 {offsets = [0, 128], sizes = [8, 128], strides = [1, 1]} : vector<8x512xf32> to vector<8x128xf32>
    %339 = arith.negf %338 : vector<8x128xf32>
    %340 = math.exp %339 : vector<8x128xf32>
    %cst_171 = arith.constant 1.000000e+00 : f32
    %341 = vector.broadcast %cst_171 : f32 to vector<8x128xf32>
    %342 = arith.addf %341, %340 : vector<8x128xf32>
    %343 = arith.divf %341, %342 : vector<8x128xf32>
    %344 = vector.extract_strided_slice %331 {offsets = [0, 256], sizes = [8, 128], strides = [1, 1]} : vector<8x512xf32> to vector<8x128xf32>
    %345 = math.tanh %344 : vector<8x128xf32>
    %346 = vector.extract_strided_slice %331 {offsets = [0, 384], sizes = [8, 128], strides = [1, 1]} : vector<8x512xf32> to vector<8x128xf32>
    %347 = arith.negf %346 : vector<8x128xf32>
    %348 = math.exp %347 : vector<8x128xf32>
    %cst_172 = arith.constant 1.000000e+00 : f32
    %349 = vector.broadcast %cst_172 : f32 to vector<8x128xf32>
    %350 = arith.addf %349, %348 : vector<8x128xf32>
    %351 = arith.divf %349, %350 : vector<8x128xf32>
    %c0_173 = arith.constant 0 : index
    %c0_174 = arith.constant 0 : index
    %352 = vector.load %arg26[%c0_173, %c0_174] : memref<8x128xf32, #tpu.memory_space<vmem>>, vector<8x128xf32>
    %353 = arith.mulf %343, %352 : vector<8x128xf32>
    %354 = arith.mulf %337, %345 : vector<8x128xf32>
    %355 = arith.addf %353, %354 : vector<8x128xf32>
    %356 = math.tanh %355 : vector<8x128xf32>
    %357 = arith.mulf %351, %356 : vector<8x128xf32>
    %c0_175 = arith.constant 0 : index
    %c0_176 = arith.constant 0 : index
    %358 = vector.load %arg26[%c0_175, %c0_176] : memref<8x128xf32, #tpu.memory_space<vmem>>, vector<8x128xf32>
    tpu.vector_store %arg26[%c0_175, %c0_176], %355 {strides = array<i32>} : memref<8x128xf32, #tpu.memory_space<vmem>>, vector<8x128xf32>,
    %c0_177 = arith.constant 0 : index
    %c0_178 = arith.constant 0 : index
    %359 = vector.load %arg25[%c0_177, %c0_178] : memref<8x128xf32, #tpu.memory_space<vmem>>, vector<8x128xf32>
    tpu.vector_store %arg25[%c0_177, %c0_178], %357 {strides = array<i32>} : memref<8x128xf32, #tpu.memory_space<vmem>>, vector<8x128xf32>,
    %360 = arith.index_cast %325 : i32 to index
    %c0_179 = arith.constant 0 : index
    %361 = vector.load %arg23[%360, %c0_179] : memref<64x128xf32, #tpu.memory_space<vmem>>, vector<8x128xf32>
    tpu.vector_store %arg23[%360, %c0_179], %357 {strides = array<i32>} : memref<64x128xf32, #tpu.memory_space<vmem>>, vector<8x128xf32>,
    %c8_i32_180 = arith.constant 8 : i32
    %c0_181 = arith.constant 0 : index
    %c0_182 = arith.constant 0 : index
    %362 = vector.load %arg23[%c0_181, %c0_182] : memref<64x128xf32, #tpu.memory_space<vmem>>, vector<64x128xf32>
    %c0_183 = arith.constant 0 : index
    %c0_184 = arith.constant 0 : index
    %363 = vector.load %arg15[%c0_183, %c0_184] : memref<128x512xf32, #tpu.memory_space<vmem>>, vector<128x512xf32>
    %cst_185 = arith.constant dense<0.000000e+00> : vector<64x512xf32>
    %364 = tpu.matmul %362, %363, %cst_185 {dimension_numbers = #tpu.dot_dimension_numbers<[1], [0], [0], [1], [0, 0, 1, 1], [], []>} : vector<64x128xf32>, vector<128x512xf32>, vector<64x512xf32> -> vector<64x512xf32>
    %c0_186 = arith.constant 0 : index
    %c0_187 = arith.constant 0 : index
    %365 = vector.load %arg17[%c0_186, %c0_187] : memref<1x512xf32, #tpu.memory_space<vmem>>, vector<1x512xf32>
    %366 = vector.broadcast %365 : vector<1x512xf32> to vector<64x512xf32>
    %367 = arith.addf %364, %366 : vector<64x512xf32>
    %c0_188 = arith.constant 0 : index
    %c0_189 = arith.constant 0 : index
    %368 = vector.load %arg22[%c0_188, %c0_189] : memref<64x512xf32, #tpu.memory_space<vmem>>, vector<64x512xf32>
    tpu.vector_store %arg22[%c0_188, %c0_189], %367 {strides = array<i32>} : memref<64x512xf32, #tpu.memory_space<vmem>>, vector<64x512xf32>,
    %cst_190 = arith.constant 0.000000e+00 : f32
    %369 = vector.broadcast %cst_190 : f32 to vector<8x128xf32>
    %c0_191 = arith.constant 0 : index
    %c0_192 = arith.constant 0 : index
    %370 = vector.load %arg25[%c0_191, %c0_192] : memref<8x128xf32, #tpu.memory_space<vmem>>, vector<8x128xf32>
    tpu.vector_store %arg25[%c0_191, %c0_192], %369 {strides = array<i32>} : memref<8x128xf32, #tpu.memory_space<vmem>>, vector<8x128xf32>,
    %cst_193 = arith.constant 0.000000e+00 : f32
    %371 = vector.broadcast %cst_193 : f32 to vector<8x128xf32>
    %c0_194 = arith.constant 0 : index
    %c0_195 = arith.constant 0 : index
    %372 = vector.load %arg26[%c0_194, %c0_195] : memref<8x128xf32, #tpu.memory_space<vmem>>, vector<8x128xf32>
    tpu.vector_store %arg26[%c0_194, %c0_195], %371 {strides = array<i32>} : memref<8x128xf32, #tpu.memory_space<vmem>>, vector<8x128xf32>,
    %c0_i32_196 = arith.constant 0 : i32
    %c8_i32_197 = arith.constant 8 : i32
    %373 = arith.muli %c0_i32_196, %c8_i32_197 : i32
    %374 = tpu.assume_multiple %373, 8 : i32
    %375 = arith.index_cast %374 : i32 to index
    %c0_198 = arith.constant 0 : index
    %376 = vector.load %arg22[%375, %c0_198] : memref<64x512xf32, #tpu.memory_space<vmem>>, vector<8x512xf32>
    %c0_199 = arith.constant 0 : index
    %c0_200 = arith.constant 0 : index
    %377 = vector.load %arg25[%c0_199, %c0_200] : memref<8x128xf32, #tpu.memory_space<vmem>>, vector<8x128xf32>
    %c0_201 = arith.constant 0 : index
    %c0_202 = arith.constant 0 : index
    %378 = vector.load %arg16[%c0_201, %c0_202] : memref<128x512xf32, #tpu.memory_space<vmem>>, vector<128x512xf32>
    %cst_203 = arith.constant dense<0.000000e+00> : vector<8x512xf32>
    %379 = tpu.matmul %377, %378, %cst_203 {dimension_numbers = #tpu.dot_dimension_numbers<[1], [0], [0], [1], [0, 0, 1, 1], [], []>} : vector<8x128xf32>, vector<128x512xf32>, vector<8x512xf32> -> vector<8x512xf32>
    %380 = arith.addf %376, %379 : vector<8x512xf32>
    %381 = vector.extract_strided_slice %380 {offsets = [0, 0], sizes = [8, 128], strides = [1, 1]} : vector<8x512xf32> to vector<8x128xf32>
    %382 = arith.negf %381 : vector<8x128xf32>
    %383 = math.exp %382 : vector<8x128xf32>
    %cst_204 = arith.constant 1.000000e+00 : f32
    %384 = vector.broadcast %cst_204 : f32 to vector<8x128xf32>
    %385 = arith.addf %384, %383 : vector<8x128xf32>
    %386 = arith.divf %384, %385 : vector<8x128xf32>
    %387 = vector.extract_strided_slice %380 {offsets = [0, 128], sizes = [8, 128], strides = [1, 1]} : vector<8x512xf32> to vector<8x128xf32>
    %388 = arith.negf %387 : vector<8x128xf32>
    %389 = math.exp %388 : vector<8x128xf32>
    %cst_205 = arith.constant 1.000000e+00 : f32
    %390 = vector.broadcast %cst_205 : f32 to vector<8x128xf32>
    %391 = arith.addf %390, %389 : vector<8x128xf32>
    %392 = arith.divf %390, %391 : vector<8x128xf32>
    %393 = vector.extract_strided_slice %380 {offsets = [0, 256], sizes = [8, 128], strides = [1, 1]} : vector<8x512xf32> to vector<8x128xf32>
    %394 = math.tanh %393 : vector<8x128xf32>
    %395 = vector.extract_strided_slice %380 {offsets = [0, 384], sizes = [8, 128], strides = [1, 1]} : vector<8x512xf32> to vector<8x128xf32>
    %396 = arith.negf %395 : vector<8x128xf32>
    %397 = math.exp %396 : vector<8x128xf32>
    %cst_206 = arith.constant 1.000000e+00 : f32
    %398 = vector.broadcast %cst_206 : f32 to vector<8x128xf32>
    %399 = arith.addf %398, %397 : vector<8x128xf32>
    %400 = arith.divf %398, %399 : vector<8x128xf32>
    %c0_207 = arith.constant 0 : index
    %c0_208 = arith.constant 0 : index
    %401 = vector.load %arg26[%c0_207, %c0_208] : memref<8x128xf32, #tpu.memory_space<vmem>>, vector<8x128xf32>
    %402 = arith.mulf %392, %401 : vector<8x128xf32>
    %403 = arith.mulf %386, %394 : vector<8x128xf32>
    %404 = arith.addf %402, %403 : vector<8x128xf32>
    %405 = math.tanh %404 : vector<8x128xf32>
    %406 = arith.mulf %400, %405 : vector<8x128xf32>
    %c0_209 = arith.constant 0 : index
    %c0_210 = arith.constant 0 : index
    %407 = vector.load %arg26[%c0_209, %c0_210] : memref<8x128xf32, #tpu.memory_space<vmem>>, vector<8x128xf32>
    tpu.vector_store %arg26[%c0_209, %c0_210], %404 {strides = array<i32>} : memref<8x128xf32, #tpu.memory_space<vmem>>, vector<8x128xf32>,
    %c0_211 = arith.constant 0 : index
    %c0_212 = arith.constant 0 : index
    %408 = vector.load %arg25[%c0_211, %c0_212] : memref<8x128xf32, #tpu.memory_space<vmem>>, vector<8x128xf32>
    tpu.vector_store %arg25[%c0_211, %c0_212], %406 {strides = array<i32>} : memref<8x128xf32, #tpu.memory_space<vmem>>, vector<8x128xf32>,
    %409 = arith.index_cast %374 : i32 to index
    %c0_213 = arith.constant 0 : index
    %410 = vector.load %arg24[%409, %c0_213] : memref<64x128xf32, #tpu.memory_space<vmem>>, vector<8x128xf32>
    tpu.vector_store %arg24[%409, %c0_213], %406 {strides = array<i32>} : memref<64x128xf32, #tpu.memory_space<vmem>>, vector<8x128xf32>,
    %c1_i32_214 = arith.constant 1 : i32
    %c8_i32_215 = arith.constant 8 : i32
    %411 = arith.muli %c1_i32_214, %c8_i32_215 : i32
    %412 = tpu.assume_multiple %411, 8 : i32
    %413 = arith.index_cast %412 : i32 to index
    %c0_216 = arith.constant 0 : index
    %414 = vector.load %arg22[%413, %c0_216] : memref<64x512xf32, #tpu.memory_space<vmem>>, vector<8x512xf32>
    %c0_217 = arith.constant 0 : index
    %c0_218 = arith.constant 0 : index
    %415 = vector.load %arg25[%c0_217, %c0_218] : memref<8x128xf32, #tpu.memory_space<vmem>>, vector<8x128xf32>
    %c0_219 = arith.constant 0 : index
    %c0_220 = arith.constant 0 : index
    %416 = vector.load %arg16[%c0_219, %c0_220] : memref<128x512xf32, #tpu.memory_space<vmem>>, vector<128x512xf32>
    %cst_221 = arith.constant dense<0.000000e+00> : vector<8x512xf32>
    %417 = tpu.matmul %415, %416, %cst_221 {dimension_numbers = #tpu.dot_dimension_numbers<[1], [0], [0], [1], [0, 0, 1, 1], [], []>} : vector<8x128xf32>, vector<128x512xf32>, vector<8x512xf32> -> vector<8x512xf32>
    %418 = arith.addf %414, %417 : vector<8x512xf32>
    %419 = vector.extract_strided_slice %418 {offsets = [0, 0], sizes = [8, 128], strides = [1, 1]} : vector<8x512xf32> to vector<8x128xf32>
    %420 = arith.negf %419 : vector<8x128xf32>
    %421 = math.exp %420 : vector<8x128xf32>
    %cst_222 = arith.constant 1.000000e+00 : f32
    %422 = vector.broadcast %cst_222 : f32 to vector<8x128xf32>
    %423 = arith.addf %422, %421 : vector<8x128xf32>
    %424 = arith.divf %422, %423 : vector<8x128xf32>
    %425 = vector.extract_strided_slice %418 {offsets = [0, 128], sizes = [8, 128], strides = [1, 1]} : vector<8x512xf32> to vector<8x128xf32>
    %426 = arith.negf %425 : vector<8x128xf32>
    %427 = math.exp %426 : vector<8x128xf32>
    %cst_223 = arith.constant 1.000000e+00 : f32
    %428 = vector.broadcast %cst_223 : f32 to vector<8x128xf32>
    %429 = arith.addf %428, %427 : vector<8x128xf32>
    %430 = arith.divf %428, %429 : vector<8x128xf32>
    %431 = vector.extract_strided_slice %418 {offsets = [0, 256], sizes = [8, 128], strides = [1, 1]} : vector<8x512xf32> to vector<8x128xf32>
    %432 = math.tanh %431 : vector<8x128xf32>
    %433 = vector.extract_strided_slice %418 {offsets = [0, 384], sizes = [8, 128], strides = [1, 1]} : vector<8x512xf32> to vector<8x128xf32>
    %434 = arith.negf %433 : vector<8x128xf32>
    %435 = math.exp %434 : vector<8x128xf32>
    %cst_224 = arith.constant 1.000000e+00 : f32
    %436 = vector.broadcast %cst_224 : f32 to vector<8x128xf32>
    %437 = arith.addf %436, %435 : vector<8x128xf32>
    %438 = arith.divf %436, %437 : vector<8x128xf32>
    %c0_225 = arith.constant 0 : index
    %c0_226 = arith.constant 0 : index
    %439 = vector.load %arg26[%c0_225, %c0_226] : memref<8x128xf32, #tpu.memory_space<vmem>>, vector<8x128xf32>
    %440 = arith.mulf %430, %439 : vector<8x128xf32>
    %441 = arith.mulf %424, %432 : vector<8x128xf32>
    %442 = arith.addf %440, %441 : vector<8x128xf32>
    %443 = math.tanh %442 : vector<8x128xf32>
    %444 = arith.mulf %438, %443 : vector<8x128xf32>
    %c0_227 = arith.constant 0 : index
    %c0_228 = arith.constant 0 : index
    %445 = vector.load %arg26[%c0_227, %c0_228] : memref<8x128xf32, #tpu.memory_space<vmem>>, vector<8x128xf32>
    tpu.vector_store %arg26[%c0_227, %c0_228], %442 {strides = array<i32>} : memref<8x128xf32, #tpu.memory_space<vmem>>, vector<8x128xf32>,
    %c0_229 = arith.constant 0 : index
    %c0_230 = arith.constant 0 : index
    %446 = vector.load %arg25[%c0_229, %c0_230] : memref<8x128xf32, #tpu.memory_space<vmem>>, vector<8x128xf32>
    tpu.vector_store %arg25[%c0_229, %c0_230], %444 {strides = array<i32>} : memref<8x128xf32, #tpu.memory_space<vmem>>, vector<8x128xf32>,
    %447 = arith.index_cast %412 : i32 to index
    %c0_231 = arith.constant 0 : index
    %448 = vector.load %arg24[%447, %c0_231] : memref<64x128xf32, #tpu.memory_space<vmem>>, vector<8x128xf32>
    tpu.vector_store %arg24[%447, %c0_231], %444 {strides = array<i32>} : memref<64x128xf32, #tpu.memory_space<vmem>>, vector<8x128xf32>,
    %c2_i32_232 = arith.constant 2 : i32
    %c8_i32_233 = arith.constant 8 : i32
    %449 = arith.muli %c2_i32_232, %c8_i32_233 : i32
    %450 = tpu.assume_multiple %449, 8 : i32
    %451 = arith.index_cast %450 : i32 to index
    %c0_234 = arith.constant 0 : index
    %452 = vector.load %arg22[%451, %c0_234] : memref<64x512xf32, #tpu.memory_space<vmem>>, vector<8x512xf32>
    %c0_235 = arith.constant 0 : index
    %c0_236 = arith.constant 0 : index
    %453 = vector.load %arg25[%c0_235, %c0_236] : memref<8x128xf32, #tpu.memory_space<vmem>>, vector<8x128xf32>
    %c0_237 = arith.constant 0 : index
    %c0_238 = arith.constant 0 : index
    %454 = vector.load %arg16[%c0_237, %c0_238] : memref<128x512xf32, #tpu.memory_space<vmem>>, vector<128x512xf32>
    %cst_239 = arith.constant dense<0.000000e+00> : vector<8x512xf32>
    %455 = tpu.matmul %453, %454, %cst_239 {dimension_numbers = #tpu.dot_dimension_numbers<[1], [0], [0], [1], [0, 0, 1, 1], [], []>} : vector<8x128xf32>, vector<128x512xf32>, vector<8x512xf32> -> vector<8x512xf32>
    %456 = arith.addf %452, %455 : vector<8x512xf32>
    %457 = vector.extract_strided_slice %456 {offsets = [0, 0], sizes = [8, 128], strides = [1, 1]} : vector<8x512xf32> to vector<8x128xf32>
    %458 = arith.negf %457 : vector<8x128xf32>
    %459 = math.exp %458 : vector<8x128xf32>
    %cst_240 = arith.constant 1.000000e+00 : f32
    %460 = vector.broadcast %cst_240 : f32 to vector<8x128xf32>
    %461 = arith.addf %460, %459 : vector<8x128xf32>
    %462 = arith.divf %460, %461 : vector<8x128xf32>
    %463 = vector.extract_strided_slice %456 {offsets = [0, 128], sizes = [8, 128], strides = [1, 1]} : vector<8x512xf32> to vector<8x128xf32>
    %464 = arith.negf %463 : vector<8x128xf32>
    %465 = math.exp %464 : vector<8x128xf32>
    %cst_241 = arith.constant 1.000000e+00 : f32
    %466 = vector.broadcast %cst_241 : f32 to vector<8x128xf32>
    %467 = arith.addf %466, %465 : vector<8x128xf32>
    %468 = arith.divf %466, %467 : vector<8x128xf32>
    %469 = vector.extract_strided_slice %456 {offsets = [0, 256], sizes = [8, 128], strides = [1, 1]} : vector<8x512xf32> to vector<8x128xf32>
    %470 = math.tanh %469 : vector<8x128xf32>
    %471 = vector.extract_strided_slice %456 {offsets = [0, 384], sizes = [8, 128], strides = [1, 1]} : vector<8x512xf32> to vector<8x128xf32>
    %472 = arith.negf %471 : vector<8x128xf32>
    %473 = math.exp %472 : vector<8x128xf32>
    %cst_242 = arith.constant 1.000000e+00 : f32
    %474 = vector.broadcast %cst_242 : f32 to vector<8x128xf32>
    %475 = arith.addf %474, %473 : vector<8x128xf32>
    %476 = arith.divf %474, %475 : vector<8x128xf32>
    %c0_243 = arith.constant 0 : index
    %c0_244 = arith.constant 0 : index
    %477 = vector.load %arg26[%c0_243, %c0_244] : memref<8x128xf32, #tpu.memory_space<vmem>>, vector<8x128xf32>
    %478 = arith.mulf %468, %477 : vector<8x128xf32>
    %479 = arith.mulf %462, %470 : vector<8x128xf32>
    %480 = arith.addf %478, %479 : vector<8x128xf32>
    %481 = math.tanh %480 : vector<8x128xf32>
    %482 = arith.mulf %476, %481 : vector<8x128xf32>
    %c0_245 = arith.constant 0 : index
    %c0_246 = arith.constant 0 : index
    %483 = vector.load %arg26[%c0_245, %c0_246] : memref<8x128xf32, #tpu.memory_space<vmem>>, vector<8x128xf32>
    tpu.vector_store %arg26[%c0_245, %c0_246], %480 {strides = array<i32>} : memref<8x128xf32, #tpu.memory_space<vmem>>, vector<8x128xf32>,
    %c0_247 = arith.constant 0 : index
    %c0_248 = arith.constant 0 : index
    %484 = vector.load %arg25[%c0_247, %c0_248] : memref<8x128xf32, #tpu.memory_space<vmem>>, vector<8x128xf32>
    tpu.vector_store %arg25[%c0_247, %c0_248], %482 {strides = array<i32>} : memref<8x128xf32, #tpu.memory_space<vmem>>, vector<8x128xf32>,
    %485 = arith.index_cast %450 : i32 to index
    %c0_249 = arith.constant 0 : index
    %486 = vector.load %arg24[%485, %c0_249] : memref<64x128xf32, #tpu.memory_space<vmem>>, vector<8x128xf32>
    tpu.vector_store %arg24[%485, %c0_249], %482 {strides = array<i32>} : memref<64x128xf32, #tpu.memory_space<vmem>>, vector<8x128xf32>,
    %c3_i32_250 = arith.constant 3 : i32
    %c8_i32_251 = arith.constant 8 : i32
    %487 = arith.muli %c3_i32_250, %c8_i32_251 : i32
    %488 = tpu.assume_multiple %487, 8 : i32
    %489 = arith.index_cast %488 : i32 to index
    %c0_252 = arith.constant 0 : index
    %490 = vector.load %arg22[%489, %c0_252] : memref<64x512xf32, #tpu.memory_space<vmem>>, vector<8x512xf32>
    %c0_253 = arith.constant 0 : index
    %c0_254 = arith.constant 0 : index
    %491 = vector.load %arg25[%c0_253, %c0_254] : memref<8x128xf32, #tpu.memory_space<vmem>>, vector<8x128xf32>
    %c0_255 = arith.constant 0 : index
    %c0_256 = arith.constant 0 : index
    %492 = vector.load %arg16[%c0_255, %c0_256] : memref<128x512xf32, #tpu.memory_space<vmem>>, vector<128x512xf32>
    %cst_257 = arith.constant dense<0.000000e+00> : vector<8x512xf32>
    %493 = tpu.matmul %491, %492, %cst_257 {dimension_numbers = #tpu.dot_dimension_numbers<[1], [0], [0], [1], [0, 0, 1, 1], [], []>} : vector<8x128xf32>, vector<128x512xf32>, vector<8x512xf32> -> vector<8x512xf32>
    %494 = arith.addf %490, %493 : vector<8x512xf32>
    %495 = vector.extract_strided_slice %494 {offsets = [0, 0], sizes = [8, 128], strides = [1, 1]} : vector<8x512xf32> to vector<8x128xf32>
    %496 = arith.negf %495 : vector<8x128xf32>
    %497 = math.exp %496 : vector<8x128xf32>
    %cst_258 = arith.constant 1.000000e+00 : f32
    %498 = vector.broadcast %cst_258 : f32 to vector<8x128xf32>
    %499 = arith.addf %498, %497 : vector<8x128xf32>
    %500 = arith.divf %498, %499 : vector<8x128xf32>
    %501 = vector.extract_strided_slice %494 {offsets = [0, 128], sizes = [8, 128], strides = [1, 1]} : vector<8x512xf32> to vector<8x128xf32>
    %502 = arith.negf %501 : vector<8x128xf32>
    %503 = math.exp %502 : vector<8x128xf32>
    %cst_259 = arith.constant 1.000000e+00 : f32
    %504 = vector.broadcast %cst_259 : f32 to vector<8x128xf32>
    %505 = arith.addf %504, %503 : vector<8x128xf32>
    %506 = arith.divf %504, %505 : vector<8x128xf32>
    %507 = vector.extract_strided_slice %494 {offsets = [0, 256], sizes = [8, 128], strides = [1, 1]} : vector<8x512xf32> to vector<8x128xf32>
    %508 = math.tanh %507 : vector<8x128xf32>
    %509 = vector.extract_strided_slice %494 {offsets = [0, 384], sizes = [8, 128], strides = [1, 1]} : vector<8x512xf32> to vector<8x128xf32>
    %510 = arith.negf %509 : vector<8x128xf32>
    %511 = math.exp %510 : vector<8x128xf32>
    %cst_260 = arith.constant 1.000000e+00 : f32
    %512 = vector.broadcast %cst_260 : f32 to vector<8x128xf32>
    %513 = arith.addf %512, %511 : vector<8x128xf32>
    %514 = arith.divf %512, %513 : vector<8x128xf32>
    %c0_261 = arith.constant 0 : index
    %c0_262 = arith.constant 0 : index
    %515 = vector.load %arg26[%c0_261, %c0_262] : memref<8x128xf32, #tpu.memory_space<vmem>>, vector<8x128xf32>
    %516 = arith.mulf %506, %515 : vector<8x128xf32>
    %517 = arith.mulf %500, %508 : vector<8x128xf32>
    %518 = arith.addf %516, %517 : vector<8x128xf32>
    %519 = math.tanh %518 : vector<8x128xf32>
    %520 = arith.mulf %514, %519 : vector<8x128xf32>
    %c0_263 = arith.constant 0 : index
    %c0_264 = arith.constant 0 : index
    %521 = vector.load %arg26[%c0_263, %c0_264] : memref<8x128xf32, #tpu.memory_space<vmem>>, vector<8x128xf32>
    tpu.vector_store %arg26[%c0_263, %c0_264], %518 {strides = array<i32>} : memref<8x128xf32, #tpu.memory_space<vmem>>, vector<8x128xf32>,
    %c0_265 = arith.constant 0 : index
    %c0_266 = arith.constant 0 : index
    %522 = vector.load %arg25[%c0_265, %c0_266] : memref<8x128xf32, #tpu.memory_space<vmem>>, vector<8x128xf32>
    tpu.vector_store %arg25[%c0_265, %c0_266], %520 {strides = array<i32>} : memref<8x128xf32, #tpu.memory_space<vmem>>, vector<8x128xf32>,
    %523 = arith.index_cast %488 : i32 to index
    %c0_267 = arith.constant 0 : index
    %524 = vector.load %arg24[%523, %c0_267] : memref<64x128xf32, #tpu.memory_space<vmem>>, vector<8x128xf32>
    tpu.vector_store %arg24[%523, %c0_267], %520 {strides = array<i32>} : memref<64x128xf32, #tpu.memory_space<vmem>>, vector<8x128xf32>,
    %c4_i32_268 = arith.constant 4 : i32
    %c8_i32_269 = arith.constant 8 : i32
    %525 = arith.muli %c4_i32_268, %c8_i32_269 : i32
    %526 = tpu.assume_multiple %525, 8 : i32
    %527 = arith.index_cast %526 : i32 to index
    %c0_270 = arith.constant 0 : index
    %528 = vector.load %arg22[%527, %c0_270] : memref<64x512xf32, #tpu.memory_space<vmem>>, vector<8x512xf32>
    %c0_271 = arith.constant 0 : index
    %c0_272 = arith.constant 0 : index
    %529 = vector.load %arg25[%c0_271, %c0_272] : memref<8x128xf32, #tpu.memory_space<vmem>>, vector<8x128xf32>
    %c0_273 = arith.constant 0 : index
    %c0_274 = arith.constant 0 : index
    %530 = vector.load %arg16[%c0_273, %c0_274] : memref<128x512xf32, #tpu.memory_space<vmem>>, vector<128x512xf32>
    %cst_275 = arith.constant dense<0.000000e+00> : vector<8x512xf32>
    %531 = tpu.matmul %529, %530, %cst_275 {dimension_numbers = #tpu.dot_dimension_numbers<[1], [0], [0], [1], [0, 0, 1, 1], [], []>} : vector<8x128xf32>, vector<128x512xf32>, vector<8x512xf32> -> vector<8x512xf32>
    %532 = arith.addf %528, %531 : vector<8x512xf32>
    %533 = vector.extract_strided_slice %532 {offsets = [0, 0], sizes = [8, 128], strides = [1, 1]} : vector<8x512xf32> to vector<8x128xf32>
    %534 = arith.negf %533 : vector<8x128xf32>
    %535 = math.exp %534 : vector<8x128xf32>
    %cst_276 = arith.constant 1.000000e+00 : f32
    %536 = vector.broadcast %cst_276 : f32 to vector<8x128xf32>
    %537 = arith.addf %536, %535 : vector<8x128xf32>
    %538 = arith.divf %536, %537 : vector<8x128xf32>
    %539 = vector.extract_strided_slice %532 {offsets = [0, 128], sizes = [8, 128], strides = [1, 1]} : vector<8x512xf32> to vector<8x128xf32>
    %540 = arith.negf %539 : vector<8x128xf32>
    %541 = math.exp %540 : vector<8x128xf32>
    %cst_277 = arith.constant 1.000000e+00 : f32
    %542 = vector.broadcast %cst_277 : f32 to vector<8x128xf32>
    %543 = arith.addf %542, %541 : vector<8x128xf32>
    %544 = arith.divf %542, %543 : vector<8x128xf32>
    %545 = vector.extract_strided_slice %532 {offsets = [0, 256], sizes = [8, 128], strides = [1, 1]} : vector<8x512xf32> to vector<8x128xf32>
    %546 = math.tanh %545 : vector<8x128xf32>
    %547 = vector.extract_strided_slice %532 {offsets = [0, 384], sizes = [8, 128], strides = [1, 1]} : vector<8x512xf32> to vector<8x128xf32>
    %548 = arith.negf %547 : vector<8x128xf32>
    %549 = math.exp %548 : vector<8x128xf32>
    %cst_278 = arith.constant 1.000000e+00 : f32
    %550 = vector.broadcast %cst_278 : f32 to vector<8x128xf32>
    %551 = arith.addf %550, %549 : vector<8x128xf32>
    %552 = arith.divf %550, %551 : vector<8x128xf32>
    %c0_279 = arith.constant 0 : index
    %c0_280 = arith.constant 0 : index
    %553 = vector.load %arg26[%c0_279, %c0_280] : memref<8x128xf32, #tpu.memory_space<vmem>>, vector<8x128xf32>
    %554 = arith.mulf %544, %553 : vector<8x128xf32>
    %555 = arith.mulf %538, %546 : vector<8x128xf32>
    %556 = arith.addf %554, %555 : vector<8x128xf32>
    %557 = math.tanh %556 : vector<8x128xf32>
    %558 = arith.mulf %552, %557 : vector<8x128xf32>
    %c0_281 = arith.constant 0 : index
    %c0_282 = arith.constant 0 : index
    %559 = vector.load %arg26[%c0_281, %c0_282] : memref<8x128xf32, #tpu.memory_space<vmem>>, vector<8x128xf32>
    tpu.vector_store %arg26[%c0_281, %c0_282], %556 {strides = array<i32>} : memref<8x128xf32, #tpu.memory_space<vmem>>, vector<8x128xf32>,
    %c0_283 = arith.constant 0 : index
    %c0_284 = arith.constant 0 : index
    %560 = vector.load %arg25[%c0_283, %c0_284] : memref<8x128xf32, #tpu.memory_space<vmem>>, vector<8x128xf32>
    tpu.vector_store %arg25[%c0_283, %c0_284], %558 {strides = array<i32>} : memref<8x128xf32, #tpu.memory_space<vmem>>, vector<8x128xf32>,
    %561 = arith.index_cast %526 : i32 to index
    %c0_285 = arith.constant 0 : index
    %562 = vector.load %arg24[%561, %c0_285] : memref<64x128xf32, #tpu.memory_space<vmem>>, vector<8x128xf32>
    tpu.vector_store %arg24[%561, %c0_285], %558 {strides = array<i32>} : memref<64x128xf32, #tpu.memory_space<vmem>>, vector<8x128xf32>,
    %c5_i32_286 = arith.constant 5 : i32
    %c8_i32_287 = arith.constant 8 : i32
    %563 = arith.muli %c5_i32_286, %c8_i32_287 : i32
    %564 = tpu.assume_multiple %563, 8 : i32
    %565 = arith.index_cast %564 : i32 to index
    %c0_288 = arith.constant 0 : index
    %566 = vector.load %arg22[%565, %c0_288] : memref<64x512xf32, #tpu.memory_space<vmem>>, vector<8x512xf32>
    %c0_289 = arith.constant 0 : index
    %c0_290 = arith.constant 0 : index
    %567 = vector.load %arg25[%c0_289, %c0_290] : memref<8x128xf32, #tpu.memory_space<vmem>>, vector<8x128xf32>
    %c0_291 = arith.constant 0 : index
    %c0_292 = arith.constant 0 : index
    %568 = vector.load %arg16[%c0_291, %c0_292] : memref<128x512xf32, #tpu.memory_space<vmem>>, vector<128x512xf32>
    %cst_293 = arith.constant dense<0.000000e+00> : vector<8x512xf32>
    %569 = tpu.matmul %567, %568, %cst_293 {dimension_numbers = #tpu.dot_dimension_numbers<[1], [0], [0], [1], [0, 0, 1, 1], [], []>} : vector<8x128xf32>, vector<128x512xf32>, vector<8x512xf32> -> vector<8x512xf32>
    %570 = arith.addf %566, %569 : vector<8x512xf32>
    %571 = vector.extract_strided_slice %570 {offsets = [0, 0], sizes = [8, 128], strides = [1, 1]} : vector<8x512xf32> to vector<8x128xf32>
    %572 = arith.negf %571 : vector<8x128xf32>
    %573 = math.exp %572 : vector<8x128xf32>
    %cst_294 = arith.constant 1.000000e+00 : f32
    %574 = vector.broadcast %cst_294 : f32 to vector<8x128xf32>
    %575 = arith.addf %574, %573 : vector<8x128xf32>
    %576 = arith.divf %574, %575 : vector<8x128xf32>
    %577 = vector.extract_strided_slice %570 {offsets = [0, 128], sizes = [8, 128], strides = [1, 1]} : vector<8x512xf32> to vector<8x128xf32>
    %578 = arith.negf %577 : vector<8x128xf32>
    %579 = math.exp %578 : vector<8x128xf32>
    %cst_295 = arith.constant 1.000000e+00 : f32
    %580 = vector.broadcast %cst_295 : f32 to vector<8x128xf32>
    %581 = arith.addf %580, %579 : vector<8x128xf32>
    %582 = arith.divf %580, %581 : vector<8x128xf32>
    %583 = vector.extract_strided_slice %570 {offsets = [0, 256], sizes = [8, 128], strides = [1, 1]} : vector<8x512xf32> to vector<8x128xf32>
    %584 = math.tanh %583 : vector<8x128xf32>
    %585 = vector.extract_strided_slice %570 {offsets = [0, 384], sizes = [8, 128], strides = [1, 1]} : vector<8x512xf32> to vector<8x128xf32>
    %586 = arith.negf %585 : vector<8x128xf32>
    %587 = math.exp %586 : vector<8x128xf32>
    %cst_296 = arith.constant 1.000000e+00 : f32
    %588 = vector.broadcast %cst_296 : f32 to vector<8x128xf32>
    %589 = arith.addf %588, %587 : vector<8x128xf32>
    %590 = arith.divf %588, %589 : vector<8x128xf32>
    %c0_297 = arith.constant 0 : index
    %c0_298 = arith.constant 0 : index
    %591 = vector.load %arg26[%c0_297, %c0_298] : memref<8x128xf32, #tpu.memory_space<vmem>>, vector<8x128xf32>
    %592 = arith.mulf %582, %591 : vector<8x128xf32>
    %593 = arith.mulf %576, %584 : vector<8x128xf32>
    %594 = arith.addf %592, %593 : vector<8x128xf32>
    %595 = math.tanh %594 : vector<8x128xf32>
    %596 = arith.mulf %590, %595 : vector<8x128xf32>
    %c0_299 = arith.constant 0 : index
    %c0_300 = arith.constant 0 : index
    %597 = vector.load %arg26[%c0_299, %c0_300] : memref<8x128xf32, #tpu.memory_space<vmem>>, vector<8x128xf32>
    tpu.vector_store %arg26[%c0_299, %c0_300], %594 {strides = array<i32>} : memref<8x128xf32, #tpu.memory_space<vmem>>, vector<8x128xf32>,
    %c0_301 = arith.constant 0 : index
    %c0_302 = arith.constant 0 : index
    %598 = vector.load %arg25[%c0_301, %c0_302] : memref<8x128xf32, #tpu.memory_space<vmem>>, vector<8x128xf32>
    tpu.vector_store %arg25[%c0_301, %c0_302], %596 {strides = array<i32>} : memref<8x128xf32, #tpu.memory_space<vmem>>, vector<8x128xf32>,
    %599 = arith.index_cast %564 : i32 to index
    %c0_303 = arith.constant 0 : index
    %600 = vector.load %arg24[%599, %c0_303] : memref<64x128xf32, #tpu.memory_space<vmem>>, vector<8x128xf32>
    tpu.vector_store %arg24[%599, %c0_303], %596 {strides = array<i32>} : memref<64x128xf32, #tpu.memory_space<vmem>>, vector<8x128xf32>,
    %c6_i32_304 = arith.constant 6 : i32
    %c8_i32_305 = arith.constant 8 : i32
    %601 = arith.muli %c6_i32_304, %c8_i32_305 : i32
    %602 = tpu.assume_multiple %601, 8 : i32
    %603 = arith.index_cast %602 : i32 to index
    %c0_306 = arith.constant 0 : index
    %604 = vector.load %arg22[%603, %c0_306] : memref<64x512xf32, #tpu.memory_space<vmem>>, vector<8x512xf32>
    %c0_307 = arith.constant 0 : index
    %c0_308 = arith.constant 0 : index
    %605 = vector.load %arg25[%c0_307, %c0_308] : memref<8x128xf32, #tpu.memory_space<vmem>>, vector<8x128xf32>
    %c0_309 = arith.constant 0 : index
    %c0_310 = arith.constant 0 : index
    %606 = vector.load %arg16[%c0_309, %c0_310] : memref<128x512xf32, #tpu.memory_space<vmem>>, vector<128x512xf32>
    %cst_311 = arith.constant dense<0.000000e+00> : vector<8x512xf32>
    %607 = tpu.matmul %605, %606, %cst_311 {dimension_numbers = #tpu.dot_dimension_numbers<[1], [0], [0], [1], [0, 0, 1, 1], [], []>} : vector<8x128xf32>, vector<128x512xf32>, vector<8x512xf32> -> vector<8x512xf32>
    %608 = arith.addf %604, %607 : vector<8x512xf32>
    %609 = vector.extract_strided_slice %608 {offsets = [0, 0], sizes = [8, 128], strides = [1, 1]} : vector<8x512xf32> to vector<8x128xf32>
    %610 = arith.negf %609 : vector<8x128xf32>
    %611 = math.exp %610 : vector<8x128xf32>
    %cst_312 = arith.constant 1.000000e+00 : f32
    %612 = vector.broadcast %cst_312 : f32 to vector<8x128xf32>
    %613 = arith.addf %612, %611 : vector<8x128xf32>
    %614 = arith.divf %612, %613 : vector<8x128xf32>
    %615 = vector.extract_strided_slice %608 {offsets = [0, 128], sizes = [8, 128], strides = [1, 1]} : vector<8x512xf32> to vector<8x128xf32>
    %616 = arith.negf %615 : vector<8x128xf32>
    %617 = math.exp %616 : vector<8x128xf32>
    %cst_313 = arith.constant 1.000000e+00 : f32
    %618 = vector.broadcast %cst_313 : f32 to vector<8x128xf32>
    %619 = arith.addf %618, %617 : vector<8x128xf32>
    %620 = arith.divf %618, %619 : vector<8x128xf32>
    %621 = vector.extract_strided_slice %608 {offsets = [0, 256], sizes = [8, 128], strides = [1, 1]} : vector<8x512xf32> to vector<8x128xf32>
    %622 = math.tanh %621 : vector<8x128xf32>
    %623 = vector.extract_strided_slice %608 {offsets = [0, 384], sizes = [8, 128], strides = [1, 1]} : vector<8x512xf32> to vector<8x128xf32>
    %624 = arith.negf %623 : vector<8x128xf32>
    %625 = math.exp %624 : vector<8x128xf32>
    %cst_314 = arith.constant 1.000000e+00 : f32
    %626 = vector.broadcast %cst_314 : f32 to vector<8x128xf32>
    %627 = arith.addf %626, %625 : vector<8x128xf32>
    %628 = arith.divf %626, %627 : vector<8x128xf32>
    %c0_315 = arith.constant 0 : index
    %c0_316 = arith.constant 0 : index
    %629 = vector.load %arg26[%c0_315, %c0_316] : memref<8x128xf32, #tpu.memory_space<vmem>>, vector<8x128xf32>
    %630 = arith.mulf %620, %629 : vector<8x128xf32>
    %631 = arith.mulf %614, %622 : vector<8x128xf32>
    %632 = arith.addf %630, %631 : vector<8x128xf32>
    %633 = math.tanh %632 : vector<8x128xf32>
    %634 = arith.mulf %628, %633 : vector<8x128xf32>
    %c0_317 = arith.constant 0 : index
    %c0_318 = arith.constant 0 : index
    %635 = vector.load %arg26[%c0_317, %c0_318] : memref<8x128xf32, #tpu.memory_space<vmem>>, vector<8x128xf32>
    tpu.vector_store %arg26[%c0_317, %c0_318], %632 {strides = array<i32>} : memref<8x128xf32, #tpu.memory_space<vmem>>, vector<8x128xf32>,
    %c0_319 = arith.constant 0 : index
    %c0_320 = arith.constant 0 : index
    %636 = vector.load %arg25[%c0_319, %c0_320] : memref<8x128xf32, #tpu.memory_space<vmem>>, vector<8x128xf32>
    tpu.vector_store %arg25[%c0_319, %c0_320], %634 {strides = array<i32>} : memref<8x128xf32, #tpu.memory_space<vmem>>, vector<8x128xf32>,
    %637 = arith.index_cast %602 : i32 to index
    %c0_321 = arith.constant 0 : index
    %638 = vector.load %arg24[%637, %c0_321] : memref<64x128xf32, #tpu.memory_space<vmem>>, vector<8x128xf32>
    tpu.vector_store %arg24[%637, %c0_321], %634 {strides = array<i32>} : memref<64x128xf32, #tpu.memory_space<vmem>>, vector<8x128xf32>,
    %c7_i32_322 = arith.constant 7 : i32
    %c8_i32_323 = arith.constant 8 : i32
    %639 = arith.muli %c7_i32_322, %c8_i32_323 : i32
    %640 = tpu.assume_multiple %639, 8 : i32
    %641 = arith.index_cast %640 : i32 to index
    %c0_324 = arith.constant 0 : index
    %642 = vector.load %arg22[%641, %c0_324] : memref<64x512xf32, #tpu.memory_space<vmem>>, vector<8x512xf32>
    %c0_325 = arith.constant 0 : index
    %c0_326 = arith.constant 0 : index
    %643 = vector.load %arg25[%c0_325, %c0_326] : memref<8x128xf32, #tpu.memory_space<vmem>>, vector<8x128xf32>
    %c0_327 = arith.constant 0 : index
    %c0_328 = arith.constant 0 : index
    %644 = vector.load %arg16[%c0_327, %c0_328] : memref<128x512xf32, #tpu.memory_space<vmem>>, vector<128x512xf32>
    %cst_329 = arith.constant dense<0.000000e+00> : vector<8x512xf32>
    %645 = tpu.matmul %643, %644, %cst_329 {dimension_numbers = #tpu.dot_dimension_numbers<[1], [0], [0], [1], [0, 0, 1, 1], [], []>} : vector<8x128xf32>, vector<128x512xf32>, vector<8x512xf32> -> vector<8x512xf32>
    %646 = arith.addf %642, %645 : vector<8x512xf32>
    %647 = vector.extract_strided_slice %646 {offsets = [0, 0], sizes = [8, 128], strides = [1, 1]} : vector<8x512xf32> to vector<8x128xf32>
    %648 = arith.negf %647 : vector<8x128xf32>
    %649 = math.exp %648 : vector<8x128xf32>
    %cst_330 = arith.constant 1.000000e+00 : f32
    %650 = vector.broadcast %cst_330 : f32 to vector<8x128xf32>
    %651 = arith.addf %650, %649 : vector<8x128xf32>
    %652 = arith.divf %650, %651 : vector<8x128xf32>
    %653 = vector.extract_strided_slice %646 {offsets = [0, 128], sizes = [8, 128], strides = [1, 1]} : vector<8x512xf32> to vector<8x128xf32>
    %654 = arith.negf %653 : vector<8x128xf32>
    %655 = math.exp %654 : vector<8x128xf32>
    %cst_331 = arith.constant 1.000000e+00 : f32
    %656 = vector.broadcast %cst_331 : f32 to vector<8x128xf32>
    %657 = arith.addf %656, %655 : vector<8x128xf32>
    %658 = arith.divf %656, %657 : vector<8x128xf32>
    %659 = vector.extract_strided_slice %646 {offsets = [0, 256], sizes = [8, 128], strides = [1, 1]} : vector<8x512xf32> to vector<8x128xf32>
    %660 = math.tanh %659 : vector<8x128xf32>
    %661 = vector.extract_strided_slice %646 {offsets = [0, 384], sizes = [8, 128], strides = [1, 1]} : vector<8x512xf32> to vector<8x128xf32>
    %662 = arith.negf %661 : vector<8x128xf32>
    %663 = math.exp %662 : vector<8x128xf32>
    %cst_332 = arith.constant 1.000000e+00 : f32
    %664 = vector.broadcast %cst_332 : f32 to vector<8x128xf32>
    %665 = arith.addf %664, %663 : vector<8x128xf32>
    %666 = arith.divf %664, %665 : vector<8x128xf32>
    %c0_333 = arith.constant 0 : index
    %c0_334 = arith.constant 0 : index
    %667 = vector.load %arg26[%c0_333, %c0_334] : memref<8x128xf32, #tpu.memory_space<vmem>>, vector<8x128xf32>
    %668 = arith.mulf %658, %667 : vector<8x128xf32>
    %669 = arith.mulf %652, %660 : vector<8x128xf32>
    %670 = arith.addf %668, %669 : vector<8x128xf32>
    %671 = math.tanh %670 : vector<8x128xf32>
    %672 = arith.mulf %666, %671 : vector<8x128xf32>
    %c0_335 = arith.constant 0 : index
    %c0_336 = arith.constant 0 : index
    %673 = vector.load %arg26[%c0_335, %c0_336] : memref<8x128xf32, #tpu.memory_space<vmem>>, vector<8x128xf32>
    tpu.vector_store %arg26[%c0_335, %c0_336], %670 {strides = array<i32>} : memref<8x128xf32, #tpu.memory_space<vmem>>, vector<8x128xf32>,
    %c0_337 = arith.constant 0 : index
    %c0_338 = arith.constant 0 : index
    %674 = vector.load %arg25[%c0_337, %c0_338] : memref<8x128xf32, #tpu.memory_space<vmem>>, vector<8x128xf32>
    tpu.vector_store %arg25[%c0_337, %c0_338], %672 {strides = array<i32>} : memref<8x128xf32, #tpu.memory_space<vmem>>, vector<8x128xf32>,
    %675 = arith.index_cast %640 : i32 to index
    %c0_339 = arith.constant 0 : index
    %676 = vector.load %arg24[%675, %c0_339] : memref<64x128xf32, #tpu.memory_space<vmem>>, vector<8x128xf32>
    tpu.vector_store %arg24[%675, %c0_339], %672 {strides = array<i32>} : memref<64x128xf32, #tpu.memory_space<vmem>>, vector<8x128xf32>,
    %c8_i32_340 = arith.constant 8 : i32
    %c0_341 = arith.constant 0 : index
    %c0_342 = arith.constant 0 : index
    %677 = vector.load %arg24[%c0_341, %c0_342] : memref<64x128xf32, #tpu.memory_space<vmem>>, vector<64x128xf32>
    %c0_343 = arith.constant 0 : index
    %c0_344 = arith.constant 0 : index
    %678 = vector.load %arg18[%c0_343, %c0_344] : memref<128x128xf32, #tpu.memory_space<vmem>>, vector<128x128xf32>
    %cst_345 = arith.constant dense<0.000000e+00> : vector<64x128xf32>
    %679 = tpu.matmul %677, %678, %cst_345 {dimension_numbers = #tpu.dot_dimension_numbers<[1], [0], [0], [1], [0, 0, 1, 1], [], []>} : vector<64x128xf32>, vector<128x128xf32>, vector<64x128xf32> -> vector<64x128xf32>
    %c0_346 = arith.constant 0 : index
    %c0_347 = arith.constant 0 : index
    %680 = vector.load %arg19[%c0_346, %c0_347] : memref<1x128xf32, #tpu.memory_space<vmem>>, vector<1x128xf32>
    %681 = vector.broadcast %680 : vector<1x128xf32> to vector<64x128xf32>
    %682 = arith.addf %679, %681 : vector<64x128xf32>
    %c0_348 = arith.constant 0 : index
    %c0_349 = arith.constant 0 : index
    %683 = vector.load %arg20[%c0_348, %c0_349] : memref<1x128xf32, #tpu.memory_space<vmem>>, vector<1x128xf32>
    %684 = vector.broadcast %683 : vector<1x128xf32> to vector<64x128xf32>
    %685 = arith.mulf %682, %684 : vector<64x128xf32>
    %c0_350 = arith.constant 0 : index
    %c0_351 = arith.constant 0 : index
    %c0_352 = arith.constant 0 : index
    %686 = vector.load %arg21[%c0_350, %c0_351, %c0_352] : memref<1x64x128xf32, #tpu.memory_space<vmem>>, vector<1x64x128xf32>
    %687 = vector.shape_cast %686 : vector<1x64x128xf32> to vector<64x128xf32>
    %688 = vector.shape_cast %685 : vector<64x128xf32> to vector<1x64x128xf32>
    tpu.vector_store %arg21[%c0_350, %c0_351, %c0_352], %688 {strides = array<i32>} : memref<1x64x128xf32, #tpu.memory_space<vmem>>, vector<1x64x128xf32>,
    return
  }
  func.func @transform_0(%arg0: i32) -> (i32, i32, i32) {
    %c0_i32 = arith.constant 0 : i32
    %c0_i32_0 = arith.constant 0 : i32
    %c0_i32_1 = arith.constant 0 : i32
    return %arg0, %c0_i32, %c0_i32_0 : i32, i32, i32
  }
  func.func @transform_1(%arg0: i32) -> (i32, i32, i32) {
    %c0_i32 = arith.constant 0 : i32
    %c0_i32_0 = arith.constant 0 : i32
    %c0_i32_1 = arith.constant 0 : i32
    return %arg0, %c0_i32, %c0_i32_0 : i32, i32, i32
  }
  func.func @transform_2(%arg0: i32) -> (i32, i32) {
    %c0_i32 = arith.constant 0 : i32
    %c0_i32_0 = arith.constant 0 : i32
    %c0_i32_1 = arith.constant 0 : i32
    return %c0_i32, %c0_i32_0 : i32, i32
  }
  func.func @transform_3(%arg0: i32) -> (i32, i32) {
    %c0_i32 = arith.constant 0 : i32
    %c0_i32_0 = arith.constant 0 : i32
    %c0_i32_1 = arith.constant 0 : i32
    return %c0_i32, %c0_i32_0 : i32, i32
  }
  func.func @transform_4(%arg0: i32) -> (i32, i32) {
    %c0_i32 = arith.constant 0 : i32
    %c0_i32_0 = arith.constant 0 : i32
    %c0_i32_1 = arith.constant 0 : i32
    return %c0_i32, %c0_i32_0 : i32, i32
  }
  func.func @transform_5(%arg0: i32) -> (i32, i32) {
    %c0_i32 = arith.constant 0 : i32
    %c0_i32_0 = arith.constant 0 : i32
    %c0_i32_1 = arith.constant 0 : i32
    return %c0_i32, %c0_i32_0 : i32, i32
  }
  func.func @transform_6(%arg0: i32) -> (i32, i32) {
    %c0_i32 = arith.constant 0 : i32
    %c0_i32_0 = arith.constant 0 : i32
    %c0_i32_1 = arith.constant 0 : i32
    return %c0_i32, %c0_i32_0 : i32, i32
  }
  func.func @transform_7(%arg0: i32) -> (i32, i32) {
    %c0_i32 = arith.constant 0 : i32
    %c0_i32_0 = arith.constant 0 : i32
    %c0_i32_1 = arith.constant 0 : i32
    return %c0_i32, %c0_i32_0 : i32, i32
  }
  func.func @transform_8(%arg0: i32) -> (i32, i32) {
    %c0_i32 = arith.constant 0 : i32
    %c0_i32_0 = arith.constant 0 : i32
    %c0_i32_1 = arith.constant 0 : i32
    return %c0_i32, %c0_i32_0 : i32, i32
  }
  func.func @transform_9(%arg0: i32) -> (i32, i32) {
    %c0_i32 = arith.constant 0 : i32
    %c0_i32_0 = arith.constant 0 : i32
    %c0_i32_1 = arith.constant 0 : i32
    return %c0_i32, %c0_i32_0 : i32, i32
  }
  func.func @transform_10(%arg0: i32) -> (i32, i32) {
    %c0_i32 = arith.constant 0 : i32
    %c0_i32_0 = arith.constant 0 : i32
    %c0_i32_1 = arith.constant 0 : i32
    return %c0_i32, %c0_i32_0 : i32, i32
  }
  func.func @transform_11(%arg0: i32) -> (i32, i32) {
    %c0_i32 = arith.constant 0 : i32
    %c0_i32_0 = arith.constant 0 : i32
    %c0_i32_1 = arith.constant 0 : i32
    return %c0_i32, %c0_i32_0 : i32, i32
  }
  func.func @transform_12(%arg0: i32) -> (i32, i32) {
    %c0_i32 = arith.constant 0 : i32
    %c0_i32_0 = arith.constant 0 : i32
    %c0_i32_1 = arith.constant 0 : i32
    return %c0_i32, %c0_i32_0 : i32, i32
  }
  func.func @transform_13(%arg0: i32) -> (i32, i32) {
    %c0_i32 = arith.constant 0 : i32
    %c0_i32_0 = arith.constant 0 : i32
    %c0_i32_1 = arith.constant 0 : i32
    return %c0_i32, %c0_i32_0 : i32, i32
  }
  func.func @transform_14(%arg0: i32) -> (i32, i32) {
    %c0_i32 = arith.constant 0 : i32
    %c0_i32_0 = arith.constant 0 : i32
    %c0_i32_1 = arith.constant 0 : i32
    return %c0_i32, %c0_i32_0 : i32, i32
  }
  func.func @transform_15(%arg0: i32) -> (i32, i32) {
    %c0_i32 = arith.constant 0 : i32
    %c0_i32_0 = arith.constant 0 : i32
    %c0_i32_1 = arith.constant 0 : i32
    return %c0_i32, %c0_i32_0 : i32, i32
  }
  func.func @transform_16(%arg0: i32) -> (i32, i32) {
    %c0_i32 = arith.constant 0 : i32
    %c0_i32_0 = arith.constant 0 : i32
    %c0_i32_1 = arith.constant 0 : i32
    return %c0_i32, %c0_i32_0 : i32, i32
  }
  func.func @transform_17(%arg0: i32) -> (i32, i32) {
    %c0_i32 = arith.constant 0 : i32
    %c0_i32_0 = arith.constant 0 : i32
    %c0_i32_1 = arith.constant 0 : i32
    return %c0_i32, %c0_i32_0 : i32, i32
  }
  func.func @transform_18(%arg0: i32) -> (i32, i32) {
    %c0_i32 = arith.constant 0 : i32
    %c0_i32_0 = arith.constant 0 : i32
    %c0_i32_1 = arith.constant 0 : i32
    return %c0_i32, %c0_i32_0 : i32, i32
  }
  func.func @transform_19(%arg0: i32) -> (i32, i32) {
    %c0_i32 = arith.constant 0 : i32
    %c0_i32_0 = arith.constant 0 : i32
    %c0_i32_1 = arith.constant 0 : i32
    return %c0_i32, %c0_i32_0 : i32, i32
  }
  func.func @transform_20(%arg0: i32) -> (i32, i32, i32) {
    %c0_i32 = arith.constant 0 : i32
    %c0_i32_0 = arith.constant 0 : i32
    %c0_i32_1 = arith.constant 0 : i32
    return %arg0, %c0_i32, %c0_i32_0 : i32, i32, i32
  }
}

</mosaic_0001>

<bundles_post_ra>
// kernel: tpu_custom_call.1
= control target key start
LH: loop header
LB: loop body
LE: loop exit
PB: predicated region body
PF: predicated region fallthrough
CT: control target
= control target key end

     0   :  { %s8808_s0 = inlined_call_operand.vmem [shape: f32[1,64,64], index: 0, kind: input, shape index: {}]   ;;  %s8809_s1 = inlined_call_operand.vmem [shape: f32[1,64,4], index: 1, kind: input, shape index: {}]   ;;  %s8810_s2 = inlined_call_operand.vmem [shape: f32[4,32], index: 2, kind: input, shape index: {}]   ;;  %s8811_s3 = inlined_call_operand.vmem [shape: f32[1,32], index: 3, kind: input, shape index: {}]   ;;  %s8812_s4 = inlined_call_operand.hbm [shape: f32[32,64], index: 4, kind: input, shape index: {}]   ;;  %s8813_s5 = inlined_call_operand.hbm [shape: f32[1,64], index: 5, kind: input, shape index: {}]   ;;  %s8814_s6 = inlined_call_operand.hbm [shape: f32[64,64], index: 6, kind: input, shape index: {}]   ;;  %s8815_s7 = inlined_call_operand.hbm [shape: f32[64,64], index: 7, kind: input, shape index: {}]   ;;  %s8816_s8 = inlined_call_operand.vmem [shape: f32[1,64], index: 8, kind: input, shape index: {}]   ;;  %s8817_s9 = inlined_call_operand.vmem [shape: f32[1,64], index: 9, kind: input, shape index: {}]   ;;  %s8818_s10 = inlined_call_operand.vmem [shape: f32[1,64], index: 10, kind: input, shape index: {}]   ;;  %s8819_s11 = inlined_call_operand.hbm [shape: f32[64,512], index: 11, kind: input, shape index: {}]   ;;  %s8820_s12 = inlined_call_operand.hbm [shape: f32[128,512], index: 12, kind: input, shape index: {}]   ;;  %s8821_s13 = inlined_call_operand.vmem [shape: f32[1,512], index: 13, kind: input, shape index: {}]   ;;  %s8822_s14 = inlined_call_operand.hbm [shape: f32[128,512], index: 14, kind: input, shape index: {}]   ;;  %s8823_s15 = inlined_call_operand.hbm [shape: f32[128,512], index: 15, kind: input, shape index: {}]   ;;  %s8824_s16 = inlined_call_operand.vmem [shape: f32[1,512], index: 16, kind: input, shape index: {}]   ;;  %s8825_s17 = inlined_call_operand.hbm [shape: f32[128,128], index: 17, kind: input, shape index: {}]   ;;  %s8826_s18 = inlined_call_operand.vmem [shape: f32[1,128], index: 18, kind: input, shape index: {}]   ;;  %s8827_s19 = inlined_call_operand.vmem [shape: f32[1,128], index: 19, kind: input, shape index: {}]   ;;  %s8828_s20 = inlined_call_operand.hbm [shape: f32[1,64,128], index: 20, kind: output, shape index: {}]  }
   0x1   :  { %9019 = sst [smem:[#allocation80_spill]] %s8808_s0 }
   0x2   :  { %9020 = sst [smem:[#allocation81_spill]] %s8809_s1 }
   0x3   :  { %9021 = sst [smem:[#allocation82_spill]] %s8810_s2 }
   0x4   :  { %9022 = sst [smem:[#allocation83_spill]] %s8811_s3 }
   0x5   :  { %9023 = sst [smem:[#allocation84_spill]] %s8812_s4 }
   0x6   :  { %25 = vsyncpa [#allocation8], 0 }
   0x7   :  { %26 = vsyncpa [#allocation11], 0 }
   0x8   :  { %27 = vsyncpa [#allocation14], 0 }
   0x9   :  { %28 = vsyncpa [#allocation17], 0 }
   0xa   :  { %29 = vsyncpa [#allocation20], 0 }
   0xb   :  { %30 = vsyncpa [#allocation9], 0  ;;  %s6537_s1 = smov [#allocation10]  }
   0xc   :  { %s57_s22 = sshll.u32 %s6537_s1, 4  ;;  %s58_s22 = int_to_ptr.vmem [resolvable:$true] %s57_s22 }
   0xd   :  { %s6333_s23 = scalar_lea.vmem %s58_s22, 16  ;;  %s6337_s24 = scalar_lea.vmem %s58_s22, 32 }
   0xe   :  { %p6334_p0 = scmp.ne.s32.totalorder %s58_s22, %s6333_s23  ;;  %p6338_p1 = scmp.lt.s32.totalorder %s58_s22, %s58_s22 }
   0xf   :  { %p6339_p2 = scmp.lt.s32.totalorder %s6337_s24, %s6333_s23 }
  0x11   :  { %p6340_p3 = por %p6339_p2, %p6338_p1 }
  0x13   :  { %p6341_p4 = pnand %p6340_p3, %p6334_p0 }
  0x15   :  { %6344 = shalt.err (!%p6341_p4)
}
  0x16   :  { %60 = dma.hbm_to_vmem [thread:$0]  %s8813_s5, 16, %s58_s22, [#allocation11]  }
  0x17   :  { %s6538_s3 = smov [#allocation13]  }
  0x18   :  { %s78_s26 = sshll.u32 %s6538_s3, 4  ;;  %s79_s26 = int_to_ptr.vmem [resolvable:$true] %s78_s26 }
  0x19   :  { %s6353_s27 = scalar_lea.vmem %s79_s26, 1024  ;;  %p6358_p6 = scmp.lt.s32.totalorder %s79_s26, %s79_s26 }
  0x1a   :  { %p6354_p5 = scmp.ne.s32.totalorder %s79_s26, %s6353_s27  ;;  %p6359_p7 = scmp.lt.s32.totalorder %s6353_s27, %s6353_s27 }
  0x1c   :  { %p6360_p8 = por %p6359_p7, %p6358_p6 }
  0x1e   :  { %p6361_p9 = pnand %p6360_p8, %p6354_p5 }
  0x20   :  { %6364 = shalt.err (!%p6361_p9)
}
  0x21   :  { %s6539_s28 = smov 128   ;;  %s6540_s4 = smov 8  }
  0x22   :  { %84 = dma.hbm_to_vmem [thread:$0]  %s8815_s7, 1024, %s79_s26, [#allocation14], %s6539_s28, %s6539_s28, %s6540_s4  }
  0x23   :  { %s6541_s5 = smov [#allocation16]   ;;  %s6542_s21 = smov [#allocation19]  }
  0x24   :  { %s108_s0 = sshll.u32 %s6541_s5, 4  ;;  %s134_s1 = sshll.u32 %s6542_s21, 4  ;;  %s109_s0 = int_to_ptr.vmem [resolvable:$true] %s108_s0  ;;  %s135_s1 = int_to_ptr.vmem [resolvable:$true] %s134_s1 }
  0x25   :  { %s6373_s22 = scalar_lea.vmem %s109_s0, 8192  ;;  %p6378_p11 = scmp.lt.s32.totalorder %s109_s0, %s109_s0 }
  0x26   :  { %p6374_p10 = scmp.ne.s32.totalorder %s109_s0, %s6373_s22  ;;  %p6379_p12 = scmp.lt.s32.totalorder %s6373_s22, %s6373_s22 }
  0x28   :  { %p6380_p13 = por %p6379_p12, %p6378_p11 }
  0x2a   :  { %p6381_p0 = pnand %p6380_p13, %p6374_p10 }
  0x2c   :  { %6384 = shalt.err (!%p6381_p0)
}
  0x2d   :  { %s6543_s23 = smov 512   ;;  %s6544_s24 = smov 32  }
  0x2e   :  { %114 = dma.hbm_to_vmem [thread:$0]  %s8820_s12, 8192, %s109_s0, [#allocation17], %s6543_s23, %s6543_s23, %s6544_s24  }
  0x2f   :  { %s6393_s25 = scalar_lea.vmem %s135_s1, 8192  ;;  %p6398_p2 = scmp.lt.s32.totalorder %s135_s1, %s135_s1 }
  0x30   :  { %p6394_p1 = scmp.ne.s32.totalorder %s135_s1, %s6393_s25  ;;  %p6399_p3 = scmp.lt.s32.totalorder %s6393_s25, %s6393_s25 }
  0x32   :  { %p6400_p4 = por %p6399_p3, %p6398_p2 }
  0x34   :  { %p6401_p5 = pnand %p6400_p4, %p6394_p1 }
  0x36   :  { %6404 = shalt.err (!%p6401_p5)
}
  0x37   :  { %140 = dma.hbm_to_vmem [thread:$0]  %s8823_s15, 8192, %s135_s1, [#allocation20], %s6543_s23, %s6543_s23, %s6544_s24  }
  0x38   :  { %s6545_s27 = smov [#allocation7]   ;;  %s6546_s30 = smov [#allocation12]  }
  0x39   :  { %s44_s29 = sshll.u32 %s6545_s27, 4  ;;  %s66_s5 = sshll.u32 %s6546_s30, 4  ;;  %s45_s29 = int_to_ptr.vmem [resolvable:$true] %s44_s29  ;;  %s67_s5 = int_to_ptr.vmem [resolvable:$true] %s66_s5 }
  0x3a   :  { %s6413_s12 = scalar_lea.vmem %s45_s29, 512  ;;  %p6418_p7 = scmp.lt.s32.totalorder %s45_s29, %s45_s29 }
  0x3b   :  { %p6414_p6 = scmp.ne.s32.totalorder %s45_s29, %s6413_s12  ;;  %p6419_p8 = scmp.lt.s32.totalorder %s6413_s12, %s6413_s12 }
  0x3d   :  { %p6420_p9 = por %p6419_p8, %p6418_p7 }
  0x3f   :  { %p6421_p10 = pnand %p6420_p9, %p6414_p6 }
  0x41   :  { %6424 = shalt.err (!%p6421_p10)
}
  0x42   :  { %s9024_s22 = sld [smem:[#allocation84_spill]]  ;;  %s6433_s15 = scalar_lea.vmem %s67_s5, 1024 }
  0x43   :  { %p6434_p11 = scmp.ne.s32.totalorder %s67_s5, %s6433_s15  ;;  %p6438_p12 = scmp.lt.s32.totalorder %s67_s5, %s67_s5 }
  0x44   :  { %p6439_p13 = scmp.lt.s32.totalorder %s6433_s15, %s6433_s15 }
  0x46   :  { %p6440_p0 = por %p6439_p13, %p6438_p12 }
  0x48   :  { %50 = dma.hbm_to_vmem [thread:$0]  %s9024_s22, 512, %s45_s29, [#allocation8], %s6539_s28, %s6539_s28, %s6540_s4  }
  0x49   :  { %p6441_p1 = pnand %p6440_p0, %p6434_p11 }
  0x4b   :  { %6444 = shalt.err (!%p6441_p1)
}
  0x4c   :  { %72 = dma.hbm_to_vmem [thread:$0]  %s8814_s6, 1024, %s67_s5, [#allocation11], %s6539_s28, %s6539_s28, %s6540_s4  }
  0x4d   :  { %s6547_s7 = smov [#allocation15]   ;;  %s6548_s3 = smov [#allocation18]  }
  0x4e   :  { %s96_s25 = sshll.u32 %s6547_s7, 4  ;;  %s122_s26 = sshll.u32 %s6548_s3, 4  ;;  %s97_s25 = int_to_ptr.vmem [resolvable:$true] %s96_s25  ;;  %s123_s26 = int_to_ptr.vmem [resolvable:$true] %s122_s26 }
  0x4f   :  { %s6453_s27 = scalar_lea.vmem %s97_s25, 4096  ;;  %p6458_p3 = scmp.lt.s32.totalorder %s97_s25, %s97_s25 }
  0x50   :  { %p6454_p2 = scmp.ne.s32.totalorder %s97_s25, %s6453_s27  ;;  %p6459_p4 = scmp.lt.s32.totalorder %s6453_s27, %s6453_s27 }
  0x52   :  { %p6460_p5 = por %p6459_p4, %p6458_p3 }
  0x54   :  { %p6461_p6 = pnand %p6460_p5, %p6454_p2 }
  0x56   :  { %6464 = shalt.err (!%p6461_p6)
}
  0x57   :  { %102 = dma.hbm_to_vmem [thread:$0]  %s8819_s11, 4096, %s97_s25, [#allocation14], %s6543_s23, %s6543_s23, %s6544_s24  }
  0x58   :  { %s6473_s6 = scalar_lea.vmem %s123_s26, 8192  ;;  %p6478_p8 = scmp.lt.s32.totalorder %s123_s26, %s123_s26 }
  0x59   :  { %p6474_p7 = scmp.ne.s32.totalorder %s123_s26, %s6473_s6  ;;  %p6479_p9 = scmp.lt.s32.totalorder %s6473_s6, %s6473_s6 }
  0x5b   :  { %p6480_p10 = por %p6479_p9, %p6478_p8 }
  0x5d   :  { %p6481_p11 = pnand %p6480_p10, %p6474_p7 }
  0x5f   :  { %6484 = shalt.err (!%p6481_p11)
}
  0x60   :  { %128 = dma.hbm_to_vmem [thread:$0]  %s8822_s14, 8192, %s123_s26, [#allocation17], %s6543_s23, %s6543_s23, %s6544_s24  }
  0x61   :  { %s6549_s0 = smov [#allocation21]  }
  0x62   :  { %s148_s21 = sshll.u32 %s6549_s0, 4  ;;  %s149_s21 = int_to_ptr.vmem [resolvable:$true] %s148_s21 }
  0x63   :  { %s6493_s22 = scalar_lea.vmem %s149_s21, 2048  ;;  %p6498_p13 = scmp.lt.s32.totalorder %s149_s21, %s149_s21 }
  0x64   :  { %p6494_p12 = scmp.ne.s32.totalorder %s149_s21, %s6493_s22  ;;  %p6499_p0 = scmp.lt.s32.totalorder %s6493_s22, %s6493_s22 }
  0x66   :  { %p6500_p1 = por %p6499_p0, %p6498_p13 }
  0x68   :  { %p6501_p2 = pnand %p6500_p1, %p6494_p12 }
  0x6a   :  { %6504 = shalt.err (!%p6501_p2)
}
  0x6b   :  { %154 = dma.hbm_to_vmem [thread:$0]  %s8825_s17, 2048, %s149_s21, [#allocation20], %s6539_s28, %s6539_s28, %s6540_s4  }
  0x6c   :  { %6525 = dma.done.wait [#allocation8], 512  }
  0x6d   :  { %6526 = vsyncadd [#allocation8], 4294966784 }
  0x6e   :  { %6527 = dma.done.wait [#allocation11], 1040  }
  0x6f   :  { %6528 = vsyncadd [#allocation11], 4294966256 }
  0x70   :  { %6529 = dma.done.wait [#allocation14], 5120  }
  0x71   :  { %6530 = vsyncadd [#allocation14], 4294962176 }
  0x72   :  { %6531 = dma.done.wait [#allocation17], 16384  }
  0x73   :  { %6532 = vsyncadd [#allocation17], 4294950912 }
  0x74   :  { %6533 = dma.done.wait [#allocation20], 10240  }
  0x75   :  { %6534 = vsyncadd [#allocation20], 4294957056  ;;  %vm235_vm0 = vcmask 1043456   ;;  %vm210_vm1 = vcmask 31744   ;;  %s9025_s24 = sld [smem:[#allocation82_spill]]  ;;  %v355_v9 = vld [vmem:[#allocation7 + $0x18] sm:$0xff] }
  0x76   :  { %s9026_s7 = sld [smem:[#allocation81_spill]]  ;;  %5918 = vmatprep.subr.mxu1 %v355_v9  ;;  %v354_v10 = vld [vmem:[#allocation7 + $0x10] sm:$0xff]  ;;  %v353_v11 = vld [vmem:[#allocation7 + $0x8] sm:$0xff]  ;;  %v352_v12 = vld [vmem:[#allocation7] sm:$0xff]  ;;  %vm363_vm2 = vcmask 261120   ;;  %vm509_vm3 = vcmask 523264  }
  0x77   :  { %5919 = vmatpush3.msra.mxu1 %v355_v9  ;;  %v508_v13 = vld [vmem:[#allocation13 + $0x38] sm:$0xff]  ;;  %s9027_s23 = sld [smem:[#allocation83_spill]]  ;;  %v507_v25 = vld [vmem:[#allocation13 + $0x30] sm:$0xff]  ;;  %v506_v28 = vld [vmem:[#allocation13 + $0x28] sm:$0xff] }
  0x78   :  { %5920 = vmatprep.subr.mxu1 %v354_v10  ;;  %v505_v33 = vld [vmem:[#allocation13 + $0x20] sm:$0xff]  ;;  %v504_v36 = vld [vmem:[#allocation13 + $0x18] sm:$0xff]  ;;  %v503_v41 = vld [vmem:[#allocation13 + $0x10] sm:$0xff]  ;;  %s9028_s2 = sld [smem:[#allocation80_spill]] }
  0x79   :  { %5921 = vmatpush3.msra.mxu1 %v354_v10  ;;  %v502_v44 = vld [vmem:[#allocation13 + $0x8] sm:$0xff]  ;;  %v501_v45 = vld [vmem:[#allocation13] sm:$0xff]  ;;  %v500_v46 = vld [vmem:[#allocation12 + $0x38] sm:$0xff] }
  0x7a   :  { %5922 = vmatprep.subr.mxu1 %v353_v11  ;;  %v5733_v48 = vld [vmem:[#allocation10] ss:$0 sm:$0xff]  ;;  %v499_v53 = vld [vmem:[#allocation12 + $0x30] sm:$0xff]  ;;  %v498_v56 = vld [vmem:[#allocation12 + $0x28] sm:$0xff] }
  0x7b   :  { %v202_v0 = vld [vmem:[%s9025_s24] sm:$0xf]  ;;  %5923 = vmatpush3.msra.mxu1 %v353_v11 }
  0x7c   :  { %v194_v1 = vld [vmem:[%s9026_s7] sm:$0xff]  ;;  %v195_v2 = vld [vmem:[%s9026_s7 + $0x8] sm:$0xff]  ;;  %5904 = vmatprep.subr.msk.mxu0 %vm235_vm0, %v202_v0  ;;  %v196_v3 = vld [vmem:[%s9026_s7 + $0x10] sm:$0xff]  ;;  %5924 = vmatprep.subr.mxu1 %v352_v12 }
  0x7d   :  { %5906 = vmatprep.mubr.msk.f32.mxu0 %vm210_vm1, %v194_v1  ;;  %5905 = vmatpush3.msk.msra.mxu0 %vm235_vm0, %v202_v0  ;;  %v197_v4 = vld [vmem:[%s9026_s7 + $0x18] sm:$0xff]  ;;  %v198_v5 = vld [vmem:[%s9026_s7 + $0x20] sm:$0xff]  ;;  %v199_v6 = vld [vmem:[%s9026_s7 + $0x28] sm:$0xff] }
  0x7e   :  { %5907 = vmatmul.mubr.msk.f32.vlgmr.msra.gmra.mxu0 %vm210_vm1, %v195_v2  ;;  %v200_v7 = vld [vmem:[%s9026_s7 + $0x30] sm:$0xff]  ;;  %v201_v8 = vld [vmem:[%s9026_s7 + $0x38] sm:$0xff]  ;;  %5925 = vmatpush3.msra.mxu1 %v352_v12  ;;  %v5723_v14 = vld [vmem:[%s9027_s23] ss:$0 sm:$0xff] }
  0x7f   :  { %5909 = vmatprep.mubr.msk.f32.mxu0 %vm210_vm1, %v196_v3  ;;  %5938 = vmatprep.subr.mxu1 %v508_v13  ;;  %v497_v59 = vld [vmem:[#allocation12 + $0x20] sm:$0xff]  ;;  %v496_v62 = vld [vmem:[#allocation12 + $0x18] sm:$0xff]  ;;  %v495_v1 = vld [vmem:[#allocation12 + $0x10] sm:$0xff] }
  0x80   :  { %v188_v9 = vld [vmem:[%s9028_s2 + $0x10] sm:$0xff]  ;;  %v189_v10 = vld [vmem:[%s9028_s2 + $0x18] sm:$0xff]  ;;  %v190_v11 = vld [vmem:[%s9028_s2 + $0x20] sm:$0xff] }
  0x81   :  { %v191_v12 = vld [vmem:[%s9028_s2 + $0x28] sm:$0xff] }
  0x82   :  { %5910 = vmatmul.mubr.msk.f32.gmra.mxu0 %vm210_vm1, %v197_v4  ;;  %v494_v4 = vld [vmem:[#allocation12 + $0x8] sm:$0xff] }
  0x83   :  { %5912 = vmatprep.mubr.msk.f32.mxu0 %vm210_vm1, %v198_v5 }
  0x86   :  { %5913 = vmatmul.mubr.msk.f32.gmra.mxu0 %vm210_vm1, %v199_v6  ;;  %v186_v6 = vld [vmem:[%s9028_s2] sm:$0xff] }
  0x87   :  { %5915 = vmatprep.mubr.msk.f32.mxu0 %vm210_vm1, %v200_v7  ;;  %v493_v7 = vld [vmem:[#allocation12] sm:$0xff] }
  0x8a   :  { %5916 = vmatmul.mubr.msk.f32.gmra.mxu0 %vm210_vm1, %v201_v8  ;;  %v187_v8 = vld [vmem:[%s9028_s2 + $0x8] sm:$0xff] }
 0x13e   :  { %v5908_v15 = vpop.f32.mrf.mxu0 }
 0x13f   :  { %v311_v16 = vadd.f32 %v5908_v15, %v5723_v14 }
 0x140   :  { %v305_v17 = vpop.f32.mrf.mxu0 }
 0x141   :  { %v306_v18 = vadd.f32 %v5723_v14, %v305_v17  ;;  %v345_v21 = vmax.f32 %v311_v16, 0.0 }
 0x142   :  { %v5911_v19 = vpop.f32.mrf.mxu0 }
 0x143   :  { %v344_v20 = vmax.f32 %v306_v18, 0.0  ;;  %v321_v22 = vadd.f32 %v5911_v19, %v5723_v14 }
 0x144   :  { %v315_v23 = vpop.f32.mrf.mxu0 }
 0x145   :  { %v316_v24 = vadd.f32 %v5723_v14, %v315_v23  ;;  %5926 = vmatprep.mubr.msk.f32.mxu1 %vm363_vm2, %v344_v20  ;;  %v347_v29 = vmax.f32 %v321_v22, 0.0 }
 0x146   :  { %v5914_v26 = vpop.f32.mrf.mxu0  ;;  %5927 = vmatmul.mubr.msk.f32.vlgmr.msra.gmra.mxu1 %vm363_vm2, %v345_v21 }
 0x147   :  { %v346_v27 = vmax.f32 %v316_v24, 0.0  ;;  %5939 = vmatpush3.msra.mxu1 %v508_v13  ;;  %v331_v30 = vadd.f32 %v5914_v26, %v5723_v14  ;;  %v192_v13 = vld [vmem:[%s9028_s2 + $0x30] sm:$0xff] }
 0x148   :  { %v325_v31 = vpop.f32.mrf.mxu0  ;;  %5940 = vmatprep.subr.mxu1 %v507_v25 }
 0x149   :  { %v326_v32 = vadd.f32 %v5723_v14, %v325_v31  ;;  %5929 = vmatprep.mubr.msk.f32.mxu1 %vm363_vm2, %v346_v27  ;;  %5941 = vmatpush3.msra.mxu1 %v507_v25  ;;  %v349_v37 = vmax.f32 %v331_v30, 0.0 }
 0x14a   :  { %v5917_v34 = vpop.f32.mrf.mxu0  ;;  %5930 = vmatmul.mubr.msk.f32.gmra.mxu1 %vm363_vm2, %v347_v29  ;;  %5942 = vmatprep.subr.mxu1 %v506_v28 }
 0x14b   :  { %v348_v35 = vmax.f32 %v326_v32, 0.0  ;;  %5943 = vmatpush3.msra.mxu1 %v506_v28  ;;  %v341_v38 = vadd.f32 %v5917_v34, %v5723_v14  ;;  %v5758_v28 = vld [vmem:[%s8816_s8] ss:$0 sm:$0xff] }
 0x14c   :  { %v335_v39 = vpop.f32.mrf.mxu0  ;;  %5944 = vmatprep.subr.mxu1 %v505_v33 }
 0x14d   :  { %v336_v40 = vadd.f32 %v5723_v14, %v335_v39  ;;  %5932 = vmatprep.mubr.msk.f32.mxu1 %vm363_vm2, %v348_v35  ;;  %5945 = vmatpush3.msra.mxu1 %v505_v33  ;;  %v351_v43 = vmax.f32 %v341_v38, 0.0  ;;  %v193_v14 = vld [vmem:[%s9028_s2 + $0x38] sm:$0xff] }
 0x14e   :  { %5933 = vmatmul.mubr.msk.f32.gmra.mxu1 %vm363_vm2, %v349_v37  ;;  %5946 = vmatprep.subr.mxu1 %v504_v36 }
 0x14f   :  { %v350_v42 = vmax.f32 %v336_v40, 0.0  ;;  %5947 = vmatpush3.msra.mxu1 %v504_v36 }
 0x150   :  { %5948 = vmatprep.subr.mxu1 %v503_v41 }
 0x151   :  { %5935 = vmatprep.mubr.msk.f32.mxu1 %vm363_vm2, %v350_v42  ;;  %5949 = vmatpush3.msra.mxu1 %v503_v41 }
 0x152   :  { %5936 = vmatmul.mubr.msk.f32.gmra.mxu1 %vm363_vm2, %v351_v43  ;;  %5950 = vmatprep.subr.mxu1 %v502_v44 }
 0x153   :  { %5951 = vmatpush3.msra.mxu1 %v502_v44 }
 0x154   :  { %5952 = vmatprep.subr.mxu1 %v501_v45 }
 0x155   :  { %5953 = vmatpush3.msra.mxu1 %v501_v45 }
 0x156   :  { %5966 = vmatprep.subr.mxu1 %v500_v46 }
 0x206   :  { %v5928_v47 = vpop.f32.mrf.mxu1 }
 0x207   :  { %v460_v51 = vadd.f32 %v5928_v47, %v5733_v48 }
 0x208   :  { %v454_v49 = vpop.f32.mrf.mxu1 }
 0x209   :  { %v455_v50 = vadd.f32 %v5733_v48, %v454_v49 }
 0x20a   :  { %v5931_v52 = vpop.f32.mrf.mxu1 }
 0x20b   :  { %5954 = vmatprep.mubr.msk.f32.mxu1 %vm509_vm3, %v455_v50  ;;  %v470_v57 = vadd.f32 %v5931_v52, %v5733_v48 }
 0x20c   :  { %v464_v54 = vpop.f32.mrf.mxu1  ;;  %5955 = vmatmul.mubr.msk.f32.vlgmr.msra.gmra.mxu1 %vm509_vm3, %v460_v51 }
 0x20d   :  { %v465_v55 = vadd.f32 %v5733_v48, %v464_v54  ;;  %5967 = vmatpush3.msra.mxu1 %v500_v46 }
 0x20e   :  { %5968 = vmatprep.subr.mxu1 %v499_v53  ;;  %v5934_v58 = vpop.f32.mrf.mxu1 }
 0x20f   :  { %5969 = vmatpush3.msra.mxu1 %v499_v53  ;;  %5957 = vmatprep.mubr.msk.f32.mxu1 %vm509_vm3, %v465_v55  ;;  %v480_v63 = vadd.f32 %v5934_v58, %v5733_v48 }
 0x210   :  { %5970 = vmatprep.subr.mxu1 %v498_v56  ;;  %v474_v60 = vpop.f32.mrf.mxu1  ;;  %5958 = vmatmul.mubr.msk.f32.gmra.mxu1 %vm509_vm3, %v470_v57 }
 0x211   :  { %v475_v61 = vadd.f32 %v5733_v48, %v474_v60  ;;  %5971 = vmatpush3.msra.mxu1 %v498_v56 }
 0x212   :  { %5972 = vmatprep.subr.mxu1 %v497_v59  ;;  %v5937_v0 = vpop.f32.mrf.mxu1 }
 0x213   :  { %5973 = vmatpush3.msra.mxu1 %v497_v59  ;;  %5960 = vmatprep.mubr.msk.f32.mxu1 %vm509_vm3, %v475_v61  ;;  %v490_v5 = vadd.f32 %v5937_v0, %v5733_v48 }
 0x214   :  { %5974 = vmatprep.subr.mxu1 %v496_v62  ;;  %v484_v2 = vpop.f32.mrf.mxu1  ;;  %5961 = vmatmul.mubr.msk.f32.gmra.mxu1 %vm509_vm3, %v480_v63 }
 0x215   :  { %v485_v3 = vadd.f32 %v5733_v48, %v484_v2  ;;  %5975 = vmatpush3.msra.mxu1 %v496_v62 }
 0x216   :  { %5976 = vmatprep.subr.mxu1 %v495_v1 }
 0x217   :  { %5977 = vmatpush3.msra.mxu1 %v495_v1  ;;  %5963 = vmatprep.mubr.msk.f32.mxu1 %vm509_vm3, %v485_v3 }
 0x218   :  { %5978 = vmatprep.subr.mxu1 %v494_v4  ;;  %5964 = vmatmul.mubr.msk.f32.gmra.mxu1 %vm509_vm3, %v490_v5 }
 0x219   :  { %5979 = vmatpush3.msra.mxu1 %v494_v4  ;;  %5982 = vmatprep.mubr.msk.f32.mxu1 %vm509_vm3, %v186_v6 }
 0x21a   :  { %5980 = vmatprep.subr.mxu1 %v493_v7 }
 0x21b   :  { %5981 = vmatpush3.msra.mxu1 %v493_v7 }
 0x21c   :  { %5983 = vmatmul.mubr.msk.f32.vlgmr.msra.gmra.mxu1 %vm509_vm3, %v187_v8 }
 0x21d   :  { %5985 = vmatprep.mubr.msk.f32.mxu1 %vm509_vm3, %v188_v9 }
 0x220   :  { %5986 = vmatmul.mubr.msk.f32.gmra.mxu1 %vm509_vm3, %v189_v10 }
 0x221   :  { %5988 = vmatprep.mubr.msk.f32.mxu1 %vm509_vm3, %v190_v11 }
 0x224   :  { %5989 = vmatmul.mubr.msk.f32.gmra.mxu1 %vm509_vm3, %v191_v12 }
 0x225   :  { %5991 = vmatprep.mubr.msk.f32.mxu1 %vm509_vm3, %v192_v13 }
 0x228   :  { %5992 = vmatmul.mubr.msk.f32.gmra.mxu1 %vm509_vm3, %v193_v14 }
 0x2cc   :  { %v5956_v15 = vpop.f32.mrf.mxu1 }
 0x2ce   :  { %v600_v16 = vpop.f32.mrf.mxu1 }
 0x2d0   :  { %v5959_v17 = vpop.f32.mrf.mxu1 }
 0x2d2   :  { %v610_v18 = vpop.f32.mrf.mxu1 }
 0x2d4   :  { %v5962_v19 = vpop.f32.mrf.mxu1 }
 0x2d6   :  { %v620_v20 = vpop.f32.mrf.mxu1 }
 0x2d8   :  { %v5965_v21 = vpop.f32.mrf.mxu1 }
 0x2da   :  { %v630_v22 = vpop.f32.mrf.mxu1 }
 0x2dc   :  { %v5984_v23 = vpop.f32.mrf.mxu1 }
 0x2dd   :  { %v735_v25 = vadd.f32 %v5984_v23, %v5956_v15 }
 0x2de   :  { %v729_v24 = vpop.f32.mrf.mxu1 }
 0x2df   :  { %v730_v26 = vadd.f32 %v729_v24, %v600_v16  ;;  %v776_v34 = vadd.f32 %v5758_v28, %v735_v25 }
 0x2e0   :  { %v5987_v27 = vpop.f32.mrf.mxu1 }
 0x2e1   :  { %v775_v29 = vadd.f32 %v5758_v28, %v730_v26  ;;  %v745_v30 = vadd.f32 %v5987_v27, %v5959_v17  ;;  %v786_v42 = vsel %vm509_vm3, %v776_v34, 0.0 }
 0x2e2   :  { %v739_v31 = vpop.f32.mrf.mxu1 }
 0x2e3   :  { %v740_v32 = vadd.f32 %v739_v31, %v610_v18  ;;  %v783_v33 = vsel %vm509_vm3, %v775_v29, 0.0  ;;  %v778_v38 = vadd.f32 %v5758_v28, %v745_v30 }
 0x2e4   :  { %v5990_v35 = vpop.f32.mrf.mxu1  ;;  %784 = vadd.xlane.f32.xlu0 %v783_v33  ;;  %v949_v33 = vld [vmem:[#allocation15 + $0xf8] sm:$0xff] }
 0x2e5   :  { %v777_v36 = vadd.f32 %v5758_v28, %v740_v32  ;;  %v755_v39 = vadd.f32 %v5990_v35, %v5962_v19  ;;  %v792_v46 = vsel %vm509_vm3, %v778_v38, 0.0  ;;  %v947_v32 = vld [vmem:[#allocation15 + $0xe8] sm:$0xff]  ;;  %1125 = vmatprep.subr.mxu1 %v949_v33  ;;  %v948_v35 = vld [vmem:[#allocation15 + $0xf0] sm:$0xff]  ;;  %v6866_v33 = vld [vmem:[#allocation16 + $0x1e0] sm:$0xff] }
 0x2e6   :  { %v749_v37 = vpop.f32.mrf.mxu1  ;;  %1012 = vmatprep.subr.mxu0 %v947_v32  ;;  %1126 = vmatpush1.msra.mxu1 %v948_v35 }
 0x2e7   :  { %v750_v40 = vadd.f32 %v749_v37, %v620_v20  ;;  %v789_v41 = vsel %vm509_vm3, %v777_v36, 0.0  ;;  %v780_v50 = vadd.f32 %v5758_v28, %v755_v39  ;;  %v945_v37 = vld [vmem:[#allocation15 + $0xd8] sm:$0xff]  ;;  %v944_v39 = vld [vmem:[#allocation15 + $0xd0] sm:$0xff] }
 0x2e8   :  { %v5993_v43 = vpop.f32.mrf.mxu1  ;;  %790 = vadd.xlane.f32.xlu1 %v789_v41  ;;  %787 = vadd.xlane.f32.xlu0 %v786_v42  ;;  %v941_v41 = vld [vmem:[#allocation15 + $0xb8] sm:$0xff]  ;;  %v938_v42 = vld [vmem:[#allocation15 + $0xa0] sm:$0xff] }
 0x2e9   :  { %v779_v44 = vadd.f32 %v5758_v28, %v750_v40  ;;  %v765_v47 = vadd.f32 %v5993_v43, %v5965_v21  ;;  %v798_v52 = vsel %vm509_vm3, %v780_v50, 0.0  ;;  %1127 = vmatprep.subr.mxu1 %v945_v37  ;;  %v939_v40 = vld [vmem:[#allocation15 + $0xa8] sm:$0xff]  ;;  %v940_v43 = vld [vmem:[#allocation15 + $0xb0] sm:$0xff]  ;;  %v6874_v37 = vld [vmem:[#allocation16 + $0x1d8] sm:$0xff] }
 0x2ea   :  { %v759_v45 = vpop.f32.mrf.mxu1  ;;  %1128 = vmatpush1.msra.mxu1 %v944_v39  ;;  %v6878_v39 = vld [vmem:[#allocation16 + $0x1c0] sm:$0xff] }
 0x2eb   :  { %v760_v48 = vadd.f32 %v759_v45, %v630_v22  ;;  %v795_v49 = vsel %vm509_vm3, %v779_v44, 0.0  ;;  %v782_v54 = vadd.f32 %v5758_v28, %v765_v47  ;;  %1129 = vmatprep.subr.mxu1 %v941_v41  ;;  %v937_v45 = vld [vmem:[#allocation15 + $0x98] sm:$0xff]  ;;  %v936_v47 = vld [vmem:[#allocation15 + $0x90] sm:$0xff] }
 0x2ec   :  { %793 = vadd.xlane.f32.xlu1 %v792_v46  ;;  %796 = vadd.xlane.f32.xlu0 %v795_v49  ;;  %v934_v46 = vld [vmem:[#allocation15 + $0x80] sm:$0xff]  ;;  %v933_v49 = vld [vmem:[#allocation15 + $0x78] sm:$0xff] }
 0x2ed   :  { %v781_v51 = vadd.f32 %v5758_v28, %v760_v48  ;;  %v804_v55 = vsel %vm509_vm3, %v782_v54, 0.0  ;;  %1130 = vmatpush1.msra.mxu1 %v940_v43  ;;  %v931_v48 = vld [vmem:[#allocation15 + $0x68] sm:$0xff]  ;;  %v6886_v43 = vld [vmem:[#allocation16 + $0x1d0] sm:$0xff] }
 0x2ee   :  { %1131 = vmatprep.subr.mxu1 %v937_v45 }
 0x2ef   :  { %v801_v53 = vsel %vm509_vm3, %v781_v51, 0.0  ;;  %1132 = vmatpush1.msra.mxu1 %v936_v47  ;;  %v6893_v47 = vld [vmem:[#allocation16 + $0x1a0] sm:$0xff] }
 0x2f0   :  { %799 = vadd.xlane.f32.xlu1 %v798_v52  ;;  %802 = vadd.xlane.f32.xlu0 %v801_v53  ;;  %v927_v52 = vld [vmem:[#allocation15 + $0x48] sm:$0xff]  ;;  %v929_v53 = vld [vmem:[#allocation15 + $0x58] sm:$0xff] }
 0x2f1   :  { %1133 = vmatprep.subr.mxu1 %v933_v49  ;;  %v6899_v49 = vld [vmem:[#allocation16 + $0x188] sm:$0xff] }
 0x2f4   :  { %805 = vadd.xlane.f32.xlu1 %v804_v55  ;;  %v928_v55 = vld [vmem:[#allocation15 + $0x50] sm:$0xff] }
 0x36d   :  { %v785_v56 = vpop.xlane.xlu0 %784 }
 0x36e   :  { %v808_v57 = vmul.f32 0.015625, %v785_v56  ;;  %v923_v56 = vld [vmem:[#allocation15 + $0x28] sm:$0xff] }
 0x370   :  { %v6805_v58 = vsub.f32 %v775_v29, %v808_v57  ;;  %v925_v57 = vld [vmem:[#allocation15 + $0x38] sm:$0xff] }
 0x371   :  { %v791_v59 = vpop.xlane.xlu1 %790  ;;  %v788_v60 = vpop.xlane.xlu0 %787 }
 0x372   :  { %v810_v61 = vmul.f32 0.015625, %v791_v59  ;;  %v809_v62 = vmul.f32 0.015625, %v788_v60  ;;  %v824_v63 = vmul.f32 %v6805_v58, %v6805_v58  ;;  %v922_v59 = vld [vmem:[#allocation15 + $0x20] sm:$0xff]  ;;  %v924_v60 = vld [vmem:[#allocation15 + $0x30] sm:$0xff] }
 0x374   :  { %v6809_v0 = vsub.f32 %v777_v36, %v810_v61  ;;  %v6811_v1 = vsub.f32 %v776_v34, %v809_v62  ;;  %v832_v2 = vsel %vm509_vm3, %v824_v63, 0.0  ;;  %v946_v34 = vld [vmem:[#allocation15 + $0xe0] sm:$0xff]  ;;  %v943_v36 = vld [vmem:[#allocation15 + $0xc8] sm:$0xff]  ;;  %v921_v63 = vld [vmem:[#allocation15 + $0x18] sm:$0xff] }
 0x375   :  { %v794_v3 = vpop.xlane.xlu1 %793  ;;  %833 = vadd.xlane.f32.xlu0 %v832_v2  ;;  %v797_v4 = vpop.xlane.xlu0 %796  ;;  %1013 = vmatpush1.msra.mxu0 %v946_v34  ;;  %v919_v61 = vld [vmem:[#allocation15 + $0x8] sm:$0xff]  ;;  %v918_v62 = vld [vmem:[#allocation15] sm:$0xff]  ;;  %v920_v2 = vld [vmem:[#allocation15 + $0x10] sm:$0xff] }
 0x376   :  { %v811_v5 = vmul.f32 0.015625, %v794_v3  ;;  %v812_v6 = vmul.f32 0.015625, %v797_v4  ;;  %v826_v7 = vmul.f32 %v6809_v0, %v6809_v0  ;;  %v825_v8 = vmul.f32 %v6811_v1, %v6811_v1  ;;  %1014 = vmatprep.subr.mxu0 %v943_v36  ;;  %v6845_v3 = vld [vmem:[#allocation16 + $0x1e8] sm:$0xff]  ;;  %v6868_v34 = vld [vmem:[#allocation16 + $0x1f0] sm:$0xff] }
 0x377   :  { %v8835_v4 = vmov 0.0   ;;  %v6872_v36 = vld [vmem:[#allocation16 + $0x1c8] sm:$0xff] }
 0x378   :  { %v6818_v9 = vsub.f32 %v778_v38, %v811_v5  ;;  %v6820_v10 = vsub.f32 %v779_v44, %v812_v6  ;;  %v838_v12 = vsel %vm509_vm3, %v826_v7, 0.0  ;;  %v835_v13 = vsel %vm509_vm3, %v825_v8, 0.0  ;;  %v942_v38 = vld [vmem:[#allocation15 + $0xc0] sm:$0xff]  ;;  %v935_v44 = vld [vmem:[#allocation15 + $0x88] sm:$0xff]  ;;  %1060 = vmatprep.mubr.f32.mxu0 %v8835_v4  ;;  %v6848_v5 = vld [vmem:[#allocation16 + $0x1f8] sm:$0xff]  ;;  %1173 = vmatprep.mubr.f32.mxu1 %v8835_v4 }
 0x379   :  { %v800_v11 = vpop.xlane.xlu1 %799  ;;  %v803_v14 = vpop.xlane.xlu0 %802  ;;  %839 = vadd.xlane.f32.xlu0 %v838_v12  ;;  %836 = vadd.xlane.f32.xlu1 %v835_v13 }
 0x37a   :  { %v813_v15 = vmul.f32 0.015625, %v800_v11  ;;  %v814_v16 = vmul.f32 0.015625, %v803_v14  ;;  %v827_v17 = vmul.f32 %v6818_v9, %v6818_v9  ;;  %v828_v18 = vmul.f32 %v6820_v10, %v6820_v10  ;;  %1015 = vmatpush1.msra.mxu0 %v942_v38 }
 0x37b   :  { %1016 = vmatprep.subr.mxu0 %v939_v40  ;;  %v6882_v40 = vld [vmem:[#allocation16 + $0x1a8] sm:$0xff] }
 0x37c   :  { %v6828_v19 = vsub.f32 %v780_v50, %v813_v15  ;;  %v6830_v20 = vsub.f32 %v781_v51, %v814_v16  ;;  %v841_v22 = vsel %vm509_vm3, %v827_v17, 0.0  ;;  %v844_v23 = vsel %vm509_vm3, %v828_v18, 0.0  ;;  %1017 = vmatpush1.msra.mxu0 %v938_v42  ;;  %v930_v50 = vld [vmem:[#allocation15 + $0x60] sm:$0xff]  ;;  %v932_v51 = vld [vmem:[#allocation15 + $0x70] sm:$0xff] }
 0x37d   :  { %v806_v21 = vpop.xlane.xlu1 %805  ;;  %842 = vadd.xlane.f32.xlu1 %v841_v22  ;;  %845 = vadd.xlane.f32.xlu0 %v844_v23  ;;  %v6856_v22 = vld [vmem:[%s8817_s9] ss:$0 sm:$0xff] }
 0x37e   :  { %v815_v24 = vmul.f32 0.015625, %v806_v21  ;;  %v829_v25 = vmul.f32 %v6828_v19, %v6828_v19  ;;  %v830_v26 = vmul.f32 %v6830_v20, %v6830_v20  ;;  %1018 = vmatprep.subr.mxu0 %v935_v44  ;;  %1134 = vmatpush1.msra.mxu1 %v932_v51  ;;  %v872_v35 = vmul.f32 %v6856_v22, %v6811_v1  ;;  %v6905_v51 = vld [vmem:[#allocation16 + $0x180] sm:$0xff] }
 0x37f   :  { %1019 = vmatpush1.msra.mxu0 %v934_v46  ;;  %1135 = vmatprep.subr.mxu1 %v929_v53  ;;  %v873_v44 = vmul.f32 %v6856_v22, %v6809_v0  ;;  %v6903_v0 = vld [vmem:[#allocation16 + $0x1b0] sm:$0xff]  ;;  %v6909_v53 = vld [vmem:[#allocation16 + $0x198] sm:$0xff] }
 0x380   :  { %v6838_v27 = vsub.f32 %v782_v54, %v815_v24  ;;  %v847_v28 = vsel %vm509_vm3, %v829_v25, 0.0  ;;  %v850_v29 = vsel %vm509_vm3, %v830_v26, 0.0  ;;  %1020 = vmatprep.subr.mxu0 %v931_v48  ;;  %v926_v54 = vld [vmem:[#allocation15 + $0x40] sm:$0xff]  ;;  %1136 = vmatpush1.msra.mxu1 %v928_v55  ;;  %v871_v25 = vmul.f32 %v6856_v22, %v6805_v58  ;;  %v6897_v48 = vld [vmem:[#allocation16 + $0x1b8] sm:$0xff] }
 0x381   :  { %848 = vadd.xlane.f32.xlu1 %v847_v28  ;;  %851 = vadd.xlane.f32.xlu0 %v850_v29  ;;  %v6863_v28 = vld [vmem:[%s8818_s10] ss:$0 sm:$0xff] }
 0x382   :  { %v831_v30 = vmul.f32 %v6838_v27, %v6838_v27  ;;  %1021 = vmatpush1.msra.mxu0 %v930_v50  ;;  %1137 = vmatprep.subr.mxu1 %v925_v57  ;;  %v6917_v57 = vld [vmem:[#allocation16 + $0x190] sm:$0xff] }
 0x383   :  { %1022 = vmatprep.subr.mxu0 %v927_v52  ;;  %1138 = vmatpush1.msra.mxu1 %v924_v60 }
 0x384   :  { %v853_v31 = vsel %vm509_vm3, %v831_v30, 0.0  ;;  %1023 = vmatpush1.msra.mxu0 %v926_v54  ;;  %1139 = vmatprep.subr.mxu1 %v921_v63  ;;  %v6913_v54 = vld [vmem:[#allocation16 + $0x168] sm:$0xff]  ;;  %v6928_v63 = vld [vmem:[#allocation16 + $0x178] sm:$0xff] }
 0x385   :  { %854 = vadd.xlane.f32.xlu1 %v853_v31  ;;  %1024 = vmatprep.subr.mxu0 %v923_v56 }
 0x386   :  { %1025 = vmatpush1.msra.mxu0 %v922_v59  ;;  %1140 = vmatpush1.msra.mxu1 %v920_v2  ;;  %v874_v59 = vmul.f32 %v6856_v22, %v6818_v9  ;;  %v6930_v2 = vld [vmem:[#allocation16 + $0x148] sm:$0xff]  ;;  %v6934_v9 = vld [vmem:[#allocation16 + $0x170] sm:$0xff] }
 0x387   :  { %1026 = vmatprep.subr.mxu0 %v919_v61  ;;  %1399 = vmatprep.subr.mxu1 %v6848_v5 }
 0x388   :  { %1027 = vmatpush1.msra.mxu0 %v918_v62  ;;  %v6924_v62 = vld [vmem:[#allocation16 + $0x160] sm:$0xff] }
 0x389   :  { %1328 = vmatprep.subr.mxu0 %v6845_v3 }
 0x3fe   :  { %v834_v6 = vpop.xlane.xlu0 %833 }
 0x3ff   :  { %v856_v7 = vmul.f32 0.015625, %v834_v6 }
 0x401   :  { %v879_v8 = vadd.f32 1e-05, %v856_v7  ;;  %v6936_v7 = vld [vmem:[#allocation16 + $0x140] sm:$0xff] }
 0x402   :  { %v837_v11 = vpop.xlane.xlu1 %836  ;;  %v840_v12 = vpop.xlane.xlu0 %839 }
 0x403   :  { %6053 = vrsqrt.f32 %v879_v8  ;;  %v857_v13 = vmul.f32 0.015625, %v837_v11  ;;  %v858_v14 = vmul.f32 0.015625, %v840_v12  ;;  %v6940_v11 = vld [vmem:[#allocation16 + $0x158] sm:$0xff]  ;;  %v6944_v12 = vld [vmem:[#allocation16 + $0x128] sm:$0xff] }
 0x405   :  { %v880_v15 = vadd.f32 1e-05, %v857_v13  ;;  %v881_v16 = vadd.f32 1e-05, %v858_v14  ;;  %v6948_v14 = vld [vmem:[#allocation16 + $0x150] sm:$0xff] }
 0x406   :  { %v843_v17 = vpop.xlane.xlu1 %842  ;;  %v846_v21 = vpop.xlane.xlu0 %845 }
 0x407   :  { %6055 = vrsqrt.f32 %v880_v15  ;;  %v859_v18 = vmul.f32 0.015625, %v843_v17  ;;  %v860_v24 = vmul.f32 0.015625, %v846_v21  ;;  %v875_v15 = vmul.f32 %v6856_v22, %v6820_v10  ;;  %v6959_v21 = vld [vmem:[#allocation16 + $0x138] sm:$0xff]  ;;  %v6965_v10 = vld [vmem:[#allocation16 + $0x130] sm:$0xff] }
 0x408   :  { %6057 = vrsqrt.f32 %v881_v16 }
 0x409   :  { %v882_v23 = vadd.f32 1e-05, %v859_v18  ;;  %v883_v31 = vadd.f32 1e-05, %v860_v24  ;;  %v6955_v18 = vld [vmem:[#allocation16 + $0x120] sm:$0xff] }
 0x40a   :  { %v849_v30 = vpop.xlane.xlu1 %848  ;;  %v852_v42 = vpop.xlane.xlu0 %851  ;;  %v6967_v24 = vld [vmem:[#allocation16 + $0x100] sm:$0xff] }
 0x40b   :  { %6059 = vrsqrt.f32 %v882_v23  ;;  %v861_v58 = vmul.f32 0.015625, %v849_v30  ;;  %v862_v50 = vmul.f32 0.015625, %v852_v42  ;;  %v6961_v23 = vld [vmem:[#allocation16 + $0x108] sm:$0xff] }
 0x40c   :  { %6061 = vrsqrt.f32 %v883_v31  ;;  %v6979_v31 = vld [vmem:[#allocation16 + $0x110] sm:$0xff] }
 0x40d   :  { %v884_v45 = vadd.f32 1e-05, %v861_v58  ;;  %v885_v60 = vadd.f32 1e-05, %v862_v50  ;;  %v6986_v58 = vld [vmem:[#allocation16 + $0xe0] sm:$0xff]  ;;  %v7010_v50 = vld [vmem:[#allocation16 + $0xd0] sm:$0xff] }
 0x40e   :  { %v855_v56 = vpop.xlane.xlu1 %854 }
 0x40f   :  { %6063 = vrsqrt.f32 %v884_v45  ;;  %v863_v6 = vmul.f32 0.015625, %v855_v56  ;;  %v7006_v45 = vld [vmem:[#allocation16 + $0xa8] sm:$0xff]  ;;  %v7017_v56 = vld [vmem:[#allocation16 + $0xa0] sm:$0xff] }
 0x410   :  { %v6054_v26 = vpop.eup %6053  ;;  %6065 = vrsqrt.f32 %v885_v60  ;;  %v7023_v60 = vld [vmem:[#allocation16 + $0x88] sm:$0xff] }
 0x411   :  { %v895_v29 = vmul.f32 %v6054_v26, %v871_v25  ;;  %v886_v16 = vadd.f32 1e-05, %v863_v6  ;;  %v6971_v26 = vld [vmem:[#allocation16 + $0x118] sm:$0xff]  ;;  %9029 = vst [vmem:[#allocation29_spill] sm:$0xff] %v7023_v60 }
 0x413   :  { %v910_v32 = vadd.f32 %v6863_v28, %v895_v29  ;;  %6067 = vrsqrt.f32 %v886_v16  ;;  %v6975_v29 = vld [vmem:[#allocation16 + $0xe8] sm:$0xff]  ;;  %v7041_v16 = vld [vmem:[#allocation16 + $0x90] sm:$0xff] }
 0x414   :  { %v6056_v38 = vpop.eup %6055  ;;  %9033 = vst [vmem:[#allocation33_spill] sm:$0xff] %v7041_v16 }
 0x415   :  { %5761 = vmatmul.mubr.msk.f32.vlgmr.msra.gmra.mxu0 %vm509_vm3, %v910_v32  ;;  %5769 = vmatmul.mubr.msk.f32.vlgmr.msra.gmra.mxu1 %vm509_vm3, %v910_v32  ;;  %v896_v1 = vmul.f32 %v6056_v38, %v872_v35  ;;  %v6058_v41 = vpop.eup %6057  ;;  %v876_v32 = vmul.f32 %v6856_v22, %v6828_v19  ;;  %v6990_v38 = vld [vmem:[#allocation16 + $0xf8] sm:$0xff]  ;;  %v6996_v19 = vld [vmem:[#allocation16 + $0xf0] sm:$0xff] }
 0x416   :  { %1329 = vmatpush1.msra.mxu0 %v6866_v33  ;;  %1400 = vmatpush1.msra.mxu1 %v6868_v34  ;;  %v897_v52 = vmul.f32 %v6058_v41, %v873_v44  ;;  %v6998_v41 = vld [vmem:[#allocation16 + $0xc0] sm:$0xff]  ;;  %v7002_v44 = vld [vmem:[#allocation16 + $0xd8] sm:$0xff] }
 0x417   :  { %1330 = vmatprep.subr.mxu0 %v6872_v36  ;;  %1401 = vmatprep.subr.mxu1 %v6874_v37  ;;  %v911_v46 = vadd.f32 %v6863_v28, %v896_v1  ;;  %v6992_v1 = vld [vmem:[#allocation16 + $0xc8] sm:$0xff] }
 0x418   :  { %1331 = vmatpush1.msra.mxu0 %v6878_v39  ;;  %1066 = vmatprep.mubr.f32.mxu0 %v8835_v4  ;;  %v6060_v55 = vpop.eup %6059  ;;  %v912_v61 = vadd.f32 %v6863_v28, %v897_v52  ;;  %v877_v52 = vmul.f32 %v6856_v22, %v6830_v20  ;;  %v7027_v20 = vld [vmem:[#allocation16 + $0xb0] sm:$0xff] }
 0x419   :  { %1179 = vmatprep.mubr.f32.mxu1 %v8835_v4  ;;  %1332 = vmatprep.subr.mxu0 %v6882_v40  ;;  %v898_v8 = vmul.f32 %v6060_v55, %v874_v59  ;;  %v6062_v13 = vpop.eup %6061  ;;  %v7021_v59 = vld [vmem:[#allocation16 + $0xb8] sm:$0xff] }
 0x41a   :  { %1402 = vmatpush1.msra.mxu1 %v6886_v43  ;;  %5762 = vmatmul.mubr.msk.f32.gmra.mxu0 %vm509_vm3, %v911_v46  ;;  %v899_v25 = vmul.f32 %v6062_v13, %v875_v15  ;;  %v7037_v13 = vld [vmem:[#allocation16 + $0x68] sm:$0xff] }
 0x41b   :  { %5770 = vmatmul.mubr.msk.f32.gmra.mxu1 %vm509_vm3, %v911_v46  ;;  %1333 = vmatpush1.msra.mxu0 %v6893_v47  ;;  %v913_v17 = vadd.f32 %v6863_v28, %v898_v8  ;;  %v7033_v8 = vld [vmem:[#allocation16 + $0x98] sm:$0xff]  ;;  %9032 = vst [vmem:[#allocation32_spill] sm:$0xff] %v7037_v13 }
 0x41c   :  { %1403 = vmatprep.subr.mxu1 %v6897_v48  ;;  %1334 = vmatprep.subr.mxu0 %v6899_v49  ;;  %v6064_v30 = vpop.eup %6063  ;;  %v914_v35 = vadd.f32 %v6863_v28, %v899_v25  ;;  %9031 = vst [vmem:[#allocation31_spill] sm:$0xff] %v7033_v8 }
 0x41d   :  { %1404 = vmatpush1.msra.mxu1 %v6903_v0  ;;  %1335 = vmatpush1.msra.mxu0 %v6905_v51  ;;  %v900_v42 = vmul.f32 %v6064_v30, %v876_v32  ;;  %v6066_v46 = vpop.eup %6065  ;;  %v7048_v30 = vld [vmem:[#allocation16 + $0x60] sm:$0xff]  ;;  %v7052_v32 = vld [vmem:[#allocation16 + $0x78] sm:$0xff] }
 0x41e   :  { %1405 = vmatprep.subr.mxu1 %v6909_v53  ;;  %1072 = vmatprep.mubr.f32.mxu0 %v8835_v4  ;;  %v901_v6 = vmul.f32 %v6066_v46, %v877_v52  ;;  %9034 = vst [vmem:[#allocation34_spill] sm:$0xff] %v7048_v30  ;;  %9035 = vst [vmem:[#allocation35_spill] sm:$0xff] %v7052_v32  ;;  %v7064_v46 = vld [vmem:[#allocation16 + $0x58] sm:$0xff]  ;;  %v7068_v52 = vld [vmem:[#allocation16 + $0x28] sm:$0xff] }
 0x41f   :  { %1185 = vmatprep.mubr.f32.mxu1 %v8835_v4  ;;  %1336 = vmatprep.subr.mxu0 %v6913_v54  ;;  %v915_v55 = vadd.f32 %v6863_v28, %v900_v42  ;;  %9039 = vst [vmem:[#allocation39_spill] sm:$0xff] %v7064_v46  ;;  %9040 = vst [vmem:[#allocation40_spill] sm:$0xff] %v7068_v52 }
 0x420   :  { %1406 = vmatpush1.msra.mxu1 %v6917_v57  ;;  %5763 = vmatmul.mubr.msk.f32.gmra.mxu0 %vm509_vm3, %v912_v61  ;;  %v6068_v15 = vpop.eup %6067  ;;  %v916_v25 = vadd.f32 %v6863_v28, %v901_v6 }
 0x421   :  { %5771 = vmatmul.mubr.msk.f32.gmra.mxu1 %vm509_vm3, %v912_v61  ;;  %1337 = vmatpush1.msra.mxu0 %v6924_v62  ;;  %v7029_v61 = vld [vmem:[#allocation16 + $0x80] sm:$0xff] }
 0x422   :  { %1407 = vmatprep.subr.mxu1 %v6928_v63  ;;  %1338 = vmatprep.subr.mxu0 %v6930_v2  ;;  %9030 = vst [vmem:[#allocation30_spill] sm:$0xff] %v7029_v61 }
 0x423   :  { %1408 = vmatpush1.msra.mxu1 %v6934_v9  ;;  %1339 = vmatpush1.msra.mxu0 %v6936_v7 }
 0x424   :  { %1409 = vmatprep.subr.mxu1 %v6940_v11  ;;  %1078 = vmatprep.mubr.f32.mxu0 %v8835_v4 }
 0x425   :  { %1191 = vmatprep.mubr.f32.mxu1 %v8835_v4  ;;  %1340 = vmatprep.subr.mxu0 %v6944_v12 }
 0x426   :  { %1410 = vmatpush1.msra.mxu1 %v6948_v14  ;;  %5764 = vmatmul.mubr.msk.f32.gmra.mxu0 %vm509_vm3, %v913_v17 }
 0x427   :  { %5772 = vmatmul.mubr.msk.f32.gmra.mxu1 %vm509_vm3, %v913_v17  ;;  %1341 = vmatpush1.msra.mxu0 %v6955_v18  ;;  %v878_v17 = vmul.f32 %v6856_v22, %v6838_v27  ;;  %v7058_v27 = vld [vmem:[#allocation16 + $0x70] sm:$0xff]  ;;  %v7060_v22 = vld [vmem:[#allocation16 + $0x40] sm:$0xff] }
 0x428   :  { %1411 = vmatprep.subr.mxu1 %v6959_v21  ;;  %1342 = vmatprep.subr.mxu0 %v6961_v23  ;;  %9037 = vst [vmem:[#allocation37_spill] sm:$0xff] %v7058_v27  ;;  %9038 = vst [vmem:[#allocation38_spill] sm:$0xff] %v7060_v22 }
 0x429   :  { %1412 = vmatpush1.msra.mxu1 %v6965_v10  ;;  %1343 = vmatpush1.msra.mxu0 %v6967_v24  ;;  %v902_v42 = vmul.f32 %v6068_v15, %v878_v17  ;;  %v7077_v15 = vld [vmem:[#allocation16 + $0x20] sm:$0xff]  ;;  %v7081_v17 = vld [vmem:[#allocation16 + $0x38] sm:$0xff] }
 0x42a   :  { %1413 = vmatprep.subr.mxu1 %v6971_v26  ;;  %1084 = vmatprep.mubr.f32.mxu0 %v8835_v4  ;;  %9042 = vst [vmem:[#allocation42_spill] sm:$0xff] %v7077_v15  ;;  %9043 = vst [vmem:[#allocation43_spill] sm:$0xff] %v7081_v17 }
 0x42b   :  { %1197 = vmatprep.mubr.f32.mxu1 %v8835_v4  ;;  %1344 = vmatprep.subr.mxu0 %v6975_v29  ;;  %v917_v6 = vadd.f32 %v6863_v28, %v902_v42  ;;  %v7093_v28 = vld [vmem:[#allocation16 + $0x18] sm:$0xff]  ;;  %v7097_v42 = vld [vmem:[#allocation16 + $0x10] sm:$0xff] }
 0x42c   :  { %1414 = vmatpush1.msra.mxu1 %v6979_v31  ;;  %5765 = vmatmul.mubr.msk.f32.gmra.mxu0 %vm509_vm3, %v914_v35  ;;  %9047 = vst [vmem:[#allocation47_spill] sm:$0xff] %v7093_v28  ;;  %9048 = vst [vmem:[#allocation48_spill] sm:$0xff] %v7097_v42 }
 0x42d   :  { %5773 = vmatmul.mubr.msk.f32.gmra.mxu1 %vm509_vm3, %v914_v35  ;;  %1345 = vmatpush1.msra.mxu0 %v6986_v58  ;;  %v7054_v35 = vld [vmem:[#allocation16 + $0x48] sm:$0xff] }
 0x42e   :  { %1415 = vmatprep.subr.mxu1 %v6990_v38  ;;  %1346 = vmatprep.subr.mxu0 %v6992_v1  ;;  %9036 = vst [vmem:[#allocation36_spill] sm:$0xff] %v7054_v35 }
 0x42f   :  { %1416 = vmatpush1.msra.mxu1 %v6996_v19  ;;  %1347 = vmatpush1.msra.mxu0 %v6998_v41 }
 0x430   :  { %1417 = vmatprep.subr.mxu1 %v7002_v44  ;;  %1090 = vmatprep.mubr.f32.mxu0 %v8835_v4 }
 0x431   :  { %1203 = vmatprep.mubr.f32.mxu1 %v8835_v4  ;;  %1348 = vmatprep.subr.mxu0 %v7006_v45 }
 0x432   :  { %1418 = vmatpush1.msra.mxu1 %v7010_v50  ;;  %5766 = vmatmul.mubr.msk.f32.gmra.mxu0 %vm509_vm3, %v915_v55 }
 0x433   :  { %5774 = vmatmul.mubr.msk.f32.gmra.mxu1 %vm509_vm3, %v915_v55  ;;  %1349 = vmatpush1.msra.mxu0 %v7017_v56  ;;  %v7072_v55 = vld [vmem:[#allocation16 + $0x50] sm:$0xff] }
 0x434   :  { %1419 = vmatprep.subr.mxu1 %v7021_v59  ;;  %1350 = vmatprep.subr.mxu0 %v7023_v60  ;;  %9041 = vst [vmem:[#allocation41_spill] sm:$0xff] %v7072_v55 }
 0x435   :  { %1420 = vmatpush1.msra.mxu1 %v7027_v20  ;;  %1351 = vmatpush1.msra.mxu0 %v7029_v61 }
 0x436   :  { %1421 = vmatprep.subr.mxu1 %v7033_v8  ;;  %1096 = vmatprep.mubr.f32.mxu0 %v8835_v4 }
 0x437   :  { %1209 = vmatprep.mubr.f32.mxu1 %v8835_v4  ;;  %1352 = vmatprep.subr.mxu0 %v7037_v13 }
 0x438   :  { %1422 = vmatpush1.msra.mxu1 %v7041_v16  ;;  %5767 = vmatmul.mubr.msk.f32.gmra.mxu0 %vm509_vm3, %v916_v25 }
 0x439   :  { %5775 = vmatmul.mubr.msk.f32.gmra.mxu1 %vm509_vm3, %v916_v25  ;;  %1353 = vmatpush1.msra.mxu0 %v7048_v30  ;;  %v7083_v25 = vld [vmem:[#allocation16 + $0x8] sm:$0xff] }
 0x43a   :  { %1423 = vmatprep.subr.mxu1 %v7052_v32  ;;  %1354 = vmatprep.subr.mxu0 %v7054_v35  ;;  %9044 = vst [vmem:[#allocation44_spill] sm:$0xff] %v7083_v25 }
 0x43b   :  { %1424 = vmatpush1.msra.mxu1 %v7058_v27  ;;  %1355 = vmatpush1.msra.mxu0 %v7060_v22  ;;  %v7087_v22 = vld [vmem:[#allocation16 + $0x30] sm:$0xff] }
 0x43c   :  { %1425 = vmatprep.subr.mxu1 %v7064_v46  ;;  %1102 = vmatprep.mubr.f32.mxu0 %v8835_v4  ;;  %9045 = vst [vmem:[#allocation45_spill] sm:$0xff] %v7087_v22  ;;  %v7089_v46 = vld [vmem:[#allocation16] sm:$0xff] }
 0x43d   :  { %1215 = vmatprep.mubr.f32.mxu1 %v8835_v4  ;;  %1356 = vmatprep.subr.mxu0 %v7068_v52  ;;  %9046 = vst [vmem:[#allocation46_spill] sm:$0xff] %v7089_v46 }
 0x43e   :  { %1426 = vmatpush1.msra.mxu1 %v7072_v55  ;;  %5768 = vmatmul.mubr.msk.f32.gmra.mxu0 %vm509_vm3, %v917_v6 }
 0x43f   :  { %5776 = vmatmul.mubr.msk.f32.gmra.mxu1 %vm509_vm3, %v917_v6  ;;  %1357 = vmatpush1.msra.mxu0 %v7077_v15  ;;  %v9049_v6 = vld [vmem:[#allocation39_spill] sm:$0xff] }
 0x440   :  { %1427 = vmatprep.subr.mxu1 %v7081_v17  ;;  %1358 = vmatprep.subr.mxu0 %v7083_v25 }
 0x441   :  { %1428 = vmatpush1.msra.mxu1 %v7087_v22  ;;  %1359 = vmatpush1.msra.mxu0 %v7089_v46 }
 0x442   :  { %1429 = vmatprep.subr.mxu1 %v7093_v28  ;;  %1392 = vmatprep.mubr.f32.mxu0 %v8835_v4 }
 0x443   :  { %1430 = vmatpush1.msra.mxu1 %v7097_v42  ;;  %1463 = vmatprep.mubr.f32.mxu1 %v8835_v4 }
 0x444   :  { %1393 = vmatmul.mubr.f32.vlgmr.msra.gmra.mxu0 %v8835_v4  ;;  %1464 = vmatmul.mubr.f32.vlgmr.msra.gmra.mxu1 %v8835_v4  ;;  %v9050_v4 = vld [vmem:[#allocation38_spill] sm:$0xff] }
 0x445   :  { %1574 = vmatprep.subr.mxu0 %v6845_v3  ;;  %1645 = vmatprep.subr.mxu1 %v6848_v5 }
 0x446   :  { %1575 = vmatpush1.msra.mxu0 %v6866_v33  ;;  %1646 = vmatpush1.msra.mxu1 %v6868_v34 }
 0x447   :  { %1576 = vmatprep.subr.mxu0 %v6872_v36  ;;  %1647 = vmatprep.subr.mxu1 %v6874_v37 }
 0x448   :  { %1577 = vmatpush1.msra.mxu0 %v6878_v39  ;;  %1648 = vmatpush1.msra.mxu1 %v6886_v43 }
 0x449   :  { %1578 = vmatprep.subr.mxu0 %v6882_v40  ;;  %1649 = vmatprep.subr.mxu1 %v6897_v48 }
 0x44a   :  { %1579 = vmatpush1.msra.mxu0 %v6893_v47  ;;  %1650 = vmatpush1.msra.mxu1 %v6903_v0 }
 0x44b   :  { %1580 = vmatprep.subr.mxu0 %v6899_v49  ;;  %1651 = vmatprep.subr.mxu1 %v6909_v53 }
 0x44c   :  { %1581 = vmatpush1.msra.mxu0 %v6905_v51  ;;  %1652 = vmatpush1.msra.mxu1 %v6917_v57 }
 0x44d   :  { %1582 = vmatprep.subr.mxu0 %v6913_v54  ;;  %1653 = vmatprep.subr.mxu1 %v6928_v63 }
 0x44e   :  { %1583 = vmatpush1.msra.mxu0 %v6924_v62  ;;  %1654 = vmatpush1.msra.mxu1 %v6934_v9 }
 0x44f   :  { %1584 = vmatprep.subr.mxu0 %v6930_v2  ;;  %1655 = vmatprep.subr.mxu1 %v6940_v11 }
 0x450   :  { %1585 = vmatpush1.msra.mxu0 %v6936_v7  ;;  %1656 = vmatpush1.msra.mxu1 %v6948_v14 }
 0x451   :  { %1586 = vmatprep.subr.mxu0 %v6944_v12  ;;  %1657 = vmatprep.subr.mxu1 %v6959_v21 }
 0x452   :  { %1587 = vmatpush1.msra.mxu0 %v6955_v18  ;;  %1658 = vmatpush1.msra.mxu1 %v6965_v10 }
 0x453   :  { %1588 = vmatprep.subr.mxu0 %v6961_v23  ;;  %1659 = vmatprep.subr.mxu1 %v6971_v26 }
 0x454   :  { %1589 = vmatpush1.msra.mxu0 %v6967_v24  ;;  %1660 = vmatpush1.msra.mxu1 %v6979_v31 }
 0x455   :  { %1590 = vmatprep.subr.mxu0 %v6975_v29  ;;  %1661 = vmatprep.subr.mxu1 %v6990_v38 }
 0x456   :  { %1591 = vmatpush1.msra.mxu0 %v6986_v58  ;;  %1662 = vmatpush1.msra.mxu1 %v6996_v19 }
 0x457   :  { %1592 = vmatprep.subr.mxu0 %v6992_v1  ;;  %1663 = vmatprep.subr.mxu1 %v7002_v44 }
 0x458   :  { %1593 = vmatpush1.msra.mxu0 %v6998_v41  ;;  %1664 = vmatpush1.msra.mxu1 %v7010_v50 }
 0x459   :  { %1594 = vmatprep.subr.mxu0 %v7006_v45  ;;  %1665 = vmatprep.subr.mxu1 %v7021_v59 }
 0x45a   :  { %1595 = vmatpush1.msra.mxu0 %v7017_v56  ;;  %1666 = vmatpush1.msra.mxu1 %v7027_v20 }
 0x45b   :  { %1596 = vmatprep.subr.mxu0 %v7023_v60  ;;  %1667 = vmatprep.subr.mxu1 %v7033_v8 }
 0x45c   :  { %1597 = vmatpush1.msra.mxu0 %v7029_v61  ;;  %1668 = vmatpush1.msra.mxu1 %v7041_v16 }
 0x45d   :  { %1598 = vmatprep.subr.mxu0 %v7037_v13  ;;  %1669 = vmatprep.subr.mxu1 %v7052_v32 }
 0x45e   :  { %1599 = vmatpush1.msra.mxu0 %v7048_v30  ;;  %1670 = vmatpush1.msra.mxu1 %v7058_v27 }
 0x45f   :  { %1600 = vmatprep.subr.mxu0 %v7054_v35  ;;  %1671 = vmatprep.subr.mxu1 %v9049_v6  ;;  %v9051_v35 = vmov 0.0  }
 0x460   :  { %1601 = vmatpush1.msra.mxu0 %v9050_v4  ;;  %1672 = vmatpush1.msra.mxu1 %v7072_v55 }
 0x461   :  { %1602 = vmatprep.subr.mxu0 %v7068_v52  ;;  %1673 = vmatprep.subr.mxu1 %v7081_v17  ;;  %v952_v17 = vlaneseq }
 0x462   :  { %1603 = vmatpush1.msra.mxu0 %v7077_v15  ;;  %1674 = vmatpush1.msra.mxu1 %v7087_v22 }
 0x463   :  { %1604 = vmatprep.subr.mxu0 %v7083_v25  ;;  %1675 = vmatprep.subr.mxu1 %v7093_v28  ;;  %v7175_v15 = vshrl.u32 %v952_v17, 7 }
 0x464   :  { %1605 = vmatpush1.msra.mxu0 %v7089_v46  ;;  %1638 = vmatprep.mubr.f32.mxu0 %v9051_v35  ;;  %v950_v46 = vld [vmem:[%s8821_s13] sm:$0xf] }
 0x465   :  { %1676 = vmatpush1.msra.mxu1 %v7097_v42  ;;  %1709 = vmatprep.mubr.f32.mxu1 %v9051_v35  ;;  %9052 = vst [vmem:[#allocation49_spill] sm:$0xff] %v7175_v15  ;;  %v8853_v22 = vsub.s32 0, %v7175_v15  ;;  %v8855_v42 = vsub.s32 2, %v7175_v15  ;;  %v8858_v35 = vsub.s32 1, %v7175_v15  ;;  %v8861_v17 = vsub.s32 3, %v7175_v15 }
 0x466   :  { %1821 = vmatprep.subr.mxu0 %v6845_v3  ;;  %1892 = vmatprep.subr.mxu1 %v6848_v5 }
 0x467   :  { %v955_v52 = vrot.slane %v950_v46, %v8853_v22  ;;  %v7196_v55 = vrot.slane %v950_v46, %v8855_v42  ;;  %v959_v6 = vrot.slane %v950_v46, %v8858_v35  ;;  %v7204_v32 = vrot.slane %v950_v46, %v8861_v17 }
 0x4d5   :  { %v7178_v25 = vpop.f32.mrf.mxu0  ;;  %v7180_v28 = vpop.f32.mrf.mxu1 }
 0x4d7   :  { %v7187_v3 = vpop.f32.mrf.mxu0  ;;  %v7189_v5 = vpop.f32.mrf.mxu1 }
 0x4da   :  { %v1068_v4 = vpop.f32.mrf.mxu0 }
 0x4db   :  { %v7200_v27 = vadd.f32 %v1068_v4, %v955_v52  ;;  %v1181_v30 = vpop.f32.mrf.mxu1 }
 0x4dc   :  { %v7207_v13 = vadd.f32 %v1181_v30, %v7196_v55  ;;  %v1070_v16 = vpop.f32.mrf.mxu0 }
 0x4dd   :  { %9053 = vst [vmem:[#allocation50_spill] sm:$0xff] %v7200_v27  ;;  %v7209_v22 = vadd.f32 %v1070_v16, %v959_v6  ;;  %v1183_v61 = vpop.f32.mrf.mxu1 }
 0x4de   :  { %9054 = vst [vmem:[#allocation51_spill] sm:$0xff] %v7207_v13  ;;  %v7212_v42 = vadd.f32 %v1183_v61, %v7204_v32 }
 0x4df   :  { %9055 = vst [vmem:[#allocation52_spill] sm:$0xff] %v7209_v22 }
 0x4e0   :  { %9056 = vst [vmem:[#allocation53_spill] sm:$0xff] %v7212_v42  ;;  %v1074_v8 = vpop.f32.mrf.mxu0 }
 0x4e1   :  { %v7214_v60 = vadd.f32 %v1074_v8, %v955_v52  ;;  %v1187_v4 = vpop.f32.mrf.mxu1 }
 0x4e2   :  { %v7217_v35 = vadd.f32 %v1187_v4, %v7196_v55  ;;  %v1076_v15 = vpop.f32.mrf.mxu0 }
 0x4e3   :  { %9057 = vst [vmem:[#allocation54_spill] sm:$0xff] %v7214_v60  ;;  %v7219_v46 = vadd.f32 %v1076_v15, %v959_v6  ;;  %v1189_v17 = vpop.f32.mrf.mxu1 }
 0x4e4   :  { %9058 = vst [vmem:[#allocation55_spill] sm:$0xff] %v7217_v35  ;;  %v7222_v30 = vadd.f32 %v1189_v17, %v7204_v32 }
 0x4e5   :  { %9059 = vst [vmem:[#allocation56_spill] sm:$0xff] %v7219_v46 }
 0x4e6   :  { %9060 = vst [vmem:[#allocation57_spill] sm:$0xff] %v7222_v30  ;;  %v1080_v16 = vpop.f32.mrf.mxu0 }
 0x4e7   :  { %v7224_v13 = vadd.f32 %v1080_v16, %v955_v52  ;;  %v1193_v22 = vpop.f32.mrf.mxu1 }
 0x4e8   :  { %v7227_v61 = vadd.f32 %v1193_v22, %v7196_v55  ;;  %v1082_v8 = vpop.f32.mrf.mxu0 }
 0x4e9   :  { %9061 = vst [vmem:[#allocation58_spill] sm:$0xff] %v7224_v13  ;;  %v7229_v60 = vadd.f32 %v1082_v8, %v959_v6  ;;  %v1195_v42 = vpop.f32.mrf.mxu1 }
 0x4ea   :  { %9062 = vst [vmem:[#allocation59_spill] sm:$0xff] %v7227_v61  ;;  %v7232_v4 = vadd.f32 %v1195_v42, %v7204_v32 }
 0x4eb   :  { %9063 = vst [vmem:[#allocation60_spill] sm:$0xff] %v7229_v60 }
 0x4ec   :  { %9064 = vst [vmem:[#allocation61_spill] sm:$0xff] %v7232_v4  ;;  %v1086_v15 = vpop.f32.mrf.mxu0 }
 0x4ed   :  { %v7234_v35 = vadd.f32 %v1086_v15, %v955_v52  ;;  %v1199_v46 = vpop.f32.mrf.mxu1 }
 0x4ee   :  { %v7237_v17 = vadd.f32 %v1199_v46, %v7196_v55  ;;  %v1088_v16 = vpop.f32.mrf.mxu0 }
 0x4ef   :  { %9065 = vst [vmem:[#allocation62_spill] sm:$0xff] %v7234_v35  ;;  %v7239_v13 = vadd.f32 %v1088_v16, %v959_v6  ;;  %v1201_v30 = vpop.f32.mrf.mxu1 }
 0x4f0   :  { %9066 = vst [vmem:[#allocation63_spill] sm:$0xff] %v7237_v17  ;;  %v7242_v22 = vadd.f32 %v1201_v30, %v7204_v32 }
 0x4f1   :  { %9067 = vst [vmem:[#allocation64_spill] sm:$0xff] %v7239_v13 }
 0x4f2   :  { %9068 = vst [vmem:[#allocation65_spill] sm:$0xff] %v7242_v22  ;;  %v1092_v8 = vpop.f32.mrf.mxu0 }
 0x4f3   :  { %v7244_v61 = vadd.f32 %v1092_v8, %v955_v52  ;;  %v1205_v60 = vpop.f32.mrf.mxu1 }
 0x4f4   :  { %v7247_v42 = vadd.f32 %v1205_v60, %v7196_v55  ;;  %v1094_v15 = vpop.f32.mrf.mxu0 }
 0x4f5   :  { %9069 = vst [vmem:[#allocation66_spill] sm:$0xff] %v7244_v61  ;;  %v7249_v35 = vadd.f32 %v1094_v15, %v959_v6  ;;  %v1207_v4 = vpop.f32.mrf.mxu1 }
 0x4f6   :  { %9070 = vst [vmem:[#allocation67_spill] sm:$0xff] %v7247_v42  ;;  %v7252_v46 = vadd.f32 %v1207_v4, %v7204_v32 }
 0x4f7   :  { %9071 = vst [vmem:[#allocation68_spill] sm:$0xff] %v7249_v35 }
 0x4f8   :  { %9072 = vst [vmem:[#allocation69_spill] sm:$0xff] %v7252_v46  ;;  %v1098_v16 = vpop.f32.mrf.mxu0 }
 0x4f9   :  { %v7254_v17 = vadd.f32 %v1098_v16, %v955_v52  ;;  %v1211_v13 = vpop.f32.mrf.mxu1 }
 0x4fa   :  { %v7257_v30 = vadd.f32 %v1211_v13, %v7196_v55  ;;  %v1100_v8 = vpop.f32.mrf.mxu0 }
 0x4fb   :  { %9073 = vst [vmem:[#allocation70_spill] sm:$0xff] %v7254_v17  ;;  %v7259_v61 = vadd.f32 %v1100_v8, %v959_v6  ;;  %v1213_v22 = vpop.f32.mrf.mxu1  ;;  %v1063_v8 = vadd.f32 %v7178_v25, %v955_v52 }
 0x4fc   :  { %9074 = vst [vmem:[#allocation71_spill] sm:$0xff] %v7257_v30  ;;  %v7262_v60 = vadd.f32 %v1213_v22, %v7204_v32  ;;  %v1065_v22 = vadd.f32 %v7187_v3, %v959_v6 }
 0x4fd   :  { %9075 = vst [vmem:[#allocation72_spill] sm:$0xff] %v7259_v61 }
 0x4fe   :  { %9076 = vst [vmem:[#allocation73_spill] sm:$0xff] %v7262_v60  ;;  %v1104_v15 = vpop.f32.mrf.mxu0 }
 0x4ff   :  { %v7264_v42 = vadd.f32 %v1104_v15, %v955_v52  ;;  %v1217_v35 = vpop.f32.mrf.mxu1 }
 0x500   :  { %v7267_v4 = vadd.f32 %v1217_v35, %v7196_v55  ;;  %v1106_v16 = vpop.f32.mrf.mxu0 }
 0x501   :  { %9077 = vst [vmem:[#allocation74_spill] sm:$0xff] %v7264_v42  ;;  %v7269_v17 = vadd.f32 %v1106_v16, %v959_v6  ;;  %v1219_v46 = vpop.f32.mrf.mxu1  ;;  %v1178_v16 = vadd.f32 %v7189_v5, %v7204_v32 }
 0x502   :  { %9078 = vst [vmem:[#allocation75_spill] sm:$0xff] %v7267_v4  ;;  %v7272_v13 = vadd.f32 %v1219_v46, %v7204_v32  ;;  %v1176_v46 = vadd.f32 %v7180_v28, %v7196_v55 }
 0x503   :  { %9079 = vst [vmem:[#allocation76_spill] sm:$0xff] %v7269_v17 }
 0x504   :  { %9080 = vst [vmem:[#allocation77_spill] sm:$0xff] %v7272_v13  ;;  %v1394_v30 = vpop.f32.mrf.mxu0  ;;  %v1465_v27 = vpop.f32.mrf.mxu1 }
 0x505   :  { %v1470_v60 = vadd.f32 %v1394_v30, %v1063_v8  ;;  %v1472_v13 = vadd.f32 %v1465_v27, %v1176_v46 }
 0x506   :  { %v1396_v61 = vpop.f32.mrf.mxu0  ;;  %v1467_v4 = vpop.f32.mrf.mxu1 }
 0x507   :  { %v5777_v15 = vmul.f32 -1.442695, %v1470_v60  ;;  %v1471_v42 = vadd.f32 %v1396_v61, %v1065_v22  ;;  %v1473_v17 = vadd.f32 %v1467_v4, %v1178_v16 }
 0x509   :  { %6069 = vpow2.f32 %v5777_v15  ;;  %v5778_v35 = vmul.f32 -1.442695, %v1471_v42  ;;  %v5779_v52 = vmul.f32 -1.442695, %v1473_v17 }
 0x50b   :  { %6071 = vpow2.f32 %v5778_v35 }
 0x50c   :  { %6073 = vpow2.f32 %v5779_v52 }
 0x516   :  { %v6070_v25 = vpop.eup %6069 }
 0x517   :  { %v1477_v6 = vadd.f32 1.0, %v6070_v25 }
 0x518   :  { %v6072_v3 = vpop.eup %6071 }
 0x519   :  { %6075 = vrcp.f32 %v1477_v6  ;;  %v1483_v61 = vadd.f32 1.0, %v6072_v3  ;;  %v6074_v42 = vpop.eup %6073  ;;  %v7365_v3 = vld [vmem:[#allocation16 + $0x1e8] sm:$0xff] }
 0x51a   :  { %6077 = vtanh.f32 %v1472_v13  ;;  %v1490_v22 = vadd.f32 1.0, %v6074_v42  ;;  %v7371_v42 = vld [vmem:[#allocation16 + $0x1e0] sm:$0xff] }
 0x51b   :  { %6079 = vrcp.f32 %v1483_v61  ;;  %v7367_v61 = vld [vmem:[#allocation16 + $0x1f8] sm:$0xff] }
 0x51c   :  { %6081 = vrcp.f32 %v1490_v22  ;;  %v7383_v22 = vld [vmem:[#allocation16 + $0x1c0] sm:$0xff] }
 0x526   :  { %v6076_v30 = vpop.eup %6075 }
 0x527   :  { %v6078_v60 = vpop.eup %6077 }
 0x528   :  { %v6080_v8 = vpop.eup %6079  ;;  %v1495_v5 = vmul.f32 %v6078_v60, %v6076_v30  ;;  %v7373_v30 = vld [vmem:[#allocation16 + $0x1f0] sm:$0xff]  ;;  %v7377_v60 = vld [vmem:[#allocation16 + $0x1c8] sm:$0xff] }
 0x529   :  { %v1494_v32 = vmul.f32 0.0, %v6080_v8  ;;  %v6082_v27 = vpop.eup %6081  ;;  %v7379_v8 = vld [vmem:[#allocation16 + $0x1d8] sm:$0xff] }
 0x52b   :  { %v7280_v4 = vadd.f32 %v1495_v5, %v1494_v32  ;;  %v7385_v32 = vld [vmem:[#allocation16 + $0x1d0] sm:$0xff]  ;;  %v7389_v5 = vld [vmem:[#allocation16 + $0x1a8] sm:$0xff] }
 0x52d   :  { %6083 = vtanh.f32 %v7280_v4 }
 0x53a   :  { %v6084_v55 = vpop.eup %6083 }
 0x53b   :  { %v7283_v28 = vmul.f32 %v6084_v55, %v6082_v27  ;;  %v7395_v27 = vld [vmem:[#allocation16 + $0x1a0] sm:$0xff]  ;;  %v7397_v55 = vld [vmem:[#allocation16 + $0x1b0] sm:$0xff] }
 0x53d   :  { %9081 = vst [vmem:[#allocation78_spill] sm:$0xff] %v7283_v28  ;;  %1639 = vmatmul.mubr.f32.vlgmr.msra.gmra.mxu0 %v7283_v28  ;;  %1710 = vmatmul.mubr.f32.vlgmr.msra.gmra.mxu1 %v7283_v28  ;;  %v7543_v28 = vld [vmem:[#allocation16 + $0x18] sm:$0xff] }
 0x53e   :  { %1822 = vmatpush1.msra.mxu0 %v6866_v33  ;;  %1893 = vmatpush1.msra.mxu1 %v6868_v34  ;;  %v9082_v33 = vld [vmem:[#allocation29_spill] sm:$0xff]  ;;  %v9083_v34 = vld [vmem:[#allocation31_spill] sm:$0xff] }
 0x53f   :  { %1823 = vmatprep.subr.mxu0 %v6872_v36  ;;  %1894 = vmatprep.subr.mxu1 %v6874_v37  ;;  %v9084_v36 = vld [vmem:[#allocation30_spill] sm:$0xff]  ;;  %v9085_v37 = vld [vmem:[#allocation33_spill] sm:$0xff]  ;;  %9108 = vst [vmem:[#allocation31_spill] sm:$0xff] %v7365_v3 }
 0x540   :  { %1824 = vmatpush1.msra.mxu0 %v6878_v39  ;;  %1895 = vmatpush1.msra.mxu1 %v6886_v43  ;;  %v9086_v39 = vld [vmem:[#allocation32_spill] sm:$0xff]  ;;  %v9088_v43 = vld [vmem:[#allocation34_spill] sm:$0xff]  ;;  %9109 = vst [vmem:[#allocation30_spill] sm:$0xff] %v7367_v61 }
 0x541   :  { %1825 = vmatprep.subr.mxu0 %v6882_v40  ;;  %1896 = vmatprep.subr.mxu1 %v6897_v48  ;;  %v9087_v40 = vld [vmem:[#allocation35_spill] sm:$0xff]  ;;  %v9090_v48 = vld [vmem:[#allocation36_spill] sm:$0xff] }
 0x542   :  { %1826 = vmatpush1.msra.mxu0 %v6893_v47  ;;  %1897 = vmatpush1.msra.mxu1 %v6903_v0  ;;  %v9089_v47 = vld [vmem:[#allocation37_spill] sm:$0xff]  ;;  %v9092_v0 = vld [vmem:[#allocation38_spill] sm:$0xff] }
 0x543   :  { %1827 = vmatprep.subr.mxu0 %v6899_v49  ;;  %1898 = vmatprep.subr.mxu1 %v6909_v53  ;;  %v9091_v49 = vld [vmem:[#allocation39_spill] sm:$0xff]  ;;  %v9094_v53 = vld [vmem:[#allocation40_spill] sm:$0xff] }
 0x544   :  { %1828 = vmatpush1.msra.mxu0 %v6905_v51  ;;  %1899 = vmatpush1.msra.mxu1 %v6917_v57  ;;  %v9093_v51 = vld [vmem:[#allocation41_spill] sm:$0xff]  ;;  %v9096_v57 = vld [vmem:[#allocation42_spill] sm:$0xff] }
 0x545   :  { %1829 = vmatprep.subr.mxu0 %v6913_v54  ;;  %1900 = vmatprep.subr.mxu1 %v6928_v63  ;;  %v9095_v54 = vld [vmem:[#allocation43_spill] sm:$0xff]  ;;  %v9098_v63 = vld [vmem:[#allocation44_spill] sm:$0xff] }
 0x546   :  { %1830 = vmatpush1.msra.mxu0 %v6924_v62  ;;  %1901 = vmatpush1.msra.mxu1 %v6934_v9  ;;  %v9097_v62 = vld [vmem:[#allocation45_spill] sm:$0xff]  ;;  %v9100_v9 = vld [vmem:[#allocation46_spill] sm:$0xff] }
 0x547   :  { %1831 = vmatprep.subr.mxu0 %v6930_v2  ;;  %1902 = vmatprep.subr.mxu1 %v6940_v11  ;;  %v9099_v2 = vld [vmem:[#allocation47_spill] sm:$0xff]  ;;  %v9102_v11 = vld [vmem:[#allocation48_spill] sm:$0xff] }
 0x548   :  { %1832 = vmatpush1.msra.mxu0 %v6936_v7  ;;  %1903 = vmatpush1.msra.mxu1 %v6948_v14  ;;  %v9101_v7 = vmov 0.0   ;;  %v9103_v14 = vld [vmem:[#allocation50_spill] sm:$0xff]  ;;  %9124 = vst [vmem:[#allocation47_spill] sm:$0xff] %v7543_v28 }
 0x549   :  { %1833 = vmatprep.subr.mxu0 %v6944_v12  ;;  %1904 = vmatprep.subr.mxu1 %v6959_v21 }
 0x54a   :  { %1834 = vmatpush1.msra.mxu0 %v6955_v18  ;;  %1905 = vmatpush1.msra.mxu1 %v6965_v10  ;;  %v9104_v10 = vld [vmem:[#allocation52_spill] sm:$0xff] }
 0x54b   :  { %1835 = vmatprep.subr.mxu0 %v6961_v23  ;;  %1906 = vmatprep.subr.mxu1 %v6971_v26 }
 0x54c   :  { %1836 = vmatpush1.msra.mxu0 %v6967_v24  ;;  %1907 = vmatpush1.msra.mxu1 %v6979_v31 }
 0x54d   :  { %1837 = vmatprep.subr.mxu0 %v6975_v29  ;;  %1908 = vmatprep.subr.mxu1 %v6990_v38 }
 0x54e   :  { %1838 = vmatpush1.msra.mxu0 %v6986_v58  ;;  %1909 = vmatpush1.msra.mxu1 %v6996_v19  ;;  %v9105_v58 = vld [vmem:[#allocation53_spill] sm:$0xff] }
 0x54f   :  { %1839 = vmatprep.subr.mxu0 %v6992_v1  ;;  %1910 = vmatprep.subr.mxu1 %v7002_v44  ;;  %v9106_v1 = vld [vmem:[#allocation51_spill] sm:$0xff] }
 0x550   :  { %1840 = vmatpush1.msra.mxu0 %v6998_v41  ;;  %1911 = vmatpush1.msra.mxu1 %v7010_v50 }
 0x551   :  { %1841 = vmatprep.subr.mxu0 %v7006_v45  ;;  %1912 = vmatprep.subr.mxu1 %v7021_v59 }
 0x552   :  { %1842 = vmatpush1.msra.mxu0 %v7017_v56  ;;  %1913 = vmatpush1.msra.mxu1 %v7027_v20 }
 0x553   :  { %1843 = vmatprep.subr.mxu0 %v9082_v33  ;;  %1914 = vmatprep.subr.mxu1 %v9083_v34  ;;  %v7401_v33 = vld [vmem:[#allocation16 + $0x188] sm:$0xff]  ;;  %v7403_v34 = vld [vmem:[#allocation16 + $0x198] sm:$0xff] }
 0x554   :  { %1844 = vmatpush1.msra.mxu0 %v9084_v36  ;;  %1915 = vmatpush1.msra.mxu1 %v9085_v37  ;;  %v7407_v36 = vld [vmem:[#allocation16 + $0x180] sm:$0xff]  ;;  %v7409_v37 = vld [vmem:[#allocation16 + $0x190] sm:$0xff] }
 0x555   :  { %1845 = vmatprep.subr.mxu0 %v9086_v39  ;;  %1916 = vmatprep.subr.mxu1 %v9087_v40  ;;  %v7413_v39 = vld [vmem:[#allocation16 + $0x168] sm:$0xff]  ;;  %v7415_v40 = vld [vmem:[#allocation16 + $0x178] sm:$0xff] }
 0x556   :  { %1846 = vmatpush1.msra.mxu0 %v9088_v43  ;;  %1917 = vmatpush1.msra.mxu1 %v9089_v47  ;;  %v7419_v43 = vld [vmem:[#allocation16 + $0x160] sm:$0xff]  ;;  %v7421_v47 = vld [vmem:[#allocation16 + $0x170] sm:$0xff] }
 0x557   :  { %1847 = vmatprep.subr.mxu0 %v9090_v48  ;;  %1918 = vmatprep.subr.mxu1 %v9091_v49  ;;  %v7425_v48 = vld [vmem:[#allocation16 + $0x148] sm:$0xff]  ;;  %v7427_v49 = vld [vmem:[#allocation16 + $0x158] sm:$0xff] }
 0x558   :  { %1848 = vmatpush1.msra.mxu0 %v9092_v0  ;;  %1919 = vmatpush1.msra.mxu1 %v9093_v51  ;;  %v7431_v0 = vld [vmem:[#allocation16 + $0x140] sm:$0xff]  ;;  %v7433_v51 = vld [vmem:[#allocation16 + $0x150] sm:$0xff] }
 0x559   :  { %1849 = vmatprep.subr.mxu0 %v9094_v53  ;;  %1920 = vmatprep.subr.mxu1 %v9095_v54  ;;  %v7437_v53 = vld [vmem:[#allocation16 + $0x128] sm:$0xff]  ;;  %v7439_v54 = vld [vmem:[#allocation16 + $0x138] sm:$0xff] }
 0x55a   :  { %1850 = vmatpush1.msra.mxu0 %v9096_v57  ;;  %1921 = vmatpush1.msra.mxu1 %v9097_v62  ;;  %v7443_v57 = vld [vmem:[#allocation16 + $0x120] sm:$0xff]  ;;  %v7445_v62 = vld [vmem:[#allocation16 + $0x130] sm:$0xff] }
 0x55b   :  { %1851 = vmatprep.subr.mxu0 %v9098_v63  ;;  %1922 = vmatprep.subr.mxu1 %v9099_v2  ;;  %v7449_v63 = vld [vmem:[#allocation16 + $0x108] sm:$0xff]  ;;  %v7451_v2 = vld [vmem:[#allocation16 + $0x118] sm:$0xff] }
 0x55c   :  { %1852 = vmatpush1.msra.mxu0 %v9100_v9  ;;  %1885 = vmatprep.mubr.f32.mxu0 %v9101_v7  ;;  %v7453_v9 = vld [vmem:[#allocation16 + $0x100] sm:$0xff] }
 0x55d   :  { %1923 = vmatpush1.msra.mxu1 %v9102_v11  ;;  %1956 = vmatprep.mubr.f32.mxu1 %v9101_v7  ;;  %v7457_v11 = vld [vmem:[#allocation16 + $0x110] sm:$0xff] }
 0x55e   :  { %2068 = vmatprep.subr.mxu0 %v7365_v3  ;;  %2139 = vmatprep.subr.mxu1 %v7367_v61 }
 0x5fd   :  { %v1640_v12 = vpop.f32.mrf.mxu0  ;;  %v1711_v26 = vpop.f32.mrf.mxu1 }
 0x5fe   :  { %v1716_v18 = vadd.f32 %v1640_v12, %v9103_v14  ;;  %v1718_v19 = vadd.f32 %v1711_v26, %v9106_v1  ;;  %v7459_v12 = vld [vmem:[#allocation16 + $0xe8] sm:$0xff]  ;;  %v7461_v14 = vld [vmem:[#allocation16 + $0xf8] sm:$0xff]  ;;  %v7477_v26 = vld [vmem:[#allocation16 + $0xd0] sm:$0xff] }
 0x5ff   :  { %v1642_v21 = vpop.f32.mrf.mxu0  ;;  %v1713_v31 = vpop.f32.mrf.mxu1  ;;  %v7493_v1 = vld [vmem:[#allocation16 + $0x88] sm:$0xff] }
 0x600   :  { %v5780_v23 = vmul.f32 -1.442695, %v1716_v18  ;;  %v1717_v24 = vadd.f32 %v1642_v21, %v9104_v10  ;;  %v1719_v38 = vadd.f32 %v1713_v31, %v9105_v58  ;;  %v7465_v18 = vld [vmem:[#allocation16 + $0xe0] sm:$0xff]  ;;  %v7467_v21 = vld [vmem:[#allocation16 + $0xf0] sm:$0xff]  ;;  %v7473_v10 = vld [vmem:[#allocation16 + $0xd8] sm:$0xff] }
 0x601   :  { %v7483_v31 = vld [vmem:[#allocation16 + $0xb8] sm:$0xff]  ;;  %v7487_v58 = vld [vmem:[#allocation16 + $0xa0] sm:$0xff] }
 0x602   :  { %6085 = vpow2.f32 %v5780_v23  ;;  %v5781_v29 = vmul.f32 -1.442695, %v1717_v24  ;;  %v5782_v41 = vmul.f32 -1.442695, %v1719_v38  ;;  %v7469_v23 = vld [vmem:[#allocation16 + $0xc8] sm:$0xff]  ;;  %v7475_v24 = vld [vmem:[#allocation16 + $0xc0] sm:$0xff] }
 0x603   :  { %v7489_v38 = vld [vmem:[#allocation16 + $0xb0] sm:$0xff] }
 0x604   :  { %6087 = vpow2.f32 %v5781_v29  ;;  %v7481_v29 = vld [vmem:[#allocation16 + $0xa8] sm:$0xff] }
 0x605   :  { %6089 = vtanh.f32 %v1718_v19  ;;  %v7495_v19 = vld [vmem:[#allocation16 + $0x98] sm:$0xff] }
 0x606   :  { %6091 = vpow2.f32 %v5782_v41  ;;  %v7499_v41 = vld [vmem:[#allocation16 + $0x80] sm:$0xff] }
 0x60f   :  { %v6086_v44 = vpop.eup %6085 }
 0x610   :  { %v1723_v45 = vadd.f32 1.0, %v6086_v44  ;;  %v7501_v44 = vld [vmem:[#allocation16 + $0x90] sm:$0xff] }
 0x611   :  { %v6088_v50 = vpop.eup %6087  ;;  %9110 = vst [vmem:[#allocation33_spill] sm:$0xff] %v7501_v44 }
 0x612   :  { %6093 = vrcp.f32 %v1723_v45  ;;  %v1729_v56 = vadd.f32 1.0, %v6088_v50  ;;  %v6090_v59 = vpop.eup %6089  ;;  %v7505_v45 = vld [vmem:[#allocation16 + $0x68] sm:$0xff]  ;;  %v7507_v50 = vld [vmem:[#allocation16 + $0x78] sm:$0xff] }
 0x613   :  { %v6092_v20 = vpop.eup %6091  ;;  %9111 = vst [vmem:[#allocation32_spill] sm:$0xff] %v7505_v45  ;;  %9112 = vst [vmem:[#allocation35_spill] sm:$0xff] %v7507_v50 }
 0x614   :  { %6095 = vrcp.f32 %v1729_v56  ;;  %v1736_v35 = vadd.f32 1.0, %v6092_v20  ;;  %v7511_v56 = vld [vmem:[#allocation16 + $0x60] sm:$0xff]  ;;  %v7517_v20 = vld [vmem:[#allocation16 + $0x48] sm:$0xff] }
 0x615   :  { %9113 = vst [vmem:[#allocation34_spill] sm:$0xff] %v7511_v56  ;;  %9115 = vst [vmem:[#allocation36_spill] sm:$0xff] %v7517_v20 }
 0x616   :  { %6097 = vrcp.f32 %v1736_v35  ;;  %v7529_v35 = vld [vmem:[#allocation16 + $0x28] sm:$0xff] }
 0x617   :  { %9119 = vst [vmem:[#allocation40_spill] sm:$0xff] %v7529_v35 }
 0x61f   :  { %v6094_v17 = vpop.eup %6093 }
 0x620   :  { %v1741_v13 = vmul.f32 %v6094_v17, %v6090_v59  ;;  %v7513_v59 = vld [vmem:[#allocation16 + $0x70] sm:$0xff]  ;;  %v7519_v17 = vld [vmem:[#allocation16 + $0x58] sm:$0xff] }
 0x621   :  { %v6096_v15 = vpop.eup %6095  ;;  %9114 = vst [vmem:[#allocation37_spill] sm:$0xff] %v7513_v59  ;;  %9116 = vst [vmem:[#allocation39_spill] sm:$0xff] %v7519_v17 }
 0x622   :  { %v1740_v16 = vmul.f32 %v6096_v15, %v7280_v4  ;;  %v7391_v4 = vld [vmem:[#allocation16 + $0x1b8] sm:$0xff]  ;;  %v7525_v15 = vld [vmem:[#allocation16 + $0x50] sm:$0xff] }
 0x623   :  { %v6098_v52 = vpop.eup %6097  ;;  %9118 = vst [vmem:[#allocation41_spill] sm:$0xff] %v7525_v15 }
 0x624   :  { %v7356_v46 = vadd.f32 %v1741_v13, %v1740_v16  ;;  %v7523_v13 = vld [vmem:[#allocation16 + $0x40] sm:$0xff]  ;;  %v7531_v16 = vld [vmem:[#allocation16 + $0x38] sm:$0xff] }
 0x625   :  { %9117 = vst [vmem:[#allocation38_spill] sm:$0xff] %v7523_v13  ;;  %9120 = vst [vmem:[#allocation43_spill] sm:$0xff] %v7531_v16 }
 0x626   :  { %6099 = vtanh.f32 %v7356_v46 }
 0x633   :  { %v6100_v25 = vpop.eup %6099 }
 0x634   :  { %v7359_v6 = vmul.f32 %v6100_v25, %v6098_v52  ;;  %v7535_v52 = vld [vmem:[#allocation16 + $0x20] sm:$0xff]  ;;  %v7537_v25 = vld [vmem:[#allocation16 + $0x30] sm:$0xff] }
 0x635   :  { %9121 = vst [vmem:[#allocation42_spill] sm:$0xff] %v7535_v52  ;;  %9122 = vst [vmem:[#allocation45_spill] sm:$0xff] %v7537_v25 }
 0x636   :  { %9107 = vst [vmem:[#allocation29_spill] sm:$0xff] %v7359_v6  ;;  %1886 = vmatmul.mubr.f32.vlgmr.msra.gmra.mxu0 %v7359_v6  ;;  %1957 = vmatmul.mubr.f32.vlgmr.msra.gmra.mxu1 %v7359_v6  ;;  %v7541_v6 = vld [vmem:[#allocation16 + $0x8] sm:$0xff] }
 0x637   :  { %2132 = vmatprep.mubr.f32.mxu0 %v9101_v7  ;;  %2203 = vmatprep.mubr.f32.mxu1 %v9101_v7  ;;  %9123 = vst [vmem:[#allocation44_spill] sm:$0xff] %v7541_v6  ;;  %v7547_v7 = vld [vmem:[#allocation16] sm:$0xff] }
 0x638   :  { %2069 = vmatpush1.msra.mxu0 %v7371_v42  ;;  %2140 = vmatpush1.msra.mxu1 %v7373_v30  ;;  %9125 = vst [vmem:[#allocation46_spill] sm:$0xff] %v7547_v7 }
 0x639   :  { %2070 = vmatprep.subr.mxu0 %v7377_v60  ;;  %2141 = vmatprep.subr.mxu1 %v7379_v8 }
 0x63a   :  { %2071 = vmatpush1.msra.mxu0 %v7383_v22  ;;  %2142 = vmatpush1.msra.mxu1 %v7385_v32 }
 0x63b   :  { %2072 = vmatprep.subr.mxu0 %v7389_v5  ;;  %2143 = vmatprep.subr.mxu1 %v7391_v4 }
 0x63c   :  { %2073 = vmatpush1.msra.mxu0 %v7395_v27  ;;  %2144 = vmatpush1.msra.mxu1 %v7397_v55 }
 0x63d   :  { %2074 = vmatprep.subr.mxu0 %v7401_v33  ;;  %2145 = vmatprep.subr.mxu1 %v7403_v34 }
 0x63e   :  { %2075 = vmatpush1.msra.mxu0 %v7407_v36  ;;  %2146 = vmatpush1.msra.mxu1 %v7409_v37 }
 0x63f   :  { %2076 = vmatprep.subr.mxu0 %v7413_v39  ;;  %2147 = vmatprep.subr.mxu1 %v7415_v40 }
 0x640   :  { %2077 = vmatpush1.msra.mxu0 %v7419_v43  ;;  %2148 = vmatpush1.msra.mxu1 %v7421_v47 }
 0x641   :  { %2078 = vmatprep.subr.mxu0 %v7425_v48  ;;  %2149 = vmatprep.subr.mxu1 %v7427_v49 }
 0x642   :  { %2079 = vmatpush1.msra.mxu0 %v7431_v0  ;;  %2150 = vmatpush1.msra.mxu1 %v7433_v51 }
 0x643   :  { %2080 = vmatprep.subr.mxu0 %v7437_v53  ;;  %2151 = vmatprep.subr.mxu1 %v7439_v54 }
 0x644   :  { %2081 = vmatpush1.msra.mxu0 %v7443_v57  ;;  %2152 = vmatpush1.msra.mxu1 %v7445_v62 }
 0x645   :  { %2082 = vmatprep.subr.mxu0 %v7449_v63  ;;  %2153 = vmatprep.subr.mxu1 %v7451_v2 }
 0x646   :  { %2083 = vmatpush1.msra.mxu0 %v7453_v9  ;;  %2154 = vmatpush1.msra.mxu1 %v7457_v11 }
 0x647   :  { %2084 = vmatprep.subr.mxu0 %v7459_v12  ;;  %2155 = vmatprep.subr.mxu1 %v7461_v14 }
 0x648   :  { %2085 = vmatpush1.msra.mxu0 %v7465_v18  ;;  %2156 = vmatpush1.msra.mxu1 %v7467_v21 }
 0x649   :  { %2086 = vmatprep.subr.mxu0 %v7469_v23  ;;  %2157 = vmatprep.subr.mxu1 %v7473_v10 }
 0x64a   :  { %2087 = vmatpush1.msra.mxu0 %v7475_v24  ;;  %2158 = vmatpush1.msra.mxu1 %v7477_v26 }
 0x64b   :  { %2088 = vmatprep.subr.mxu0 %v7481_v29  ;;  %2159 = vmatprep.subr.mxu1 %v7483_v31 }
 0x64c   :  { %2089 = vmatpush1.msra.mxu0 %v7487_v58  ;;  %2160 = vmatpush1.msra.mxu1 %v7489_v38 }
 0x64d   :  { %2090 = vmatprep.subr.mxu0 %v7493_v1  ;;  %2161 = vmatprep.subr.mxu1 %v7495_v19 }
 0x64e   :  { %2091 = vmatpush1.msra.mxu0 %v7499_v41  ;;  %2162 = vmatpush1.msra.mxu1 %v7501_v44 }
 0x64f   :  { %2092 = vmatprep.subr.mxu0 %v7505_v45  ;;  %2163 = vmatprep.subr.mxu1 %v7507_v50  ;;  %v9130_v50 = vld [vmem:[#allocation55_spill] sm:$0xff] }
 0x650   :  { %2093 = vmatpush1.msra.mxu0 %v7511_v56  ;;  %2164 = vmatpush1.msra.mxu1 %v7513_v59  ;;  %v9129_v56 = vld [vmem:[#allocation57_spill] sm:$0xff] }
 0x651   :  { %2094 = vmatprep.subr.mxu0 %v7517_v20  ;;  %2165 = vmatprep.subr.mxu1 %v7519_v17  ;;  %v7549_v20 = vld [vmem:[#allocation16 + $0x10] sm:$0xff] }
 0x652   :  { %2095 = vmatpush1.msra.mxu0 %v7523_v13  ;;  %2166 = vmatpush1.msra.mxu1 %v7525_v15  ;;  %9126 = vst [vmem:[#allocation48_spill] sm:$0xff] %v7549_v20 }
 0x653   :  { %2096 = vmatprep.subr.mxu0 %v7529_v35  ;;  %2167 = vmatprep.subr.mxu1 %v7531_v16  ;;  %v9127_v35 = vld [vmem:[#allocation54_spill] sm:$0xff] }
 0x654   :  { %2097 = vmatpush1.msra.mxu0 %v7535_v52  ;;  %2168 = vmatpush1.msra.mxu1 %v7537_v25  ;;  %v9128_v52 = vld [vmem:[#allocation56_spill] sm:$0xff] }
 0x655   :  { %2098 = vmatprep.subr.mxu0 %v7541_v6  ;;  %2169 = vmatprep.subr.mxu1 %v7543_v28 }
 0x656   :  { %2099 = vmatpush1.msra.mxu0 %v7547_v7  ;;  %2170 = vmatpush1.msra.mxu1 %v7549_v20 }
 0x657   :  { %2315 = vmatprep.subr.mxu0 %v7365_v3  ;;  %2386 = vmatprep.subr.mxu1 %v7367_v61 }
 0x6f6   :  { %v1887_v16 = vpop.f32.mrf.mxu0  ;;  %v1958_v25 = vpop.f32.mrf.mxu1 }
 0x6f7   :  { %v1963_v15 = vadd.f32 %v1887_v16, %v9127_v35  ;;  %v1965_v20 = vadd.f32 %v1958_v25, %v9130_v50  ;;  %v9138_v25 = vld [vmem:[#allocation39_spill] sm:$0xff] }
 0x6f8   :  { %v1889_v13 = vpop.f32.mrf.mxu0  ;;  %v1960_v28 = vpop.f32.mrf.mxu1 }
 0x6f9   :  { %v5783_v17 = vmul.f32 -1.442695, %v1963_v15  ;;  %v1964_v59 = vadd.f32 %v1889_v13, %v9128_v52  ;;  %v1966_v7 = vadd.f32 %v1960_v28, %v9129_v56  ;;  %v9136_v56 = vld [vmem:[#allocation37_spill] sm:$0xff] }
 0x6fb   :  { %6101 = vpow2.f32 %v5783_v17  ;;  %v5784_v6 = vmul.f32 -1.442695, %v1964_v59  ;;  %v5785_v45 = vmul.f32 -1.442695, %v1966_v7 }
 0x6fd   :  { %6103 = vpow2.f32 %v5784_v6 }
 0x6fe   :  { %6105 = vtanh.f32 %v1965_v20  ;;  %v9137_v20 = vld [vmem:[#allocation36_spill] sm:$0xff] }
 0x6ff   :  { %6107 = vpow2.f32 %v5785_v45  ;;  %v9135_v45 = vld [vmem:[#allocation34_spill] sm:$0xff] }
 0x708   :  { %v6102_v3 = vpop.eup %6101 }
 0x709   :  { %v1970_v44 = vadd.f32 1.0, %v6102_v3 }
 0x70a   :  { %v6104_v61 = vpop.eup %6103 }
 0x70b   :  { %6109 = vrcp.f32 %v1970_v44  ;;  %v1976_v35 = vadd.f32 1.0, %v6104_v61  ;;  %v6106_v15 = vpop.eup %6105  ;;  %v9133_v61 = vld [vmem:[#allocation32_spill] sm:$0xff]  ;;  %v9134_v44 = vld [vmem:[#allocation35_spill] sm:$0xff] }
 0x70c   :  { %v6108_v13 = vpop.eup %6107 }
 0x70d   :  { %6111 = vrcp.f32 %v1976_v35  ;;  %v1983_v6 = vadd.f32 1.0, %v6108_v13  ;;  %v9139_v35 = vld [vmem:[#allocation38_spill] sm:$0xff]  ;;  %v9141_v13 = vld [vmem:[#allocation40_spill] sm:$0xff] }
 0x70f   :  { %6113 = vrcp.f32 %v1983_v6  ;;  %v9145_v6 = vld [vmem:[#allocation44_spill] sm:$0xff] }
 0x718   :  { %v6110_v17 = vpop.eup %6109 }
 0x719   :  { %v1988_v16 = vmul.f32 %v6110_v17, %v6106_v15  ;;  %v9140_v15 = vld [vmem:[#allocation41_spill] sm:$0xff]  ;;  %v9142_v17 = vld [vmem:[#allocation43_spill] sm:$0xff] }
 0x71a   :  { %v6112_v59 = vpop.eup %6111 }
 0x71b   :  { %v1987_v52 = vmul.f32 %v6112_v59, %v7356_v46  ;;  %v9132_v46 = vld [vmem:[#allocation33_spill] sm:$0xff] }
 0x71c   :  { %v6114_v7 = vpop.eup %6113  ;;  %v9144_v59 = vld [vmem:[#allocation45_spill] sm:$0xff] }
 0x71d   :  { %v7564_v28 = vadd.f32 %v1988_v16, %v1987_v52  ;;  %v9143_v16 = vld [vmem:[#allocation42_spill] sm:$0xff]  ;;  %v9146_v52 = vld [vmem:[#allocation47_spill] sm:$0xff] }
 0x71f   :  { %6115 = vtanh.f32 %v7564_v28 }
 0x72c   :  { %v6116_v3 = vpop.eup %6115 }
 0x72d   :  { %v7567_v50 = vmul.f32 %v6116_v3, %v6114_v7  ;;  %v9147_v7 = vld [vmem:[#allocation46_spill] sm:$0xff]  ;;  %v9148_v3 = vmov 0.0  }
 0x72f   :  { %9131 = vst [vmem:[#allocation50_spill] sm:$0xff] %v7567_v50  ;;  %2133 = vmatmul.mubr.f32.vlgmr.msra.gmra.mxu0 %v7567_v50  ;;  %2204 = vmatmul.mubr.f32.vlgmr.msra.gmra.mxu1 %v7567_v50  ;;  %v9149_v50 = vld [vmem:[#allocation48_spill] sm:$0xff] }
 0x730   :  { %2316 = vmatpush1.msra.mxu0 %v7371_v42  ;;  %2387 = vmatpush1.msra.mxu1 %v7373_v30 }
 0x731   :  { %2317 = vmatprep.subr.mxu0 %v7377_v60  ;;  %2388 = vmatprep.subr.mxu1 %v7379_v8 }
 0x732   :  { %2318 = vmatpush1.msra.mxu0 %v7383_v22  ;;  %2389 = vmatpush1.msra.mxu1 %v7385_v32 }
 0x733   :  { %2319 = vmatprep.subr.mxu0 %v7389_v5  ;;  %2390 = vmatprep.subr.mxu1 %v7391_v4 }
 0x734   :  { %2320 = vmatpush1.msra.mxu0 %v7395_v27  ;;  %2391 = vmatpush1.msra.mxu1 %v7397_v55 }
 0x735   :  { %2321 = vmatprep.subr.mxu0 %v7401_v33  ;;  %2392 = vmatprep.subr.mxu1 %v7403_v34 }
 0x736   :  { %2322 = vmatpush1.msra.mxu0 %v7407_v36  ;;  %2393 = vmatpush1.msra.mxu1 %v7409_v37 }
 0x737   :  { %2323 = vmatprep.subr.mxu0 %v7413_v39  ;;  %2394 = vmatprep.subr.mxu1 %v7415_v40 }
 0x738   :  { %2324 = vmatpush1.msra.mxu0 %v7419_v43  ;;  %2395 = vmatpush1.msra.mxu1 %v7421_v47 }
 0x739   :  { %2325 = vmatprep.subr.mxu0 %v7425_v48  ;;  %2396 = vmatprep.subr.mxu1 %v7427_v49 }
 0x73a   :  { %2326 = vmatpush1.msra.mxu0 %v7431_v0  ;;  %2397 = vmatpush1.msra.mxu1 %v7433_v51 }
 0x73b   :  { %2327 = vmatprep.subr.mxu0 %v7437_v53  ;;  %2398 = vmatprep.subr.mxu1 %v7439_v54 }
 0x73c   :  { %2328 = vmatpush1.msra.mxu0 %v7443_v57  ;;  %2399 = vmatpush1.msra.mxu1 %v7445_v62 }
 0x73d   :  { %2329 = vmatprep.subr.mxu0 %v7449_v63  ;;  %2400 = vmatprep.subr.mxu1 %v7451_v2 }
 0x73e   :  { %2330 = vmatpush1.msra.mxu0 %v7453_v9  ;;  %2401 = vmatpush1.msra.mxu1 %v7457_v11 }
 0x73f   :  { %2331 = vmatprep.subr.mxu0 %v7459_v12  ;;  %2402 = vmatprep.subr.mxu1 %v7461_v14 }
 0x740   :  { %2332 = vmatpush1.msra.mxu0 %v7465_v18  ;;  %2403 = vmatpush1.msra.mxu1 %v7467_v21 }
 0x741   :  { %2333 = vmatprep.subr.mxu0 %v7469_v23  ;;  %2404 = vmatprep.subr.mxu1 %v7473_v10 }
 0x742   :  { %2334 = vmatpush1.msra.mxu0 %v7475_v24  ;;  %2405 = vmatpush1.msra.mxu1 %v7477_v26 }
 0x743   :  { %2335 = vmatprep.subr.mxu0 %v7481_v29  ;;  %2406 = vmatprep.subr.mxu1 %v7483_v31 }
 0x744   :  { %2336 = vmatpush1.msra.mxu0 %v7487_v58  ;;  %2407 = vmatpush1.msra.mxu1 %v7489_v38 }
 0x745   :  { %2337 = vmatprep.subr.mxu0 %v7493_v1  ;;  %2408 = vmatprep.subr.mxu1 %v7495_v19 }
 0x746   :  { %2338 = vmatpush1.msra.mxu0 %v7499_v41  ;;  %2409 = vmatpush1.msra.mxu1 %v9132_v46 }
 0x747   :  { %2339 = vmatprep.subr.mxu0 %v9133_v61  ;;  %2410 = vmatprep.subr.mxu1 %v9134_v44  ;;  %v9155_v44 = vld [vmem:[#allocation59_spill] sm:$0xff] }
 0x748   :  { %2340 = vmatpush1.msra.mxu0 %v9135_v45  ;;  %2411 = vmatpush1.msra.mxu1 %v9136_v56  ;;  %v9154_v45 = vld [vmem:[#allocation61_spill] sm:$0xff] }
 0x749   :  { %2341 = vmatprep.subr.mxu0 %v9137_v20  ;;  %2412 = vmatprep.subr.mxu1 %v9138_v25 }
 0x74a   :  { %2342 = vmatpush1.msra.mxu0 %v9139_v35  ;;  %2413 = vmatpush1.msra.mxu1 %v9140_v15  ;;  %v9150_v15 = vld [vmem:[#allocation31_spill] sm:$0xff] }
 0x74b   :  { %2343 = vmatprep.subr.mxu0 %v9141_v13  ;;  %2414 = vmatprep.subr.mxu1 %v9142_v17  ;;  %v9151_v13 = vld [vmem:[#allocation30_spill] sm:$0xff] }
 0x74c   :  { %2344 = vmatpush1.msra.mxu0 %v9143_v16  ;;  %2415 = vmatpush1.msra.mxu1 %v9144_v59  ;;  %v9152_v16 = vld [vmem:[#allocation58_spill] sm:$0xff] }
 0x74d   :  { %2345 = vmatprep.subr.mxu0 %v9145_v6  ;;  %2416 = vmatprep.subr.mxu1 %v9146_v52  ;;  %v9153_v6 = vld [vmem:[#allocation60_spill] sm:$0xff] }
 0x74e   :  { %2346 = vmatpush1.msra.mxu0 %v9147_v7  ;;  %2379 = vmatprep.mubr.f32.mxu0 %v9148_v3 }
 0x74f   :  { %2417 = vmatpush1.msra.mxu1 %v9149_v50  ;;  %2450 = vmatprep.mubr.f32.mxu1 %v9148_v3 }
 0x750   :  { %2562 = vmatprep.subr.mxu0 %v9150_v15  ;;  %2633 = vmatprep.subr.mxu1 %v9151_v13 }
 0x7ef   :  { %v2134_v17 = vpop.f32.mrf.mxu0  ;;  %v2205_v52 = vpop.f32.mrf.mxu1 }
 0x7f0   :  { %v2210_v35 = vadd.f32 %v2134_v17, %v9152_v16  ;;  %v2212_v3 = vadd.f32 %v2205_v52, %v9155_v44  ;;  %v9162_v52 = vld [vmem:[#allocation36_spill] sm:$0xff] }
 0x7f1   :  { %v2136_v59 = vpop.f32.mrf.mxu0  ;;  %v2207_v56 = vpop.f32.mrf.mxu1 }
 0x7f2   :  { %v5786_v25 = vmul.f32 -1.442695, %v2210_v35  ;;  %v2211_v20 = vadd.f32 %v2136_v59, %v9153_v6  ;;  %v2213_v50 = vadd.f32 %v2207_v56, %v9154_v45 }
 0x7f4   :  { %6117 = vpow2.f32 %v5786_v25  ;;  %v5787_v7 = vmul.f32 -1.442695, %v2211_v20  ;;  %v5788_v61 = vmul.f32 -1.442695, %v2213_v50 }
 0x7f6   :  { %6119 = vpow2.f32 %v5787_v7 }
 0x7f7   :  { %6121 = vtanh.f32 %v2212_v3  ;;  %v9163_v3 = vld [vmem:[#allocation39_spill] sm:$0xff] }
 0x7f8   :  { %6123 = vpow2.f32 %v5788_v61  ;;  %v9159_v61 = vld [vmem:[#allocation35_spill] sm:$0xff] }
 0x801   :  { %v6118_v15 = vpop.eup %6117 }
 0x802   :  { %v2217_v46 = vadd.f32 1.0, %v6118_v15  ;;  %v9160_v15 = vld [vmem:[#allocation34_spill] sm:$0xff] }
 0x803   :  { %v6120_v13 = vpop.eup %6119 }
 0x804   :  { %6125 = vrcp.f32 %v2217_v46  ;;  %v2223_v17 = vadd.f32 1.0, %v6120_v13  ;;  %v6122_v35 = vpop.eup %6121  ;;  %v9158_v46 = vld [vmem:[#allocation32_spill] sm:$0xff]  ;;  %v9161_v13 = vld [vmem:[#allocation37_spill] sm:$0xff] }
 0x805   :  { %v6124_v16 = vpop.eup %6123 }
 0x806   :  { %6127 = vrcp.f32 %v2223_v17  ;;  %v2230_v6 = vadd.f32 1.0, %v6124_v16  ;;  %v9164_v17 = vld [vmem:[#allocation38_spill] sm:$0xff]  ;;  %v9166_v16 = vld [vmem:[#allocation40_spill] sm:$0xff] }
 0x808   :  { %6129 = vrcp.f32 %v2230_v6  ;;  %v9170_v6 = vld [vmem:[#allocation44_spill] sm:$0xff] }
 0x811   :  { %v6126_v25 = vpop.eup %6125 }
 0x812   :  { %v2235_v59 = vmul.f32 %v6126_v25, %v6122_v35  ;;  %v9165_v35 = vld [vmem:[#allocation41_spill] sm:$0xff]  ;;  %v9167_v25 = vld [vmem:[#allocation43_spill] sm:$0xff] }
 0x813   :  { %v6128_v20 = vpop.eup %6127 }
 0x814   :  { %v2234_v7 = vmul.f32 %v6128_v20, %v7564_v28  ;;  %v9157_v28 = vld [vmem:[#allocation33_spill] sm:$0xff] }
 0x815   :  { %v6130_v50 = vpop.eup %6129  ;;  %v9169_v20 = vld [vmem:[#allocation45_spill] sm:$0xff] }
 0x816   :  { %v7642_v45 = vadd.f32 %v2235_v59, %v2234_v7  ;;  %v9168_v59 = vld [vmem:[#allocation42_spill] sm:$0xff]  ;;  %v9171_v7 = vld [vmem:[#allocation47_spill] sm:$0xff] }
 0x818   :  { %6131 = vtanh.f32 %v7642_v45 }
 0x825   :  { %v6132_v44 = vpop.eup %6131 }
 0x826   :  { %v7645_v56 = vmul.f32 %v6132_v44, %v6130_v50  ;;  %v9172_v50 = vld [vmem:[#allocation46_spill] sm:$0xff]  ;;  %v9173_v44 = vmov 0.0  }
 0x828   :  { %9156 = vst [vmem:[#allocation52_spill] sm:$0xff] %v7645_v56  ;;  %2380 = vmatmul.mubr.f32.vlgmr.msra.gmra.mxu0 %v7645_v56  ;;  %2451 = vmatmul.mubr.f32.vlgmr.msra.gmra.mxu1 %v7645_v56  ;;  %v9174_v56 = vld [vmem:[#allocation48_spill] sm:$0xff] }
 0x829   :  { %2563 = vmatpush1.msra.mxu0 %v7371_v42  ;;  %2634 = vmatpush1.msra.mxu1 %v7373_v30 }
 0x82a   :  { %2564 = vmatprep.subr.mxu0 %v7377_v60  ;;  %2635 = vmatprep.subr.mxu1 %v7379_v8 }
 0x82b   :  { %2565 = vmatpush1.msra.mxu0 %v7383_v22  ;;  %2636 = vmatpush1.msra.mxu1 %v7385_v32 }
 0x82c   :  { %2566 = vmatprep.subr.mxu0 %v7389_v5  ;;  %2637 = vmatprep.subr.mxu1 %v7391_v4 }
 0x82d   :  { %2567 = vmatpush1.msra.mxu0 %v7395_v27  ;;  %2638 = vmatpush1.msra.mxu1 %v7397_v55 }
 0x82e   :  { %2568 = vmatprep.subr.mxu0 %v7401_v33  ;;  %2639 = vmatprep.subr.mxu1 %v7403_v34 }
 0x82f   :  { %2569 = vmatpush1.msra.mxu0 %v7407_v36  ;;  %2640 = vmatpush1.msra.mxu1 %v7409_v37 }
 0x830   :  { %2570 = vmatprep.subr.mxu0 %v7413_v39  ;;  %2641 = vmatprep.subr.mxu1 %v7415_v40 }
 0x831   :  { %2571 = vmatpush1.msra.mxu0 %v7419_v43  ;;  %2642 = vmatpush1.msra.mxu1 %v7421_v47 }
 0x832   :  { %2572 = vmatprep.subr.mxu0 %v7425_v48  ;;  %2643 = vmatprep.subr.mxu1 %v7427_v49 }
 0x833   :  { %2573 = vmatpush1.msra.mxu0 %v7431_v0  ;;  %2644 = vmatpush1.msra.mxu1 %v7433_v51 }
 0x834   :  { %2574 = vmatprep.subr.mxu0 %v7437_v53  ;;  %2645 = vmatprep.subr.mxu1 %v7439_v54 }
 0x835   :  { %2575 = vmatpush1.msra.mxu0 %v7443_v57  ;;  %2646 = vmatpush1.msra.mxu1 %v7445_v62 }
 0x836   :  { %2576 = vmatprep.subr.mxu0 %v7449_v63  ;;  %2647 = vmatprep.subr.mxu1 %v7451_v2 }
 0x837   :  { %2577 = vmatpush1.msra.mxu0 %v7453_v9  ;;  %2648 = vmatpush1.msra.mxu1 %v7457_v11 }
 0x838   :  { %2578 = vmatprep.subr.mxu0 %v7459_v12  ;;  %2649 = vmatprep.subr.mxu1 %v7461_v14 }
 0x839   :  { %2579 = vmatpush1.msra.mxu0 %v7465_v18  ;;  %2650 = vmatpush1.msra.mxu1 %v7467_v21 }
 0x83a   :  { %2580 = vmatprep.subr.mxu0 %v7469_v23  ;;  %2651 = vmatprep.subr.mxu1 %v7473_v10 }
 0x83b   :  { %2581 = vmatpush1.msra.mxu0 %v7475_v24  ;;  %2652 = vmatpush1.msra.mxu1 %v7477_v26 }
 0x83c   :  { %2582 = vmatprep.subr.mxu0 %v7481_v29  ;;  %2653 = vmatprep.subr.mxu1 %v7483_v31 }
 0x83d   :  { %2583 = vmatpush1.msra.mxu0 %v7487_v58  ;;  %2654 = vmatpush1.msra.mxu1 %v7489_v38 }
 0x83e   :  { %2584 = vmatprep.subr.mxu0 %v7493_v1  ;;  %2655 = vmatprep.subr.mxu1 %v7495_v19 }
 0x83f   :  { %2585 = vmatpush1.msra.mxu0 %v7499_v41  ;;  %2656 = vmatpush1.msra.mxu1 %v9157_v28 }
 0x840   :  { %2586 = vmatprep.subr.mxu0 %v9158_v46  ;;  %2657 = vmatprep.subr.mxu1 %v9159_v61  ;;  %v9180_v61 = vld [vmem:[#allocation63_spill] sm:$0xff] }
 0x841   :  { %2587 = vmatpush1.msra.mxu0 %v9160_v15  ;;  %2658 = vmatpush1.msra.mxu1 %v9161_v13  ;;  %v9179_v15 = vld [vmem:[#allocation65_spill] sm:$0xff] }
 0x842   :  { %2588 = vmatprep.subr.mxu0 %v9162_v52  ;;  %2659 = vmatprep.subr.mxu1 %v9163_v3 }
 0x843   :  { %2589 = vmatpush1.msra.mxu0 %v9164_v17  ;;  %2660 = vmatpush1.msra.mxu1 %v9165_v35  ;;  %v9175_v35 = vld [vmem:[#allocation31_spill] sm:$0xff] }
 0x844   :  { %2590 = vmatprep.subr.mxu0 %v9166_v16  ;;  %2661 = vmatprep.subr.mxu1 %v9167_v25  ;;  %v9176_v16 = vld [vmem:[#allocation30_spill] sm:$0xff] }
 0x845   :  { %2591 = vmatpush1.msra.mxu0 %v9168_v59  ;;  %2662 = vmatpush1.msra.mxu1 %v9169_v20  ;;  %v9177_v59 = vld [vmem:[#allocation62_spill] sm:$0xff] }
 0x846   :  { %2592 = vmatprep.subr.mxu0 %v9170_v6  ;;  %2663 = vmatprep.subr.mxu1 %v9171_v7  ;;  %v9178_v6 = vld [vmem:[#allocation64_spill] sm:$0xff] }
 0x847   :  { %2593 = vmatpush1.msra.mxu0 %v9172_v50  ;;  %2626 = vmatprep.mubr.f32.mxu0 %v9173_v44 }
 0x848   :  { %2664 = vmatpush1.msra.mxu1 %v9174_v56  ;;  %2697 = vmatprep.mubr.f32.mxu1 %v9173_v44 }
 0x849   :  { %2809 = vmatprep.subr.mxu0 %v9175_v35  ;;  %2880 = vmatprep.subr.mxu1 %v9176_v16 }
 0x8e8   :  { %v2381_v25 = vpop.f32.mrf.mxu0  ;;  %v2452_v7 = vpop.f32.mrf.mxu1 }
 0x8e9   :  { %v2457_v17 = vadd.f32 %v2381_v25, %v9177_v59  ;;  %v2459_v44 = vadd.f32 %v2452_v7, %v9180_v61  ;;  %v3053_v7 = vld [vmem:[#allocation16 + $0x1e8] sm:$0xff] }
 0x8ea   :  { %v2383_v20 = vpop.f32.mrf.mxu0  ;;  %v2454_v13 = vpop.f32.mrf.mxu1 }
 0x8eb   :  { %v5789_v3 = vmul.f32 -1.442695, %v2457_v17  ;;  %v2458_v52 = vadd.f32 %v2383_v20, %v9178_v6  ;;  %v2460_v56 = vadd.f32 %v2454_v13, %v9179_v15 }
 0x8ed   :  { %6133 = vpow2.f32 %v5789_v3  ;;  %v5790_v50 = vmul.f32 -1.442695, %v2458_v52  ;;  %v5791_v46 = vmul.f32 -1.442695, %v2460_v56 }
 0x8ef   :  { %6135 = vpow2.f32 %v5790_v50 }
 0x8f0   :  { %6137 = vtanh.f32 %v2459_v44  ;;  %v3055_v44 = vld [vmem:[#allocation16 + $0x1f8] sm:$0xff] }
 0x8f1   :  { %6139 = vpow2.f32 %v5791_v46 }
 0x8fa   :  { %v6134_v35 = vpop.eup %6133 }
 0x8fb   :  { %v2464_v28 = vadd.f32 1.0, %v6134_v35  ;;  %v3052_v35 = vld [vmem:[#allocation16 + $0x1e0] sm:$0xff] }
 0x8fc   :  { %v6136_v16 = vpop.eup %6135 }
 0x8fd   :  { %6141 = vrcp.f32 %v2464_v28  ;;  %v2470_v25 = vadd.f32 1.0, %v6136_v16  ;;  %v6138_v17 = vpop.eup %6137  ;;  %v3054_v16 = vld [vmem:[#allocation16 + $0x1f0] sm:$0xff] }
 0x8fe   :  { %v6140_v59 = vpop.eup %6139 }
 0x8ff   :  { %6143 = vrcp.f32 %v2470_v25  ;;  %v2477_v6 = vadd.f32 1.0, %v6140_v59  ;;  %v3049_v25 = vld [vmem:[#allocation16 + $0x1c8] sm:$0xff]  ;;  %v3048_v59 = vld [vmem:[#allocation16 + $0x1c0] sm:$0xff] }
 0x901   :  { %6145 = vrcp.f32 %v2477_v6  ;;  %v3044_v6 = vld [vmem:[#allocation16 + $0x1a0] sm:$0xff] }
 0x90a   :  { %v6142_v3 = vpop.eup %6141 }
 0x90b   :  { %v2482_v20 = vmul.f32 %v6142_v3, %v6138_v17  ;;  %v3051_v17 = vld [vmem:[#allocation16 + $0x1d8] sm:$0xff]  ;;  %v3050_v3 = vld [vmem:[#allocation16 + $0x1d0] sm:$0xff] }
 0x90c   :  { %v6144_v52 = vpop.eup %6143 }
 0x90d   :  { %v2481_v50 = vmul.f32 %v6144_v52, %v7642_v45  ;;  %v3047_v52 = vld [vmem:[#allocation16 + $0x1b8] sm:$0xff] }
 0x90e   :  { %v6146_v56 = vpop.eup %6145 }
 0x90f   :  { %v7720_v15 = vadd.f32 %v2482_v20, %v2481_v50  ;;  %v3045_v20 = vld [vmem:[#allocation16 + $0x1a8] sm:$0xff]  ;;  %v3046_v50 = vld [vmem:[#allocation16 + $0x1b0] sm:$0xff] }
 0x911   :  { %6147 = vtanh.f32 %v7720_v15 }
 0x91e   :  { %v6148_v61 = vpop.eup %6147 }
 0x91f   :  { %v7723_v13 = vmul.f32 %v6148_v61, %v6146_v56  ;;  %v3043_v56 = vld [vmem:[#allocation16 + $0x198] sm:$0xff]  ;;  %v3040_v61 = vld [vmem:[#allocation16 + $0x180] sm:$0xff] }
 0x921   :  { %2627 = vmatmul.mubr.f32.vlgmr.msra.gmra.mxu0 %v7723_v13  ;;  %2698 = vmatmul.mubr.f32.vlgmr.msra.gmra.mxu1 %v7723_v13 }
 0x922   :  { %2810 = vmatpush1.msra.mxu0 %v7371_v42  ;;  %2881 = vmatpush1.msra.mxu1 %v7373_v30  ;;  %v9181_v42 = vld [vmem:[#allocation33_spill] sm:$0xff]  ;;  %v9182_v30 = vld [vmem:[#allocation32_spill] sm:$0xff] }
 0x923   :  { %2811 = vmatprep.subr.mxu0 %v7377_v60  ;;  %2882 = vmatprep.subr.mxu1 %v7379_v8  ;;  %v9183_v60 = vld [vmem:[#allocation35_spill] sm:$0xff]  ;;  %v9184_v8 = vld [vmem:[#allocation34_spill] sm:$0xff] }
 0x924   :  { %2812 = vmatpush1.msra.mxu0 %v7383_v22  ;;  %2883 = vmatpush1.msra.mxu1 %v7385_v32  ;;  %v9185_v22 = vld [vmem:[#allocation37_spill] sm:$0xff]  ;;  %v9186_v32 = vld [vmem:[#allocation36_spill] sm:$0xff] }
 0x925   :  { %2813 = vmatprep.subr.mxu0 %v7389_v5  ;;  %2884 = vmatprep.subr.mxu1 %v7391_v4  ;;  %v9187_v5 = vld [vmem:[#allocation39_spill] sm:$0xff]  ;;  %v9188_v4 = vld [vmem:[#allocation38_spill] sm:$0xff] }
 0x926   :  { %2814 = vmatpush1.msra.mxu0 %v7395_v27  ;;  %2885 = vmatpush1.msra.mxu1 %v7397_v55  ;;  %v9189_v27 = vld [vmem:[#allocation41_spill] sm:$0xff]  ;;  %v9190_v55 = vld [vmem:[#allocation40_spill] sm:$0xff] }
 0x927   :  { %2815 = vmatprep.subr.mxu0 %v7401_v33  ;;  %2886 = vmatprep.subr.mxu1 %v7403_v34  ;;  %v9191_v33 = vld [vmem:[#allocation43_spill] sm:$0xff]  ;;  %v9192_v34 = vld [vmem:[#allocation42_spill] sm:$0xff] }
 0x928   :  { %2816 = vmatpush1.msra.mxu0 %v7407_v36  ;;  %2887 = vmatpush1.msra.mxu1 %v7409_v37  ;;  %v9193_v36 = vld [vmem:[#allocation45_spill] sm:$0xff]  ;;  %v9194_v37 = vld [vmem:[#allocation44_spill] sm:$0xff] }
 0x929   :  { %2817 = vmatprep.subr.mxu0 %v7413_v39  ;;  %2888 = vmatprep.subr.mxu1 %v7415_v40  ;;  %v9195_v39 = vld [vmem:[#allocation47_spill] sm:$0xff]  ;;  %v9196_v40 = vld [vmem:[#allocation46_spill] sm:$0xff] }
 0x92a   :  { %2818 = vmatpush1.msra.mxu0 %v7419_v43  ;;  %2889 = vmatpush1.msra.mxu1 %v7421_v47  ;;  %v9197_v43 = vmov 0.0   ;;  %v9198_v47 = vld [vmem:[#allocation48_spill] sm:$0xff] }
 0x92b   :  { %2819 = vmatprep.subr.mxu0 %v7425_v48  ;;  %2890 = vmatprep.subr.mxu1 %v7427_v49  ;;  %v9199_v49 = vld [vmem:[#allocation66_spill] sm:$0xff] }
 0x92c   :  { %2820 = vmatpush1.msra.mxu0 %v7431_v0  ;;  %2891 = vmatpush1.msra.mxu1 %v7433_v51 }
 0x92d   :  { %2821 = vmatprep.subr.mxu0 %v7437_v53  ;;  %2892 = vmatprep.subr.mxu1 %v7439_v54  ;;  %v9200_v54 = vld [vmem:[#allocation68_spill] sm:$0xff] }
 0x92e   :  { %2822 = vmatpush1.msra.mxu0 %v7443_v57  ;;  %2893 = vmatpush1.msra.mxu1 %v7445_v62 }
 0x92f   :  { %2823 = vmatprep.subr.mxu0 %v7449_v63  ;;  %2894 = vmatprep.subr.mxu1 %v7451_v2 }
 0x930   :  { %2824 = vmatpush1.msra.mxu0 %v7453_v9  ;;  %2895 = vmatpush1.msra.mxu1 %v7457_v11  ;;  %v9201_v9 = vld [vmem:[#allocation69_spill] sm:$0xff] }
 0x931   :  { %2825 = vmatprep.subr.mxu0 %v7459_v12  ;;  %2896 = vmatprep.subr.mxu1 %v7461_v14  ;;  %v9202_v12 = vld [vmem:[#allocation67_spill] sm:$0xff] }
 0x932   :  { %2826 = vmatpush1.msra.mxu0 %v7465_v18  ;;  %2897 = vmatpush1.msra.mxu1 %v7467_v21 }
 0x933   :  { %2827 = vmatprep.subr.mxu0 %v7469_v23  ;;  %2898 = vmatprep.subr.mxu1 %v7473_v10 }
 0x934   :  { %2828 = vmatpush1.msra.mxu0 %v7475_v24  ;;  %2899 = vmatpush1.msra.mxu1 %v7477_v26 }
 0x935   :  { %2829 = vmatprep.subr.mxu0 %v7481_v29  ;;  %2900 = vmatprep.subr.mxu1 %v7483_v31 }
 0x936   :  { %2830 = vmatpush1.msra.mxu0 %v7487_v58  ;;  %2901 = vmatpush1.msra.mxu1 %v7489_v38 }
 0x937   :  { %2831 = vmatprep.subr.mxu0 %v7493_v1  ;;  %2902 = vmatprep.subr.mxu1 %v7495_v19 }
 0x938   :  { %2832 = vmatpush1.msra.mxu0 %v7499_v41  ;;  %2903 = vmatpush1.msra.mxu1 %v9181_v42  ;;  %v3042_v42 = vld [vmem:[#allocation16 + $0x190] sm:$0xff] }
 0x939   :  { %2833 = vmatprep.subr.mxu0 %v9182_v30  ;;  %2904 = vmatprep.subr.mxu1 %v9183_v60  ;;  %v3037_v30 = vld [vmem:[#allocation16 + $0x168] sm:$0xff]  ;;  %v3039_v60 = vld [vmem:[#allocation16 + $0x178] sm:$0xff] }
 0x93a   :  { %2834 = vmatpush1.msra.mxu0 %v9184_v8  ;;  %2905 = vmatpush1.msra.mxu1 %v9185_v22  ;;  %v3036_v8 = vld [vmem:[#allocation16 + $0x160] sm:$0xff]  ;;  %v3038_v22 = vld [vmem:[#allocation16 + $0x170] sm:$0xff] }
 0x93b   :  { %2835 = vmatprep.subr.mxu0 %v9186_v32  ;;  %2906 = vmatprep.subr.mxu1 %v9187_v5  ;;  %v3033_v32 = vld [vmem:[#allocation16 + $0x148] sm:$0xff]  ;;  %v3035_v5 = vld [vmem:[#allocation16 + $0x158] sm:$0xff] }
 0x93c   :  { %2836 = vmatpush1.msra.mxu0 %v9188_v4  ;;  %2907 = vmatpush1.msra.mxu1 %v9189_v27  ;;  %v3032_v4 = vld [vmem:[#allocation16 + $0x140] sm:$0xff]  ;;  %v3034_v27 = vld [vmem:[#allocation16 + $0x150] sm:$0xff] }
 0x93d   :  { %2837 = vmatprep.subr.mxu0 %v9190_v55  ;;  %2908 = vmatprep.subr.mxu1 %v9191_v33  ;;  %v3029_v55 = vld [vmem:[#allocation16 + $0x128] sm:$0xff]  ;;  %v3031_v33 = vld [vmem:[#allocation16 + $0x138] sm:$0xff] }
 0x93e   :  { %2838 = vmatpush1.msra.mxu0 %v9192_v34  ;;  %2909 = vmatpush1.msra.mxu1 %v9193_v36  ;;  %v3028_v34 = vld [vmem:[#allocation16 + $0x120] sm:$0xff]  ;;  %v3030_v36 = vld [vmem:[#allocation16 + $0x130] sm:$0xff] }
 0x93f   :  { %2839 = vmatprep.subr.mxu0 %v9194_v37  ;;  %2910 = vmatprep.subr.mxu1 %v9195_v39  ;;  %v3025_v37 = vld [vmem:[#allocation16 + $0x108] sm:$0xff]  ;;  %v3027_v39 = vld [vmem:[#allocation16 + $0x118] sm:$0xff] }
 0x940   :  { %2840 = vmatpush1.msra.mxu0 %v9196_v40  ;;  %2873 = vmatprep.mubr.f32.mxu0 %v9197_v43  ;;  %v3024_v40 = vld [vmem:[#allocation16 + $0x100] sm:$0xff] }
 0x941   :  { %2911 = vmatpush1.msra.mxu1 %v9198_v47  ;;  %2944 = vmatprep.mubr.f32.mxu1 %v9197_v43  ;;  %v3026_v47 = vld [vmem:[#allocation16 + $0x110] sm:$0xff] }
 0x942   :  { %3056 = vmatprep.subr.mxu0 %v3053_v7  ;;  %3127 = vmatprep.subr.mxu1 %v3055_v44  ;;  %v2993_v7 = vld [vmem:[#allocation16 + $0x8] sm:$0xff]  ;;  %v2995_v44 = vld [vmem:[#allocation16 + $0x18] sm:$0xff] }
 0x9e1   :  { %v2628_v48 = vpop.f32.mrf.mxu0  ;;  %v2699_v62 = vpop.f32.mrf.mxu1 }
 0x9e2   :  { %v2704_v0 = vadd.f32 %v2628_v48, %v9199_v49  ;;  %v2706_v14 = vadd.f32 %v2699_v62, %v9202_v12  ;;  %v3021_v48 = vld [vmem:[#allocation16 + $0xe8] sm:$0xff]  ;;  %v3023_v49 = vld [vmem:[#allocation16 + $0xf8] sm:$0xff]  ;;  %v3018_v62 = vld [vmem:[#allocation16 + $0xd0] sm:$0xff] }
 0x9e3   :  { %v2630_v51 = vpop.f32.mrf.mxu0  ;;  %v2701_v2 = vpop.f32.mrf.mxu1  ;;  %v3009_v12 = vld [vmem:[#allocation16 + $0x88] sm:$0xff] }
 0x9e4   :  { %v5792_v53 = vmul.f32 -1.442695, %v2704_v0  ;;  %v2705_v57 = vadd.f32 %v2630_v51, %v9200_v54  ;;  %v2707_v11 = vadd.f32 %v2701_v2, %v9201_v9  ;;  %v3020_v0 = vld [vmem:[#allocation16 + $0xe0] sm:$0xff]  ;;  %v3022_v51 = vld [vmem:[#allocation16 + $0xf0] sm:$0xff]  ;;  %v3019_v54 = vld [vmem:[#allocation16 + $0xd8] sm:$0xff] }
 0x9e5   :  { %v3015_v2 = vld [vmem:[#allocation16 + $0xb8] sm:$0xff]  ;;  %v3012_v9 = vld [vmem:[#allocation16 + $0xa0] sm:$0xff] }
 0x9e6   :  { %6149 = vpow2.f32 %v5792_v53  ;;  %v5793_v63 = vmul.f32 -1.442695, %v2705_v57  ;;  %v5794_v18 = vmul.f32 -1.442695, %v2707_v11  ;;  %v3017_v53 = vld [vmem:[#allocation16 + $0xc8] sm:$0xff]  ;;  %v3016_v57 = vld [vmem:[#allocation16 + $0xc0] sm:$0xff] }
 0x9e7   :  { %v3014_v11 = vld [vmem:[#allocation16 + $0xb0] sm:$0xff] }
 0x9e8   :  { %6151 = vpow2.f32 %v5793_v63  ;;  %v3013_v63 = vld [vmem:[#allocation16 + $0xa8] sm:$0xff] }
 0x9e9   :  { %6153 = vtanh.f32 %v2706_v14  ;;  %v3011_v14 = vld [vmem:[#allocation16 + $0x98] sm:$0xff] }
 0x9ea   :  { %6155 = vpow2.f32 %v5794_v18  ;;  %v3008_v18 = vld [vmem:[#allocation16 + $0x80] sm:$0xff] }
 0x9f3   :  { %v6150_v21 = vpop.eup %6149 }
 0x9f4   :  { %v2711_v23 = vadd.f32 1.0, %v6150_v21  ;;  %v3010_v21 = vld [vmem:[#allocation16 + $0x90] sm:$0xff] }
 0x9f5   :  { %v6152_v10 = vpop.eup %6151 }
 0x9f6   :  { %6157 = vrcp.f32 %v2711_v23  ;;  %v2717_v24 = vadd.f32 1.0, %v6152_v10  ;;  %v6154_v26 = vpop.eup %6153  ;;  %v3005_v23 = vld [vmem:[#allocation16 + $0x68] sm:$0xff]  ;;  %v3007_v10 = vld [vmem:[#allocation16 + $0x78] sm:$0xff] }
 0x9f7   :  { %v6156_v29 = vpop.eup %6155 }
 0x9f8   :  { %6159 = vrcp.f32 %v2717_v24  ;;  %v2724_v1 = vadd.f32 1.0, %v6156_v29  ;;  %v3004_v24 = vld [vmem:[#allocation16 + $0x60] sm:$0xff]  ;;  %v3001_v29 = vld [vmem:[#allocation16 + $0x48] sm:$0xff] }
 0x9fa   :  { %6161 = vrcp.f32 %v2724_v1  ;;  %v2997_v1 = vld [vmem:[#allocation16 + $0x28] sm:$0xff] }
 0xa03   :  { %v6158_v31 = vpop.eup %6157 }
 0xa04   :  { %v2729_v58 = vmul.f32 %v6158_v31, %v6154_v26  ;;  %v3006_v26 = vld [vmem:[#allocation16 + $0x70] sm:$0xff]  ;;  %v3003_v31 = vld [vmem:[#allocation16 + $0x58] sm:$0xff] }
 0xa05   :  { %v6160_v38 = vpop.eup %6159 }
 0xa06   :  { %v2728_v19 = vmul.f32 %v6160_v38, %v7720_v15  ;;  %v3041_v15 = vld [vmem:[#allocation16 + $0x188] sm:$0xff]  ;;  %v3002_v38 = vld [vmem:[#allocation16 + $0x50] sm:$0xff] }
 0xa07   :  { %v6162_v45 = vpop.eup %6161 }
 0xa08   :  { %v7796_v41 = vadd.f32 %v2729_v58, %v2728_v19  ;;  %v3000_v58 = vld [vmem:[#allocation16 + $0x40] sm:$0xff]  ;;  %v2999_v19 = vld [vmem:[#allocation16 + $0x38] sm:$0xff] }
 0xa0a   :  { %6163 = vtanh.f32 %v7796_v41 }
 0xa17   :  { %v6164_v28 = vpop.eup %6163 }
 0xa18   :  { %v7799_v46 = vmul.f32 %v6164_v28, %v6162_v45  ;;  %v2996_v45 = vld [vmem:[#allocation16 + $0x20] sm:$0xff]  ;;  %v2998_v28 = vld [vmem:[#allocation16 + $0x30] sm:$0xff] }
 0xa1a   :  { %2874 = vmatmul.mubr.f32.vlgmr.msra.gmra.mxu0 %v7799_v46  ;;  %2945 = vmatmul.mubr.f32.vlgmr.msra.gmra.mxu1 %v7799_v46 }
 0xa1b   :  { %3120 = vmatprep.mubr.f32.mxu0 %v9197_v43  ;;  %3191 = vmatprep.mubr.f32.mxu1 %v9197_v43 }
 0xa1c   :  { %3057 = vmatpush1.msra.mxu0 %v3052_v35  ;;  %3128 = vmatpush1.msra.mxu1 %v3054_v16  ;;  %v2992_v35 = vld [vmem:[#allocation16] sm:$0xff]  ;;  %v2994_v16 = vld [vmem:[#allocation16 + $0x10] sm:$0xff] }
 0xa1d   :  { %3058 = vmatprep.subr.mxu0 %v3049_v25  ;;  %3129 = vmatprep.subr.mxu1 %v3051_v17  ;;  %v3300_v25 = vld [vmem:[#allocation18 + $0x1e8] sm:$0xff]  ;;  %v3302_v17 = vld [vmem:[#allocation18 + $0x1f8] sm:$0xff] }
 0xa1e   :  { %3059 = vmatpush1.msra.mxu0 %v3048_v59  ;;  %3130 = vmatpush1.msra.mxu1 %v3050_v3  ;;  %v9203_v3 = vld [vmem:[#allocation70_spill] sm:$0xff] }
 0xa1f   :  { %3060 = vmatprep.subr.mxu0 %v3045_v20  ;;  %3131 = vmatprep.subr.mxu1 %v3047_v52 }
 0xa20   :  { %3061 = vmatpush1.msra.mxu0 %v3044_v6  ;;  %3132 = vmatpush1.msra.mxu1 %v3046_v50  ;;  %v9204_v50 = vld [vmem:[#allocation72_spill] sm:$0xff] }
 0xa21   :  { %3062 = vmatprep.subr.mxu0 %v3041_v15  ;;  %3133 = vmatprep.subr.mxu1 %v3043_v56 }
 0xa22   :  { %3063 = vmatpush1.msra.mxu0 %v3040_v61  ;;  %3134 = vmatpush1.msra.mxu1 %v3042_v42 }
 0xa23   :  { %3064 = vmatprep.subr.mxu0 %v3037_v30  ;;  %3135 = vmatprep.subr.mxu1 %v3039_v60  ;;  %v9205_v30 = vld [vmem:[#allocation73_spill] sm:$0xff] }
 0xa24   :  { %3065 = vmatpush1.msra.mxu0 %v3036_v8  ;;  %3136 = vmatpush1.msra.mxu1 %v3038_v22  ;;  %v9206_v8 = vld [vmem:[#allocation71_spill] sm:$0xff] }
 0xa25   :  { %3066 = vmatprep.subr.mxu0 %v3033_v32  ;;  %3137 = vmatprep.subr.mxu1 %v3035_v5 }
 0xa26   :  { %3067 = vmatpush1.msra.mxu0 %v3032_v4  ;;  %3138 = vmatpush1.msra.mxu1 %v3034_v27 }
 0xa27   :  { %3068 = vmatprep.subr.mxu0 %v3029_v55  ;;  %3139 = vmatprep.subr.mxu1 %v3031_v33 }
 0xa28   :  { %3069 = vmatpush1.msra.mxu0 %v3028_v34  ;;  %3140 = vmatpush1.msra.mxu1 %v3030_v36 }
 0xa29   :  { %3070 = vmatprep.subr.mxu0 %v3025_v37  ;;  %3141 = vmatprep.subr.mxu1 %v3027_v39 }
 0xa2a   :  { %3071 = vmatpush1.msra.mxu0 %v3024_v40  ;;  %3142 = vmatpush1.msra.mxu1 %v3026_v47 }
 0xa2b   :  { %3072 = vmatprep.subr.mxu0 %v3021_v48  ;;  %3143 = vmatprep.subr.mxu1 %v3023_v49 }
 0xa2c   :  { %3073 = vmatpush1.msra.mxu0 %v3020_v0  ;;  %3144 = vmatpush1.msra.mxu1 %v3022_v51 }
 0xa2d   :  { %3074 = vmatprep.subr.mxu0 %v3017_v53  ;;  %3145 = vmatprep.subr.mxu1 %v3019_v54  ;;  %v3299_v53 = vld [vmem:[#allocation18 + $0x1e0] sm:$0xff]  ;;  %v3301_v54 = vld [vmem:[#allocation18 + $0x1f0] sm:$0xff] }
 0xa2e   :  { %3075 = vmatpush1.msra.mxu0 %v3016_v57  ;;  %3146 = vmatpush1.msra.mxu1 %v3018_v62  ;;  %v3296_v57 = vld [vmem:[#allocation18 + $0x1c8] sm:$0xff]  ;;  %v3298_v62 = vld [vmem:[#allocation18 + $0x1d8] sm:$0xff] }
 0xa2f   :  { %3076 = vmatprep.subr.mxu0 %v3013_v63  ;;  %3147 = vmatprep.subr.mxu1 %v3015_v2  ;;  %v3295_v63 = vld [vmem:[#allocation18 + $0x1c0] sm:$0xff]  ;;  %v3297_v2 = vld [vmem:[#allocation18 + $0x1d0] sm:$0xff] }
 0xa30   :  { %3077 = vmatpush1.msra.mxu0 %v3012_v9  ;;  %3148 = vmatpush1.msra.mxu1 %v3014_v11  ;;  %v3294_v9 = vld [vmem:[#allocation18 + $0x1b8] sm:$0xff]  ;;  %v3291_v11 = vld [vmem:[#allocation18 + $0x1a0] sm:$0xff] }
 0xa31   :  { %3078 = vmatprep.subr.mxu0 %v3009_v12  ;;  %3149 = vmatprep.subr.mxu1 %v3011_v14  ;;  %v3293_v12 = vld [vmem:[#allocation18 + $0x1b0] sm:$0xff]  ;;  %v3288_v14 = vld [vmem:[#allocation18 + $0x188] sm:$0xff] }
 0xa32   :  { %3079 = vmatpush1.msra.mxu0 %v3008_v18  ;;  %3150 = vmatpush1.msra.mxu1 %v3010_v21  ;;  %v3290_v18 = vld [vmem:[#allocation18 + $0x198] sm:$0xff]  ;;  %v3287_v21 = vld [vmem:[#allocation18 + $0x180] sm:$0xff] }
 0xa33   :  { %3080 = vmatprep.subr.mxu0 %v3005_v23  ;;  %3151 = vmatprep.subr.mxu1 %v3007_v10  ;;  %v3289_v23 = vld [vmem:[#allocation18 + $0x190] sm:$0xff]  ;;  %v3284_v10 = vld [vmem:[#allocation18 + $0x168] sm:$0xff] }
 0xa34   :  { %3081 = vmatpush1.msra.mxu0 %v3004_v24  ;;  %3152 = vmatpush1.msra.mxu1 %v3006_v26  ;;  %v3286_v24 = vld [vmem:[#allocation18 + $0x178] sm:$0xff]  ;;  %v3283_v26 = vld [vmem:[#allocation18 + $0x160] sm:$0xff] }
 0xa35   :  { %3082 = vmatprep.subr.mxu0 %v3001_v29  ;;  %3153 = vmatprep.subr.mxu1 %v3003_v31  ;;  %v3285_v29 = vld [vmem:[#allocation18 + $0x170] sm:$0xff]  ;;  %v3280_v31 = vld [vmem:[#allocation18 + $0x148] sm:$0xff] }
 0xa36   :  { %3083 = vmatpush1.msra.mxu0 %v3000_v58  ;;  %3154 = vmatpush1.msra.mxu1 %v3002_v38  ;;  %v3282_v58 = vld [vmem:[#allocation18 + $0x158] sm:$0xff]  ;;  %v3279_v38 = vld [vmem:[#allocation18 + $0x140] sm:$0xff] }
 0xa37   :  { %3084 = vmatprep.subr.mxu0 %v2997_v1  ;;  %3155 = vmatprep.subr.mxu1 %v2999_v19  ;;  %v3281_v1 = vld [vmem:[#allocation18 + $0x150] sm:$0xff]  ;;  %v3276_v19 = vld [vmem:[#allocation18 + $0x128] sm:$0xff] }
 0xa38   :  { %3085 = vmatpush1.msra.mxu0 %v2996_v45  ;;  %3156 = vmatpush1.msra.mxu1 %v2998_v28  ;;  %v3278_v45 = vld [vmem:[#allocation18 + $0x138] sm:$0xff]  ;;  %v3275_v28 = vld [vmem:[#allocation18 + $0x120] sm:$0xff] }
 0xa39   :  { %3086 = vmatprep.subr.mxu0 %v2993_v7  ;;  %3157 = vmatprep.subr.mxu1 %v2995_v44  ;;  %v3277_v7 = vld [vmem:[#allocation18 + $0x130] sm:$0xff]  ;;  %v3272_v44 = vld [vmem:[#allocation18 + $0x108] sm:$0xff] }
 0xa3a   :  { %3087 = vmatpush1.msra.mxu0 %v2992_v35  ;;  %3158 = vmatpush1.msra.mxu1 %v2994_v16  ;;  %v3274_v35 = vld [vmem:[#allocation18 + $0x118] sm:$0xff]  ;;  %v3271_v16 = vld [vmem:[#allocation18 + $0x100] sm:$0xff] }
 0xa3b   :  { %3325 = vmatprep.subr.mxu0 %v3300_v25  ;;  %3438 = vmatprep.subr.mxu1 %v3302_v17  ;;  %v3273_v25 = vld [vmem:[#allocation18 + $0x110] sm:$0xff]  ;;  %v3268_v17 = vld [vmem:[#allocation18 + $0xe8] sm:$0xff] }
 0xada   :  { %v2875_v59 = vpop.f32.mrf.mxu0  ;;  %v2946_v56 = vpop.f32.mrf.mxu1 }
 0xadb   :  { %v2951_v20 = vadd.f32 %v2875_v59, %v9203_v3  ;;  %v2953_v22 = vadd.f32 %v2946_v56, %v9206_v8  ;;  %v3270_v59 = vld [vmem:[#allocation18 + $0xf8] sm:$0xff]  ;;  %v3267_v3 = vld [vmem:[#allocation18 + $0xe0] sm:$0xff]  ;;  %v3260_v56 = vld [vmem:[#allocation18 + $0xa8] sm:$0xff] }
 0xadc   :  { %v2877_v52 = vpop.f32.mrf.mxu0  ;;  %v2948_v42 = vpop.f32.mrf.mxu1  ;;  %v3258_v8 = vld [vmem:[#allocation18 + $0x98] sm:$0xff] }
 0xadd   :  { %v5795_v6 = vmul.f32 -1.442695, %v2951_v20  ;;  %v2952_v15 = vadd.f32 %v2877_v52, %v9204_v50  ;;  %v2954_v60 = vadd.f32 %v2948_v42, %v9205_v30  ;;  %v3269_v20 = vld [vmem:[#allocation18 + $0xf0] sm:$0xff]  ;;  %v3264_v52 = vld [vmem:[#allocation18 + $0xc8] sm:$0xff]  ;;  %v3263_v50 = vld [vmem:[#allocation18 + $0xc0] sm:$0xff] }
 0xade   :  { %v3259_v42 = vld [vmem:[#allocation18 + $0xa0] sm:$0xff]  ;;  %v3261_v30 = vld [vmem:[#allocation18 + $0xb0] sm:$0xff] }
 0xadf   :  { %6165 = vpow2.f32 %v5795_v6  ;;  %v5796_v61 = vmul.f32 -1.442695, %v2952_v15  ;;  %v5797_v32 = vmul.f32 -1.442695, %v2954_v60  ;;  %v3266_v6 = vld [vmem:[#allocation18 + $0xd8] sm:$0xff]  ;;  %v3265_v15 = vld [vmem:[#allocation18 + $0xd0] sm:$0xff] }
 0xae0   :  { %v3256_v60 = vld [vmem:[#allocation18 + $0x88] sm:$0xff] }
 0xae1   :  { %6167 = vpow2.f32 %v5796_v61  ;;  %v3262_v61 = vld [vmem:[#allocation18 + $0xb8] sm:$0xff] }
 0xae2   :  { %6169 = vtanh.f32 %v2953_v22  ;;  %v3255_v22 = vld [vmem:[#allocation18 + $0x80] sm:$0xff] }
 0xae3   :  { %6171 = vpow2.f32 %v5797_v32  ;;  %v3257_v32 = vld [vmem:[#allocation18 + $0x90] sm:$0xff] }
 0xaec   :  { %v6166_v5 = vpop.eup %6165 }
 0xaed   :  { %v2958_v4 = vadd.f32 1.0, %v6166_v5  ;;  %v3252_v5 = vld [vmem:[#allocation18 + $0x68] sm:$0xff] }
 0xaee   :  { %v6168_v27 = vpop.eup %6167 }
 0xaef   :  { %6173 = vrcp.f32 %v2958_v4  ;;  %v2964_v55 = vadd.f32 1.0, %v6168_v27  ;;  %v6170_v33 = vpop.eup %6169  ;;  %v3254_v4 = vld [vmem:[#allocation18 + $0x78] sm:$0xff]  ;;  %v3251_v27 = vld [vmem:[#allocation18 + $0x60] sm:$0xff] }
 0xaf0   :  { %v6172_v34 = vpop.eup %6171 }
 0xaf1   :  { %6175 = vrcp.f32 %v2964_v55  ;;  %v2971_v40 = vadd.f32 1.0, %v6172_v34  ;;  %v3253_v55 = vld [vmem:[#allocation18 + $0x70] sm:$0xff]  ;;  %v3250_v34 = vld [vmem:[#allocation18 + $0x58] sm:$0xff] }
 0xaf3   :  { %6177 = vrcp.f32 %v2971_v40  ;;  %v3246_v40 = vld [vmem:[#allocation18 + $0x38] sm:$0xff] }
 0xafc   :  { %v6174_v36 = vpop.eup %6173 }
 0xafd   :  { %v2976_v37 = vmul.f32 %v6174_v36, %v6170_v33  ;;  %v3248_v33 = vld [vmem:[#allocation18 + $0x48] sm:$0xff]  ;;  %v3247_v36 = vld [vmem:[#allocation18 + $0x40] sm:$0xff] }
 0xafe   :  { %v6176_v39 = vpop.eup %6175 }
 0xaff   :  { %v2975_v47 = vmul.f32 %v6176_v39, %v7796_v41  ;;  %v3292_v41 = vld [vmem:[#allocation18 + $0x1a8] sm:$0xff] }
 0xb00   :  { %v6178_v49 = vpop.eup %6177  ;;  %v3244_v39 = vld [vmem:[#allocation18 + $0x28] sm:$0xff] }
 0xb01   :  { %v7810_v48 = vadd.f32 %v2976_v37, %v2975_v47  ;;  %v3249_v37 = vld [vmem:[#allocation18 + $0x50] sm:$0xff]  ;;  %v3243_v47 = vld [vmem:[#allocation18 + $0x20] sm:$0xff] }
 0xb03   :  { %6179 = vtanh.f32 %v7810_v48 }
 0xb10   :  { %v6180_v0 = vpop.eup %6179 }
 0xb11   :  { %v7813_v51 = vmul.f32 %v6180_v0, %v6178_v49  ;;  %v3245_v49 = vld [vmem:[#allocation18 + $0x30] sm:$0xff]  ;;  %v3240_v0 = vld [vmem:[#allocation18 + $0x8] sm:$0xff] }
 0xb13   :  { %3121 = vmatmul.mubr.f32.vlgmr.msra.gmra.mxu0 %v7813_v51  ;;  %3192 = vmatmul.mubr.f32.vlgmr.msra.gmra.mxu1 %v7813_v51 }
 0xb14   :  { %3326 = vmatpush1.msra.mxu0 %v3299_v53  ;;  %3439 = vmatpush1.msra.mxu1 %v3301_v54  ;;  %v3242_v53 = vld [vmem:[#allocation18 + $0x18] sm:$0xff]  ;;  %v3239_v54 = vld [vmem:[#allocation18] sm:$0xff] }
 0xb15   :  { %3327 = vmatprep.subr.mxu0 %v3296_v57  ;;  %3440 = vmatprep.subr.mxu1 %v3298_v62  ;;  %v3241_v57 = vld [vmem:[#allocation18 + $0x10] sm:$0xff]  ;;  %v9207_v62 = vld [vmem:[#allocation78_spill] sm:$0xff] }
 0xb16   :  { %3328 = vmatpush1.msra.mxu0 %v3295_v63  ;;  %3441 = vmatpush1.msra.mxu1 %v3297_v2  ;;  %v9208_v63 = vld [vmem:[#allocation29_spill] sm:$0xff]  ;;  %v9209_v2 = vld [vmem:[#allocation50_spill] sm:$0xff] }
 0xb17   :  { %3329 = vmatprep.subr.mxu0 %v3292_v41  ;;  %3442 = vmatprep.subr.mxu1 %v3294_v9  ;;  %v9210_v41 = vld [vmem:[#allocation52_spill] sm:$0xff] }
 0xb18   :  { %3330 = vmatpush1.msra.mxu0 %v3291_v11  ;;  %3443 = vmatpush1.msra.mxu1 %v3293_v12  ;;  %v7849_v9 = vld [vmem:[#allocation19 + $0x1f8] sm:$0xff]  ;;  %v7852_v11 = vld [vmem:[#allocation19 + $0x1e0] sm:$0xff]  ;;  %v7858_v12 = vld [vmem:[#allocation19 + $0x1c8] sm:$0xff] }
 0xb19   :  { %3331 = vmatprep.subr.mxu0 %v3288_v14  ;;  %3444 = vmatprep.subr.mxu1 %v3290_v18  ;;  %9212 = vst [vmem:[#allocation51_spill] sm:$0xff] %v7849_v9  ;;  %v7864_v14 = vld [vmem:[#allocation19 + $0x1c0] sm:$0xff]  ;;  %v7867_v18 = vld [vmem:[#allocation19 + $0x1d0] sm:$0xff] }
 0xb1a   :  { %3332 = vmatpush1.msra.mxu0 %v3287_v21  ;;  %3445 = vmatpush1.msra.mxu1 %v3289_v23  ;;  %v7870_v21 = vld [vmem:[#allocation19 + $0x1a8] sm:$0xff]  ;;  %v7873_v23 = vld [vmem:[#allocation19 + $0x1b8] sm:$0xff] }
 0xb1b   :  { %3333 = vmatprep.subr.mxu0 %v3284_v10  ;;  %3446 = vmatprep.subr.mxu1 %v3286_v24  ;;  %v7876_v10 = vld [vmem:[#allocation19 + $0x1a0] sm:$0xff]  ;;  %v7879_v24 = vld [vmem:[#allocation19 + $0x1b0] sm:$0xff] }
 0xb1c   :  { %3334 = vmatpush1.msra.mxu0 %v3283_v26  ;;  %3447 = vmatpush1.msra.mxu1 %v3285_v29  ;;  %v7882_v26 = vld [vmem:[#allocation19 + $0x188] sm:$0xff]  ;;  %v7885_v29 = vld [vmem:[#allocation19 + $0x198] sm:$0xff] }
 0xb1d   :  { %3335 = vmatprep.subr.mxu0 %v3280_v31  ;;  %3448 = vmatprep.subr.mxu1 %v3282_v58  ;;  %v7888_v31 = vld [vmem:[#allocation19 + $0x180] sm:$0xff]  ;;  %v7891_v58 = vld [vmem:[#allocation19 + $0x190] sm:$0xff] }
 0xb1e   :  { %3336 = vmatpush1.msra.mxu0 %v3279_v38  ;;  %3449 = vmatpush1.msra.mxu1 %v3281_v1  ;;  %v7894_v38 = vld [vmem:[#allocation19 + $0x168] sm:$0xff]  ;;  %v7897_v1 = vld [vmem:[#allocation19 + $0x178] sm:$0xff] }
 0xb1f   :  { %3337 = vmatprep.subr.mxu0 %v3276_v19  ;;  %3450 = vmatprep.subr.mxu1 %v3278_v45  ;;  %v7900_v19 = vld [vmem:[#allocation19 + $0x160] sm:$0xff]  ;;  %v7903_v45 = vld [vmem:[#allocation19 + $0x170] sm:$0xff] }
 0xb20   :  { %3338 = vmatpush1.msra.mxu0 %v3275_v28  ;;  %3451 = vmatpush1.msra.mxu1 %v3277_v7  ;;  %v7906_v28 = vld [vmem:[#allocation19 + $0x148] sm:$0xff]  ;;  %v7909_v7 = vld [vmem:[#allocation19 + $0x158] sm:$0xff] }
 0xb21   :  { %3339 = vmatprep.subr.mxu0 %v3272_v44  ;;  %3452 = vmatprep.subr.mxu1 %v3274_v35  ;;  %v7912_v44 = vld [vmem:[#allocation19 + $0x140] sm:$0xff]  ;;  %v7915_v35 = vld [vmem:[#allocation19 + $0x150] sm:$0xff] }
 0xb22   :  { %3340 = vmatpush1.msra.mxu0 %v3271_v16  ;;  %3453 = vmatpush1.msra.mxu1 %v3273_v25  ;;  %v7918_v16 = vld [vmem:[#allocation19 + $0x128] sm:$0xff]  ;;  %v7921_v25 = vld [vmem:[#allocation19 + $0x138] sm:$0xff] }
 0xb23   :  { %3341 = vmatprep.subr.mxu0 %v3268_v17  ;;  %3454 = vmatprep.subr.mxu1 %v3270_v59  ;;  %v7924_v17 = vld [vmem:[#allocation19 + $0x120] sm:$0xff]  ;;  %v7927_v59 = vld [vmem:[#allocation19 + $0x130] sm:$0xff] }
 0xb24   :  { %3342 = vmatpush1.msra.mxu0 %v3267_v3  ;;  %3455 = vmatpush1.msra.mxu1 %v3269_v20  ;;  %v7930_v3 = vld [vmem:[#allocation19 + $0x108] sm:$0xff]  ;;  %v7933_v20 = vld [vmem:[#allocation19 + $0x118] sm:$0xff] }
 0xb25   :  { %3343 = vmatprep.subr.mxu0 %v3264_v52  ;;  %3456 = vmatprep.subr.mxu1 %v3266_v6  ;;  %v7936_v52 = vld [vmem:[#allocation19 + $0x100] sm:$0xff]  ;;  %v7939_v6 = vld [vmem:[#allocation19 + $0x110] sm:$0xff] }
 0xb26   :  { %3344 = vmatpush1.msra.mxu0 %v3263_v50  ;;  %3457 = vmatpush1.msra.mxu1 %v3265_v15  ;;  %v7942_v50 = vld [vmem:[#allocation19 + $0xe8] sm:$0xff]  ;;  %v7945_v15 = vld [vmem:[#allocation19 + $0xf8] sm:$0xff] }
 0xb27   :  { %3345 = vmatprep.subr.mxu0 %v3260_v56  ;;  %3458 = vmatprep.subr.mxu1 %v3262_v61  ;;  %v7948_v56 = vld [vmem:[#allocation19 + $0xe0] sm:$0xff]  ;;  %v7951_v61 = vld [vmem:[#allocation19 + $0xf0] sm:$0xff] }
 0xb28   :  { %3346 = vmatpush1.msra.mxu0 %v3259_v42  ;;  %3459 = vmatpush1.msra.mxu1 %v3261_v30  ;;  %v7954_v42 = vld [vmem:[#allocation19 + $0xc8] sm:$0xff]  ;;  %v7957_v30 = vld [vmem:[#allocation19 + $0xd8] sm:$0xff] }
 0xb29   :  { %3347 = vmatprep.subr.mxu0 %v3256_v60  ;;  %3460 = vmatprep.subr.mxu1 %v3258_v8  ;;  %v7960_v60 = vld [vmem:[#allocation19 + $0xc0] sm:$0xff]  ;;  %v7963_v8 = vld [vmem:[#allocation19 + $0xd0] sm:$0xff] }
 0xb2a   :  { %3348 = vmatpush1.msra.mxu0 %v3255_v22  ;;  %3461 = vmatpush1.msra.mxu1 %v3257_v32  ;;  %v7966_v22 = vld [vmem:[#allocation19 + $0xa8] sm:$0xff]  ;;  %v7969_v32 = vld [vmem:[#allocation19 + $0xb8] sm:$0xff] }
 0xb2b   :  { %3349 = vmatprep.subr.mxu0 %v3252_v5  ;;  %3462 = vmatprep.subr.mxu1 %v3254_v4  ;;  %v7972_v5 = vld [vmem:[#allocation19 + $0xa0] sm:$0xff]  ;;  %v7975_v4 = vld [vmem:[#allocation19 + $0xb0] sm:$0xff] }
 0xb2c   :  { %3350 = vmatpush1.msra.mxu0 %v3251_v27  ;;  %3463 = vmatpush1.msra.mxu1 %v3253_v55  ;;  %v7978_v27 = vld [vmem:[#allocation19 + $0x88] sm:$0xff]  ;;  %v7981_v55 = vld [vmem:[#allocation19 + $0x98] sm:$0xff] }
 0xb2d   :  { %3351 = vmatprep.subr.mxu0 %v3248_v33  ;;  %3464 = vmatprep.subr.mxu1 %v3250_v34  ;;  %9213 = vst [vmem:[#allocation54_spill] sm:$0xff] %v7978_v27  ;;  %9214 = vst [vmem:[#allocation56_spill] sm:$0xff] %v7981_v55  ;;  %v7984_v33 = vld [vmem:[#allocation19 + $0x80] sm:$0xff]  ;;  %v7987_v34 = vld [vmem:[#allocation19 + $0x90] sm:$0xff] }
 0xb2e   :  { %3352 = vmatpush1.msra.mxu0 %v3247_v36  ;;  %3465 = vmatpush1.msra.mxu1 %v3249_v37  ;;  %9215 = vst [vmem:[#allocation57_spill] sm:$0xff] %v7984_v33  ;;  %9216 = vst [vmem:[#allocation55_spill] sm:$0xff] %v7987_v34  ;;  %v7990_v36 = vld [vmem:[#allocation19 + $0x68] sm:$0xff]  ;;  %v7993_v37 = vld [vmem:[#allocation19 + $0x78] sm:$0xff] }
 0xb2f   :  { %3353 = vmatprep.subr.mxu0 %v3244_v39  ;;  %3466 = vmatprep.subr.mxu1 %v3246_v40  ;;  %9217 = vst [vmem:[#allocation58_spill] sm:$0xff] %v7990_v36  ;;  %9218 = vst [vmem:[#allocation60_spill] sm:$0xff] %v7993_v37  ;;  %v7996_v39 = vld [vmem:[#allocation19 + $0x60] sm:$0xff]  ;;  %v7999_v40 = vld [vmem:[#allocation19 + $0x70] sm:$0xff] }
 0xb30   :  { %3354 = vmatpush1.msra.mxu0 %v3243_v47  ;;  %3467 = vmatpush1.msra.mxu1 %v3245_v49  ;;  %9219 = vst [vmem:[#allocation61_spill] sm:$0xff] %v7996_v39  ;;  %9220 = vst [vmem:[#allocation59_spill] sm:$0xff] %v7999_v40  ;;  %v8002_v47 = vld [vmem:[#allocation19 + $0x48] sm:$0xff]  ;;  %v8005_v49 = vld [vmem:[#allocation19 + $0x58] sm:$0xff] }
 0xb31   :  { %3355 = vmatprep.subr.mxu0 %v3240_v0  ;;  %3468 = vmatprep.subr.mxu1 %v3242_v53  ;;  %9221 = vst [vmem:[#allocation31_spill] sm:$0xff] %v8002_v47  ;;  %9222 = vst [vmem:[#allocation30_spill] sm:$0xff] %v8005_v49  ;;  %v8008_v0 = vld [vmem:[#allocation19 + $0x40] sm:$0xff]  ;;  %v8011_v53 = vld [vmem:[#allocation19 + $0x50] sm:$0xff] }
 0xb32   :  { %3356 = vmatpush1.msra.mxu0 %v3239_v54  ;;  %3389 = vmatprep.mubr.f32.mxu0 %v9197_v43  ;;  %9223 = vst [vmem:[#allocation62_spill] sm:$0xff] %v8008_v0  ;;  %9224 = vst [vmem:[#allocation64_spill] sm:$0xff] %v8011_v53  ;;  %v8014_v54 = vld [vmem:[#allocation19 + $0x28] sm:$0xff] }
 0xb33   :  { %3469 = vmatpush1.msra.mxu1 %v3241_v57  ;;  %3502 = vmatprep.mubr.f32.mxu1 %v9197_v43  ;;  %9225 = vst [vmem:[#allocation65_spill] sm:$0xff] %v8014_v54  ;;  %v8017_v57 = vld [vmem:[#allocation19 + $0x38] sm:$0xff] }
 0xb34   :  { %3390 = vmatmul.mubr.f32.vlgmr.msra.gmra.mxu0 %v9207_v62  ;;  %3503 = vmatmul.mubr.f32.vlgmr.msra.gmra.mxu1 %v9207_v62  ;;  %9226 = vst [vmem:[#allocation63_spill] sm:$0xff] %v8017_v57  ;;  %v8020_v62 = vld [vmem:[#allocation19 + $0x20] sm:$0xff] }
 0xb35   :  { %3395 = vmatprep.mubr.f32.mxu0 %v9197_v43  ;;  %3508 = vmatprep.mubr.f32.mxu1 %v9197_v43  ;;  %9227 = vst [vmem:[#allocation33_spill] sm:$0xff] %v8020_v62 }
 0xb36   :  { %3725 = vmatprep.subr.mxu1 %v7849_v9 }
 0xb38   :  { %3396 = vmatmul.mubr.f32.gmra.mxu0 %v9208_v63  ;;  %3509 = vmatmul.mubr.f32.gmra.mxu1 %v9208_v63  ;;  %v8023_v63 = vld [vmem:[#allocation19 + $0x30] sm:$0xff] }
 0xb39   :  { %3401 = vmatprep.mubr.f32.mxu0 %v9197_v43  ;;  %3514 = vmatprep.mubr.f32.mxu1 %v9197_v43  ;;  %9228 = vst [vmem:[#allocation32_spill] sm:$0xff] %v8023_v63 }
 0xb3c   :  { %3402 = vmatmul.mubr.f32.gmra.mxu0 %v9209_v2  ;;  %3515 = vmatmul.mubr.f32.gmra.mxu1 %v9209_v2  ;;  %v8026_v2 = vld [vmem:[#allocation19 + $0x8] sm:$0xff] }
 0xb3d   :  { %3407 = vmatprep.mubr.f32.mxu0 %v9197_v43  ;;  %3520 = vmatprep.mubr.f32.mxu1 %v9197_v43  ;;  %9229 = vst [vmem:[#allocation35_spill] sm:$0xff] %v8026_v2 }
 0xb40   :  { %3408 = vmatmul.mubr.f32.gmra.mxu0 %v9210_v41  ;;  %3521 = vmatmul.mubr.f32.gmra.mxu1 %v9210_v41  ;;  %v8029_v41 = vld [vmem:[#allocation19] sm:$0xff] }
 0xb41   :  { %3413 = vmatprep.mubr.f32.mxu0 %v9197_v43  ;;  %3526 = vmatprep.mubr.f32.mxu1 %v9197_v43  ;;  %9230 = vst [vmem:[#allocation34_spill] sm:$0xff] %v8029_v41 }
 0xb44   :  { %3414 = vmatmul.mubr.f32.gmra.mxu0 %v7723_v13  ;;  %3527 = vmatmul.mubr.f32.gmra.mxu1 %v7723_v13  ;;  %v7847_v13 = vld [vmem:[#allocation19 + $0x1e8] sm:$0xff] }
 0xb45   :  { %3419 = vmatprep.mubr.f32.mxu0 %v9197_v43  ;;  %3532 = vmatprep.mubr.f32.mxu1 %v9197_v43  ;;  %9211 = vst [vmem:[#allocation53_spill] sm:$0xff] %v7847_v13 }
 0xb46   :  { %3654 = vmatprep.subr.mxu0 %v7847_v13 }
 0xb47   :  { %3655 = vmatpush1.msra.mxu0 %v7852_v11 }
 0xb48   :  { %3420 = vmatmul.mubr.f32.gmra.mxu0 %v7799_v46  ;;  %3533 = vmatmul.mubr.f32.gmra.mxu1 %v7799_v46  ;;  %v7855_v46 = vld [vmem:[#allocation19 + $0x1f0] sm:$0xff] }
 0xb49   :  { %3425 = vmatprep.mubr.f32.mxu0 %v9197_v43  ;;  %3538 = vmatprep.mubr.f32.mxu1 %v9197_v43 }
 0xb4a   :  { %3726 = vmatpush1.msra.mxu1 %v7855_v46  ;;  %3656 = vmatprep.subr.mxu0 %v7858_v12 }
 0xb4b   :  { %3657 = vmatpush1.msra.mxu0 %v7864_v14 }
 0xb4c   :  { %3426 = vmatmul.mubr.f32.gmra.mxu0 %v7813_v51  ;;  %3539 = vmatmul.mubr.f32.gmra.mxu1 %v7813_v51  ;;  %v7861_v51 = vld [vmem:[#allocation19 + $0x1d8] sm:$0xff] }
 0xb4d   :  { %3431 = vmatprep.mubr.f32.mxu0 %v9197_v43  ;;  %3544 = vmatprep.mubr.f32.mxu1 %v9197_v43 }
 0xb4e   :  { %3727 = vmatprep.subr.mxu1 %v7861_v51  ;;  %3658 = vmatprep.subr.mxu0 %v7870_v21 }
 0xb4f   :  { %3728 = vmatpush1.msra.mxu1 %v7867_v18  ;;  %3659 = vmatpush1.msra.mxu0 %v7876_v10 }
 0xb50   :  { %3729 = vmatprep.subr.mxu1 %v7873_v23  ;;  %3660 = vmatprep.subr.mxu0 %v7882_v26 }
 0xb51   :  { %3730 = vmatpush1.msra.mxu1 %v7879_v24  ;;  %3661 = vmatpush1.msra.mxu0 %v7888_v31 }
 0xb52   :  { %3731 = vmatprep.subr.mxu1 %v7885_v29  ;;  %3662 = vmatprep.subr.mxu0 %v7894_v38 }
 0xb53   :  { %3732 = vmatpush1.msra.mxu1 %v7891_v58  ;;  %3663 = vmatpush1.msra.mxu0 %v7900_v19 }
 0xb54   :  { %3733 = vmatprep.subr.mxu1 %v7897_v1  ;;  %3664 = vmatprep.subr.mxu0 %v7906_v28 }
 0xb55   :  { %3734 = vmatpush1.msra.mxu1 %v7903_v45  ;;  %3665 = vmatpush1.msra.mxu0 %v7912_v44 }
 0xb56   :  { %3735 = vmatprep.subr.mxu1 %v7909_v7  ;;  %3666 = vmatprep.subr.mxu0 %v7918_v16 }
 0xb57   :  { %3736 = vmatpush1.msra.mxu1 %v7915_v35  ;;  %3667 = vmatpush1.msra.mxu0 %v7924_v17 }
 0xb58   :  { %3737 = vmatprep.subr.mxu1 %v7921_v25  ;;  %3668 = vmatprep.subr.mxu0 %v7930_v3 }
 0xb59   :  { %3738 = vmatpush1.msra.mxu1 %v7927_v59  ;;  %3669 = vmatpush1.msra.mxu0 %v7936_v52 }
 0xb5a   :  { %3739 = vmatprep.subr.mxu1 %v7933_v20  ;;  %3670 = vmatprep.subr.mxu0 %v7942_v50 }
 0xb5b   :  { %3740 = vmatpush1.msra.mxu1 %v7939_v6  ;;  %3671 = vmatpush1.msra.mxu0 %v7948_v56 }
 0xb5c   :  { %3741 = vmatprep.subr.mxu1 %v7945_v15  ;;  %3672 = vmatprep.subr.mxu0 %v7954_v42 }
 0xb5d   :  { %3742 = vmatpush1.msra.mxu1 %v7951_v61  ;;  %3673 = vmatpush1.msra.mxu0 %v7960_v60 }
 0xb5e   :  { %3743 = vmatprep.subr.mxu1 %v7957_v30  ;;  %3674 = vmatprep.subr.mxu0 %v7966_v22 }
 0xb5f   :  { %3744 = vmatpush1.msra.mxu1 %v7963_v8  ;;  %3675 = vmatpush1.msra.mxu0 %v7972_v5 }
 0xb60   :  { %3745 = vmatprep.subr.mxu1 %v7969_v32  ;;  %3676 = vmatprep.subr.mxu0 %v7978_v27 }
 0xb61   :  { %3746 = vmatpush1.msra.mxu1 %v7975_v4  ;;  %3677 = vmatpush1.msra.mxu0 %v7984_v33 }
 0xb62   :  { %3747 = vmatprep.subr.mxu1 %v7981_v55  ;;  %3678 = vmatprep.subr.mxu0 %v7990_v36  ;;  %v9236_v36 = vld [vmem:[#allocation75_spill] sm:$0xff] }
 0xb63   :  { %3748 = vmatpush1.msra.mxu1 %v7987_v34  ;;  %3679 = vmatpush1.msra.mxu0 %v7996_v39 }
 0xb64   :  { %3749 = vmatprep.subr.mxu1 %v7993_v37  ;;  %3680 = vmatprep.subr.mxu0 %v8002_v47  ;;  %v9234_v47 = vld [vmem:[#allocation76_spill] sm:$0xff]  ;;  %v9235_v37 = vld [vmem:[#allocation77_spill] sm:$0xff] }
 0xb65   :  { %3750 = vmatpush1.msra.mxu1 %v7999_v40  ;;  %3681 = vmatpush1.msra.mxu0 %v8008_v0  ;;  %v8031_v0 = vld [vmem:[#allocation19 + $0x18] sm:$0xff] }
 0xb66   :  { %3751 = vmatprep.subr.mxu1 %v8005_v49  ;;  %3682 = vmatprep.subr.mxu0 %v8014_v54  ;;  %9231 = vst [vmem:[#allocation37_spill] sm:$0xff] %v8031_v0  ;;  %v8035_v54 = vld [vmem:[#allocation19 + $0x10] sm:$0xff] }
 0xb67   :  { %3752 = vmatpush1.msra.mxu1 %v8011_v53  ;;  %3683 = vmatpush1.msra.mxu0 %v8020_v62  ;;  %9232 = vst [vmem:[#allocation36_spill] sm:$0xff] %v8035_v54 }
 0xb68   :  { %3753 = vmatprep.subr.mxu1 %v8017_v57  ;;  %3684 = vmatprep.subr.mxu0 %v8026_v2 }
 0xb69   :  { %3754 = vmatpush1.msra.mxu1 %v8023_v63  ;;  %3685 = vmatpush1.msra.mxu0 %v8029_v41  ;;  %v9233_v63 = vld [vmem:[#allocation74_spill] sm:$0xff] }
 0xb6a   :  { %3755 = vmatprep.subr.mxu1 %v8031_v0  ;;  %3897 = vmatprep.subr.mxu0 %v7847_v13 }
 0xb6b   :  { %3756 = vmatpush1.msra.mxu1 %v8035_v54 }
 0xb6c   :  { %3968 = vmatprep.subr.mxu1 %v7849_v9 }
 0xbd3   :  { %v3122_v62 = vpop.f32.mrf.mxu0  ;;  %v3193_v2 = vpop.f32.mrf.mxu1 }
 0xbd4   :  { %v3198_v57 = vadd.f32 %v3122_v62, %v9233_v63  ;;  %v3200_v54 = vadd.f32 %v3193_v2, %v9236_v36  ;;  %v9242_v2 = vld [vmem:[#allocation59_spill] sm:$0xff] }
 0xbd5   :  { %v3124_v53 = vpop.f32.mrf.mxu0  ;;  %v3195_v39 = vpop.f32.mrf.mxu1 }
 0xbd6   :  { %v5798_v49 = vmul.f32 -1.442695, %v3198_v57  ;;  %v3199_v40 = vadd.f32 %v3124_v53, %v9234_v47  ;;  %v3201_v41 = vadd.f32 %v3195_v39, %v9235_v37 }
 0xbd8   :  { %6181 = vpow2.f32 %v5798_v49  ;;  %v5799_v0 = vmul.f32 -1.442695, %v3199_v40  ;;  %v5800_v34 = vmul.f32 -1.442695, %v3201_v41  ;;  %v9243_v41 = vld [vmem:[#allocation31_spill] sm:$0xff] }
 0xbda   :  { %6183 = vpow2.f32 %v5799_v0 }
 0xbdb   :  { %6185 = vtanh.f32 %v3200_v54  ;;  %v9241_v54 = vld [vmem:[#allocation61_spill] sm:$0xff] }
 0xbdc   :  { %6187 = vpow2.f32 %v5800_v34  ;;  %v9240_v34 = vld [vmem:[#allocation60_spill] sm:$0xff] }
 0xbe5   :  { %v6182_v13 = vpop.eup %6181 }
 0xbe6   :  { %v3205_v33 = vadd.f32 1.0, %v6182_v13 }
 0xbe7   :  { %v6184_v9 = vpop.eup %6183 }
 0xbe8   :  { %6189 = vrcp.f32 %v3205_v33  ;;  %v3211_v62 = vadd.f32 1.0, %v6184_v9  ;;  %v6186_v57 = vpop.eup %6185  ;;  %v9238_v9 = vld [vmem:[#allocation55_spill] sm:$0xff]  ;;  %v9239_v33 = vld [vmem:[#allocation58_spill] sm:$0xff] }
 0xbe9   :  { %v6188_v47 = vpop.eup %6187 }
 0xbea   :  { %6191 = vrcp.f32 %v3211_v62  ;;  %v3218_v0 = vadd.f32 1.0, %v6188_v47  ;;  %v9244_v62 = vld [vmem:[#allocation30_spill] sm:$0xff]  ;;  %v9246_v47 = vld [vmem:[#allocation64_spill] sm:$0xff] }
 0xbec   :  { %6193 = vrcp.f32 %v3218_v0  ;;  %v9250_v0 = vld [vmem:[#allocation32_spill] sm:$0xff] }
 0xbf5   :  { %v6190_v49 = vpop.eup %6189 }
 0xbf6   :  { %v3223_v53 = vmul.f32 %v6190_v49, %v6186_v57  ;;  %v9245_v57 = vld [vmem:[#allocation62_spill] sm:$0xff]  ;;  %v9247_v49 = vld [vmem:[#allocation65_spill] sm:$0xff] }
 0xbf7   :  { %v6192_v40 = vpop.eup %6191 }
 0xbf8   :  { %v3222_v63 = vmul.f32 %v6192_v40, %v7810_v48  ;;  %v9237_v48 = vld [vmem:[#allocation57_spill] sm:$0xff] }
 0xbf9   :  { %v6194_v36 = vpop.eup %6193  ;;  %v9249_v40 = vld [vmem:[#allocation33_spill] sm:$0xff] }
 0xbfa   :  { %v3224_v37 = vadd.f32 %v3223_v53, %v3222_v63  ;;  %v9248_v53 = vld [vmem:[#allocation63_spill] sm:$0xff] }
 0xbfb   :  { %v9251_v63 = vld [vmem:[#allocation35_spill] sm:$0xff] }
 0xbfc   :  { %6195 = vtanh.f32 %v3224_v37  ;;  %v9252_v37 = vld [vmem:[#allocation37_spill] sm:$0xff] }
 0xc09   :  { %v6196_v39 = vpop.eup %6195 }
 0xc0a   :  { %v3226_v13 = vmul.f32 %v6196_v39, %v6194_v36  ;;  %v9253_v36 = vld [vmem:[#allocation34_spill] sm:$0xff]  ;;  %v9254_v39 = vld [vmem:[#allocation36_spill] sm:$0xff] }
 0xc0c   :  { %3432 = vmatmul.mubr.f32.gmra.mxu0 %v3226_v13  ;;  %3545 = vmatmul.mubr.f32.gmra.mxu1 %v3226_v13  ;;  %v9255_v13 = vld [vmem:[#allocation53_spill] sm:$0xff] }
 0xc0d   :  { %3718 = vmatprep.mubr.f32.mxu0 %v9197_v43  ;;  %3789 = vmatprep.mubr.f32.mxu1 %v9197_v43 }
 0xc10   :  { %3719 = vmatmul.mubr.f32.vlgmr.msra.gmra.mxu0 %v9197_v43  ;;  %3790 = vmatmul.mubr.f32.vlgmr.msra.gmra.mxu1 %v9197_v43 }
 0xc11   :  { %3898 = vmatpush1.msra.mxu0 %v7852_v11  ;;  %3969 = vmatpush1.msra.mxu1 %v7855_v46 }
 0xc12   :  { %3899 = vmatprep.subr.mxu0 %v7858_v12  ;;  %3970 = vmatprep.subr.mxu1 %v7861_v51 }
 0xc13   :  { %3900 = vmatpush1.msra.mxu0 %v7864_v14  ;;  %3971 = vmatpush1.msra.mxu1 %v7867_v18 }
 0xc14   :  { %3901 = vmatprep.subr.mxu0 %v7870_v21  ;;  %3972 = vmatprep.subr.mxu1 %v7873_v23 }
 0xc15   :  { %3902 = vmatpush1.msra.mxu0 %v7876_v10  ;;  %3973 = vmatpush1.msra.mxu1 %v7879_v24 }
 0xc16   :  { %3903 = vmatprep.subr.mxu0 %v7882_v26  ;;  %3974 = vmatprep.subr.mxu1 %v7885_v29 }
 0xc17   :  { %3904 = vmatpush1.msra.mxu0 %v7888_v31  ;;  %3975 = vmatpush1.msra.mxu1 %v7891_v58 }
 0xc18   :  { %3905 = vmatprep.subr.mxu0 %v7894_v38  ;;  %3976 = vmatprep.subr.mxu1 %v7897_v1 }
 0xc19   :  { %3906 = vmatpush1.msra.mxu0 %v7900_v19  ;;  %3977 = vmatpush1.msra.mxu1 %v7903_v45 }
 0xc1a   :  { %3907 = vmatprep.subr.mxu0 %v7906_v28  ;;  %3978 = vmatprep.subr.mxu1 %v7909_v7 }
 0xc1b   :  { %3908 = vmatpush1.msra.mxu0 %v7912_v44  ;;  %3979 = vmatpush1.msra.mxu1 %v7915_v35 }
 0xc1c   :  { %3909 = vmatprep.subr.mxu0 %v7918_v16  ;;  %3980 = vmatprep.subr.mxu1 %v7921_v25 }
 0xc1d   :  { %3910 = vmatpush1.msra.mxu0 %v7924_v17  ;;  %3981 = vmatpush1.msra.mxu1 %v7927_v59 }
 0xc1e   :  { %3911 = vmatprep.subr.mxu0 %v7930_v3  ;;  %3982 = vmatprep.subr.mxu1 %v7933_v20 }
 0xc1f   :  { %3912 = vmatpush1.msra.mxu0 %v7936_v52  ;;  %3983 = vmatpush1.msra.mxu1 %v7939_v6 }
 0xc20   :  { %3913 = vmatprep.subr.mxu0 %v7942_v50  ;;  %3984 = vmatprep.subr.mxu1 %v7945_v15 }
 0xc21   :  { %3914 = vmatpush1.msra.mxu0 %v7948_v56  ;;  %3985 = vmatpush1.msra.mxu1 %v7951_v61 }
 0xc22   :  { %3915 = vmatprep.subr.mxu0 %v7954_v42  ;;  %3986 = vmatprep.subr.mxu1 %v7957_v30 }
 0xc23   :  { %3916 = vmatpush1.msra.mxu0 %v7960_v60  ;;  %3987 = vmatpush1.msra.mxu1 %v7963_v8 }
 0xc24   :  { %3917 = vmatprep.subr.mxu0 %v7966_v22  ;;  %3988 = vmatprep.subr.mxu1 %v7969_v32 }
 0xc25   :  { %3918 = vmatpush1.msra.mxu0 %v7972_v5  ;;  %3989 = vmatpush1.msra.mxu1 %v7975_v4 }
 0xc26   :  { %3919 = vmatprep.subr.mxu0 %v7978_v27  ;;  %3990 = vmatprep.subr.mxu1 %v7981_v55 }
 0xc27   :  { %3920 = vmatpush1.msra.mxu0 %v9237_v48  ;;  %3991 = vmatpush1.msra.mxu1 %v9238_v9 }
 0xc28   :  { %3921 = vmatprep.subr.mxu0 %v9239_v33  ;;  %3992 = vmatprep.subr.mxu1 %v9240_v34 }
 0xc29   :  { %3922 = vmatpush1.msra.mxu0 %v9241_v54  ;;  %3993 = vmatpush1.msra.mxu1 %v9242_v2 }
 0xc2a   :  { %3923 = vmatprep.subr.mxu0 %v9243_v41  ;;  %3994 = vmatprep.subr.mxu1 %v9244_v62 }
 0xc2b   :  { %3924 = vmatpush1.msra.mxu0 %v9245_v57  ;;  %3995 = vmatpush1.msra.mxu1 %v9246_v47 }
 0xc2c   :  { %3925 = vmatprep.subr.mxu0 %v9247_v49  ;;  %3996 = vmatprep.subr.mxu1 %v9248_v53  ;;  %v9256_v49 = vld [vmem:[#allocation51_spill] sm:$0xff]  ;;  %v3391_v53 = vpop.f32.mrf.mxu0 }
 0xc2d   :  { %3926 = vmatpush1.msra.mxu0 %v9249_v40  ;;  %3997 = vmatpush1.msra.mxu1 %v9250_v0  ;;  %v3504_v40 = vpop.f32.mrf.mxu1 }
 0xc2e   :  { %3927 = vmatprep.subr.mxu0 %v9251_v63  ;;  %3998 = vmatprep.subr.mxu1 %v9252_v37  ;;  %v3393_v47 = vpop.f32.mrf.mxu0 }
 0xc2f   :  { %3928 = vmatpush1.msra.mxu0 %v9253_v36  ;;  %3961 = vmatprep.mubr.f32.mxu0 %v9197_v43  ;;  %v3506_v0 = vpop.f32.mrf.mxu1 }
 0xc30   :  { %3999 = vmatpush1.msra.mxu1 %v9254_v39  ;;  %4032 = vmatprep.mubr.f32.mxu1 %v9197_v43  ;;  %v8116_v57 = vpop.f32.mrf.mxu0 }
 0xc31   :  { %4141 = vmatprep.subr.mxu0 %v9255_v13  ;;  %4212 = vmatprep.subr.mxu1 %v9256_v49  ;;  %9257 = vst [vmem:[#allocation39_spill] sm:$0xff] %v8116_v57  ;;  %v8118_v63 = vpop.f32.mrf.mxu1 }
 0xc32   :  { %9258 = vst [vmem:[#allocation38_spill] sm:$0xff] %v8118_v63  ;;  %v8120_v37 = vpop.f32.mrf.mxu0 }
 0xc33   :  { %9259 = vst [vmem:[#allocation41_spill] sm:$0xff] %v8120_v37  ;;  %v8122_v36 = vpop.f32.mrf.mxu1 }
 0xc34   :  { %9260 = vst [vmem:[#allocation40_spill] sm:$0xff] %v8122_v36  ;;  %v8124_v62 = vpop.f32.mrf.mxu0 }
 0xc35   :  { %9261 = vst [vmem:[#allocation43_spill] sm:$0xff] %v8124_v62  ;;  %v8126_v39 = vpop.f32.mrf.mxu1 }
 0xc36   :  { %9262 = vst [vmem:[#allocation42_spill] sm:$0xff] %v8126_v39  ;;  %v8128_v43 = vpop.f32.mrf.mxu0 }
 0xc37   :  { %9263 = vst [vmem:[#allocation45_spill] sm:$0xff] %v8128_v43  ;;  %v8130_v13 = vpop.f32.mrf.mxu1 }
 0xc38   :  { %9264 = vst [vmem:[#allocation44_spill] sm:$0xff] %v8130_v13  ;;  %v8132_v49 = vpop.f32.mrf.mxu0 }
 0xc39   :  { %9265 = vst [vmem:[#allocation47_spill] sm:$0xff] %v8132_v49  ;;  %v8134_v41 = vpop.f32.mrf.mxu1 }
 0xc3a   :  { %9266 = vst [vmem:[#allocation46_spill] sm:$0xff] %v8134_v41  ;;  %v8136_v2 = vpop.f32.mrf.mxu0 }
 0xc3b   :  { %9267 = vst [vmem:[#allocation48_spill] sm:$0xff] %v8136_v2  ;;  %v8138_v57 = vpop.f32.mrf.mxu1 }
 0xc3c   :  { %9268 = vst [vmem:[#allocation66_spill] sm:$0xff] %v8138_v57  ;;  %v8140_v63 = vpop.f32.mrf.mxu0 }
 0xc3d   :  { %9269 = vst [vmem:[#allocation68_spill] sm:$0xff] %v8140_v63  ;;  %v8142_v37 = vpop.f32.mrf.mxu1 }
 0xc3e   :  { %9270 = vst [vmem:[#allocation69_spill] sm:$0xff] %v8142_v37  ;;  %v8144_v36 = vpop.f32.mrf.mxu0  ;;  %v3303_v37 = vld [vmem:[%s8824_s16] sm:$0xf] }
 0xc3f   :  { %9271 = vst [vmem:[#allocation67_spill] sm:$0xff] %v8144_v36  ;;  %v8146_v62 = vpop.f32.mrf.mxu1  ;;  %v9280_v36 = vld [vmem:[#allocation49_spill] sm:$0xff] }
 0xc40   :  { %9272 = vst [vmem:[#allocation70_spill] sm:$0xff] %v8146_v62  ;;  %v8148_v39 = vpop.f32.mrf.mxu0  ;;  %v9281_v62 = vsub.s32 0, %v9280_v36 }
 0xc41   :  { %9273 = vst [vmem:[#allocation72_spill] sm:$0xff] %v8148_v39  ;;  %v8150_v43 = vpop.f32.mrf.mxu1 }
 0xc42   :  { %9274 = vst [vmem:[#allocation73_spill] sm:$0xff] %v8150_v43  ;;  %v8152_v13 = vpop.f32.mrf.mxu0  ;;  %v8167_v57 = vrot.slane %v3303_v37, %v9281_v62 }
 0xc43   :  { %9275 = vst [vmem:[#allocation71_spill] sm:$0xff] %v8152_v13  ;;  %v8154_v49 = vpop.f32.mrf.mxu1 }
 0xc44   :  { %9276 = vst [vmem:[#allocation78_spill] sm:$0xff] %v8154_v49  ;;  %v8156_v41 = vpop.f32.mrf.mxu0  ;;  %9282 = vst [vmem:[#allocation74_spill] sm:$0xff] %v8167_v57  ;;  %v9285_v49 = vsub.s32 1, %v9280_v36  ;;  %v3392_v54 = vadd.f32 %v3391_v53, %v8167_v57 }
 0xc45   :  { %9277 = vst [vmem:[#allocation29_spill] sm:$0xff] %v8156_v41  ;;  %v8158_v2 = vpop.f32.mrf.mxu1 }
 0xc46   :  { %9278 = vst [vmem:[#allocation50_spill] sm:$0xff] %v8158_v2  ;;  %v8163_v63 = vpop.f32.mrf.mxu0  ;;  %v8175_v13 = vrot.slane %v3303_v37, %v9285_v49  ;;  %v9289_v49 = vsub.s32 3, %v9280_v36 }
 0xc47   :  { %9279 = vst [vmem:[#allocation52_spill] sm:$0xff] %v8163_v63  ;;  %v8169_v39 = vpop.f32.mrf.mxu1 }
 0xc48   :  { %9283 = vst [vmem:[#allocation76_spill] sm:$0xff] %v8169_v39  ;;  %v3394_v63 = vadd.f32 %v3393_v47, %v8175_v13  ;;  %v8187_v27 = vrot.slane %v3303_v37, %v9289_v49 }
 0xc4a   :  { %9290 = vst [vmem:[#allocation49_spill] sm:$0xff] %v8187_v27  ;;  %v3507_v53 = vadd.f32 %v3506_v0, %v8187_v27 }
 0xccc   :  { %v8171_v43 = vpop.f32.mrf.mxu0  ;;  %v8177_v41 = vpop.f32.mrf.mxu1 }
 0xccd   :  { %9284 = vst [vmem:[#allocation77_spill] sm:$0xff] %v8171_v43  ;;  %9286 = vst [vmem:[#allocation75_spill] sm:$0xff] %v8177_v41 }
 0xcce   :  { %v8179_v2 = vpop.f32.mrf.mxu0  ;;  %v8183_v33 = vpop.f32.mrf.mxu1 }
 0xccf   :  { %9287 = vst [vmem:[#allocation53_spill] sm:$0xff] %v8179_v2  ;;  %9288 = vst [vmem:[#allocation51_spill] sm:$0xff] %v8183_v33  ;;  %v9291_v2 = vsub.s32 2, %v9280_v36 }
 0xcd0   :  { %v3720_v34 = vpop.f32.mrf.mxu0  ;;  %v3791_v43 = vpop.f32.mrf.mxu1 }
 0xcd1   :  { %v3796_v62 = vadd.f32 %v3720_v34, %v3392_v54  ;;  %v8192_v47 = vrot.slane %v3303_v37, %v9291_v2 }
 0xcd2   :  { %v3722_v9 = vpop.f32.mrf.mxu0  ;;  %v3793_v41 = vpop.f32.mrf.mxu1 }
 0xcd3   :  { %v5801_v39 = vmul.f32 -1.442695, %v3796_v62  ;;  %v3797_v48 = vadd.f32 %v3722_v9, %v3394_v63  ;;  %v3799_v33 = vadd.f32 %v3793_v41, %v3507_v53  ;;  %v3505_v34 = vadd.f32 %v3504_v40, %v8192_v47  ;;  %v9317_v53 = vld [vmem:[#allocation40_spill] sm:$0xff] }
 0xcd5   :  { %6197 = vpow2.f32 %v5801_v39  ;;  %v5802_v55 = vmul.f32 -1.442695, %v3797_v48  ;;  %v5803_v54 = vmul.f32 -1.442695, %v3799_v33  ;;  %v3798_v63 = vadd.f32 %v3791_v43, %v3505_v34 }
 0xcd7   :  { %6199 = vpow2.f32 %v5802_v55 }
 0xcd8   :  { %6201 = vpow2.f32 %v5803_v54 }
 0xce2   :  { %v6198_v9 = vpop.eup %6197 }
 0xce3   :  { %v3803_v39 = vadd.f32 1.0, %v6198_v9  ;;  %v9318_v9 = vld [vmem:[#allocation38_spill] sm:$0xff] }
 0xce4   :  { %v6200_v48 = vpop.eup %6199 }
 0xce5   :  { %6203 = vrcp.f32 %v3803_v39  ;;  %v3809_v62 = vadd.f32 1.0, %v6200_v48  ;;  %v6202_v55 = vpop.eup %6201 }
 0xce6   :  { %6205 = vtanh.f32 %v3798_v63  ;;  %v3816_v36 = vadd.f32 1.0, %v6202_v55  ;;  %v3511_v63 = vadd.f32 %v9318_v9, %v8192_v47  ;;  %v8314_v9 = vld [vmem:[#allocation19 + $0x1a0] sm:$0xff] }
 0xce7   :  { %6207 = vrcp.f32 %v3809_v62 }
 0xce8   :  { %6209 = vrcp.f32 %v3816_v36 }
 0xcf2   :  { %v6204_v49 = vpop.eup %6203 }
 0xcf3   :  { %v6206_v0 = vpop.eup %6205 }
 0xcf4   :  { %v6208_v27 = vpop.eup %6207  ;;  %v3821_v37 = vmul.f32 %v6206_v0, %v6204_v49 }
 0xcf5   :  { %v3820_v2 = vmul.f32 0.0, %v6208_v27  ;;  %v6210_v43 = vpop.eup %6209  ;;  %v9316_v27 = vld [vmem:[#allocation49_spill] sm:$0xff] }
 0xcf6   :  { %v3513_v34 = vadd.f32 %v9317_v53, %v9316_v27  ;;  %v8304_v53 = vld [vmem:[#allocation19 + $0x1d0] sm:$0xff] }
 0xcf7   :  { %v8195_v41 = vadd.f32 %v3821_v37, %v3820_v2 }
 0xcf9   :  { %6211 = vtanh.f32 %v8195_v41 }
 0xd06   :  { %v6212_v33 = vpop.eup %6211 }
 0xd07   :  { %v8198_v40 = vmul.f32 %v6212_v33, %v6210_v43 }
 0xd09   :  { %9292 = vst [vmem:[#allocation79_spill] sm:$0xff] %v8198_v40  ;;  %3962 = vmatmul.mubr.f32.vlgmr.msra.gmra.mxu0 %v8198_v40  ;;  %4033 = vmatmul.mubr.f32.vlgmr.msra.gmra.mxu1 %v8198_v40  ;;  %v8366_v40 = vld [vmem:[#allocation19 + $0x108] sm:$0xff] }
 0xd0a   :  { %4142 = vmatpush1.msra.mxu0 %v7852_v11  ;;  %4213 = vmatpush1.msra.mxu1 %v7855_v46  ;;  %v9293_v11 = vld [vmem:[#allocation54_spill] sm:$0xff]  ;;  %v9294_v46 = vld [vmem:[#allocation56_spill] sm:$0xff] }
 0xd0b   :  { %4143 = vmatprep.subr.mxu0 %v7858_v12  ;;  %4214 = vmatprep.subr.mxu1 %v7861_v51  ;;  %v9295_v12 = vld [vmem:[#allocation57_spill] sm:$0xff]  ;;  %v9296_v51 = vld [vmem:[#allocation55_spill] sm:$0xff] }
 0xd0c   :  { %4144 = vmatpush1.msra.mxu0 %v7864_v14  ;;  %4215 = vmatpush1.msra.mxu1 %v7867_v18  ;;  %v9297_v14 = vld [vmem:[#allocation58_spill] sm:$0xff]  ;;  %v9298_v18 = vld [vmem:[#allocation60_spill] sm:$0xff] }
 0xd0d   :  { %4145 = vmatprep.subr.mxu0 %v7870_v21  ;;  %4216 = vmatprep.subr.mxu1 %v7873_v23  ;;  %v9299_v21 = vld [vmem:[#allocation61_spill] sm:$0xff]  ;;  %v9300_v23 = vld [vmem:[#allocation59_spill] sm:$0xff] }
 0xd0e   :  { %4146 = vmatpush1.msra.mxu0 %v7876_v10  ;;  %4217 = vmatpush1.msra.mxu1 %v7879_v24  ;;  %v9301_v10 = vld [vmem:[#allocation31_spill] sm:$0xff]  ;;  %v9302_v24 = vld [vmem:[#allocation30_spill] sm:$0xff] }
 0xd0f   :  { %4147 = vmatprep.subr.mxu0 %v7882_v26  ;;  %4218 = vmatprep.subr.mxu1 %v7885_v29  ;;  %v9303_v26 = vld [vmem:[#allocation62_spill] sm:$0xff]  ;;  %v9304_v29 = vld [vmem:[#allocation64_spill] sm:$0xff] }
 0xd10   :  { %4148 = vmatpush1.msra.mxu0 %v7888_v31  ;;  %4219 = vmatpush1.msra.mxu1 %v7891_v58  ;;  %v9305_v31 = vld [vmem:[#allocation65_spill] sm:$0xff]  ;;  %v9306_v58 = vld [vmem:[#allocation63_spill] sm:$0xff] }
 0xd11   :  { %4149 = vmatprep.subr.mxu0 %v7894_v38  ;;  %4220 = vmatprep.subr.mxu1 %v7897_v1  ;;  %v9307_v38 = vld [vmem:[#allocation33_spill] sm:$0xff]  ;;  %v9308_v1 = vld [vmem:[#allocation32_spill] sm:$0xff] }
 0xd12   :  { %4150 = vmatpush1.msra.mxu0 %v7900_v19  ;;  %4221 = vmatpush1.msra.mxu1 %v7903_v45  ;;  %v9309_v19 = vld [vmem:[#allocation35_spill] sm:$0xff]  ;;  %v9310_v45 = vld [vmem:[#allocation37_spill] sm:$0xff] }
 0xd13   :  { %4151 = vmatprep.subr.mxu0 %v7906_v28  ;;  %4222 = vmatprep.subr.mxu1 %v7909_v7  ;;  %v9311_v28 = vld [vmem:[#allocation34_spill] sm:$0xff]  ;;  %v9312_v7 = vmov 0.0  }
 0xd14   :  { %4152 = vmatpush1.msra.mxu0 %v7912_v44  ;;  %4223 = vmatpush1.msra.mxu1 %v7915_v35  ;;  %v9313_v44 = vld [vmem:[#allocation36_spill] sm:$0xff]  ;;  %v9314_v35 = vld [vmem:[#allocation39_spill] sm:$0xff] }
 0xd15   :  { %4153 = vmatprep.subr.mxu0 %v7918_v16  ;;  %4224 = vmatprep.subr.mxu1 %v7921_v25  ;;  %v3398_v16 = vadd.f32 %v9314_v35, %v8167_v57 }
 0xd16   :  { %4154 = vmatpush1.msra.mxu0 %v7924_v17  ;;  %4225 = vmatpush1.msra.mxu1 %v7927_v59  ;;  %v9315_v17 = vld [vmem:[#allocation41_spill] sm:$0xff] }
 0xd17   :  { %4155 = vmatprep.subr.mxu0 %v7930_v3  ;;  %4226 = vmatprep.subr.mxu1 %v7933_v20  ;;  %v3400_v59 = vadd.f32 %v9315_v17, %v8175_v13 }
 0xd18   :  { %4156 = vmatpush1.msra.mxu0 %v7936_v52  ;;  %4227 = vmatpush1.msra.mxu1 %v7939_v6 }
 0xd19   :  { %4157 = vmatprep.subr.mxu0 %v7942_v50  ;;  %4228 = vmatprep.subr.mxu1 %v7945_v15 }
 0xd1a   :  { %4158 = vmatpush1.msra.mxu0 %v7948_v56  ;;  %4229 = vmatpush1.msra.mxu1 %v7951_v61 }
 0xd1b   :  { %4159 = vmatprep.subr.mxu0 %v7954_v42  ;;  %4230 = vmatprep.subr.mxu1 %v7957_v30 }
 0xd1c   :  { %4160 = vmatpush1.msra.mxu0 %v7960_v60  ;;  %4231 = vmatpush1.msra.mxu1 %v7963_v8 }
 0xd1d   :  { %4161 = vmatprep.subr.mxu0 %v7966_v22  ;;  %4232 = vmatprep.subr.mxu1 %v7969_v32 }
 0xd1e   :  { %4162 = vmatpush1.msra.mxu0 %v7972_v5  ;;  %4233 = vmatpush1.msra.mxu1 %v7975_v4 }
 0xd1f   :  { %4163 = vmatprep.subr.mxu0 %v9293_v11  ;;  %4234 = vmatprep.subr.mxu1 %v9294_v46 }
 0xd20   :  { %4164 = vmatpush1.msra.mxu0 %v9295_v12  ;;  %4235 = vmatpush1.msra.mxu1 %v9296_v51 }
 0xd21   :  { %4165 = vmatprep.subr.mxu0 %v9297_v14  ;;  %4236 = vmatprep.subr.mxu1 %v9298_v18 }
 0xd22   :  { %4166 = vmatpush1.msra.mxu0 %v9299_v21  ;;  %4237 = vmatpush1.msra.mxu1 %v9300_v23 }
 0xd23   :  { %4167 = vmatprep.subr.mxu0 %v9301_v10  ;;  %4238 = vmatprep.subr.mxu1 %v9302_v24 }
 0xd24   :  { %4168 = vmatpush1.msra.mxu0 %v9303_v26  ;;  %4239 = vmatpush1.msra.mxu1 %v9304_v29 }
 0xd25   :  { %4169 = vmatprep.subr.mxu0 %v9305_v31  ;;  %4240 = vmatprep.subr.mxu1 %v9306_v58 }
 0xd26   :  { %4170 = vmatpush1.msra.mxu0 %v9307_v38  ;;  %4241 = vmatpush1.msra.mxu1 %v9308_v1 }
 0xd27   :  { %4171 = vmatprep.subr.mxu0 %v9309_v19  ;;  %4242 = vmatprep.subr.mxu1 %v9310_v45 }
 0xd28   :  { %4172 = vmatpush1.msra.mxu0 %v9311_v28  ;;  %4205 = vmatprep.mubr.f32.mxu0 %v9312_v7 }
 0xd29   :  { %4243 = vmatpush1.msra.mxu1 %v9313_v44  ;;  %4276 = vmatprep.mubr.f32.mxu1 %v9312_v7 }
 0xdc9   :  { %v3963_v25 = vpop.f32.mrf.mxu0  ;;  %v4034_v50 = vpop.f32.mrf.mxu1 }
 0xdca   :  { %v4039_v3 = vadd.f32 %v3963_v25, %v3398_v16  ;;  %v4041_v39 = vadd.f32 %v4034_v50, %v3511_v63  ;;  %v8296_v50 = vld [vmem:[#allocation19 + $0x1c8] sm:$0xff]  ;;  %v8316_v63 = vld [vmem:[#allocation19 + $0x1b0] sm:$0xff] }
 0xdcb   :  { %v3965_v20 = vpop.f32.mrf.mxu0  ;;  %v4036_v42 = vpop.f32.mrf.mxu1 }
 0xdcc   :  { %v5804_v52 = vmul.f32 -1.442695, %v4039_v3  ;;  %v4040_v6 = vadd.f32 %v3965_v20, %v3400_v59  ;;  %v4042_v54 = vadd.f32 %v4036_v42, %v3513_v34  ;;  %v8284_v20 = vld [vmem:[#allocation19 + $0x1e8] sm:$0xff]  ;;  %v8302_v42 = vld [vmem:[#allocation19 + $0x1c0] sm:$0xff] }
 0xdcd   :  { %9320 = vst [vmem:[#allocation56_spill] sm:$0xff] %v8284_v20  ;;  %4385 = vmatprep.subr.mxu0 %v8284_v20  ;;  %v8308_v34 = vld [vmem:[#allocation19 + $0x1a8] sm:$0xff] }
 0xdce   :  { %6213 = vpow2.f32 %v5804_v52  ;;  %v5805_v56 = vmul.f32 -1.442695, %v4040_v6  ;;  %v5806_v48 = vmul.f32 -1.442695, %v4042_v54  ;;  %v8290_v52 = vld [vmem:[#allocation19 + $0x1e0] sm:$0xff]  ;;  %v8292_v6 = vld [vmem:[#allocation19 + $0x1f0] sm:$0xff] }
 0xdcf   :  { %v8310_v54 = vld [vmem:[#allocation19 + $0x1b8] sm:$0xff] }
 0xdd0   :  { %6215 = vpow2.f32 %v5805_v56  ;;  %v8298_v56 = vld [vmem:[#allocation19 + $0x1d8] sm:$0xff] }
 0xdd1   :  { %6217 = vtanh.f32 %v4041_v39  ;;  %v8320_v39 = vld [vmem:[#allocation19 + $0x188] sm:$0xff] }
 0xdd2   :  { %6219 = vpow2.f32 %v5806_v48  ;;  %v8322_v48 = vld [vmem:[#allocation19 + $0x198] sm:$0xff] }
 0xddb   :  { %v6214_v62 = vpop.eup %6213 }
 0xddc   :  { %v4046_v55 = vadd.f32 1.0, %v6214_v62  ;;  %v8326_v62 = vld [vmem:[#allocation19 + $0x180] sm:$0xff] }
 0xddd   :  { %v6216_v49 = vpop.eup %6215 }
 0xdde   :  { %6221 = vrcp.f32 %v4046_v55  ;;  %v4052_v0 = vadd.f32 1.0, %v6216_v49  ;;  %v6218_v36 = vpop.eup %6217  ;;  %v8328_v55 = vld [vmem:[#allocation19 + $0x190] sm:$0xff]  ;;  %v8332_v49 = vld [vmem:[#allocation19 + $0x168] sm:$0xff] }
 0xddf   :  { %v6220_v2 = vpop.eup %6219 }
 0xde0   :  { %6223 = vrcp.f32 %v4052_v0  ;;  %v4059_v35 = vadd.f32 1.0, %v6220_v2  ;;  %v8334_v0 = vld [vmem:[#allocation19 + $0x178] sm:$0xff]  ;;  %v8340_v2 = vld [vmem:[#allocation19 + $0x170] sm:$0xff] }
 0xde2   :  { %6225 = vrcp.f32 %v4059_v35  ;;  %v8352_v35 = vld [vmem:[#allocation19 + $0x150] sm:$0xff] }
 0xde3   :  { %9323 = vst [vmem:[#allocation58_spill] sm:$0xff] %v8352_v35 }
 0xdeb   :  { %v6222_v37 = vpop.eup %6221 }
 0xdec   :  { %v4064_v43 = vmul.f32 %v6222_v37, %v6218_v36  ;;  %v8338_v36 = vld [vmem:[#allocation19 + $0x160] sm:$0xff]  ;;  %v8344_v37 = vld [vmem:[#allocation19 + $0x148] sm:$0xff] }
 0xded   :  { %v6224_v33 = vpop.eup %6223 }
 0xdee   :  { %v4063_v16 = vmul.f32 %v6224_v33, %v8195_v41  ;;  %v8286_v41 = vld [vmem:[#allocation19 + $0x1f8] sm:$0xff]  ;;  %v8350_v33 = vld [vmem:[#allocation19 + $0x140] sm:$0xff] }
 0xdef   :  { %v6226_v17 = vpop.eup %6225  ;;  %9321 = vst [vmem:[#allocation57_spill] sm:$0xff] %v8286_v41  ;;  %4456 = vmatprep.subr.mxu1 %v8286_v41  ;;  %9322 = vst [vmem:[#allocation55_spill] sm:$0xff] %v8350_v33 }
 0xdf0   :  { %v8275_v25 = vadd.f32 %v4064_v43, %v4063_v16  ;;  %v8346_v43 = vld [vmem:[#allocation19 + $0x158] sm:$0xff]  ;;  %v8356_v16 = vld [vmem:[#allocation19 + $0x128] sm:$0xff] }
 0xdf1   :  { %9324 = vst [vmem:[#allocation60_spill] sm:$0xff] %v8356_v16 }
 0xdf2   :  { %6227 = vtanh.f32 %v8275_v25 }
 0xdff   :  { %v6228_v59 = vpop.eup %6227 }
 0xe00   :  { %v8278_v3 = vmul.f32 %v6228_v59, %v6226_v17  ;;  %v8358_v17 = vld [vmem:[#allocation19 + $0x138] sm:$0xff]  ;;  %v8362_v59 = vld [vmem:[#allocation19 + $0x120] sm:$0xff] }
 0xe01   :  { %9325 = vst [vmem:[#allocation61_spill] sm:$0xff] %v8358_v17  ;;  %9326 = vst [vmem:[#allocation59_spill] sm:$0xff] %v8362_v59 }
 0xe02   :  { %9319 = vst [vmem:[#allocation54_spill] sm:$0xff] %v8278_v3  ;;  %4206 = vmatmul.mubr.f32.vlgmr.msra.gmra.mxu0 %v8278_v3  ;;  %4277 = vmatmul.mubr.f32.vlgmr.msra.gmra.mxu1 %v8278_v3  ;;  %v8364_v3 = vld [vmem:[#allocation19 + $0x130] sm:$0xff] }
 0xe03   :  { %4449 = vmatprep.mubr.f32.mxu0 %v9312_v7  ;;  %4520 = vmatprep.mubr.f32.mxu1 %v9312_v7  ;;  %v8370_v7 = vld [vmem:[#allocation19 + $0x118] sm:$0xff] }
 0xe04   :  { %4386 = vmatpush1.msra.mxu0 %v8290_v52  ;;  %4457 = vmatpush1.msra.mxu1 %v8292_v6 }
 0xe05   :  { %4387 = vmatprep.subr.mxu0 %v8296_v50  ;;  %4458 = vmatprep.subr.mxu1 %v8298_v56 }
 0xe06   :  { %4388 = vmatpush1.msra.mxu0 %v8302_v42  ;;  %4459 = vmatpush1.msra.mxu1 %v8304_v53 }
 0xe07   :  { %4389 = vmatprep.subr.mxu0 %v8308_v34  ;;  %4460 = vmatprep.subr.mxu1 %v8310_v54 }
 0xe08   :  { %4390 = vmatpush1.msra.mxu0 %v8314_v9  ;;  %4461 = vmatpush1.msra.mxu1 %v8316_v63 }
 0xe09   :  { %4391 = vmatprep.subr.mxu0 %v8320_v39  ;;  %4462 = vmatprep.subr.mxu1 %v8322_v48 }
 0xe0a   :  { %4392 = vmatpush1.msra.mxu0 %v8326_v62  ;;  %4463 = vmatpush1.msra.mxu1 %v8328_v55 }
 0xe0b   :  { %4393 = vmatprep.subr.mxu0 %v8332_v49  ;;  %4464 = vmatprep.subr.mxu1 %v8334_v0 }
 0xe0c   :  { %4394 = vmatpush1.msra.mxu0 %v8338_v36  ;;  %4465 = vmatpush1.msra.mxu1 %v8340_v2 }
 0xe0d   :  { %4395 = vmatprep.subr.mxu0 %v8344_v37  ;;  %4466 = vmatprep.subr.mxu1 %v8346_v43 }
 0xe0e   :  { %4396 = vmatpush1.msra.mxu0 %v8350_v33  ;;  %4467 = vmatpush1.msra.mxu1 %v8352_v35  ;;  %v8372_v35 = vld [vmem:[#allocation19 + $0x100] sm:$0xff]  ;;  %v8374_v33 = vld [vmem:[#allocation19 + $0x110] sm:$0xff] }
 0xe0f   :  { %4397 = vmatprep.subr.mxu0 %v8356_v16  ;;  %4468 = vmatprep.subr.mxu1 %v8358_v17  ;;  %v8378_v17 = vld [vmem:[#allocation19 + $0xe8] sm:$0xff]  ;;  %v8380_v16 = vld [vmem:[#allocation19 + $0xe0] sm:$0xff] }
 0xe10   :  { %4398 = vmatpush1.msra.mxu0 %v8362_v59  ;;  %4469 = vmatpush1.msra.mxu1 %v8364_v3  ;;  %v8384_v59 = vld [vmem:[#allocation19 + $0xc8] sm:$0xff] }
 0xe11   :  { %4399 = vmatprep.subr.mxu0 %v8366_v40  ;;  %4470 = vmatprep.subr.mxu1 %v8370_v7 }
 0xe12   :  { %4400 = vmatpush1.msra.mxu0 %v8372_v35  ;;  %4471 = vmatpush1.msra.mxu1 %v8374_v33 }
 0xe13   :  { %4401 = vmatprep.subr.mxu0 %v8378_v17  ;;  %4472 = vmatprep.subr.mxu1 %v7945_v15  ;;  %v9327_v15 = vld [vmem:[#allocation43_spill] sm:$0xff] }
 0xe14   :  { %4402 = vmatpush1.msra.mxu0 %v8380_v16  ;;  %4473 = vmatpush1.msra.mxu1 %v7951_v61  ;;  %v3404_v61 = vadd.f32 %v9327_v15, %v8167_v57 }
 0xe15   :  { %4403 = vmatprep.subr.mxu0 %v8384_v59  ;;  %4474 = vmatprep.subr.mxu1 %v7957_v30 }
 0xe16   :  { %4404 = vmatpush1.msra.mxu0 %v7960_v60  ;;  %4475 = vmatpush1.msra.mxu1 %v7963_v8  ;;  %v9328_v60 = vld [vmem:[#allocation45_spill] sm:$0xff] }
 0xe17   :  { %4405 = vmatprep.subr.mxu0 %v7966_v22  ;;  %4476 = vmatprep.subr.mxu1 %v7969_v32  ;;  %v3406_v8 = vadd.f32 %v9328_v60, %v8175_v13 }
 0xe18   :  { %4406 = vmatpush1.msra.mxu0 %v7972_v5  ;;  %4477 = vmatpush1.msra.mxu1 %v7975_v4 }
 0xe19   :  { %4407 = vmatprep.subr.mxu0 %v9293_v11  ;;  %4478 = vmatprep.subr.mxu1 %v9294_v46 }
 0xe1a   :  { %4408 = vmatpush1.msra.mxu0 %v9295_v12  ;;  %4479 = vmatpush1.msra.mxu1 %v9296_v51  ;;  %v9329_v51 = vld [vmem:[#allocation44_spill] sm:$0xff] }
 0xe1b   :  { %4409 = vmatprep.subr.mxu0 %v9297_v14  ;;  %4480 = vmatprep.subr.mxu1 %v9298_v18  ;;  %v3519_v14 = vadd.f32 %v9329_v51, %v9316_v27  ;;  %v8475_v51 = vld [vmem:[#allocation19 + $0xd8] sm:$0xff] }
 0xe1c   :  { %4410 = vmatpush1.msra.mxu0 %v9299_v21  ;;  %4481 = vmatpush1.msra.mxu1 %v9300_v23  ;;  %v9330_v21 = vld [vmem:[#allocation42_spill] sm:$0xff] }
 0xe1d   :  { %4411 = vmatprep.subr.mxu0 %v9301_v10  ;;  %4482 = vmatprep.subr.mxu1 %v9302_v24  ;;  %v3517_v23 = vadd.f32 %v9330_v21, %v8192_v47  ;;  %v8482_v21 = vld [vmem:[#allocation19 + $0xa8] sm:$0xff] }
 0xe1e   :  { %4412 = vmatpush1.msra.mxu0 %v9303_v26  ;;  %4483 = vmatpush1.msra.mxu1 %v9304_v29 }
 0xe1f   :  { %4413 = vmatprep.subr.mxu0 %v9305_v31  ;;  %4484 = vmatprep.subr.mxu1 %v9306_v58 }
 0xe20   :  { %4414 = vmatpush1.msra.mxu0 %v9307_v38  ;;  %4485 = vmatpush1.msra.mxu1 %v9308_v1 }
 0xe21   :  { %4415 = vmatprep.subr.mxu0 %v9309_v19  ;;  %4486 = vmatprep.subr.mxu1 %v9310_v45 }
 0xe22   :  { %4416 = vmatpush1.msra.mxu0 %v9311_v28  ;;  %4487 = vmatpush1.msra.mxu1 %v9313_v44 }
 0xe23   :  { %4629 = vmatprep.subr.mxu0 %v8284_v20  ;;  %4700 = vmatprep.subr.mxu1 %v8286_v41 }
 0xec2   :  { %v4207_v30 = vpop.f32.mrf.mxu0  ;;  %v4278_v11 = vpop.f32.mrf.mxu1 }
 0xec3   :  { %v4283_v22 = vadd.f32 %v4207_v30, %v3404_v61  ;;  %v4285_v10 = vadd.f32 %v4278_v11, %v3517_v23  ;;  %v9337_v11 = vmov 0.0   ;;  %v8486_v23 = vld [vmem:[#allocation19 + $0xb8] sm:$0xff] }
 0xec4   :  { %v4209_v32 = vpop.f32.mrf.mxu0  ;;  %v4280_v12 = vpop.f32.mrf.mxu1 }
 0xec5   :  { %v5807_v5 = vmul.f32 -1.442695, %v4283_v22  ;;  %v4284_v4 = vadd.f32 %v4209_v32, %v3406_v8  ;;  %v4286_v18 = vadd.f32 %v4280_v12, %v3519_v14  ;;  %v9333_v22 = vld [vmem:[#allocation58_spill] sm:$0xff]  ;;  %v9334_v32 = vld [vmem:[#allocation60_spill] sm:$0xff]  ;;  %v8473_v12 = vld [vmem:[#allocation19 + $0xf0] sm:$0xff] }
 0xec6   :  { %v8478_v14 = vld [vmem:[#allocation19 + $0xc0] sm:$0xff] }
 0xec7   :  { %6229 = vpow2.f32 %v5807_v5  ;;  %v5808_v46 = vmul.f32 -1.442695, %v4284_v4  ;;  %v5809_v24 = vmul.f32 -1.442695, %v4286_v18  ;;  %v9335_v5 = vld [vmem:[#allocation61_spill] sm:$0xff]  ;;  %v9336_v4 = vld [vmem:[#allocation59_spill] sm:$0xff] }
 0xec8   :  { %v8480_v18 = vld [vmem:[#allocation19 + $0xd0] sm:$0xff] }
 0xec9   :  { %6231 = vpow2.f32 %v5808_v46  ;;  %v8471_v46 = vld [vmem:[#allocation19 + $0xf8] sm:$0xff] }
 0xeca   :  { %6233 = vtanh.f32 %v4285_v10  ;;  %v8488_v10 = vld [vmem:[#allocation19 + $0xa0] sm:$0xff] }
 0xecb   :  { %6235 = vpow2.f32 %v5809_v24  ;;  %v8492_v24 = vld [vmem:[#allocation19 + $0xb0] sm:$0xff] }
 0xecc   :  { %9338 = vst [vmem:[#allocation30_spill] sm:$0xff] %v8492_v24 }
 0xed4   :  { %v6230_v26 = vpop.eup %6229 }
 0xed5   :  { %v4290_v29 = vadd.f32 1.0, %v6230_v26  ;;  %v8494_v26 = vld [vmem:[#allocation19 + $0x88] sm:$0xff] }
 0xed6   :  { %v6232_v31 = vpop.eup %6231  ;;  %9339 = vst [vmem:[#allocation62_spill] sm:$0xff] %v8494_v26 }
 0xed7   :  { %6237 = vrcp.f32 %v4290_v29  ;;  %v4296_v58 = vadd.f32 1.0, %v6232_v31  ;;  %v6234_v38 = vpop.eup %6233  ;;  %v8496_v29 = vld [vmem:[#allocation19 + $0x80] sm:$0xff]  ;;  %v8500_v31 = vld [vmem:[#allocation19 + $0x98] sm:$0xff] }
 0xed8   :  { %v6236_v1 = vpop.eup %6235  ;;  %9340 = vst [vmem:[#allocation64_spill] sm:$0xff] %v8496_v29  ;;  %9341 = vst [vmem:[#allocation65_spill] sm:$0xff] %v8500_v31 }
 0xed9   :  { %6239 = vrcp.f32 %v4296_v58  ;;  %v4303_v44 = vadd.f32 1.0, %v6236_v1  ;;  %v8502_v58 = vld [vmem:[#allocation19 + $0x68] sm:$0xff]  ;;  %v8508_v1 = vld [vmem:[#allocation19 + $0x60] sm:$0xff] }
 0xeda   :  { %9342 = vst [vmem:[#allocation63_spill] sm:$0xff] %v8502_v58  ;;  %9344 = vst [vmem:[#allocation32_spill] sm:$0xff] %v8508_v1 }
 0xedb   :  { %6241 = vrcp.f32 %v4303_v44  ;;  %v8520_v44 = vld [vmem:[#allocation19 + $0x40] sm:$0xff] }
 0xedc   :  { %9348 = vst [vmem:[#allocation36_spill] sm:$0xff] %v8520_v44 }
 0xee4   :  { %v6238_v19 = vpop.eup %6237 }
 0xee5   :  { %v4308_v45 = vmul.f32 %v6238_v19, %v6234_v38  ;;  %v8506_v38 = vld [vmem:[#allocation19 + $0x90] sm:$0xff]  ;;  %v8512_v19 = vld [vmem:[#allocation19 + $0x78] sm:$0xff] }
 0xee6   :  { %v6240_v28 = vpop.eup %6239  ;;  %9343 = vst [vmem:[#allocation33_spill] sm:$0xff] %v8506_v38  ;;  %9345 = vst [vmem:[#allocation35_spill] sm:$0xff] %v8512_v19 }
 0xee7   :  { %v4307_v15 = vmul.f32 %v6240_v28, %v8275_v25  ;;  %v9332_v25 = vld [vmem:[#allocation55_spill] sm:$0xff] }
 0xee8   :  { %v6242_v30 = vpop.eup %6241  ;;  %v8518_v28 = vld [vmem:[#allocation19 + $0x70] sm:$0xff] }
 0xee9   :  { %v8429_v61 = vadd.f32 %v4308_v45, %v4307_v15  ;;  %v8514_v45 = vld [vmem:[#allocation19 + $0x48] sm:$0xff]  ;;  %9347 = vst [vmem:[#allocation34_spill] sm:$0xff] %v8518_v28  ;;  %v8524_v15 = vld [vmem:[#allocation19 + $0x58] sm:$0xff] }
 0xeea   :  { %9346 = vst [vmem:[#allocation37_spill] sm:$0xff] %v8514_v45  ;;  %9349 = vst [vmem:[#allocation39_spill] sm:$0xff] %v8524_v15 }
 0xeeb   :  { %6243 = vtanh.f32 %v8429_v61 }
 0xef8   :  { %v6244_v60 = vpop.eup %6243 }
 0xef9   :  { %v8432_v8 = vmul.f32 %v6244_v60, %v6242_v30  ;;  %v8526_v30 = vld [vmem:[#allocation19 + $0x28] sm:$0xff]  ;;  %v8530_v60 = vld [vmem:[#allocation19 + $0x50] sm:$0xff] }
 0xefa   :  { %9350 = vst [vmem:[#allocation41_spill] sm:$0xff] %v8526_v30  ;;  %9351 = vst [vmem:[#allocation49_spill] sm:$0xff] %v8530_v60 }
 0xefb   :  { %9331 = vst [vmem:[#allocation31_spill] sm:$0xff] %v8432_v8  ;;  %4450 = vmatmul.mubr.f32.vlgmr.msra.gmra.mxu0 %v8432_v8  ;;  %4521 = vmatmul.mubr.f32.vlgmr.msra.gmra.mxu1 %v8432_v8  ;;  %v8532_v8 = vld [vmem:[#allocation19 + $0x20] sm:$0xff] }
 0xefc   :  { %4630 = vmatpush1.msra.mxu0 %v8290_v52  ;;  %4701 = vmatpush1.msra.mxu1 %v8292_v6  ;;  %9352 = vst [vmem:[#allocation40_spill] sm:$0xff] %v8532_v8 }
 0xefd   :  { %4631 = vmatprep.subr.mxu0 %v8296_v50  ;;  %4702 = vmatprep.subr.mxu1 %v8298_v56 }
 0xefe   :  { %4632 = vmatpush1.msra.mxu0 %v8302_v42  ;;  %4703 = vmatpush1.msra.mxu1 %v8304_v53 }
 0xeff   :  { %4633 = vmatprep.subr.mxu0 %v8308_v34  ;;  %4704 = vmatprep.subr.mxu1 %v8310_v54 }
 0xf00   :  { %4634 = vmatpush1.msra.mxu0 %v8314_v9  ;;  %4705 = vmatpush1.msra.mxu1 %v8316_v63 }
 0xf01   :  { %4635 = vmatprep.subr.mxu0 %v8320_v39  ;;  %4706 = vmatprep.subr.mxu1 %v8322_v48 }
 0xf02   :  { %4636 = vmatpush1.msra.mxu0 %v8326_v62  ;;  %4707 = vmatpush1.msra.mxu1 %v8328_v55 }
 0xf03   :  { %4637 = vmatprep.subr.mxu0 %v8332_v49  ;;  %4708 = vmatprep.subr.mxu1 %v8334_v0 }
 0xf04   :  { %4638 = vmatpush1.msra.mxu0 %v8338_v36  ;;  %4709 = vmatpush1.msra.mxu1 %v8340_v2 }
 0xf05   :  { %4639 = vmatprep.subr.mxu0 %v8344_v37  ;;  %4710 = vmatprep.subr.mxu1 %v8346_v43 }
 0xf06   :  { %4640 = vmatpush1.msra.mxu0 %v9332_v25  ;;  %4711 = vmatpush1.msra.mxu1 %v9333_v22 }
 0xf07   :  { %4641 = vmatprep.subr.mxu0 %v9334_v32  ;;  %4712 = vmatprep.subr.mxu1 %v9335_v5 }
 0xf08   :  { %4642 = vmatpush1.msra.mxu0 %v9336_v4  ;;  %4713 = vmatpush1.msra.mxu1 %v8364_v3 }
 0xf09   :  { %4643 = vmatprep.subr.mxu0 %v8366_v40  ;;  %4714 = vmatprep.subr.mxu1 %v8370_v7 }
 0xf0a   :  { %4644 = vmatpush1.msra.mxu0 %v8372_v35  ;;  %4715 = vmatpush1.msra.mxu1 %v8374_v33 }
 0xf0b   :  { %4645 = vmatprep.subr.mxu0 %v8378_v17  ;;  %4693 = vmatprep.mubr.f32.mxu0 %v9337_v11 }
 0xf0c   :  { %4646 = vmatpush1.msra.mxu0 %v8380_v16  ;;  %4764 = vmatprep.mubr.f32.mxu1 %v9337_v11  ;;  %v8536_v11 = vld [vmem:[#allocation19 + $0x38] sm:$0xff] }
 0xf0d   :  { %4647 = vmatprep.subr.mxu0 %v8384_v59  ;;  %4716 = vmatprep.subr.mxu1 %v8471_v46  ;;  %9353 = vst [vmem:[#allocation38_spill] sm:$0xff] %v8536_v11 }
 0xf0e   :  { %4717 = vmatpush1.msra.mxu1 %v8473_v12  ;;  %4648 = vmatpush1.msra.mxu0 %v8478_v14 }
 0xf0f   :  { %4718 = vmatprep.subr.mxu1 %v8475_v51  ;;  %4649 = vmatprep.subr.mxu0 %v8482_v21 }
 0xf10   :  { %4719 = vmatpush1.msra.mxu1 %v8480_v18  ;;  %4650 = vmatpush1.msra.mxu0 %v8488_v10 }
 0xf11   :  { %4720 = vmatprep.subr.mxu1 %v8486_v23  ;;  %4651 = vmatprep.subr.mxu0 %v8494_v26 }
 0xf12   :  { %4721 = vmatpush1.msra.mxu1 %v8492_v24  ;;  %4652 = vmatpush1.msra.mxu0 %v8496_v29 }
 0xf13   :  { %4722 = vmatprep.subr.mxu1 %v8500_v31  ;;  %4653 = vmatprep.subr.mxu0 %v8502_v58  ;;  %v8538_v58 = vld [vmem:[#allocation19 + $0x8] sm:$0xff] }
 0xf14   :  { %4723 = vmatpush1.msra.mxu1 %v8506_v38  ;;  %4654 = vmatpush1.msra.mxu0 %v8508_v1  ;;  %9354 = vst [vmem:[#allocation43_spill] sm:$0xff] %v8538_v58  ;;  %v8542_v1 = vld [vmem:[#allocation19 + $0x30] sm:$0xff]  ;;  %v9362_v31 = vld [vmem:[#allocation46_spill] sm:$0xff] }
 0xf15   :  { %4724 = vmatprep.subr.mxu1 %v8512_v19  ;;  %4655 = vmatprep.subr.mxu0 %v8514_v45  ;;  %9355 = vst [vmem:[#allocation45_spill] sm:$0xff] %v8542_v1  ;;  %v8544_v19 = vld [vmem:[#allocation19] sm:$0xff]  ;;  %v8548_v45 = vld [vmem:[#allocation19 + $0x18] sm:$0xff] }
 0xf16   :  { %4725 = vmatpush1.msra.mxu1 %v8518_v28  ;;  %4656 = vmatpush1.msra.mxu0 %v8520_v44  ;;  %9356 = vst [vmem:[#allocation44_spill] sm:$0xff] %v8544_v19  ;;  %9357 = vst [vmem:[#allocation42_spill] sm:$0xff] %v8548_v45  ;;  %v8552_v44 = vld [vmem:[#allocation19 + $0x10] sm:$0xff] }
 0xf17   :  { %4726 = vmatprep.subr.mxu1 %v8524_v15  ;;  %4657 = vmatprep.subr.mxu0 %v8526_v30  ;;  %9358 = vst [vmem:[#allocation55_spill] sm:$0xff] %v8552_v44 }
 0xf18   :  { %4727 = vmatpush1.msra.mxu1 %v8530_v60  ;;  %4658 = vmatpush1.msra.mxu0 %v8532_v8  ;;  %v9359_v8 = vld [vmem:[#allocation47_spill] sm:$0xff] }
 0xf19   :  { %4728 = vmatprep.subr.mxu1 %v8536_v11  ;;  %4659 = vmatprep.subr.mxu0 %v8538_v58  ;;  %v3410_v30 = vadd.f32 %v9359_v8, %v8167_v57  ;;  %v9360_v58 = vld [vmem:[#allocation48_spill] sm:$0xff]  ;;  %v3523_v8 = vadd.f32 %v9362_v31, %v8192_v47  ;;  %v9366_v31 = vld [vmem:[#allocation65_spill] sm:$0xff] }
 0xf1a   :  { %4729 = vmatpush1.msra.mxu1 %v8542_v1  ;;  %4660 = vmatpush1.msra.mxu0 %v8544_v19  ;;  %v3412_v60 = vadd.f32 %v9360_v58, %v8175_v13 }
 0xf1b   :  { %4730 = vmatprep.subr.mxu1 %v8548_v45  ;;  %4873 = vmatprep.subr.mxu0 %v8284_v20 }
 0xf1c   :  { %4731 = vmatpush1.msra.mxu1 %v8552_v44  ;;  %v9361_v44 = vld [vmem:[#allocation66_spill] sm:$0xff] }
 0xf1d   :  { %4944 = vmatprep.subr.mxu1 %v8286_v41  ;;  %v3525_v29 = vadd.f32 %v9361_v44, %v9316_v27 }
 0xfbb   :  { %v4451_v11 = vpop.f32.mrf.mxu0  ;;  %v4522_v19 = vpop.f32.mrf.mxu1 }
 0xfbc   :  { %v4527_v15 = vadd.f32 %v4451_v11, %v3410_v30  ;;  %v4529_v57 = vadd.f32 %v4522_v19, %v3523_v8  ;;  %v9367_v19 = vld [vmem:[#allocation64_spill] sm:$0xff]  ;;  %v9369_v8 = vld [vmem:[#allocation63_spill] sm:$0xff] }
 0xfbd   :  { %v4453_v28 = vpop.f32.mrf.mxu0  ;;  %v4524_v20 = vpop.f32.mrf.mxu1 }
 0xfbe   :  { %v5810_v1 = vmul.f32 -1.442695, %v4527_v15  ;;  %v4528_v38 = vadd.f32 %v4453_v28, %v3412_v60  ;;  %v4530_v41 = vadd.f32 %v4524_v20, %v3525_v29  ;;  %v9368_v60 = vld [vmem:[#allocation33_spill] sm:$0xff] }
 0xfc0   :  { %6245 = vpow2.f32 %v5810_v1  ;;  %v5811_v45 = vmul.f32 -1.442695, %v4528_v38  ;;  %v5812_v26 = vmul.f32 -1.442695, %v4530_v41 }
 0xfc2   :  { %6247 = vpow2.f32 %v5811_v45 }
 0xfc3   :  { %6249 = vtanh.f32 %v4529_v57 }
 0xfc4   :  { %6251 = vpow2.f32 %v5812_v26  ;;  %v9365_v26 = vld [vmem:[#allocation62_spill] sm:$0xff] }
 0xfcd   :  { %v6246_v24 = vpop.eup %6245 }
 0xfce   :  { %v4534_v58 = vadd.f32 1.0, %v6246_v24 }
 0xfcf   :  { %v6248_v11 = vpop.eup %6247 }
 0xfd0   :  { %6253 = vrcp.f32 %v4534_v58  ;;  %v4540_v1 = vadd.f32 1.0, %v6248_v11  ;;  %v6250_v38 = vpop.eup %6249  ;;  %v9370_v58 = vld [vmem:[#allocation35_spill] sm:$0xff]  ;;  %v9371_v11 = vld [vmem:[#allocation32_spill] sm:$0xff] }
 0xfd1   :  { %v6252_v45 = vpop.eup %6251 }
 0xfd2   :  { %6255 = vrcp.f32 %v4540_v1  ;;  %v4547_v44 = vadd.f32 1.0, %v6252_v45  ;;  %v9372_v1 = vld [vmem:[#allocation34_spill] sm:$0xff]  ;;  %v9374_v45 = vld [vmem:[#allocation39_spill] sm:$0xff] }
 0xfd4   :  { %6257 = vrcp.f32 %v4547_v44  ;;  %v9378_v44 = vld [vmem:[#allocation38_spill] sm:$0xff] }
 0xfdd   :  { %v6254_v28 = vpop.eup %6253 }
 0xfde   :  { %v4552_v15 = vmul.f32 %v6254_v28, %v6250_v38  ;;  %v9373_v38 = vld [vmem:[#allocation37_spill] sm:$0xff]  ;;  %v9375_v28 = vld [vmem:[#allocation36_spill] sm:$0xff] }
 0xfdf   :  { %v6256_v30 = vpop.eup %6255 }
 0xfe0   :  { %v4551_v20 = vmul.f32 %v6256_v30, %v8429_v61  ;;  %v9364_v61 = vld [vmem:[#allocation30_spill] sm:$0xff]  ;;  %v9377_v30 = vld [vmem:[#allocation41_spill] sm:$0xff] }
 0xfe1   :  { %v6258_v41 = vpop.eup %6257 }
 0xfe2   :  { %v8569_v29 = vadd.f32 %v4552_v15, %v4551_v20  ;;  %v9376_v15 = vld [vmem:[#allocation49_spill] sm:$0xff]  ;;  %v9379_v20 = vld [vmem:[#allocation40_spill] sm:$0xff] }
 0xfe4   :  { %6259 = vtanh.f32 %v8569_v29 }
 0xff1   :  { %v6260_v57 = vpop.eup %6259 }
 0xff2   :  { %v8572_v24 = vmul.f32 %v6260_v57, %v6258_v41  ;;  %v9380_v41 = vld [vmem:[#allocation45_spill] sm:$0xff]  ;;  %v9381_v57 = vld [vmem:[#allocation43_spill] sm:$0xff] }
 0xff4   :  { %9363 = vst [vmem:[#allocation58_spill] sm:$0xff] %v8572_v24  ;;  %4694 = vmatmul.mubr.f32.vlgmr.msra.gmra.mxu0 %v8572_v24  ;;  %4765 = vmatmul.mubr.f32.vlgmr.msra.gmra.mxu1 %v8572_v24  ;;  %v9382_v24 = vld [vmem:[#allocation42_spill] sm:$0xff] }
 0xff5   :  { %4874 = vmatpush1.msra.mxu0 %v8290_v52  ;;  %4945 = vmatpush1.msra.mxu1 %v8292_v6 }
 0xff6   :  { %4875 = vmatprep.subr.mxu0 %v8296_v50  ;;  %4946 = vmatprep.subr.mxu1 %v8298_v56 }
 0xff7   :  { %4876 = vmatpush1.msra.mxu0 %v8302_v42  ;;  %4947 = vmatpush1.msra.mxu1 %v8304_v53 }
 0xff8   :  { %4877 = vmatprep.subr.mxu0 %v8308_v34  ;;  %4948 = vmatprep.subr.mxu1 %v8310_v54 }
 0xff9   :  { %4878 = vmatpush1.msra.mxu0 %v8314_v9  ;;  %4949 = vmatpush1.msra.mxu1 %v8316_v63 }
 0xffa   :  { %4879 = vmatprep.subr.mxu0 %v8320_v39  ;;  %4950 = vmatprep.subr.mxu1 %v8322_v48 }
 0xffb   :  { %4880 = vmatpush1.msra.mxu0 %v8326_v62  ;;  %4951 = vmatpush1.msra.mxu1 %v8328_v55 }
 0xffc   :  { %4881 = vmatprep.subr.mxu0 %v8332_v49  ;;  %4952 = vmatprep.subr.mxu1 %v8334_v0 }
 0xffd   :  { %4882 = vmatpush1.msra.mxu0 %v8338_v36  ;;  %4953 = vmatpush1.msra.mxu1 %v8340_v2 }
 0xffe   :  { %4883 = vmatprep.subr.mxu0 %v8344_v37  ;;  %4954 = vmatprep.subr.mxu1 %v8346_v43 }
 0xfff   :  { %4884 = vmatpush1.msra.mxu0 %v9332_v25  ;;  %4955 = vmatpush1.msra.mxu1 %v9333_v22 }
0x1000   :  { %4885 = vmatprep.subr.mxu0 %v9334_v32  ;;  %4956 = vmatprep.subr.mxu1 %v9335_v5 }
0x1001   :  { %4886 = vmatpush1.msra.mxu0 %v9336_v4  ;;  %4957 = vmatpush1.msra.mxu1 %v8364_v3 }
0x1002   :  { %4887 = vmatprep.subr.mxu0 %v8366_v40  ;;  %4958 = vmatprep.subr.mxu1 %v8370_v7 }
0x1003   :  { %4888 = vmatpush1.msra.mxu0 %v8372_v35  ;;  %4959 = vmatpush1.msra.mxu1 %v8374_v33 }
0x1004   :  { %4889 = vmatprep.subr.mxu0 %v8378_v17  ;;  %4960 = vmatprep.subr.mxu1 %v8471_v46 }
0x1005   :  { %4890 = vmatpush1.msra.mxu0 %v8380_v16  ;;  %4961 = vmatpush1.msra.mxu1 %v8473_v12 }
0x1006   :  { %4891 = vmatprep.subr.mxu0 %v8384_v59  ;;  %4962 = vmatprep.subr.mxu1 %v8475_v51 }
0x1007   :  { %4892 = vmatpush1.msra.mxu0 %v8478_v14  ;;  %4963 = vmatpush1.msra.mxu1 %v8480_v18 }
0x1008   :  { %4893 = vmatprep.subr.mxu0 %v8482_v21  ;;  %4964 = vmatprep.subr.mxu1 %v8486_v23 }
0x1009   :  { %4894 = vmatpush1.msra.mxu0 %v8488_v10  ;;  %4965 = vmatpush1.msra.mxu1 %v9364_v61 }
0x100a   :  { %4895 = vmatprep.subr.mxu0 %v9365_v26  ;;  %4966 = vmatprep.subr.mxu1 %v9366_v31  ;;  %v9392_v31 = vld [vmem:[#allocation69_spill] sm:$0xff] }
0x100b   :  { %4896 = vmatpush1.msra.mxu0 %v9367_v19  ;;  %4967 = vmatpush1.msra.mxu1 %v9368_v60 }
0x100c   :  { %4897 = vmatprep.subr.mxu0 %v9369_v8  ;;  %4968 = vmatprep.subr.mxu1 %v9370_v58 }
0x100d   :  { %4898 = vmatpush1.msra.mxu0 %v9371_v11  ;;  %4969 = vmatpush1.msra.mxu1 %v9372_v1  ;;  %v9383_v1 = vld [vmem:[#allocation44_spill] sm:$0xff] }
0x100e   :  { %4899 = vmatprep.subr.mxu0 %v9373_v38  ;;  %4970 = vmatprep.subr.mxu1 %v9374_v45  ;;  %v9384_v38 = vmov 0.0   ;;  %v9385_v45 = vld [vmem:[#allocation55_spill] sm:$0xff] }
0x100f   :  { %4900 = vmatpush1.msra.mxu0 %v9375_v28  ;;  %4971 = vmatpush1.msra.mxu1 %v9376_v15  ;;  %v9386_v15 = vld [vmem:[#allocation56_spill] sm:$0xff] }
0x1010   :  { %4901 = vmatprep.subr.mxu0 %v9377_v30  ;;  %4972 = vmatprep.subr.mxu1 %v9378_v44  ;;  %v9387_v30 = vld [vmem:[#allocation57_spill] sm:$0xff]  ;;  %v9388_v44 = vld [vmem:[#allocation74_spill] sm:$0xff] }
0x1011   :  { %4902 = vmatpush1.msra.mxu0 %v9379_v20  ;;  %4973 = vmatpush1.msra.mxu1 %v9380_v41  ;;  %v9389_v20 = vld [vmem:[#allocation68_spill] sm:$0xff] }
0x1012   :  { %4903 = vmatprep.subr.mxu0 %v9381_v57  ;;  %4974 = vmatprep.subr.mxu1 %v9382_v24  ;;  %v3416_v28 = vadd.f32 %v9389_v20, %v9388_v44  ;;  %v9390_v57 = vld [vmem:[#allocation67_spill] sm:$0xff]  ;;  %v3529_v20 = vadd.f32 %v9392_v31, %v8192_v47 }
0x1013   :  { %4904 = vmatpush1.msra.mxu0 %v9383_v1  ;;  %4937 = vmatprep.mubr.f32.mxu0 %v9384_v38  ;;  %v3418_v11 = vadd.f32 %v9390_v57, %v8175_v13 }
0x1014   :  { %4975 = vmatpush1.msra.mxu1 %v9385_v45  ;;  %5008 = vmatprep.mubr.f32.mxu1 %v9384_v38 }
0x1015   :  { %5117 = vmatprep.subr.mxu0 %v9386_v15  ;;  %5188 = vmatprep.subr.mxu1 %v9387_v30  ;;  %v9391_v15 = vld [vmem:[#allocation70_spill] sm:$0xff] }
0x1016   :  { %v3531_v19 = vadd.f32 %v9391_v15, %v9316_v27 }
0x10b4   :  { %v4695_v41 = vpop.f32.mrf.mxu0  ;;  %v4766_v60 = vpop.f32.mrf.mxu1 }
0x10b5   :  { %v4771_v24 = vadd.f32 %v4695_v41, %v3416_v28  ;;  %v4773_v44 = vadd.f32 %v4766_v60, %v3529_v20  ;;  %v9419_v20 = vld [vmem:[#allocation73_spill] sm:$0xff] }
0x10b6   :  { %v4697_v58 = vpop.f32.mrf.mxu0  ;;  %v4768_v38 = vpop.f32.mrf.mxu1 }
0x10b7   :  { %v5813_v1 = vmul.f32 -1.442695, %v4771_v24  ;;  %v4772_v8 = vadd.f32 %v4697_v58, %v3418_v11  ;;  %v4774_v30 = vadd.f32 %v4768_v38, %v3531_v19 }
0x10b9   :  { %6261 = vpow2.f32 %v5813_v1  ;;  %v5814_v45 = vmul.f32 -1.442695, %v4772_v8  ;;  %v5815_v26 = vmul.f32 -1.442695, %v4774_v30 }
0x10bb   :  { %6263 = vpow2.f32 %v5814_v45 }
0x10bc   :  { %6265 = vtanh.f32 %v4773_v44  ;;  %v9418_v44 = vld [vmem:[#allocation78_spill] sm:$0xff] }
0x10bd   :  { %6267 = vpow2.f32 %v5815_v26  ;;  %v3537_v15 = vadd.f32 %v9418_v44, %v9316_v27  ;;  %v5350_v44 = vld [vmem:[#allocation19 + $0x1a8] sm:$0xff] }
0x10c6   :  { %v6262_v61 = vpop.eup %6261 }
0x10c7   :  { %v4778_v57 = vadd.f32 1.0, %v6262_v61 }
0x10c8   :  { %v6264_v28 = vpop.eup %6263 }
0x10c9   :  { %6269 = vrcp.f32 %v4778_v57  ;;  %v4784_v24 = vadd.f32 1.0, %v6264_v28  ;;  %v6266_v8 = vpop.eup %6265  ;;  %v3535_v57 = vadd.f32 %v9419_v20, %v8192_v47  ;;  %v5346_v20 = vld [vmem:[#allocation19 + $0x188] sm:$0xff] }
0x10ca   :  { %v6268_v58 = vpop.eup %6267 }
0x10cb   :  { %6271 = vrcp.f32 %v4784_v24  ;;  %v4791_v41 = vadd.f32 1.0, %v6268_v58 }
0x10cd   :  { %6273 = vrcp.f32 %v4791_v41 }
0x10d6   :  { %v6270_v11 = vpop.eup %6269 }
0x10d7   :  { %v4796_v1 = vmul.f32 %v6270_v11, %v6266_v8 }
0x10d8   :  { %v6272_v45 = vpop.eup %6271 }
0x10d9   :  { %v4795_v19 = vmul.f32 %v6272_v45, %v8569_v29 }
0x10da   :  { %v6274_v61 = vpop.eup %6273 }
0x10db   :  { %v8651_v38 = vadd.f32 %v4796_v1, %v4795_v19 }
0x10dd   :  { %6275 = vtanh.f32 %v8651_v38 }
0x10ea   :  { %v6276_v31 = vpop.eup %6275 }
0x10eb   :  { %v8654_v60 = vmul.f32 %v6276_v31, %v6274_v61 }
0x10ed   :  { %4938 = vmatmul.mubr.f32.vlgmr.msra.gmra.mxu0 %v8654_v60  ;;  %5009 = vmatmul.mubr.f32.vlgmr.msra.gmra.mxu1 %v8654_v60 }
0x10ee   :  { %5118 = vmatpush1.msra.mxu0 %v8290_v52  ;;  %5189 = vmatpush1.msra.mxu1 %v8292_v6  ;;  %v9396_v52 = vld [vmem:[#allocation64_spill] sm:$0xff]  ;;  %v9397_v6 = vld [vmem:[#allocation33_spill] sm:$0xff] }
0x10ef   :  { %5119 = vmatprep.subr.mxu0 %v8296_v50  ;;  %5190 = vmatprep.subr.mxu1 %v8298_v56  ;;  %v9398_v50 = vld [vmem:[#allocation63_spill] sm:$0xff] }
0x10f0   :  { %5120 = vmatpush1.msra.mxu0 %v8302_v42  ;;  %5191 = vmatpush1.msra.mxu1 %v8304_v53  ;;  %v9399_v56 = vld [vmem:[#allocation35_spill] sm:$0xff]  ;;  %v9400_v42 = vld [vmem:[#allocation32_spill] sm:$0xff]  ;;  %v9401_v53 = vld [vmem:[#allocation34_spill] sm:$0xff] }
0x10f1   :  { %5121 = vmatprep.subr.mxu0 %v8308_v34  ;;  %5192 = vmatprep.subr.mxu1 %v8310_v54  ;;  %v9402_v34 = vld [vmem:[#allocation37_spill] sm:$0xff]  ;;  %v9403_v54 = vld [vmem:[#allocation39_spill] sm:$0xff] }
0x10f2   :  { %5122 = vmatpush1.msra.mxu0 %v8314_v9  ;;  %5193 = vmatpush1.msra.mxu1 %v8316_v63  ;;  %v9404_v9 = vld [vmem:[#allocation36_spill] sm:$0xff]  ;;  %v9405_v63 = vld [vmem:[#allocation49_spill] sm:$0xff] }
0x10f3   :  { %5123 = vmatprep.subr.mxu0 %v8320_v39  ;;  %5194 = vmatprep.subr.mxu1 %v8322_v48  ;;  %v9406_v39 = vld [vmem:[#allocation41_spill] sm:$0xff]  ;;  %v9407_v48 = vld [vmem:[#allocation38_spill] sm:$0xff] }
0x10f4   :  { %5124 = vmatpush1.msra.mxu0 %v8326_v62  ;;  %5195 = vmatpush1.msra.mxu1 %v8328_v55  ;;  %v9408_v62 = vld [vmem:[#allocation40_spill] sm:$0xff]  ;;  %v9409_v55 = vld [vmem:[#allocation45_spill] sm:$0xff] }
0x10f5   :  { %5125 = vmatprep.subr.mxu0 %v8332_v49  ;;  %5196 = vmatprep.subr.mxu1 %v8334_v0  ;;  %v9410_v49 = vld [vmem:[#allocation43_spill] sm:$0xff]  ;;  %v9411_v0 = vld [vmem:[#allocation42_spill] sm:$0xff] }
0x10f6   :  { %5126 = vmatpush1.msra.mxu0 %v8338_v36  ;;  %5197 = vmatpush1.msra.mxu1 %v8340_v2  ;;  %v9412_v36 = vld [vmem:[#allocation44_spill] sm:$0xff]  ;;  %v9413_v2 = vmov 0.0  }
0x10f7   :  { %5127 = vmatprep.subr.mxu0 %v8344_v37  ;;  %5198 = vmatprep.subr.mxu1 %v8346_v43  ;;  %v9414_v37 = vld [vmem:[#allocation55_spill] sm:$0xff]  ;;  %v9415_v43 = vld [vmem:[#allocation74_spill] sm:$0xff] }
0x10f8   :  { %5128 = vmatpush1.msra.mxu0 %v9332_v25  ;;  %5199 = vmatpush1.msra.mxu1 %v9333_v22 }
0x10f9   :  { %5129 = vmatprep.subr.mxu0 %v9334_v32  ;;  %5200 = vmatprep.subr.mxu1 %v9335_v5 }
0x10fa   :  { %5130 = vmatpush1.msra.mxu0 %v9336_v4  ;;  %5201 = vmatpush1.msra.mxu1 %v8364_v3  ;;  %v9395_v3 = vld [vmem:[#allocation65_spill] sm:$0xff] }
0x10fb   :  { %5131 = vmatprep.subr.mxu0 %v8366_v40  ;;  %5202 = vmatprep.subr.mxu1 %v8370_v7  ;;  %v9393_v40 = vld [vmem:[#allocation30_spill] sm:$0xff] }
0x10fc   :  { %5132 = vmatpush1.msra.mxu0 %v8372_v35  ;;  %5203 = vmatpush1.msra.mxu1 %v8374_v33  ;;  %v9394_v7 = vld [vmem:[#allocation62_spill] sm:$0xff]  ;;  %v9416_v33 = vld [vmem:[#allocation72_spill] sm:$0xff] }
0x10fd   :  { %5133 = vmatprep.subr.mxu0 %v8378_v17  ;;  %5204 = vmatprep.subr.mxu1 %v8471_v46  ;;  %v3422_v35 = vadd.f32 %v9416_v33, %v9415_v43  ;;  %v9417_v17 = vld [vmem:[#allocation71_spill] sm:$0xff] }
0x10fe   :  { %5134 = vmatpush1.msra.mxu0 %v8380_v16  ;;  %5205 = vmatpush1.msra.mxu1 %v8473_v12 }
0x10ff   :  { %5135 = vmatprep.subr.mxu0 %v8384_v59  ;;  %5206 = vmatprep.subr.mxu1 %v8475_v51  ;;  %v3424_v59 = vadd.f32 %v9417_v17, %v8175_v13 }
0x1100   :  { %5136 = vmatpush1.msra.mxu0 %v8478_v14  ;;  %5207 = vmatpush1.msra.mxu1 %v8480_v18 }
0x1101   :  { %5137 = vmatprep.subr.mxu0 %v8482_v21  ;;  %5208 = vmatprep.subr.mxu1 %v8486_v23 }
0x1102   :  { %5138 = vmatpush1.msra.mxu0 %v8488_v10  ;;  %5209 = vmatpush1.msra.mxu1 %v9393_v40 }
0x1103   :  { %5139 = vmatprep.subr.mxu0 %v9394_v7  ;;  %5210 = vmatprep.subr.mxu1 %v9395_v3 }
0x1104   :  { %5140 = vmatpush1.msra.mxu0 %v9396_v52  ;;  %5211 = vmatpush1.msra.mxu1 %v9397_v6 }
0x1105   :  { %5141 = vmatprep.subr.mxu0 %v9398_v50  ;;  %5212 = vmatprep.subr.mxu1 %v9399_v56 }
0x1106   :  { %5142 = vmatpush1.msra.mxu0 %v9400_v42  ;;  %5213 = vmatpush1.msra.mxu1 %v9401_v53 }
0x1107   :  { %5143 = vmatprep.subr.mxu0 %v9402_v34  ;;  %5214 = vmatprep.subr.mxu1 %v9403_v54 }
0x1108   :  { %5144 = vmatpush1.msra.mxu0 %v9404_v9  ;;  %5215 = vmatpush1.msra.mxu1 %v9405_v63 }
0x1109   :  { %5145 = vmatprep.subr.mxu0 %v9406_v39  ;;  %5216 = vmatprep.subr.mxu1 %v9407_v48 }
0x110a   :  { %5146 = vmatpush1.msra.mxu0 %v9408_v62  ;;  %5217 = vmatpush1.msra.mxu1 %v9409_v55 }
0x110b   :  { %5147 = vmatprep.subr.mxu0 %v9410_v49  ;;  %5218 = vmatprep.subr.mxu1 %v9411_v0 }
0x110c   :  { %5148 = vmatpush1.msra.mxu0 %v9412_v36  ;;  %5181 = vmatprep.mubr.f32.mxu0 %v9413_v2 }
0x110d   :  { %5219 = vmatpush1.msra.mxu1 %v9414_v37  ;;  %5252 = vmatprep.mubr.f32.mxu1 %v9413_v2 }
0x11ad   :  { %v4939_v16 = vpop.f32.mrf.mxu0  ;;  %v5010_v4 = vpop.f32.mrf.mxu1 }
0x11ae   :  { %v5015_v25 = vadd.f32 %v4939_v16, %v3422_v35  ;;  %v5017_v28 = vadd.f32 %v5010_v4, %v3535_v57  ;;  %v5359_v4 = vld [vmem:[#allocation19 + $0x1f0] sm:$0xff] }
0x11af   :  { %v4941_v22 = vpop.f32.mrf.mxu0  ;;  %v5012_v26 = vpop.f32.mrf.mxu1  ;;  %v5351_v57 = vld [vmem:[#allocation19 + $0x1b0] sm:$0xff] }
0x11b0   :  { %v5816_v32 = vmul.f32 -1.442695, %v5015_v25  ;;  %v5016_v5 = vadd.f32 %v4941_v22, %v3424_v59  ;;  %v5018_v30 = vadd.f32 %v5012_v26, %v3537_v15  ;;  %v5358_v22 = vld [vmem:[#allocation19 + $0x1e8] sm:$0xff]  ;;  %v5356_v26 = vld [vmem:[#allocation19 + $0x1d8] sm:$0xff]  ;;  %v5355_v15 = vld [vmem:[#allocation19 + $0x1d0] sm:$0xff] }
0x11b1   :  { %5361 = vmatprep.subr.mxu0 %v5358_v22  ;;  %v5335_v22 = vld [vmem:[#allocation19 + $0x130] sm:$0xff] }
0x11b2   :  { %6277 = vpow2.f32 %v5816_v32  ;;  %v5817_v29 = vmul.f32 -1.442695, %v5016_v5  ;;  %v5818_v24 = vmul.f32 -1.442695, %v5018_v30  ;;  %v5360_v32 = vld [vmem:[#allocation19 + $0x1f8] sm:$0xff]  ;;  %v5354_v5 = vld [vmem:[#allocation19 + $0x1c8] sm:$0xff] }
0x11b3   :  { %5432 = vmatprep.subr.mxu1 %v5360_v32  ;;  %v5349_v30 = vld [vmem:[#allocation19 + $0x1a0] sm:$0xff]  ;;  %v5332_v32 = vld [vmem:[#allocation19 + $0x118] sm:$0xff] }
0x11b4   :  { %6279 = vpow2.f32 %v5817_v29  ;;  %v5353_v29 = vld [vmem:[#allocation19 + $0x1c0] sm:$0xff] }
0x11b5   :  { %6281 = vtanh.f32 %v5017_v28  ;;  %v5345_v28 = vld [vmem:[#allocation19 + $0x180] sm:$0xff] }
0x11b6   :  { %6283 = vpow2.f32 %v5818_v24  ;;  %v5348_v24 = vld [vmem:[#allocation19 + $0x198] sm:$0xff] }
0x11bf   :  { %v6278_v8 = vpop.eup %6277 }
0x11c0   :  { %v5022_v58 = vadd.f32 1.0, %v6278_v8  ;;  %v5342_v8 = vld [vmem:[#allocation19 + $0x168] sm:$0xff] }
0x11c1   :  { %v6280_v11 = vpop.eup %6279 }
0x11c2   :  { %6285 = vrcp.f32 %v5022_v58  ;;  %v5028_v1 = vadd.f32 1.0, %v6280_v11  ;;  %v6282_v45 = vpop.eup %6281  ;;  %v5347_v58 = vld [vmem:[#allocation19 + $0x190] sm:$0xff]  ;;  %v5341_v11 = vld [vmem:[#allocation19 + $0x160] sm:$0xff] }
0x11c3   :  { %v6284_v41 = vpop.eup %6283 }
0x11c4   :  { %6287 = vrcp.f32 %v5028_v1  ;;  %v5035_v33 = vadd.f32 1.0, %v6284_v41  ;;  %v5344_v1 = vld [vmem:[#allocation19 + $0x178] sm:$0xff]  ;;  %v5343_v41 = vld [vmem:[#allocation19 + $0x170] sm:$0xff] }
0x11c6   :  { %6289 = vrcp.f32 %v5035_v33  ;;  %v5339_v33 = vld [vmem:[#allocation19 + $0x150] sm:$0xff] }
0x11cf   :  { %v6286_v19 = vpop.eup %6285 }
0x11d0   :  { %v5040_v61 = vmul.f32 %v6286_v19, %v6282_v45  ;;  %v5338_v45 = vld [vmem:[#allocation19 + $0x148] sm:$0xff]  ;;  %v5337_v19 = vld [vmem:[#allocation19 + $0x140] sm:$0xff] }
0x11d1   :  { %v6288_v31 = vpop.eup %6287 }
0x11d2   :  { %v5039_v35 = vmul.f32 %v6288_v31, %v8651_v38  ;;  %v5357_v38 = vld [vmem:[#allocation19 + $0x1e0] sm:$0xff]  ;;  %v5334_v31 = vld [vmem:[#allocation19 + $0x128] sm:$0xff] }
0x11d3   :  { %v6290_v17 = vpop.eup %6289 }
0x11d4   :  { %v8731_v16 = vadd.f32 %v5040_v61, %v5039_v35  ;;  %v5340_v61 = vld [vmem:[#allocation19 + $0x158] sm:$0xff]  ;;  %v5333_v35 = vld [vmem:[#allocation19 + $0x120] sm:$0xff] }
0x11d6   :  { %6291 = vtanh.f32 %v8731_v16 }
0x11e3   :  { %v6292_v59 = vpop.eup %6291 }
0x11e4   :  { %v8734_v25 = vmul.f32 %v6292_v59, %v6290_v17  ;;  %v5336_v17 = vld [vmem:[#allocation19 + $0x138] sm:$0xff]  ;;  %v5330_v59 = vld [vmem:[#allocation19 + $0x108] sm:$0xff] }
0x11e6   :  { %5182 = vmatmul.mubr.f32.vlgmr.msra.gmra.mxu0 %v8734_v25  ;;  %5253 = vmatmul.mubr.f32.vlgmr.msra.gmra.mxu1 %v8734_v25 }
0x11e7   :  { %5425 = vmatprep.mubr.f32.mxu0 %v9413_v2  ;;  %5496 = vmatprep.mubr.f32.mxu1 %v9413_v2  ;;  %v5352_v2 = vld [vmem:[#allocation19 + $0x1b8] sm:$0xff] }
0x11e8   :  { %5362 = vmatpush1.msra.mxu0 %v5357_v38  ;;  %5433 = vmatpush1.msra.mxu1 %v5359_v4  ;;  %v5329_v38 = vld [vmem:[#allocation19 + $0x100] sm:$0xff]  ;;  %v5331_v4 = vld [vmem:[#allocation19 + $0x110] sm:$0xff] }
0x11e9   :  { %5363 = vmatprep.subr.mxu0 %v5354_v5  ;;  %5434 = vmatprep.subr.mxu1 %v5356_v26  ;;  %v5326_v5 = vld [vmem:[#allocation19 + $0xe8] sm:$0xff] }
0x11ea   :  { %5364 = vmatpush1.msra.mxu0 %v5353_v29  ;;  %5435 = vmatpush1.msra.mxu1 %v5355_v15  ;;  %v5325_v29 = vld [vmem:[#allocation19 + $0xe0] sm:$0xff]  ;;  %v5322_v26 = vld [vmem:[#allocation19 + $0xc8] sm:$0xff] }
0x11eb   :  { %5365 = vmatprep.subr.mxu0 %v5350_v44  ;;  %5436 = vmatprep.subr.mxu1 %v5352_v2 }
0x11ec   :  { %5366 = vmatpush1.msra.mxu0 %v5349_v30  ;;  %5437 = vmatpush1.msra.mxu1 %v5351_v57 }
0x11ed   :  { %5367 = vmatprep.subr.mxu0 %v5346_v20  ;;  %5438 = vmatprep.subr.mxu1 %v5348_v24  ;;  %v9424_v24 = vld [vmem:[#allocation79_spill] sm:$0xff] }
0x11ee   :  { %5368 = vmatpush1.msra.mxu0 %v5345_v28  ;;  %5439 = vmatpush1.msra.mxu1 %v5347_v58  ;;  %v5558_v28 = vld [vmem:[#allocation21 + $0x70] sm:$0xff]  ;;  %v5556_v58 = vld [vmem:[#allocation21 + $0x60] sm:$0xff] }
0x11ef   :  { %5369 = vmatprep.subr.mxu0 %v5342_v8  ;;  %5440 = vmatprep.subr.mxu1 %v5344_v1  ;;  %v5557_v8 = vld [vmem:[#allocation21 + $0x68] sm:$0xff] }
0x11f0   :  { %5370 = vmatpush1.msra.mxu0 %v5341_v11  ;;  %5441 = vmatpush1.msra.mxu1 %v5343_v41  ;;  %v5554_v11 = vld [vmem:[#allocation21 + $0x50] sm:$0xff]  ;;  %v5553_v1 = vld [vmem:[#allocation21 + $0x48] sm:$0xff]  ;;  %v5551_v41 = vld [vmem:[#allocation21 + $0x38] sm:$0xff] }
0x11f1   :  { %5371 = vmatprep.subr.mxu0 %v5338_v45  ;;  %5442 = vmatprep.subr.mxu1 %v5340_v61  ;;  %v5552_v45 = vld [vmem:[#allocation21 + $0x40] sm:$0xff]  ;;  %v5549_v61 = vld [vmem:[#allocation21 + $0x28] sm:$0xff] }
0x11f2   :  { %5372 = vmatpush1.msra.mxu0 %v5337_v19  ;;  %5443 = vmatpush1.msra.mxu1 %v5339_v33  ;;  %v5550_v19 = vld [vmem:[#allocation21 + $0x30] sm:$0xff]  ;;  %v5547_v33 = vld [vmem:[#allocation21 + $0x18] sm:$0xff] }
0x11f3   :  { %5373 = vmatprep.subr.mxu0 %v5334_v31  ;;  %5444 = vmatprep.subr.mxu1 %v5336_v17  ;;  %v5548_v31 = vld [vmem:[#allocation21 + $0x20] sm:$0xff]  ;;  %v5545_v17 = vld [vmem:[#allocation21 + $0x8] sm:$0xff] }
0x11f4   :  { %5374 = vmatpush1.msra.mxu0 %v5333_v35  ;;  %5445 = vmatpush1.msra.mxu1 %v5335_v22  ;;  %v5546_v35 = vld [vmem:[#allocation21 + $0x10] sm:$0xff]  ;;  %v9425_v22 = vld [vmem:[#allocation54_spill] sm:$0xff] }
0x11f5   :  { %5375 = vmatprep.subr.mxu0 %v5330_v59  ;;  %5446 = vmatprep.subr.mxu1 %v5332_v32  ;;  %v5544_v59 = vld [vmem:[#allocation21] sm:$0xff]  ;;  %v9427_v32 = vld [vmem:[#allocation58_spill] sm:$0xff] }
0x11f6   :  { %5376 = vmatpush1.msra.mxu0 %v5329_v38  ;;  %5447 = vmatpush1.msra.mxu1 %v5331_v4  ;;  %v9426_v38 = vld [vmem:[#allocation31_spill] sm:$0xff] }
0x11f7   :  { %5377 = vmatprep.subr.mxu0 %v5326_v5  ;;  %5448 = vmatprep.subr.mxu1 %v8471_v46  ;;  %v5559_v46 = vld [vmem:[#allocation21 + $0x78] sm:$0xff]  ;;  %v9428_v5 = vld [vmem:[#allocation77_spill] sm:$0xff] }
0x11f8   :  { %5378 = vmatpush1.msra.mxu0 %v5325_v29  ;;  %5449 = vmatpush1.msra.mxu1 %v8473_v12  ;;  %v9420_v12 = vld [vmem:[#allocation29_spill] sm:$0xff]  ;;  %v3434_v4 = vadd.f32 %v9428_v5, %v9415_v43 }
0x11f9   :  { %5379 = vmatprep.subr.mxu0 %v5322_v26  ;;  %5450 = vmatprep.subr.mxu1 %v8475_v51  ;;  %v3428_v51 = vadd.f32 %v9420_v12, %v9415_v43  ;;  %v9429_v26 = vld [vmem:[#allocation53_spill] sm:$0xff] }
0x11fa   :  { %5380 = vmatpush1.msra.mxu0 %v8478_v14  ;;  %5451 = vmatpush1.msra.mxu1 %v8480_v18  ;;  %v9421_v18 = vld [vmem:[#allocation52_spill] sm:$0xff] }
0x11fb   :  { %5381 = vmatprep.subr.mxu0 %v8482_v21  ;;  %5452 = vmatprep.subr.mxu1 %v8486_v23  ;;  %v3430_v21 = vadd.f32 %v9421_v18, %v8175_v13 }
0x11fc   :  { %5382 = vmatpush1.msra.mxu0 %v8488_v10  ;;  %5453 = vmatpush1.msra.mxu1 %v9393_v40 }
0x11fd   :  { %5383 = vmatprep.subr.mxu0 %v9394_v7  ;;  %5454 = vmatprep.subr.mxu1 %v9395_v3 }
0x11fe   :  { %5384 = vmatpush1.msra.mxu0 %v9396_v52  ;;  %5455 = vmatpush1.msra.mxu1 %v9397_v6 }
0x11ff   :  { %5385 = vmatprep.subr.mxu0 %v9398_v50  ;;  %5456 = vmatprep.subr.mxu1 %v9399_v56  ;;  %v9422_v50 = vld [vmem:[#allocation76_spill] sm:$0xff] }
0x1200   :  { %5386 = vmatpush1.msra.mxu0 %v9400_v42  ;;  %5457 = vmatpush1.msra.mxu1 %v9401_v53  ;;  %v3543_v56 = vadd.f32 %v9422_v50, %v9316_v27  ;;  %v9423_v53 = vld [vmem:[#allocation50_spill] sm:$0xff] }
0x1201   :  { %5387 = vmatprep.subr.mxu0 %v9402_v34  ;;  %5458 = vmatprep.subr.mxu1 %v9403_v54  ;;  %v3541_v34 = vadd.f32 %v9423_v53, %v8192_v47 }
0x1202   :  { %5388 = vmatpush1.msra.mxu0 %v9404_v9  ;;  %5459 = vmatpush1.msra.mxu1 %v9405_v63 }
0x1203   :  { %5389 = vmatprep.subr.mxu0 %v9406_v39  ;;  %5460 = vmatprep.subr.mxu1 %v9407_v48 }
0x1204   :  { %5390 = vmatpush1.msra.mxu0 %v9408_v62  ;;  %5461 = vmatpush1.msra.mxu1 %v9409_v55 }
0x1205   :  { %5391 = vmatprep.subr.mxu0 %v9410_v49  ;;  %5462 = vmatprep.subr.mxu1 %v9411_v0 }
0x1206   :  { %5392 = vmatpush1.msra.mxu0 %v9412_v36  ;;  %5463 = vmatpush1.msra.mxu1 %v9414_v37 }
0x1207   :  { %5994 = vmatprep.subr.mxu0 %v5559_v46 }
0x12a6   :  { %v5183_v14 = vpop.f32.mrf.mxu0  ;;  %v5254_v3 = vpop.f32.mrf.mxu1 }
0x12a7   :  { %v5259_v23 = vadd.f32 %v5183_v14, %v3428_v51  ;;  %v5261_v54 = vadd.f32 %v5254_v3, %v3541_v34 }
0x12a8   :  { %v5185_v10 = vpop.f32.mrf.mxu0  ;;  %v5256_v6 = vpop.f32.mrf.mxu1 }
0x12a9   :  { %v5819_v40 = vmul.f32 -1.442695, %v5259_v23  ;;  %v5260_v7 = vadd.f32 %v5185_v10, %v3430_v21  ;;  %v5262_v42 = vadd.f32 %v5256_v6, %v3543_v56 }
0x12ab   :  { %6293 = vpow2.f32 %v5819_v40  ;;  %v5820_v52 = vmul.f32 -1.442695, %v5260_v7  ;;  %v5821_v9 = vmul.f32 -1.442695, %v5262_v42  ;;  %v9431_v7 = vld [vmem:[#allocation75_spill] sm:$0xff] }
0x12ac   :  { %v3547_v43 = vadd.f32 %v9431_v7, %v8192_v47  ;;  %v5825_v42 = vld [vmem:[%s8826_s18] ss:$0 sm:$0xff]  ;;  %s6551_s18 = smov [#allocation22]  }
0x12ad   :  { %6295 = vpow2.f32 %v5820_v52  ;;  %v5826_v47 = vld [vmem:[%s8827_s19] ss:$0 sm:$0xff]  ;;  %s5700_s19 = sshll.u32 %s6551_s18, 4  ;;  %s5701_s19 = int_to_ptr.vmem [resolvable:$true] %s5700_s19 }
0x12ae   :  { %6297 = vtanh.f32 %v5261_v54  ;;  %s6505_s25 = scalar_lea.vmem %s5701_s19, 1024  ;;  %p6510_p4 = scmp.lt.s32.totalorder %s5701_s19, %s5701_s19 }
0x12af   :  { %6299 = vpow2.f32 %v5821_v9  ;;  %p6506_p3 = scmp.ne.s32.totalorder %s5701_s19, %s6505_s25  ;;  %p6511_p5 = scmp.lt.s32.totalorder %s6505_s25, %s6505_s25 }
0x12b1   :  { %p6512_p6 = por %p6511_p5, %p6510_p4 }
0x12b3   :  { %p6513_p7 = pnand %p6512_p6, %p6506_p3 }
0x12b8   :  { %v6294_v63 = vpop.eup %6293 }
0x12b9   :  { %v5266_v39 = vadd.f32 1.0, %v6294_v63 }
0x12ba   :  { %v6296_v48 = vpop.eup %6295 }
0x12bb   :  { %6301 = vrcp.f32 %v5266_v39  ;;  %v5272_v62 = vadd.f32 1.0, %v6296_v48  ;;  %v6298_v55 = vpop.eup %6297 }
0x12bc   :  { %v6300_v49 = vpop.eup %6299 }
0x12bd   :  { %6303 = vrcp.f32 %v5272_v62  ;;  %v5279_v44 = vadd.f32 1.0, %v6300_v49 }
0x12bf   :  { %6305 = vrcp.f32 %v5279_v44 }
0x12c8   :  { %v6302_v0 = vpop.eup %6301 }
0x12c9   :  { %v5284_v36 = vmul.f32 %v6302_v0, %v6298_v55 }
0x12ca   :  { %v6304_v37 = vpop.eup %6303 }
0x12cb   :  { %v5283_v15 = vmul.f32 %v6304_v37, %v8731_v16  ;;  %v5555_v16 = vld [vmem:[#allocation21 + $0x58] sm:$0xff] }
0x12cc   :  { %v6306_v2 = vpop.eup %6305 }
0x12cd   :  { %v8778_v30 = vadd.f32 %v5284_v36, %v5283_v15 }
0x12cf   :  { %6307 = vtanh.f32 %v8778_v30 }
0x12dc   :  { %v6308_v20 = vpop.eup %6307 }
0x12dd   :  { %v5287_v57 = vmul.f32 %v6308_v20, %v6306_v2 }
0x12df   :  { %5426 = vmatmul.mubr.f32.vlgmr.msra.gmra.mxu0 %v5287_v57  ;;  %5497 = vmatmul.mubr.f32.vlgmr.msra.gmra.mxu1 %v5287_v57 }
0x12e0   :  { %5995 = vmatpush3.msra.mxu0 %v5559_v46  ;;  %6026 = vmatprep.mubr.f32.mxu0 %v9424_v24  ;;  %v3436_v46 = vadd.f32 %v9429_v26, %v8175_v13 }
0x12e1   :  { %5996 = vmatprep.subr.mxu0 %v5558_v28 }
0x12e2   :  { %5997 = vmatpush3.msra.mxu0 %v5558_v28 }
0x12e3   :  { %5998 = vmatprep.subr.mxu0 %v5557_v8 }
0x12e4   :  { %5999 = vmatpush3.msra.mxu0 %v5557_v8 }
0x12e5   :  { %6000 = vmatprep.subr.mxu0 %v5556_v58 }
0x12e6   :  { %6001 = vmatpush3.msra.mxu0 %v5556_v58 }
0x12e7   :  { %6002 = vmatprep.subr.mxu0 %v5555_v16 }
0x12e8   :  { %6003 = vmatpush3.msra.mxu0 %v5555_v16 }
0x12e9   :  { %6004 = vmatprep.subr.mxu0 %v5554_v11 }
0x12ea   :  { %6005 = vmatpush3.msra.mxu0 %v5554_v11 }
0x12eb   :  { %6006 = vmatprep.subr.mxu0 %v5553_v1 }
0x12ec   :  { %6007 = vmatpush3.msra.mxu0 %v5553_v1 }
0x12ed   :  { %6008 = vmatprep.subr.mxu0 %v5552_v45 }
0x12ee   :  { %6009 = vmatpush3.msra.mxu0 %v5552_v45 }
0x12ef   :  { %6010 = vmatprep.subr.mxu0 %v5551_v41 }
0x12f0   :  { %6011 = vmatpush3.msra.mxu0 %v5551_v41 }
0x12f1   :  { %6012 = vmatprep.subr.mxu0 %v5550_v19 }
0x12f2   :  { %6013 = vmatpush3.msra.mxu0 %v5550_v19 }
0x12f3   :  { %6014 = vmatprep.subr.mxu0 %v5549_v61 }
0x12f4   :  { %6015 = vmatpush3.msra.mxu0 %v5549_v61 }
0x12f5   :  { %6016 = vmatprep.subr.mxu0 %v5548_v31 }
0x12f6   :  { %6017 = vmatpush3.msra.mxu0 %v5548_v31 }
0x12f7   :  { %6018 = vmatprep.subr.mxu0 %v5547_v33 }
0x12f8   :  { %6019 = vmatpush3.msra.mxu0 %v5547_v33 }
0x12f9   :  { %6020 = vmatprep.subr.mxu0 %v5546_v35 }
0x12fa   :  { %6021 = vmatpush3.msra.mxu0 %v5546_v35 }
0x12fb   :  { %6022 = vmatprep.subr.mxu0 %v5545_v17 }
0x12fc   :  { %6023 = vmatpush3.msra.mxu0 %v5545_v17 }
0x12fd   :  { %6024 = vmatprep.subr.mxu0 %v5544_v59 }
0x12fe   :  { %6025 = vmatpush3.msra.mxu0 %v5544_v59 }
0x12ff   :  { %6027 = vmatmul.mubr.f32.vlgmr.msra.gmra.mxu0 %v9425_v22 }
0x1300   :  { %6029 = vmatprep.mubr.f32.mxu0 %v9426_v38 }
0x1303   :  { %6030 = vmatmul.mubr.f32.gmra.mxu0 %v9427_v32 }
0x1304   :  { %6032 = vmatprep.mubr.f32.mxu0 %v8654_v60  ;;  %v9430_v60 = vld [vmem:[#allocation51_spill] sm:$0xff] }
0x1307   :  { %6033 = vmatmul.mubr.f32.gmra.mxu0 %v8734_v25  ;;  %v3549_v25 = vadd.f32 %v9430_v60, %v9316_v27 }
0x1308   :  { %6035 = vmatprep.mubr.f32.mxu0 %v5287_v57 }
0x139f   :  { %v5427_v29 = vpop.f32.mrf.mxu0  ;;  %v5498_v21 = vpop.f32.mrf.mxu1 }
0x13a0   :  { %v5503_v12 = vadd.f32 %v5427_v29, %v3434_v4  ;;  %v5505_v3 = vadd.f32 %v5498_v21, %v3547_v43 }
0x13a1   :  { %v5429_v51 = vpop.f32.mrf.mxu0  ;;  %v5500_v10 = vpop.f32.mrf.mxu1 }
0x13a2   :  { %v5822_v14 = vmul.f32 -1.442695, %v5503_v12  ;;  %v5504_v18 = vadd.f32 %v5429_v51, %v3436_v46  ;;  %v5506_v40 = vadd.f32 %v5500_v10, %v3549_v25 }
0x13a4   :  { %6309 = vpow2.f32 %v5822_v14  ;;  %v5823_v23 = vmul.f32 -1.442695, %v5504_v18  ;;  %v5824_v52 = vmul.f32 -1.442695, %v5506_v40 }
0x13a6   :  { %6311 = vpow2.f32 %v5823_v23 }
0x13a7   :  { %6313 = vtanh.f32 %v5505_v3 }
0x13a8   :  { %6315 = vpow2.f32 %v5824_v52 }
0x13b1   :  { %v6310_v6 = vpop.eup %6309 }
0x13b2   :  { %v5510_v13 = vadd.f32 1.0, %v6310_v6 }
0x13b3   :  { %v6312_v50 = vpop.eup %6311 }
0x13b4   :  { %6317 = vrcp.f32 %v5510_v13  ;;  %v5516_v56 = vadd.f32 1.0, %v6312_v50  ;;  %v6314_v53 = vpop.eup %6313 }
0x13b5   :  { %v6316_v34 = vpop.eup %6315 }
0x13b6   :  { %6319 = vrcp.f32 %v5516_v56  ;;  %v5523_v49 = vadd.f32 1.0, %v6316_v34 }
0x13b8   :  { %6321 = vrcp.f32 %v5523_v49 }
0x13bf   :  { %v6028_v27 = vpop.f32.mrf.mxu0 }
0x13c0   :  { %v5639_v54 = vadd.f32 %v6028_v27, %v5825_v42 }
0x13c1   :  { %v6318_v9 = vpop.eup %6317  ;;  %v5633_v63 = vpop.f32.mrf.mxu0 }
0x13c2   :  { %v5528_v39 = vmul.f32 %v6318_v9, %v6314_v53  ;;  %v5680_v48 = vmul.f32 %v5826_v47, %v5639_v54  ;;  %v5634_v62 = vadd.f32 %v5825_v42, %v5633_v63 }
0x13c3   :  { %v6320_v55 = vpop.eup %6319  ;;  %v6031_v0 = vpop.f32.mrf.mxu0 }
0x13c4   :  { %v5527_v36 = vmul.f32 %v6320_v55, %v8778_v30  ;;  %5688 = vst [vmem:[#allocation22 + $0x8] sm:$0xff] %v5680_v48  ;;  %v5679_v37 = vmul.f32 %v5826_v47, %v5634_v62  ;;  %v5649_v44 = vadd.f32 %v6031_v0, %v5825_v42 }
0x13c5   :  { %v5643_v15 = vpop.f32.mrf.mxu0  ;;  %v6322_v1 = vpop.eup %6321 }
0x13c6   :  { %5687 = vst [vmem:[#allocation22] sm:$0xff] %v5679_v37  ;;  %v5682_v2 = vmul.f32 %v5826_v47, %v5649_v44  ;;  %v5644_v20 = vadd.f32 %v5825_v42, %v5643_v15  ;;  %v5529_v57 = vadd.f32 %v5528_v39, %v5527_v36 }
0x13c7   :  { %v6034_v28 = vpop.f32.mrf.mxu0 }
0x13c8   :  { %5690 = vst [vmem:[#allocation22 + $0x18] sm:$0xff] %v5682_v2  ;;  %v5681_v24 = vmul.f32 %v5826_v47, %v5644_v20  ;;  %v5659_v8 = vadd.f32 %v6034_v28, %v5825_v42  ;;  %6323 = vtanh.f32 %v5529_v57 }
0x13c9   :  { %v5653_v58 = vpop.f32.mrf.mxu0 }
0x13ca   :  { %5689 = vst [vmem:[#allocation22 + $0x10] sm:$0xff] %v5681_v24  ;;  %v5684_v16 = vmul.f32 %v5826_v47, %v5659_v8  ;;  %v5654_v11 = vadd.f32 %v5825_v42, %v5653_v58 }
0x13cc   :  { %5692 = vst [vmem:[#allocation22 + $0x28] sm:$0xff] %v5684_v16  ;;  %v5683_v30 = vmul.f32 %v5826_v47, %v5654_v11 }
0x13ce   :  { %5691 = vst [vmem:[#allocation22 + $0x20] sm:$0xff] %v5683_v30 }
0x13d5   :  { %v6324_v45 = vpop.eup %6323 }
0x13d6   :  { %v5531_v41 = vmul.f32 %v6324_v45, %v6322_v1 }
0x13d8   :  { %6036 = vmatmul.mubr.f32.gmra.mxu0 %v5531_v41 }
0x1498   :  { %v6037_v19 = vpop.f32.mrf.mxu0 }
0x1499   :  { %v5669_v61 = vadd.f32 %v6037_v19, %v5825_v42 }
0x149a   :  { %v5663_v31 = vpop.f32.mrf.mxu0 }
0x149b   :  { %v5686_v33 = vmul.f32 %v5826_v47, %v5669_v61  ;;  %v5664_v35 = vadd.f32 %v5825_v42, %v5663_v31 }
0x149d   :  { %5694 = vst [vmem:[#allocation22 + $0x38] sm:$0xff] %v5686_v33  ;;  %v5685_v17 = vmul.f32 %v5826_v47, %v5664_v35 }
0x149f   :  { %5693 = vst [vmem:[#allocation22 + $0x30] sm:$0xff] %v5685_v17 }
0x14a0   :  { %6516 = shalt.err (!%p6513_p7)
}
0x14a1   :  { %5706 = dma.vmem_to_hbm [thread:$0]  %s5701_s19, 1024, %s8828_s20, [#allocation9], %s6539_s28, %s6539_s28, %s6540_s4  }
0x14a2   :  { %6535 = dma.done.wait [#allocation9], 1024  }
0x14a3   :  { %6536 = vsyncadd [#allocation9], 4294966272 }
0x14a4   :  { %5710 = vsyncpa [#allocation8], 1 }
0x14a5   :  { %5711 = vsyncpa [#allocation11], 1 }
0x14a6   :  { %5712 = vsyncpa [#allocation14], 1 }
0x14a7   :  { %5713 = vsyncpa [#allocation17], 1 }
0x14a8   :  { %5714 = vsyncpa [#allocation20], 1 }
0x14a9   :  { %5715 = vsyncpa [#allocation9], 1 }

</bundles_post_ra>
